<compile_context>
chip_gen: v7x
topology: tpu7x:2x2x1
jax: 0.10.0
libtpu: 0.0.40
codegen_flags: <defaults>
</compile_context>

<pallas_src>
import jax
import jax.numpy as jnp
from jax import lax
from jax.experimental import pallas as pl
from jax.experimental.pallas import tpu as pltpu

N_ACTIONS = 9


def _round_up(x, m):
    return (x + m - 1) // m * m


# ----------------------------------------------------------------------------
# Pallas kernel 1: per-batch conv GEMM    out[b] = tanh(W @ patches[b] + bias)
#   W: (out_c, K) bf16 resident    patches block: (1, K, S) bf16 (batch grid)
#   bias: (out_c, 1) f32 resident  out block: (1, out_c, S) bf16 (lane-dense)
# ----------------------------------------------------------------------------
def _conv_gemm_kernel(w_ref, p_ref, b_ref, o_ref):
    acc = jnp.dot(w_ref[...], p_ref[0], preferred_element_type=jnp.float32)
    o_ref[0] = jnp.tanh(acc + b_ref[...]).astype(o_ref.dtype)


def conv2d_tanh(x_nchw, w2d, b_col, kh, kw, stride, *, out_batch=None):
    """x_nchw: (B, C, H, W) bf16; w2d: (out_c, C*kh*kw) bf16; b_col: (out_c, 1) f32.
    Returns ((Bo, out_c, oh*ow) bf16, oh, ow).  If out_batch > B, rows >= B of
    the output are left unwritten (padding that later gets sliced away)."""
    B, C, H, W = x_nchw.shape
    oh = (H - kh) // stride + 1
    ow = (W - kw) // stride + 1
    S = oh * ow
    out_c, K = w2d.shape
    Bo = B if out_batch is None else out_batch

    # Single XLA op: patches (B, C*kh*kw, oh, ow), feature = c*kh*kw + i*kw + j
    # (matches PyTorch Conv2d weight.reshape(out_c, -1) ordering).
    patches = lax.conv_general_dilated_patches(
        x_nchw, (kh, kw), (stride, stride), "VALID",
        dimension_numbers=("NCHW", "OIHW", "NCHW")).reshape(B, K, S)

    y = pl.pallas_call(
        _conv_gemm_kernel,
        out_shape=jax.ShapeDtypeStruct((Bo, out_c, S), jnp.bfloat16),
        grid_spec=pltpu.PrefetchScalarGridSpec(
            num_scalar_prefetch=0,
            grid=(B,),
            in_specs=[
                pl.BlockSpec((out_c, K), lambda b: (0, 0)),      # resident W
                pl.BlockSpec((1, K, S), lambda b: (b, 0, 0)),    # streamed patches
                pl.BlockSpec((out_c, 1), lambda b: (0, 0)),      # resident bias
            ],
            out_specs=pl.BlockSpec((1, out_c, S), lambda b: (b, 0, 0)),
        ),
        compiler_params=pltpu.CompilerParams(
            dimension_semantics=("parallel",)),
    )(w2d, patches, b_col)
    return y, oh, ow


# ----------------------------------------------------------------------------
# Pallas kernel 2: FC head, hidden dim split across a leading "parallel" axis.
#   For hidden-half h:  hid_h = tanh(x @ W1[:, h] + b1[h])  (K streamed, tk tile)
#                       out_h = hid_h @ W2[h, :]            (fused finalize)
#   Final q-values = out_0 + out_1 + b2 (tiny fused XLA epilogue).
# ----------------------------------------------------------------------------
def _mlp_head_kernel(x_ref, w1_ref, b1_ref, w2_ref, o_ref, h_ref):
    k = pl.program_id(1)

    @pl.when(k == 0)
    def _():
        h_ref[...] = jnp.broadcast_to(b1_ref[...], h_ref.shape)

    h_ref[...] += jnp.dot(x_ref[...], w1_ref[...],
                          preferred_element_type=jnp.float32)

    @pl.when(k == pl.num_programs(1) - 1)
    def _():
        hidden = jnp.tanh(h_ref[...]).astype(jnp.bfloat16)
        o_ref[0] = jnp.dot(hidden, w2_ref[...],
                           preferred_element_type=jnp.float32)


def mlp_head(x, w1, b1, w2p, *, tk=5632, n_splits=2):
    """x: (Bp, K) bf16; w1: (K, H) bf16; b1: (1, H) f32; w2p: (H, N2p) bf16.
    Returns (n_splits, Bp, N2p) f32 partial FC2 outputs (no bias)."""
    Bp, K = x.shape
    H = w1.shape[1]
    N2p = w2p.shape[1]
    assert H % n_splits == 0 and K % tk == 0, (H, n_splits, K, tk)
    Hh = H // n_splits

    return pl.pallas_call(
        _mlp_head_kernel,
        out_shape=jax.ShapeDtypeStruct((n_splits, Bp, N2p), jnp.float32),
        grid_spec=pltpu.PrefetchScalarGridSpec(
            num_scalar_prefetch=0,
            grid=(n_splits, K // tk),
            in_specs=[
                pl.BlockSpec((Bp, tk), lambda h, k: (0, k)),    # activations
                pl.BlockSpec((tk, Hh), lambda h, k: (k, h)),    # streamed W1 half
                pl.BlockSpec((1, Hh), lambda h, k: (0, h)),     # resident b1 half
                pl.BlockSpec((Hh, N2p), lambda h, k: (h, 0)),   # resident W2 half
            ],
            out_specs=pl.BlockSpec((1, Bp, N2p), lambda h, k: (h, 0, 0)),
            scratch_shapes=[pltpu.VMEM((Bp, Hh), jnp.float32)],
        ),
        compiler_params=pltpu.CompilerParams(
            dimension_semantics=("parallel", "arbitrary"),
            vmem_limit_bytes=32 * 1024 * 1024),
    )(x, w1, b1, w2p)


# ----------------------------------------------------------------------------
# Parameters: deterministic init (PyTorch layout) + one-time prep.
# ----------------------------------------------------------------------------
def init_dqn_params(key):
    ks = jax.random.split(key, 10)

    def u(k, shape, fan_in):
        bound = 1.0 / jnp.sqrt(fan_in)
        return jax.random.uniform(k, shape, jnp.float32, -bound, bound)

    return {
        "conv1_w": u(ks[0], (32, 3, 8, 8), 3 * 8 * 8),
        "conv1_b": u(ks[1], (32,), 3 * 8 * 8),
        "conv2_w": u(ks[2], (64, 32, 4, 4), 32 * 4 * 4),
        "conv2_b": u(ks[3], (64,), 32 * 4 * 4),
        "conv3_w": u(ks[4], (64, 64, 3, 3), 64 * 3 * 3),
        "conv3_b": u(ks[5], (64,), 64 * 3 * 3),
        "f1_w": u(ks[6], (512, 22 * 16 * 64), 22 * 16 * 64),
        "f1_b": u(ks[7], (512,), 22 * 16 * 64),
        "f2_w": u(ks[8], (9, 512), 512),
        "f2_b": u(ks[9], (9,), 512),
    }


def prepare_params(params):
    """One-time weight prep (reshape / transpose / pad / bf16) outside the
    forward path, so the forward does zero per-call weight copies."""
    def conv(wname, bname):
        w = params[wname]
        oc = w.shape[0]
        return (w.reshape(oc, -1).astype(jnp.bfloat16),            # (oc, C*kh*kw)
                params[bname].reshape(oc, 1).astype(jnp.float32))

    c1w, c1b = conv("conv1_w", "conv1_b")
    c2w, c2b = conv("conv2_w", "conv2_b")
    c3w, c3b = conv("conv3_w", "conv3_b")

    f1_w = params["f1_w"].T.astype(jnp.bfloat16)                   # (22528, 512)
    f1_b = params["f1_b"].reshape(1, -1).astype(jnp.float32)       # (1, 512)

    n2 = params["f2_w"].shape[0]                                   # 9
    n2p = _round_up(n2, 128)
    f2_w = jnp.zeros((512, n2p), jnp.bfloat16).at[:, :n2].set(
        params["f2_w"].T.astype(jnp.bfloat16))                     # (512, 128) bf16
    f2_b = params["f2_b"].astype(jnp.float32)                      # (9,)

    return {
        "conv1_w": c1w, "conv1_b": c1b,
        "conv2_w": c2w, "conv2_b": c2b,
        "conv3_w": c3w, "conv3_b": c3b,
        "f1_w": f1_w, "f1_b": f1_b,
        "f2_w": f2_w, "f2_b": f2_b,
    }


# ----------------------------------------------------------------------------
# Forward pass.
# ----------------------------------------------------------------------------
def dqn_forward(prep, x, beta=1.0):
    # beta accepted for signature parity; reference hard-codes tanh_beta(., 1).
    B = x.shape[0]
    Bp = _round_up(B, 8)

    y = x.astype(jnp.bfloat16)                                     # NCHW bf16
    y, oh, ow = conv2d_tanh(y, prep["conv1_w"], prep["conv1_b"], 8, 8, 4)
    y, oh, ow = conv2d_tanh(y.reshape(B, 32, oh, ow),
                            prep["conv2_w"], prep["conv2_b"], 4, 4, 2)
    y, oh, ow = conv2d_tanh(y.reshape(B, 64, oh, ow),
                            prep["conv3_w"], prep["conv3_b"], 3, 3, 1,
                            out_batch=Bp)

    # Free reshape: (Bp, 64, 22*16) -> (Bp, 22528); feature = c*(oh*ow)+h*ow+w
    # which matches PyTorch x.view(B, -1) on the NCHW conv3 output.
    flat = y.reshape(Bp, -1)
    parts = mlp_head(flat, prep["f1_w"], prep["f1_b"], prep["f2_w"],
                     tk=5632, n_splits=2)
    # Tiny fused epilogue: sum hidden-half partials, add bias, drop padding.
    return parts[:, :B, :N_ACTIONS].sum(axis=0) + prep["f2_b"]


# ----------------------------------------------------------------------------
# Pure-JAX f32 reference (for a tolerance check against the bf16 kernels).
# ----------------------------------------------------------------------------
def dqn_reference(params, x):
    def conv(y, w, b, stride):
        y = lax.conv_general_dilated(y, w, (stride, stride), "VALID",
                                     dimension_numbers=("NCHW", "OIHW", "NCHW"))
        return jnp.tanh(y + b.reshape(1, -1, 1, 1))

    y = conv(x, params["conv1_w"], params["conv1_b"], 4)
    y = conv(y, params["conv2_w"], params["conv2_b"], 2)
    y = conv(y, params["conv3_w"], params["conv3_b"], 1)
    flat = y.reshape(y.shape[0], -1)
    h = jnp.tanh(flat @ params["f1_w"].T + params["f1_b"])
    return h @ params["f2_w"].T + params["f2_b"]


if __name__ == "__main__":
    key = jax.random.PRNGKey(0)
    pkey, xkey = jax.random.split(key)
    params = init_dqn_params(pkey)
    prep = prepare_params(params)          # one-time weight prep (not per forward)

    # Input spatial size dictated by the architecture (f1 expects 22*16*64):
    # H=204, W=156 -> conv1 50x38 -> conv2 24x18 -> conv3 22x16.
    x = jax.random.normal(xkey, (2, 3, 204, 156), jnp.float32)

    fwd = jax.jit(dqn_forward)
    out = jax.block_until_ready(fwd(prep, x))
    assert out.shape == (2, N_ACTIONS), out.shape
    assert bool(jnp.all(jnp.isfinite(out)))

    ref = dqn_reference(params, x)
    max_err = float(jnp.max(jnp.abs(out - ref)))
    assert max_err < 0.1, ("kernel vs f32 reference mismatch", max_err)
    print("KERNEL_OK")
</pallas_src>

<mosaic_0001>
module attributes {stable_mosaic.version = 11 : i64} {
  func.func @_conv_gemm_kernel(%arg0: i32, %arg1: memref<32x192xbf16, #tpu.memory_space<vmem>>, %arg2: memref<1x192x1900xbf16, #tpu.memory_space<vmem>>, %arg3: memref<32x1xf32, #tpu.memory_space<vmem>>, %arg4: memref<1x32x1900xbf16, #tpu.memory_space<vmem>>) attributes {dimension_semantics = [#tpu.dimension_semantics<parallel>], iteration_bounds = array<i64: 2>, scalar_prefetch = 0 : i64, scratch_operands = 0 : i64, tpu.core_type = #tpu.core_type<tc>, window_params = [{pipeline_mode = #tpu.pipeline_mode<synchronous>, transform_indices = @transform_0, window_bounds = array<i64: 32, 192>}, {transform_indices = @transform_1, window_bounds = array<i64: 1, 192, 1900>}, {pipeline_mode = #tpu.pipeline_mode<synchronous>, transform_indices = @transform_2, window_bounds = array<i64: 32, 1>}, {transform_indices = @transform_3, window_bounds = array<i64: 1, 32, 1900>}]} {
    %c0 = arith.constant 0 : index
    %c0_0 = arith.constant 0 : index
    %0 = vector.load %arg1[%c0, %c0_0] : memref<32x192xbf16, #tpu.memory_space<vmem>>, vector<32x192xbf16>
    %c0_1 = arith.constant 0 : index
    %c0_2 = arith.constant 0 : index
    %c0_3 = arith.constant 0 : index
    %1 = vector.load %arg2[%c0_1, %c0_2, %c0_3] : memref<1x192x1900xbf16, #tpu.memory_space<vmem>>, vector<1x192x1900xbf16>
    %2 = vector.shape_cast %1 : vector<1x192x1900xbf16> to vector<192x1900xbf16>
    %cst = arith.constant dense<0.000000e+00> : vector<32x1900xf32>
    %3 = tpu.matmul %0, %2, %cst {dimension_numbers = #tpu.dot_dimension_numbers<[1], [0], [0], [1], [0, 0, 1, 1], [], []>} : vector<32x192xbf16>, vector<192x1900xbf16>, vector<32x1900xf32> -> vector<32x1900xf32>
    %c0_4 = arith.constant 0 : index
    %c0_5 = arith.constant 0 : index
    %4 = vector.load %arg3[%c0_4, %c0_5] : memref<32x1xf32, #tpu.memory_space<vmem>>, vector<32x1xf32>
    %5 = vector.broadcast %4 : vector<32x1xf32> to vector<32x1900xf32>
    %6 = arith.addf %3, %5 : vector<32x1900xf32>
    %7 = math.tanh %6 : vector<32x1900xf32>
    %8 = arith.truncf %7 : vector<32x1900xf32> to vector<32x1900xbf16>
    %c0_6 = arith.constant 0 : index
    %c0_7 = arith.constant 0 : index
    %c0_8 = arith.constant 0 : index
    %9 = vector.load %arg4[%c0_6, %c0_7, %c0_8] : memref<1x32x1900xbf16, #tpu.memory_space<vmem>>, vector<1x32x1900xbf16>
    %10 = vector.shape_cast %9 : vector<1x32x1900xbf16> to vector<32x1900xbf16>
    %11 = vector.shape_cast %8 : vector<32x1900xbf16> to vector<1x32x1900xbf16>
    tpu.vector_store %arg4[%c0_6, %c0_7, %c0_8], %11 {strides = array<i32>} : memref<1x32x1900xbf16, #tpu.memory_space<vmem>>, vector<1x32x1900xbf16>,
    return
  }
  func.func @transform_0(%arg0: i32) -> (i32, i32) {
    %c0_i32 = arith.constant 0 : i32
    %c0_i32_0 = arith.constant 0 : i32
    %c0_i32_1 = arith.constant 0 : i32
    return %c0_i32, %c0_i32_0 : i32, i32
  }
  func.func @transform_1(%arg0: i32) -> (i32, i32, i32) {
    %c0_i32 = arith.constant 0 : i32
    %c0_i32_0 = arith.constant 0 : i32
    %c0_i32_1 = arith.constant 0 : i32
    return %arg0, %c0_i32, %c0_i32_0 : i32, i32, i32
  }
  func.func @transform_2(%arg0: i32) -> (i32, i32) {
    %c0_i32 = arith.constant 0 : i32
    %c0_i32_0 = arith.constant 0 : i32
    %c0_i32_1 = arith.constant 0 : i32
    return %c0_i32, %c0_i32_0 : i32, i32
  }
  func.func @transform_3(%arg0: i32) -> (i32, i32, i32) {
    %c0_i32 = arith.constant 0 : i32
    %c0_i32_0 = arith.constant 0 : i32
    %c0_i32_1 = arith.constant 0 : i32
    return %arg0, %c0_i32, %c0_i32_0 : i32, i32, i32
  }
}

module attributes {stable_mosaic.version = 11 : i64} {
  func.func @_conv_gemm_kernel(%arg0: i32, %arg1: memref<64x512xbf16, #tpu.memory_space<vmem>>, %arg2: memref<1x512x432xbf16, #tpu.memory_space<vmem>>, %arg3: memref<64x1xf32, #tpu.memory_space<vmem>>, %arg4: memref<1x64x432xbf16, #tpu.memory_space<vmem>>) attributes {dimension_semantics = [#tpu.dimension_semantics<parallel>], iteration_bounds = array<i64: 2>, scalar_prefetch = 0 : i64, scratch_operands = 0 : i64, tpu.core_type = #tpu.core_type<tc>, window_params = [{pipeline_mode = #tpu.pipeline_mode<synchronous>, transform_indices = @transform_0, window_bounds = array<i64: 64, 512>}, {transform_indices = @transform_1, window_bounds = array<i64: 1, 512, 432>}, {pipeline_mode = #tpu.pipeline_mode<synchronous>, transform_indices = @transform_2, window_bounds = array<i64: 64, 1>}, {transform_indices = @transform_3, window_bounds = array<i64: 1, 64, 432>}]} {
    %c0 = arith.constant 0 : index
    %c0_0 = arith.constant 0 : index
    %0 = vector.load %arg1[%c0, %c0_0] : memref<64x512xbf16, #tpu.memory_space<vmem>>, vector<64x512xbf16>
    %c0_1 = arith.constant 0 : index
    %c0_2 = arith.constant 0 : index
    %c0_3 = arith.constant 0 : index
    %1 = vector.load %arg2[%c0_1, %c0_2, %c0_3] : memref<1x512x432xbf16, #tpu.memory_space<vmem>>, vector<1x512x432xbf16>
    %2 = vector.shape_cast %1 : vector<1x512x432xbf16> to vector<512x432xbf16>
    %cst = arith.constant dense<0.000000e+00> : vector<64x432xf32>
    %3 = tpu.matmul %0, %2, %cst {dimension_numbers = #tpu.dot_dimension_numbers<[1], [0], [0], [1], [0, 0, 1, 1], [], []>} : vector<64x512xbf16>, vector<512x432xbf16>, vector<64x432xf32> -> vector<64x432xf32>
    %c0_4 = arith.constant 0 : index
    %c0_5 = arith.constant 0 : index
    %4 = vector.load %arg3[%c0_4, %c0_5] : memref<64x1xf32, #tpu.memory_space<vmem>>, vector<64x1xf32>
    %5 = vector.broadcast %4 : vector<64x1xf32> to vector<64x432xf32>
    %6 = arith.addf %3, %5 : vector<64x432xf32>
    %7 = math.tanh %6 : vector<64x432xf32>
    %8 = arith.truncf %7 : vector<64x432xf32> to vector<64x432xbf16>
    %c0_6 = arith.constant 0 : index
    %c0_7 = arith.constant 0 : index
    %c0_8 = arith.constant 0 : index
    %9 = vector.load %arg4[%c0_6, %c0_7, %c0_8] : memref<1x64x432xbf16, #tpu.memory_space<vmem>>, vector<1x64x432xbf16>
    %10 = vector.shape_cast %9 : vector<1x64x432xbf16> to vector<64x432xbf16>
    %11 = vector.shape_cast %8 : vector<64x432xbf16> to vector<1x64x432xbf16>
    tpu.vector_store %arg4[%c0_6, %c0_7, %c0_8], %11 {strides = array<i32>} : memref<1x64x432xbf16, #tpu.memory_space<vmem>>, vector<1x64x432xbf16>,
    return
  }
  func.func @transform_0(%arg0: i32) -> (i32, i32) {
    %c0_i32 = arith.constant 0 : i32
    %c0_i32_0 = arith.constant 0 : i32
    %c0_i32_1 = arith.constant 0 : i32
    return %c0_i32, %c0_i32_0 : i32, i32
  }
  func.func @transform_1(%arg0: i32) -> (i32, i32, i32) {
    %c0_i32 = arith.constant 0 : i32
    %c0_i32_0 = arith.constant 0 : i32
    %c0_i32_1 = arith.constant 0 : i32
    return %arg0, %c0_i32, %c0_i32_0 : i32, i32, i32
  }
  func.func @transform_2(%arg0: i32) -> (i32, i32) {
    %c0_i32 = arith.constant 0 : i32
    %c0_i32_0 = arith.constant 0 : i32
    %c0_i32_1 = arith.constant 0 : i32
    return %c0_i32, %c0_i32_0 : i32, i32
  }
  func.func @transform_3(%arg0: i32) -> (i32, i32, i32) {
    %c0_i32 = arith.constant 0 : i32
    %c0_i32_0 = arith.constant 0 : i32
    %c0_i32_1 = arith.constant 0 : i32
    return %arg0, %c0_i32, %c0_i32_0 : i32, i32, i32
  }
}

module attributes {stable_mosaic.version = 11 : i64} {
  func.func @_conv_gemm_kernel(%arg0: i32, %arg1: memref<64x576xbf16, #tpu.memory_space<vmem>>, %arg2: memref<1x576x352xbf16, #tpu.memory_space<vmem>>, %arg3: memref<64x1xf32, #tpu.memory_space<vmem>>, %arg4: memref<1x64x352xbf16, #tpu.memory_space<vmem>>) attributes {dimension_semantics = [#tpu.dimension_semantics<parallel>], iteration_bounds = array<i64: 2>, scalar_prefetch = 0 : i64, scratch_operands = 0 : i64, tpu.core_type = #tpu.core_type<tc>, window_params = [{pipeline_mode = #tpu.pipeline_mode<synchronous>, transform_indices = @transform_0, window_bounds = array<i64: 64, 576>}, {transform_indices = @transform_1, window_bounds = array<i64: 1, 576, 352>}, {pipeline_mode = #tpu.pipeline_mode<synchronous>, transform_indices = @transform_2, window_bounds = array<i64: 64, 1>}, {transform_indices = @transform_3, window_bounds = array<i64: 1, 64, 352>}]} {
    %c0 = arith.constant 0 : index
    %c0_0 = arith.constant 0 : index
    %0 = vector.load %arg1[%c0, %c0_0] : memref<64x576xbf16, #tpu.memory_space<vmem>>, vector<64x576xbf16>
    %c0_1 = arith.constant 0 : index
    %c0_2 = arith.constant 0 : index
    %c0_3 = arith.constant 0 : index
    %1 = vector.load %arg2[%c0_1, %c0_2, %c0_3] : memref<1x576x352xbf16, #tpu.memory_space<vmem>>, vector<1x576x352xbf16>
    %2 = vector.shape_cast %1 : vector<1x576x352xbf16> to vector<576x352xbf16>
    %cst = arith.constant dense<0.000000e+00> : vector<64x352xf32>
    %3 = tpu.matmul %0, %2, %cst {dimension_numbers = #tpu.dot_dimension_numbers<[1], [0], [0], [1], [0, 0, 1, 1], [], []>} : vector<64x576xbf16>, vector<576x352xbf16>, vector<64x352xf32> -> vector<64x352xf32>
    %c0_4 = arith.constant 0 : index
    %c0_5 = arith.constant 0 : index
    %4 = vector.load %arg3[%c0_4, %c0_5] : memref<64x1xf32, #tpu.memory_space<vmem>>, vector<64x1xf32>
    %5 = vector.broadcast %4 : vector<64x1xf32> to vector<64x352xf32>
    %6 = arith.addf %3, %5 : vector<64x352xf32>
    %7 = math.tanh %6 : vector<64x352xf32>
    %8 = arith.truncf %7 : vector<64x352xf32> to vector<64x352xbf16>
    %c0_6 = arith.constant 0 : index
    %c0_7 = arith.constant 0 : index
    %c0_8 = arith.constant 0 : index
    %9 = vector.load %arg4[%c0_6, %c0_7, %c0_8] : memref<1x64x352xbf16, #tpu.memory_space<vmem>>, vector<1x64x352xbf16>
    %10 = vector.shape_cast %9 : vector<1x64x352xbf16> to vector<64x352xbf16>
    %11 = vector.shape_cast %8 : vector<64x352xbf16> to vector<1x64x352xbf16>
    tpu.vector_store %arg4[%c0_6, %c0_7, %c0_8], %11 {strides = array<i32>} : memref<1x64x352xbf16, #tpu.memory_space<vmem>>, vector<1x64x352xbf16>,
    return
  }
  func.func @transform_0(%arg0: i32) -> (i32, i32) {
    %c0_i32 = arith.constant 0 : i32
    %c0_i32_0 = arith.constant 0 : i32
    %c0_i32_1 = arith.constant 0 : i32
    return %c0_i32, %c0_i32_0 : i32, i32
  }
  func.func @transform_1(%arg0: i32) -> (i32, i32, i32) {
    %c0_i32 = arith.constant 0 : i32
    %c0_i32_0 = arith.constant 0 : i32
    %c0_i32_1 = arith.constant 0 : i32
    return %arg0, %c0_i32, %c0_i32_0 : i32, i32, i32
  }
  func.func @transform_2(%arg0: i32) -> (i32, i32) {
    %c0_i32 = arith.constant 0 : i32
    %c0_i32_0 = arith.constant 0 : i32
    %c0_i32_1 = arith.constant 0 : i32
    return %c0_i32, %c0_i32_0 : i32, i32
  }
  func.func @transform_3(%arg0: i32) -> (i32, i32, i32) {
    %c0_i32 = arith.constant 0 : i32
    %c0_i32_0 = arith.constant 0 : i32
    %c0_i32_1 = arith.constant 0 : i32
    return %arg0, %c0_i32, %c0_i32_0 : i32, i32, i32
  }
}

module attributes {stable_mosaic.version = 11 : i64} {
  func.func @_mlp_head_kernel(%arg0: i32, %arg1: i32, %arg2: memref<8x5632xbf16, #tpu.memory_space<vmem>>, %arg3: memref<5632x256xbf16, #tpu.memory_space<vmem>>, %arg4: memref<1x256xf32, #tpu.memory_space<vmem>>, %arg5: memref<256x128xbf16, #tpu.memory_space<vmem>>, %arg6: memref<1x8x128xf32, #tpu.memory_space<vmem>>, %arg7: memref<8x256xf32, #tpu.memory_space<vmem>>) attributes {dimension_semantics = [#tpu.dimension_semantics<parallel>, #tpu.dimension_semantics<arbitrary>], iteration_bounds = array<i64: 2, 4>, scalar_prefetch = 0 : i64, scratch_operands = 1 : i64, tpu.core_type = #tpu.core_type<tc>, window_params = [{transform_indices = @transform_0, window_bounds = array<i64: 8, 5632>}, {transform_indices = @transform_1, window_bounds = array<i64: 5632, 256>}, {transform_indices = @transform_2, window_bounds = array<i64: 1, 256>}, {transform_indices = @transform_3, window_bounds = array<i64: 256, 128>}, {transform_indices = @transform_4, window_bounds = array<i64: 1, 8, 128>}]} {
    %c0_i32 = arith.constant 0 : i32
    %0 = arith.cmpi eq, %arg1, %c0_i32 : i32
    %1 = arith.extui %0 : i1 to i32
    %c0_i32_0 = arith.constant 0 : i32
    %2 = arith.cmpi ne, %1, %c0_i32_0 : i32
    scf.if %2 {
      %c0_9 = arith.constant 0 : index
      %c0_10 = arith.constant 0 : index
      %12 = vector.load %arg4[%c0_9, %c0_10] : memref<1x256xf32, #tpu.memory_space<vmem>>, vector<1x256xf32>
      %13 = vector.shape_cast %12 : vector<1x256xf32> to vector<1x256xf32>
      %14 = vector.broadcast %13 : vector<1x256xf32> to vector<8x256xf32>
      %c0_11 = arith.constant 0 : index
      %c0_12 = arith.constant 0 : index
      %15 = vector.load %arg7[%c0_11, %c0_12] : memref<8x256xf32, #tpu.memory_space<vmem>>, vector<8x256xf32>
      tpu.vector_store %arg7[%c0_11, %c0_12], %14 {strides = array<i32>} : memref<8x256xf32, #tpu.memory_space<vmem>>, vector<8x256xf32>,
    } else {
    }
    %c0 = arith.constant 0 : index
    %c0_1 = arith.constant 0 : index
    %3 = vector.load %arg7[%c0, %c0_1] : memref<8x256xf32, #tpu.memory_space<vmem>>, vector<8x256xf32>
    %c0_2 = arith.constant 0 : index
    %c0_3 = arith.constant 0 : index
    %4 = vector.load %arg2[%c0_2, %c0_3] : memref<8x5632xbf16, #tpu.memory_space<vmem>>, vector<8x5632xbf16>
    %c0_4 = arith.constant 0 : index
    %c0_5 = arith.constant 0 : index
    %5 = vector.load %arg3[%c0_4, %c0_5] : memref<5632x256xbf16, #tpu.memory_space<vmem>>, vector<5632x256xbf16>
    %cst = arith.constant dense<0.000000e+00> : vector<8x256xf32>
    %6 = tpu.matmul %4, %5, %cst {dimension_numbers = #tpu.dot_dimension_numbers<[1], [0], [0], [1], [0, 0, 1, 1], [], []>} : vector<8x5632xbf16>, vector<5632x256xbf16>, vector<8x256xf32> -> vector<8x256xf32>
    %7 = arith.addf %3, %6 : vector<8x256xf32>
    %c0_6 = arith.constant 0 : index
    %c0_7 = arith.constant 0 : index
    %8 = vector.load %arg7[%c0_6, %c0_7] : memref<8x256xf32, #tpu.memory_space<vmem>>, vector<8x256xf32>
    tpu.vector_store %arg7[%c0_6, %c0_7], %7 {strides = array<i32>} : memref<8x256xf32, #tpu.memory_space<vmem>>, vector<8x256xf32>,
    %c3_i32 = arith.constant 3 : i32
    %9 = arith.cmpi eq, %arg1, %c3_i32 : i32
    %10 = arith.extui %9 : i1 to i32
    %c0_i32_8 = arith.constant 0 : i32
    %11 = arith.cmpi ne, %10, %c0_i32_8 : i32
    scf.if %11 {
      %c0_9 = arith.constant 0 : index
      %c0_10 = arith.constant 0 : index
      %12 = vector.load %arg7[%c0_9, %c0_10] : memref<8x256xf32, #tpu.memory_space<vmem>>, vector<8x256xf32>
      %13 = math.tanh %12 : vector<8x256xf32>
      %14 = arith.truncf %13 : vector<8x256xf32> to vector<8x256xbf16>
      %c0_11 = arith.constant 0 : index
      %c0_12 = arith.constant 0 : index
      %15 = vector.load %arg5[%c0_11, %c0_12] : memref<256x128xbf16, #tpu.memory_space<vmem>>, vector<256x128xbf16>
      %cst_13 = arith.constant dense<0.000000e+00> : vector<8x128xf32>
      %16 = tpu.matmul %14, %15, %cst_13 {dimension_numbers = #tpu.dot_dimension_numbers<[1], [0], [0], [1], [0, 0, 1, 1], [], []>} : vector<8x256xbf16>, vector<256x128xbf16>, vector<8x128xf32> -> vector<8x128xf32>
      %c0_14 = arith.constant 0 : index
      %c0_15 = arith.constant 0 : index
      %c0_16 = arith.constant 0 : index
      %17 = vector.load %arg6[%c0_14, %c0_15, %c0_16] : memref<1x8x128xf32, #tpu.memory_space<vmem>>, vector<1x8x128xf32>
      %18 = vector.shape_cast %17 : vector<1x8x128xf32> to vector<8x128xf32>
      %19 = vector.shape_cast %16 : vector<8x128xf32> to vector<1x8x128xf32>
      tpu.vector_store %arg6[%c0_14, %c0_15, %c0_16], %19 {strides = array<i32>} : memref<1x8x128xf32, #tpu.memory_space<vmem>>, vector<1x8x128xf32>,
    } else {
    }
    return
  }
  func.func @transform_0(%arg0: i32, %arg1: i32) -> (i32, i32) {
    %c0_i32 = arith.constant 0 : i32
    %c0_i32_0 = arith.constant 0 : i32
    return %c0_i32, %arg1 : i32, i32
  }
  func.func @transform_1(%arg0: i32, %arg1: i32) -> (i32, i32) {
    %c0_i32 = arith.constant 0 : i32
    return %arg1, %arg0 : i32, i32
  }
  func.func @transform_2(%arg0: i32, %arg1: i32) -> (i32, i32) {
    %c0_i32 = arith.constant 0 : i32
    %c0_i32_0 = arith.constant 0 : i32
    return %c0_i32, %arg0 : i32, i32
  }
  func.func @transform_3(%arg0: i32, %arg1: i32) -> (i32, i32) {
    %c0_i32 = arith.constant 0 : i32
    %c0_i32_0 = arith.constant 0 : i32
    return %arg0, %c0_i32 : i32, i32
  }
  func.func @transform_4(%arg0: i32, %arg1: i32) -> (i32, i32, i32) {
    %c0_i32 = arith.constant 0 : i32
    %c0_i32_0 = arith.constant 0 : i32
    %c0_i32_1 = arith.constant 0 : i32
    return %arg0, %c0_i32, %c0_i32_0 : i32, i32, i32
  }
}

</mosaic_0001>

<bundles_post_ra>
// kernel: dqn_forward.4
= control target key start
LH: loop header
LB: loop body
LE: loop exit
PB: predicated region body
PF: predicated region fallthrough
CT: control target
= control target key end

     0   :  { %s2787_s12 = smov 0   ;;  %s3191_s0 = inlined_call_operand.vmem [shape: bf16[32,192], index: 0, kind: input, shape index: {}]   ;;  %s3192_s1 = inlined_call_operand.vmem [shape: bf16[2,192,1900], index: 1, kind: input, shape index: {}]   ;;  %s3193_s2 = inlined_call_operand.vmem [shape: f32[32,1], index: 2, kind: input, shape index: {}]   ;;  %s3194_s3 = inlined_call_operand.vmem [shape: bf16[2,32,1900], index: 3, kind: output, shape index: {}]  }
   0x1 LB: > { %s2081_s13 = sadd.s32 4294967295, %s2764_s12   ;;  %p2085_p0 = scmp.ge.s32.totalorder %s2764_s12, 1  ;;  %s2764_s12 = sphi %s2787_s12, %s13_s12  }
   0x2   : > { %p137_p1 = scmp.lt.s32.totalorder %s2764_s12, 3 }
   0x4   : > { %p138_p2 = pnand %p2085_p0, %p137_p1 }
   0x5   : > { %p161_p3 = scmp.lt.s32.totalorder (!%p138_p2), %s2081_s13, 1  ;;  %v2798_v0 = vld [vmem:[%s3191_s0 + $0x4] ss:$8 sps:$4 sm:$0xff] (!%p138_p2)   ;;  %vm1322_vm0 = vcmask (!%p138_p2), 523264   ;;  %v2766_v5 = vmov (!%p138_p2), 0   ;;  %vm2000_vm1 = vcmask (!%p138_p2), 879616  }
   0x6   : > { %141 = sbr.rel (%p138_p2) target bundleno = 451 (0x1c3), region = 32  ;;  %2272 = vmatprep.mubr.msk.bf16.mxu0 (!%p138_p2), %vm1322_vm0, %v2798_v0  ;;  %2274 = vmatprep.mubr.msk.bf16.mxu1 (!%p138_p2), %vm1322_vm0, %v2798_v0  ;;  %v2867_v52 = vld [vmem:[%s3191_s0] ss:$8 sps:$4 sm:$0xff] (!%p138_p2)   ;;  %v2876_v57 = vld [vmem:[%s3191_s0 + $0x14] ss:$8 sps:$4 sm:$0xff] (!%p138_p2)  }
   0x7   : > { %2365 = vset.pattern.permute.xlu0 (!%p138_p2), %v2766_v5  ;;  %2366 = vset.pattern.permute.xlu1 (!%p138_p2), %v2766_v5  ;;  %v2889_v62 = vld [vmem:[%s3191_s0 + $0x10] ss:$8 sps:$4 sm:$0xff] (!%p138_p2)  }
   0xd   : > { %s3196_s13 = smov (!%p161_p3, %s2081_s13), 1 }
   0xe   : > { %s2354_s16 = smul.u32 1440, %s3196_s13 }
   0xf   : > { %s2355_s9 = smul.u32 240, %s3196_s13 }
  0x10   : > { %s2810_s19 = scalar_lea.vmem %s3192_s1, %s2354_s16 }
  0x11   : > { %v2367_v1 = vld [vmem:[%s2810_s19 + $0x4] ss:$60 sps:$4 sm:$0xff]   ;;  %v2369_v2 = vld [vmem:[%s2810_s19 + $0xc] ss:$60 sps:$4 sm:$0xff]   ;;  %v2373_v6 = vld [vmem:[%s2810_s19 + $0x7c] ss:$60 sps:$4 sm:$0xff]   ;;  %s3106_s13 = scalar_lea.vmem %s3194_s3, %s2355_s9 }
  0x12   : > { %1329 = vmatprep.subr.bf16.mxu0 %v2367_v1  ;;  %v2371_v3 = vld [vmem:[%s2810_s19] ss:$60 sps:$4 sm:$0xff]   ;;  %v2372_v4 = vld [vmem:[%s2810_s19 + $0x8] ss:$60 sps:$4 sm:$0xff]   ;;  %1382 = vmatprep.subr.bf16.mxu1 %v2369_v2  ;;  %v2377_v8 = vld [vmem:[%s2810_s19 + $0x78] ss:$60 sps:$4 sm:$0xff]  }
  0x13   : > { %1330 = vmatpush1.bf16.msra.mxu0 %v2371_v3  ;;  %1383 = vmatpush1.bf16.msra.mxu1 %v2372_v4  ;;  %v2375_v7 = vld [vmem:[%s2810_s19 + $0x84] ss:$60 sps:$4 sm:$0xff]   ;;  %v2379_v10 = vld [vmem:[%s2810_s19 + $0xf4] ss:$60 sps:$4 sm:$0xff]   ;;  %v2381_v11 = vld [vmem:[%s2810_s19 + $0xfc] ss:$60 sps:$4 sm:$0xff]  }
  0x14   : > { %1331 = vmatprep.subr.bf16.mxu0 %v2373_v6  ;;  %v2378_v9 = vld [vmem:[%s2810_s19 + $0x80] ss:$60 sps:$4 sm:$0xff]   ;;  %1384 = vmatprep.subr.bf16.mxu1 %v2375_v7  ;;  %v2383_v12 = vld [vmem:[%s2810_s19 + $0xf0] ss:$60 sps:$4 sm:$0xff]   ;;  %v2384_v13 = vld [vmem:[%s2810_s19 + $0xf8] ss:$60 sps:$4 sm:$0xff]  }
  0x15   : > { %v2385_v14 = vld [vmem:[%s2810_s19 + $0x16c] ss:$60 sps:$4 sm:$0xff]   ;;  %v2387_v15 = vld [vmem:[%s2810_s19 + $0x174] ss:$60 sps:$4 sm:$0xff]   ;;  %v2391_v18 = vld [vmem:[%s2810_s19 + $0x1e4] ss:$60 sps:$4 sm:$0xff]  }
  0x16   : > { %v2389_v16 = vld [vmem:[%s2810_s19 + $0x168] ss:$60 sps:$4 sm:$0xff]   ;;  %v2390_v17 = vld [vmem:[%s2810_s19 + $0x170] ss:$60 sps:$4 sm:$0xff]   ;;  %v2395_v20 = vld [vmem:[%s2810_s19 + $0x1e0] ss:$60 sps:$4 sm:$0xff]  }
  0x17   : > { %1332 = vmatpush1.bf16.msra.mxu0 %v2377_v8  ;;  %1385 = vmatpush1.bf16.msra.mxu1 %v2378_v9  ;;  %v2393_v19 = vld [vmem:[%s2810_s19 + $0x1ec] ss:$60 sps:$4 sm:$0xff]   ;;  %v2397_v22 = vld [vmem:[%s2810_s19 + $0x25c] ss:$60 sps:$4 sm:$0xff]   ;;  %v2399_v23 = vld [vmem:[%s2810_s19 + $0x264] ss:$60 sps:$4 sm:$0xff]  }
  0x18   : > { %1333 = vmatprep.subr.bf16.mxu0 %v2379_v10  ;;  %1386 = vmatprep.subr.bf16.mxu1 %v2381_v11  ;;  %v2396_v21 = vld [vmem:[%s2810_s19 + $0x1e8] ss:$60 sps:$4 sm:$0xff]   ;;  %v2401_v24 = vld [vmem:[%s2810_s19 + $0x258] ss:$60 sps:$4 sm:$0xff]   ;;  %v2402_v25 = vld [vmem:[%s2810_s19 + $0x260] ss:$60 sps:$4 sm:$0xff]  }
  0x19   : > { %v2403_v26 = vld [vmem:[%s2810_s19 + $0x2d4] ss:$60 sps:$4 sm:$0xff]   ;;  %v2405_v27 = vld [vmem:[%s2810_s19 + $0x2dc] ss:$60 sps:$4 sm:$0xff]   ;;  %v2409_v30 = vld [vmem:[%s2810_s19 + $0x34c] ss:$60 sps:$4 sm:$0xff]  }
  0x1a   : > { %v2407_v28 = vld [vmem:[%s2810_s19 + $0x2d0] ss:$60 sps:$4 sm:$0xff]   ;;  %v2408_v29 = vld [vmem:[%s2810_s19 + $0x2d8] ss:$60 sps:$4 sm:$0xff]   ;;  %v2413_v32 = vld [vmem:[%s2810_s19 + $0x348] ss:$60 sps:$4 sm:$0xff]  }
  0x1b   : > { %1334 = vmatpush1.bf16.msra.mxu0 %v2383_v12  ;;  %1387 = vmatpush1.bf16.msra.mxu1 %v2384_v13  ;;  %v2411_v31 = vld [vmem:[%s2810_s19 + $0x354] ss:$60 sps:$4 sm:$0xff]   ;;  %v2415_v34 = vld [vmem:[%s2810_s19 + $0x3c4] ss:$60 sps:$4 sm:$0xff]   ;;  %v2417_v35 = vld [vmem:[%s2810_s19 + $0x3cc] ss:$60 sps:$4 sm:$0xff]  }
  0x1c   : > { %1335 = vmatprep.subr.bf16.mxu0 %v2385_v14  ;;  %1388 = vmatprep.subr.bf16.mxu1 %v2387_v15  ;;  %v2414_v33 = vld [vmem:[%s2810_s19 + $0x350] ss:$60 sps:$4 sm:$0xff]   ;;  %v2419_v36 = vld [vmem:[%s2810_s19 + $0x3c0] ss:$60 sps:$4 sm:$0xff]   ;;  %v2420_v37 = vld [vmem:[%s2810_s19 + $0x3c8] ss:$60 sps:$4 sm:$0xff]  }
  0x1d   : > { %v2421_v38 = vld [vmem:[%s2810_s19 + $0x43c] ss:$60 sps:$4 sm:$0xff]   ;;  %v2423_v39 = vld [vmem:[%s2810_s19 + $0x444] ss:$60 sps:$4 sm:$0xff]   ;;  %v2427_v42 = vld [vmem:[%s2810_s19 + $0x4b4] ss:$60 sps:$4 sm:$0xff]  }
  0x1e   : > { %v2425_v40 = vld [vmem:[%s2810_s19 + $0x438] ss:$60 sps:$4 sm:$0xff]   ;;  %v2426_v41 = vld [vmem:[%s2810_s19 + $0x440] ss:$60 sps:$4 sm:$0xff]   ;;  %v2431_v44 = vld [vmem:[%s2810_s19 + $0x4b0] ss:$60 sps:$4 sm:$0xff]  }
  0x1f   : > { %1336 = vmatpush1.bf16.msra.mxu0 %v2389_v16  ;;  %1389 = vmatpush1.bf16.msra.mxu1 %v2390_v17  ;;  %v2429_v43 = vld [vmem:[%s2810_s19 + $0x4bc] ss:$60 sps:$4 sm:$0xff]   ;;  %v2433_v46 = vld [vmem:[%s2810_s19 + $0x52c] ss:$60 sps:$4 sm:$0xff]   ;;  %v2435_v47 = vld [vmem:[%s2810_s19 + $0x534] ss:$60 sps:$4 sm:$0xff]  }
  0x20   : > { %1337 = vmatprep.subr.bf16.mxu0 %v2391_v18  ;;  %1390 = vmatprep.subr.bf16.mxu1 %v2393_v19  ;;  %v2432_v45 = vld [vmem:[%s2810_s19 + $0x4b8] ss:$60 sps:$4 sm:$0xff]   ;;  %v2437_v48 = vld [vmem:[%s2810_s19 + $0x528] ss:$60 sps:$4 sm:$0xff]   ;;  %v2438_v49 = vld [vmem:[%s2810_s19 + $0x530] ss:$60 sps:$4 sm:$0xff]  }
  0x21   : > { %v2444_v50 = vld [vmem:[%s2810_s19 + $0x14] ss:$60 sps:$4 sm:$0xff]   ;;  %v2447_v51 = vld [vmem:[%s2810_s19 + $0x1c] ss:$60 sps:$4 sm:$0xff]   ;;  %v2450_v55 = vld [vmem:[%s2810_s19 + $0x8c] ss:$60 sps:$4 sm:$0xff]  }
  0x22   : > { %v2442_v53 = vld [vmem:[%s2810_s19 + $0x10] ss:$60 sps:$4 sm:$0xff]   ;;  %v2445_v54 = vld [vmem:[%s2810_s19 + $0x18] ss:$60 sps:$4 sm:$0xff]   ;;  %v2448_v58 = vld [vmem:[%s2810_s19 + $0x88] ss:$60 sps:$4 sm:$0xff]  }
  0x23   : > { %1338 = vmatpush1.bf16.msra.mxu0 %v2395_v20  ;;  %1391 = vmatpush1.bf16.msra.mxu1 %v2396_v21  ;;  %v2453_v56 = vld [vmem:[%s2810_s19 + $0x94] ss:$60 sps:$4 sm:$0xff]   ;;  %v2456_v60 = vld [vmem:[%s2810_s19 + $0x104] ss:$60 sps:$4 sm:$0xff]   ;;  %v2459_v61 = vld [vmem:[%s2810_s19 + $0x10c] ss:$60 sps:$4 sm:$0xff]  }
  0x24   : > { %1339 = vmatprep.subr.bf16.mxu0 %v2397_v22  ;;  %1392 = vmatprep.subr.bf16.mxu1 %v2399_v23  ;;  %v2451_v59 = vld [vmem:[%s2810_s19 + $0x90] ss:$60 sps:$4 sm:$0xff]   ;;  %v2454_v63 = vld [vmem:[%s2810_s19 + $0x100] ss:$60 sps:$4 sm:$0xff]   ;;  %v2457_v1 = vld [vmem:[%s2810_s19 + $0x108] ss:$60 sps:$4 sm:$0xff]  }
  0x25   : > { %v2462_v2 = vld [vmem:[%s2810_s19 + $0x17c] ss:$60 sps:$4 sm:$0xff]   ;;  %v2465_v3 = vld [vmem:[%s2810_s19 + $0x184] ss:$60 sps:$4 sm:$0xff]   ;;  %v2468_v7 = vld [vmem:[%s2810_s19 + $0x1f4] ss:$60 sps:$4 sm:$0xff]  }
  0x26   : > { %v2460_v4 = vld [vmem:[%s2810_s19 + $0x178] ss:$60 sps:$4 sm:$0xff]   ;;  %v2463_v6 = vld [vmem:[%s2810_s19 + $0x180] ss:$60 sps:$4 sm:$0xff]   ;;  %v2466_v9 = vld [vmem:[%s2810_s19 + $0x1f0] ss:$60 sps:$4 sm:$0xff]  }
  0x27   : > { %1340 = vmatpush1.bf16.msra.mxu0 %v2401_v24  ;;  %1393 = vmatpush1.bf16.msra.mxu1 %v2402_v25  ;;  %v2471_v8 = vld [vmem:[%s2810_s19 + $0x1fc] ss:$60 sps:$4 sm:$0xff]   ;;  %v2474_v11 = vld [vmem:[%s2810_s19 + $0x26c] ss:$60 sps:$4 sm:$0xff]   ;;  %v2477_v12 = vld [vmem:[%s2810_s19 + $0x274] ss:$60 sps:$4 sm:$0xff]  }
  0x28   : > { %1341 = vmatprep.subr.bf16.mxu0 %v2403_v26  ;;  %1394 = vmatprep.subr.bf16.mxu1 %v2405_v27  ;;  %v2469_v10 = vld [vmem:[%s2810_s19 + $0x1f8] ss:$60 sps:$4 sm:$0xff]   ;;  %v2472_v13 = vld [vmem:[%s2810_s19 + $0x268] ss:$60 sps:$4 sm:$0xff]   ;;  %v2475_v14 = vld [vmem:[%s2810_s19 + $0x270] ss:$60 sps:$4 sm:$0xff]  }
  0x29   : > { %v2480_v15 = vld [vmem:[%s2810_s19 + $0x2e4] ss:$60 sps:$4 sm:$0xff]   ;;  %v2483_v16 = vld [vmem:[%s2810_s19 + $0x2ec] ss:$60 sps:$4 sm:$0xff]   ;;  %v2486_v19 = vld [vmem:[%s2810_s19 + $0x35c] ss:$60 sps:$4 sm:$0xff]  }
  0x2a   : > { %v2478_v17 = vld [vmem:[%s2810_s19 + $0x2e0] ss:$60 sps:$4 sm:$0xff]   ;;  %v2481_v18 = vld [vmem:[%s2810_s19 + $0x2e8] ss:$60 sps:$4 sm:$0xff]   ;;  %v2484_v21 = vld [vmem:[%s2810_s19 + $0x358] ss:$60 sps:$4 sm:$0xff]  }
  0x2b   : > { %1342 = vmatpush1.bf16.msra.mxu0 %v2407_v28  ;;  %1395 = vmatpush1.bf16.msra.mxu1 %v2408_v29  ;;  %v2489_v20 = vld [vmem:[%s2810_s19 + $0x364] ss:$60 sps:$4 sm:$0xff]   ;;  %v2492_v23 = vld [vmem:[%s2810_s19 + $0x3d4] ss:$60 sps:$4 sm:$0xff]   ;;  %v2495_v24 = vld [vmem:[%s2810_s19 + $0x3dc] ss:$60 sps:$4 sm:$0xff]  }
  0x2c   : > { %1343 = vmatprep.subr.bf16.mxu0 %v2409_v30  ;;  %1396 = vmatprep.subr.bf16.mxu1 %v2411_v31  ;;  %v2487_v22 = vld [vmem:[%s2810_s19 + $0x360] ss:$60 sps:$4 sm:$0xff]   ;;  %v2490_v25 = vld [vmem:[%s2810_s19 + $0x3d0] ss:$60 sps:$4 sm:$0xff]   ;;  %v2493_v26 = vld [vmem:[%s2810_s19 + $0x3d8] ss:$60 sps:$4 sm:$0xff]  }
  0x2d   : > { %v2498_v27 = vld [vmem:[%s2810_s19 + $0x44c] ss:$60 sps:$4 sm:$0xff]   ;;  %v2501_v28 = vld [vmem:[%s2810_s19 + $0x454] ss:$60 sps:$4 sm:$0xff]   ;;  %v2507_v31 = vld [vmem:[%s2810_s19 + $0x4c4] ss:$60 sps:$4 sm:$0xff]  }
  0x2e   : > { %v2496_v29 = vld [vmem:[%s2810_s19 + $0x448] ss:$60 sps:$4 sm:$0xff]   ;;  %v2499_v30 = vld [vmem:[%s2810_s19 + $0x450] ss:$60 sps:$4 sm:$0xff]  }
  0x2f   : > { %1344 = vmatpush1.bf16.msra.mxu0 %v2413_v32  ;;  %1397 = vmatpush1.bf16.msra.mxu1 %v2414_v33  ;;  %v2510_v32 = vld [vmem:[%s2810_s19 + $0x4cc] ss:$60 sps:$4 sm:$0xff]   ;;  %v2505_v33 = vld [vmem:[%s2810_s19 + $0x4c0] ss:$60 sps:$4 sm:$0xff]  }
  0x30   : > { %1345 = vmatprep.subr.bf16.mxu0 %v2415_v34  ;;  %1398 = vmatprep.subr.bf16.mxu1 %v2417_v35  ;;  %v2508_v34 = vld [vmem:[%s2810_s19 + $0x4c8] ss:$60 sps:$4 sm:$0xff]  }
  0x31   : > { %v368_v35 = vld [vmem:[%s3193_s2] sm:$0xff] }
  0x32   : > { %374 = vperm.xlu0 %2365, %v368_v35   ;;  %v2593_v35 = vld [vmem:[%s2810_s19 + $0xa8] ss:$60 sps:$4 sm:$0xff]  }
  0x33   : > { %1346 = vmatpush1.bf16.msra.mxu0 %v2419_v36  ;;  %1399 = vmatpush1.bf16.msra.mxu1 %v2420_v37  ;;  %v2513_v36 = vld [vmem:[%s2810_s19 + $0x53c] ss:$60 sps:$4 sm:$0xff]   ;;  %v2516_v37 = vld [vmem:[%s2810_s19 + $0x544] ss:$60 sps:$4 sm:$0xff]  }
  0x34   : > { %1347 = vmatprep.subr.bf16.mxu0 %v2421_v38  ;;  %1400 = vmatprep.subr.bf16.mxu1 %v2423_v39  ;;  %v369_v38 = vld [vmem:[%s3193_s2 + $0x8] sm:$0xff]  ;;  %v2511_v39 = vld [vmem:[%s2810_s19 + $0x538] ss:$60 sps:$4 sm:$0xff]  }
  0x36   : > { %379 = vperm.xlu0 %2365, %v369_v38   ;;  %v2597_v38 = vld [vmem:[%s2810_s19 + $0x120] ss:$60 sps:$4 sm:$0xff]  }
  0x37   : > { %1348 = vmatpush1.bf16.msra.mxu0 %v2425_v40  ;;  %1401 = vmatpush1.bf16.msra.mxu1 %v2426_v41  ;;  %v2514_v40 = vld [vmem:[%s2810_s19 + $0x540] ss:$60 sps:$4 sm:$0xff]  }
  0x38   : > { %1349 = vmatprep.subr.bf16.mxu0 %v2427_v42  ;;  %1402 = vmatprep.subr.bf16.mxu1 %v2429_v43  ;;  %v2519_v41 = vld [vmem:[%s2810_s19 + $0x24] ss:$60 sps:$4 sm:$0xff]   ;;  %v2522_v42 = vld [vmem:[%s2810_s19 + $0x2c] ss:$60 sps:$4 sm:$0xff]  }
  0x39   : > { %v2517_v43 = vld [vmem:[%s2810_s19 + $0x20] ss:$60 sps:$4 sm:$0xff]  }
  0x3b   : > { %1350 = vmatpush1.bf16.msra.mxu0 %v2431_v44  ;;  %1403 = vmatpush1.bf16.msra.mxu1 %v2432_v45  ;;  %v2520_v44 = vld [vmem:[%s2810_s19 + $0x28] ss:$60 sps:$4 sm:$0xff]   ;;  %v2525_v45 = vld [vmem:[%s2810_s19 + $0x9c] ss:$60 sps:$4 sm:$0xff]  }
  0x3c   : > { %1351 = vmatprep.subr.bf16.mxu0 %v2433_v46  ;;  %1404 = vmatprep.subr.bf16.mxu1 %v2435_v47  ;;  %v2528_v46 = vld [vmem:[%s2810_s19 + $0xa4] ss:$60 sps:$4 sm:$0xff]   ;;  %v2523_v47 = vld [vmem:[%s2810_s19 + $0x98] ss:$60 sps:$4 sm:$0xff]  }
  0x3f   : > { %1352 = vmatpush1.bf16.msra.mxu0 %v2437_v48  ;;  %1405 = vmatpush1.bf16.msra.mxu1 %v2438_v49  ;;  %v2526_v48 = vld [vmem:[%s2810_s19 + $0xa0] ss:$60 sps:$4 sm:$0xff]   ;;  %v2531_v49 = vld [vmem:[%s2810_s19 + $0x114] ss:$60 sps:$4 sm:$0xff]  }
  0x40   : > { %1435 = vmatprep.subr.bf16.mxu0 %v2444_v50  ;;  %1488 = vmatprep.subr.bf16.mxu1 %v2447_v51  ;;  %v2534_v50 = vld [vmem:[%s2810_s19 + $0x11c] ss:$60 sps:$4 sm:$0xff]   ;;  %v2529_v51 = vld [vmem:[%s2810_s19 + $0x110] ss:$60 sps:$4 sm:$0xff]  }
  0x42   : > { %1362 = vmatmul.mubr.bf16.vlgmr.msra.gmra.mrb[0].mxu0 %v2867_v52  ;;  %1415 = vmatmul.mubr.bf16.vlgmr.msra.gmra.mrb[0].mxu1 %v2867_v52 }
  0x43   : > { %1436 = vmatpush1.bf16.msra.mxu0 %v2442_v53  ;;  %1489 = vmatpush1.bf16.msra.mxu1 %v2445_v54  ;;  %v2532_v53 = vld [vmem:[%s2810_s19 + $0x118] ss:$60 sps:$4 sm:$0xff]   ;;  %v2537_v54 = vld [vmem:[%s2810_s19 + $0x18c] ss:$60 sps:$4 sm:$0xff]  }
  0x44   : > { %1437 = vmatprep.subr.bf16.mxu0 %v2450_v55  ;;  %1490 = vmatprep.subr.bf16.mxu1 %v2453_v56  ;;  %v2540_v55 = vld [vmem:[%s2810_s19 + $0x194] ss:$60 sps:$4 sm:$0xff]   ;;  %v2535_v56 = vld [vmem:[%s2810_s19 + $0x188] ss:$60 sps:$4 sm:$0xff]  }
  0x45   : > { %2273 = vmatprep.mubr.msk.bf16.mxu0 %vm1322_vm0, %v2876_v57  ;;  %2275 = vmatprep.mubr.msk.bf16.mxu1 %vm1322_vm0, %v2876_v57 }
  0x47   : > { %1438 = vmatpush1.bf16.msra.mxu0 %v2448_v58  ;;  %1491 = vmatpush1.bf16.msra.mxu1 %v2451_v59  ;;  %v2538_v58 = vld [vmem:[%s2810_s19 + $0x190] ss:$60 sps:$4 sm:$0xff]   ;;  %v2543_v59 = vld [vmem:[%s2810_s19 + $0x204] ss:$60 sps:$4 sm:$0xff]  }
  0x48   : > { %1439 = vmatprep.subr.bf16.mxu0 %v2456_v60  ;;  %1492 = vmatprep.subr.bf16.mxu1 %v2459_v61  ;;  %v2546_v60 = vld [vmem:[%s2810_s19 + $0x20c] ss:$60 sps:$4 sm:$0xff]   ;;  %v2541_v61 = vld [vmem:[%s2810_s19 + $0x200] ss:$60 sps:$4 sm:$0xff]  }
  0x4a   : > { %1372 = vmatmul.mubr.bf16.gmra.mrb[4].mxu0 %v2889_v62  ;;  %1425 = vmatmul.mubr.bf16.gmra.mrb[4].mxu1 %v2889_v62 }
  0x4b   : > { %1440 = vmatpush1.bf16.msra.mxu0 %v2454_v63  ;;  %1493 = vmatpush1.bf16.msra.mxu1 %v2457_v1  ;;  %v2544_v63 = vld [vmem:[%s2810_s19 + $0x208] ss:$60 sps:$4 sm:$0xff]   ;;  %v2549_v1 = vld [vmem:[%s2810_s19 + $0x27c] ss:$60 sps:$4 sm:$0xff]  }
  0x4c   : > { %1441 = vmatprep.subr.bf16.mxu0 %v2462_v2  ;;  %1494 = vmatprep.subr.bf16.mxu1 %v2465_v3  ;;  %v370_v2 = vld [vmem:[%s3193_s2 + $0x10] sm:$0xff]  ;;  %v2552_v3 = vld [vmem:[%s2810_s19 + $0x284] ss:$60 sps:$4 sm:$0xff]  }
  0x4d   : > { %2276 = vmatprep.mubr.msk.bf16.mxu0 %vm1322_vm0, %v2798_v0  ;;  %2278 = vmatprep.mubr.msk.bf16.mxu1 %vm1322_vm0, %v2798_v0 }
  0x4e   : > { %384 = vperm.xlu1 %2366, %v370_v2   ;;  %v2631_v2 = vld [vmem:[%s2810_s19 + $0x4e4] ss:$60 sps:$4 sm:$0xff]  }
  0x4f   : > { %1442 = vmatpush1.bf16.msra.mxu0 %v2460_v4  ;;  %1495 = vmatpush1.bf16.msra.mxu1 %v2463_v6  ;;  %v2547_v4 = vld [vmem:[%s2810_s19 + $0x278] ss:$60 sps:$4 sm:$0xff]   ;;  %v2550_v6 = vld [vmem:[%s2810_s19 + $0x280] ss:$60 sps:$4 sm:$0xff]  }
  0x50   : > { %1443 = vmatprep.subr.bf16.mxu0 %v2468_v7  ;;  %1496 = vmatprep.subr.bf16.mxu1 %v2471_v8  ;;  %v2555_v7 = vld [vmem:[%s2810_s19 + $0x2f4] ss:$60 sps:$4 sm:$0xff]   ;;  %v2558_v8 = vld [vmem:[%s2810_s19 + $0x2fc] ss:$60 sps:$4 sm:$0xff]  }
  0x53   : > { %1444 = vmatpush1.bf16.msra.mxu0 %v2466_v9  ;;  %1497 = vmatpush1.bf16.msra.mxu1 %v2469_v10  ;;  %v2553_v9 = vld [vmem:[%s2810_s19 + $0x2f0] ss:$60 sps:$4 sm:$0xff]   ;;  %v2556_v10 = vld [vmem:[%s2810_s19 + $0x2f8] ss:$60 sps:$4 sm:$0xff]  }
  0x54   : > { %1445 = vmatprep.subr.bf16.mxu0 %v2474_v11  ;;  %1498 = vmatprep.subr.bf16.mxu1 %v2477_v12  ;;  %v2561_v11 = vld [vmem:[%s2810_s19 + $0x36c] ss:$60 sps:$4 sm:$0xff]   ;;  %v2564_v12 = vld [vmem:[%s2810_s19 + $0x374] ss:$60 sps:$4 sm:$0xff]  }
  0x57   : > { %1446 = vmatpush1.bf16.msra.mxu0 %v2472_v13  ;;  %1499 = vmatpush1.bf16.msra.mxu1 %v2475_v14  ;;  %v2559_v13 = vld [vmem:[%s2810_s19 + $0x368] ss:$60 sps:$4 sm:$0xff]   ;;  %v2562_v14 = vld [vmem:[%s2810_s19 + $0x370] ss:$60 sps:$4 sm:$0xff]  }
  0x58   : > { %1447 = vmatprep.subr.bf16.mxu0 %v2480_v15  ;;  %1500 = vmatprep.subr.bf16.mxu1 %v2483_v16  ;;  %v2567_v15 = vld [vmem:[%s2810_s19 + $0x3e4] ss:$60 sps:$4 sm:$0xff]   ;;  %v2570_v16 = vld [vmem:[%s2810_s19 + $0x3ec] ss:$60 sps:$4 sm:$0xff]  }
  0x5b   : > { %1448 = vmatpush1.bf16.msra.mxu0 %v2478_v17  ;;  %1501 = vmatpush1.bf16.msra.mxu1 %v2481_v18  ;;  %v2565_v17 = vld [vmem:[%s2810_s19 + $0x3e0] ss:$60 sps:$4 sm:$0xff]   ;;  %v2568_v18 = vld [vmem:[%s2810_s19 + $0x3e8] ss:$60 sps:$4 sm:$0xff]  }
  0x5c   : > { %1449 = vmatprep.subr.bf16.mxu0 %v2486_v19  ;;  %1502 = vmatprep.subr.bf16.mxu1 %v2489_v20  ;;  %v2573_v19 = vld [vmem:[%s2810_s19 + $0x45c] ss:$60 sps:$4 sm:$0xff]   ;;  %v2576_v20 = vld [vmem:[%s2810_s19 + $0x464] ss:$60 sps:$4 sm:$0xff]  }
  0x5f   : > { %1450 = vmatpush1.bf16.msra.mxu0 %v2484_v21  ;;  %1503 = vmatpush1.bf16.msra.mxu1 %v2487_v22  ;;  %v2571_v21 = vld [vmem:[%s2810_s19 + $0x458] ss:$60 sps:$4 sm:$0xff]   ;;  %v2574_v22 = vld [vmem:[%s2810_s19 + $0x460] ss:$60 sps:$4 sm:$0xff]  }
  0x60   : > { %1451 = vmatprep.subr.bf16.mxu0 %v2492_v23  ;;  %1504 = vmatprep.subr.bf16.mxu1 %v2495_v24  ;;  %v2579_v23 = vld [vmem:[%s2810_s19 + $0x4d4] ss:$60 sps:$4 sm:$0xff]   ;;  %v2582_v24 = vld [vmem:[%s2810_s19 + $0x4dc] ss:$60 sps:$4 sm:$0xff]  }
  0x63   : > { %1452 = vmatpush1.bf16.msra.mxu0 %v2490_v25  ;;  %1505 = vmatpush1.bf16.msra.mxu1 %v2493_v26  ;;  %v2577_v25 = vld [vmem:[%s2810_s19 + $0x4d0] ss:$60 sps:$4 sm:$0xff]   ;;  %v2580_v26 = vld [vmem:[%s2810_s19 + $0x4d8] ss:$60 sps:$4 sm:$0xff]  }
  0x64   : > { %1453 = vmatprep.subr.bf16.mxu0 %v2498_v27  ;;  %1506 = vmatprep.subr.bf16.mxu1 %v2501_v28  ;;  %v2585_v27 = vld [vmem:[%s2810_s19 + $0x54c] ss:$60 sps:$4 sm:$0xff]   ;;  %v2588_v28 = vld [vmem:[%s2810_s19 + $0x554] ss:$60 sps:$4 sm:$0xff]  }
  0x67   : > { %1454 = vmatpush1.bf16.msra.mxu0 %v2496_v29  ;;  %1507 = vmatpush1.bf16.msra.mxu1 %v2499_v30  ;;  %v2583_v29 = vld [vmem:[%s2810_s19 + $0x548] ss:$60 sps:$4 sm:$0xff]   ;;  %v2586_v30 = vld [vmem:[%s2810_s19 + $0x550] ss:$60 sps:$4 sm:$0xff]  }
  0x68   : > { %1455 = vmatprep.subr.bf16.mxu0 %v2507_v31  ;;  %1508 = vmatprep.subr.bf16.mxu1 %v2510_v32  ;;  %v2591_v31 = vld [vmem:[%s2810_s19 + $0x34] ss:$60 sps:$4 sm:$0xff]  }
  0x69   : > { %v2589_v32 = vld [vmem:[%s2810_s19 + $0x30] ss:$60 sps:$4 sm:$0xff]  }
  0x6b   : > { %1456 = vmatpush1.bf16.msra.mxu0 %v2505_v33  ;;  %1509 = vmatpush1.bf16.msra.mxu1 %v2508_v34  ;;  %v2592_v33 = vld [vmem:[%s2810_s19 + $0x38] ss:$60 sps:$4 sm:$0xff]   ;;  %v2595_v34 = vld [vmem:[%s2810_s19 + $0xac] ss:$60 sps:$4 sm:$0xff]  }
  0x6c   : > { %1457 = vmatprep.subr.bf16.mxu0 %v2513_v36  ;;  %1510 = vmatprep.subr.bf16.mxu1 %v2516_v37  ;;  %v2596_v36 = vld [vmem:[%s2810_s19 + $0xb0] ss:$60 sps:$4 sm:$0xff]   ;;  %v2599_v37 = vld [vmem:[%s2810_s19 + $0x124] ss:$60 sps:$4 sm:$0xff]  }
  0x6f   : > { %1458 = vmatpush1.bf16.msra.mxu0 %v2511_v39  ;;  %1511 = vmatpush1.bf16.msra.mxu1 %v2514_v40  ;;  %v2600_v39 = vld [vmem:[%s2810_s19 + $0x128] ss:$60 sps:$4 sm:$0xff]   ;;  %v2603_v40 = vld [vmem:[%s2810_s19 + $0x19c] ss:$60 sps:$4 sm:$0xff]  }
  0x70   : > { %1541 = vmatprep.subr.bf16.mxu0 %v2519_v41  ;;  %1594 = vmatprep.subr.bf16.mxu1 %v2522_v42  ;;  %v2601_v41 = vld [vmem:[%s2810_s19 + $0x198] ss:$60 sps:$4 sm:$0xff]   ;;  %v2604_v42 = vld [vmem:[%s2810_s19 + $0x1a0] ss:$60 sps:$4 sm:$0xff]  }
  0x72   : > { %1468 = vmatmul.mubr.bf16.vlgmr.msra.gmra.mrb[8].mxu0 %v2867_v52  ;;  %1521 = vmatmul.mubr.bf16.vlgmr.msra.gmra.mrb[8].mxu1 %v2867_v52 }
  0x73   : > { %1542 = vmatpush1.bf16.msra.mxu0 %v2517_v43  ;;  %1595 = vmatpush1.bf16.msra.mxu1 %v2520_v44  ;;  %v2607_v43 = vld [vmem:[%s2810_s19 + $0x214] ss:$60 sps:$4 sm:$0xff]   ;;  %v2757_v44 = vld [vmem:[%s3191_s0 + $0x4] ss:$8 sps:$4 sm:$0xff]  }
  0x74   : > { %1543 = vmatprep.subr.bf16.mxu0 %v2525_v45  ;;  %1596 = vmatprep.subr.bf16.mxu1 %v2528_v46  ;;  %v2605_v45 = vld [vmem:[%s2810_s19 + $0x210] ss:$60 sps:$4 sm:$0xff]   ;;  %v2608_v46 = vld [vmem:[%s2810_s19 + $0x218] ss:$60 sps:$4 sm:$0xff]  }
  0x75   : > { %2277 = vmatprep.mubr.msk.bf16.mxu0 %vm1322_vm0, %v2876_v57  ;;  %2279 = vmatprep.mubr.msk.bf16.mxu1 %vm1322_vm0, %v2876_v57 }
  0x77   : > { %1544 = vmatpush1.bf16.msra.mxu0 %v2523_v47  ;;  %1597 = vmatpush1.bf16.msra.mxu1 %v2526_v48  ;;  %v2611_v47 = vld [vmem:[%s2810_s19 + $0x28c] ss:$60 sps:$4 sm:$0xff]  }
  0x78   : > { %1545 = vmatprep.subr.bf16.mxu0 %v2531_v49  ;;  %1598 = vmatprep.subr.bf16.mxu1 %v2534_v50  ;;  %v2609_v48 = vld [vmem:[%s2810_s19 + $0x288] ss:$60 sps:$4 sm:$0xff]   ;;  %v2612_v49 = vld [vmem:[%s2810_s19 + $0x290] ss:$60 sps:$4 sm:$0xff]  }
  0x79   : > { %v2615_v50 = vld [vmem:[%s2810_s19 + $0x304] ss:$60 sps:$4 sm:$0xff]  }
  0x7a   : > { %1478 = vmatmul.mubr.bf16.gmra.mrb[12].mxu0 %v2889_v62  ;;  %1531 = vmatmul.mubr.bf16.gmra.mrb[12].mxu1 %v2889_v62 }
  0x7b   : > { %1546 = vmatpush1.bf16.msra.mxu0 %v2529_v51  ;;  %1599 = vmatpush1.bf16.msra.mxu1 %v2532_v53  ;;  %v2613_v51 = vld [vmem:[%s2810_s19 + $0x300] ss:$60 sps:$4 sm:$0xff]   ;;  %v2616_v53 = vld [vmem:[%s2810_s19 + $0x308] ss:$60 sps:$4 sm:$0xff]  }
  0x7c   : > { %1547 = vmatprep.subr.bf16.mxu0 %v2537_v54  ;;  %1600 = vmatprep.subr.bf16.mxu1 %v2540_v55  ;;  %v2619_v54 = vld [vmem:[%s2810_s19 + $0x37c] ss:$60 sps:$4 sm:$0xff]  }
  0x7d   : > { %2280 = vmatprep.mubr.msk.bf16.mxu0 %vm1322_vm0, %v2798_v0  ;;  %2282 = vmatprep.mubr.msk.bf16.mxu1 %vm1322_vm0, %v2798_v0  ;;  %v371_v0 = vld [vmem:[%s3193_s2 + $0x18] sm:$0xff] }
  0x7e   : > { %389 = vperm.xlu1 %2366, %v371_v0   ;;  %v2617_v55 = vld [vmem:[%s2810_s19 + $0x378] ss:$60 sps:$4 sm:$0xff]  }
  0x7f   : > { %1548 = vmatpush1.bf16.msra.mxu0 %v2535_v56  ;;  %1601 = vmatpush1.bf16.msra.mxu1 %v2538_v58  ;;  %v2620_v56 = vld [vmem:[%s2810_s19 + $0x380] ss:$60 sps:$4 sm:$0xff]   ;;  %v2623_v58 = vld [vmem:[%s2810_s19 + $0x3f4] ss:$60 sps:$4 sm:$0xff]  }
  0x80   : > { %1549 = vmatprep.subr.bf16.mxu0 %v2543_v59  ;;  %1602 = vmatprep.subr.bf16.mxu1 %v2546_v60  ;;  %v2621_v59 = vld [vmem:[%s2810_s19 + $0x3f0] ss:$60 sps:$4 sm:$0xff]   ;;  %v2624_v60 = vld [vmem:[%s2810_s19 + $0x3f8] ss:$60 sps:$4 sm:$0xff]  }
  0x81   : > { %v2633_v0 = vld [vmem:[%s2810_s19 + $0x558] ss:$60 sps:$4 sm:$0xff]  }
  0x83   : > { %1550 = vmatpush1.bf16.msra.mxu0 %v2541_v61  ;;  %1603 = vmatpush1.bf16.msra.mxu1 %v2544_v63  ;;  %v2627_v61 = vld [vmem:[%s2810_s19 + $0x46c] ss:$60 sps:$4 sm:$0xff]  }
  0x84   : > { %1551 = vmatprep.subr.bf16.mxu0 %v2549_v1  ;;  %1604 = vmatprep.subr.bf16.mxu1 %v2552_v3  ;;  %v2625_v63 = vld [vmem:[%s2810_s19 + $0x468] ss:$60 sps:$4 sm:$0xff]   ;;  %v2628_v1 = vld [vmem:[%s2810_s19 + $0x470] ss:$60 sps:$4 sm:$0xff]   ;;  %v2629_v3 = vld [vmem:[%s2810_s19 + $0x4e0] ss:$60 sps:$4 sm:$0xff]  }
  0x87   : > { %1552 = vmatpush1.bf16.msra.mxu0 %v2547_v4  ;;  %1605 = vmatpush1.bf16.msra.mxu1 %v2550_v6  ;;  %v2632_v4 = vld [vmem:[%s2810_s19 + $0x4e8] ss:$60 sps:$4 sm:$0xff]   ;;  %v2635_v6 = vld [vmem:[%s2810_s19 + $0x55c] ss:$60 sps:$4 sm:$0xff]  }
  0x88   : > { %1553 = vmatprep.subr.bf16.mxu0 %v2555_v7  ;;  %1606 = vmatprep.subr.bf16.mxu1 %v2558_v8  ;;  %v2636_v7 = vld [vmem:[%s2810_s19 + $0x560] ss:$60 sps:$4 sm:$0xff]  }
  0x8b   : > { %1554 = vmatpush1.bf16.msra.mxu0 %v2553_v9  ;;  %1607 = vmatpush1.bf16.msra.mxu1 %v2556_v10 }
  0x8c   : > { %1555 = vmatprep.subr.bf16.mxu0 %v2561_v11  ;;  %1608 = vmatprep.subr.bf16.mxu1 %v2564_v12 }
  0x8f   : > { %1556 = vmatpush1.bf16.msra.mxu0 %v2559_v13  ;;  %1609 = vmatpush1.bf16.msra.mxu1 %v2562_v14 }
  0x90   : > { %1557 = vmatprep.subr.bf16.mxu0 %v2567_v15  ;;  %1610 = vmatprep.subr.bf16.mxu1 %v2570_v16 }
  0x93   : > { %1558 = vmatpush1.bf16.msra.mxu0 %v2565_v17  ;;  %1611 = vmatpush1.bf16.msra.mxu1 %v2568_v18 }
  0x94   : > { %1559 = vmatprep.subr.bf16.mxu0 %v2573_v19  ;;  %1612 = vmatprep.subr.bf16.mxu1 %v2576_v20 }
  0x97   : > { %1560 = vmatpush1.bf16.msra.mxu0 %v2571_v21  ;;  %1613 = vmatpush1.bf16.msra.mxu1 %v2574_v22 }
  0x98   : > { %1561 = vmatprep.subr.bf16.mxu0 %v2579_v23  ;;  %1614 = vmatprep.subr.bf16.mxu1 %v2582_v24 }
  0x9b   : > { %1562 = vmatpush1.bf16.msra.mxu0 %v2577_v25  ;;  %1615 = vmatpush1.bf16.msra.mxu1 %v2580_v26 }
  0x9c   : > { %1563 = vmatprep.subr.bf16.mxu0 %v2585_v27  ;;  %1616 = vmatprep.subr.bf16.mxu1 %v2588_v28 }
  0x9f   : > { %1564 = vmatpush1.bf16.msra.mxu0 %v2583_v29  ;;  %1617 = vmatpush1.bf16.msra.mxu1 %v2586_v30 }
  0xa0   : > { %1647 = vmatprep.subr.bf16.mxu0 %v2591_v31  ;;  %1700 = vmatprep.subr.bf16.mxu1 %v2766_v5 }
  0xa2   : > { %1574 = vmatmul.mubr.bf16.vlgmr.msra.gmra.mrb[16].mxu0 %v2867_v52  ;;  %1627 = vmatmul.mubr.bf16.vlgmr.msra.gmra.mrb[16].mxu1 %v2867_v52 }
  0xa3   : > { %1648 = vmatpush1.bf16.msra.mxu0 %v2589_v32  ;;  %1701 = vmatpush1.bf16.msra.mxu1 %v2592_v33 }
  0xa4   : > { %1649 = vmatprep.subr.bf16.mxu0 %v2595_v34  ;;  %1702 = vmatprep.subr.bf16.mxu1 %v2766_v5 }
  0xa5   : > { %2281 = vmatprep.mubr.msk.bf16.mxu0 %vm1322_vm0, %v2876_v57  ;;  %2283 = vmatprep.mubr.msk.bf16.mxu1 %vm1322_vm0, %v2876_v57 }
  0xa7   : > { %1650 = vmatpush1.bf16.msra.mxu0 %v2593_v35  ;;  %1703 = vmatpush1.bf16.msra.mxu1 %v2596_v36 }
  0xa8   : > { %1651 = vmatprep.subr.bf16.mxu0 %v2599_v37  ;;  %1704 = vmatprep.subr.bf16.mxu1 %v2766_v5 }
  0xaa   : > { %1584 = vmatmul.mubr.bf16.gmra.mrb[20].mxu0 %v2889_v62  ;;  %1637 = vmatmul.mubr.bf16.gmra.mrb[20].mxu1 %v2889_v62 }
  0xab   : > { %1652 = vmatpush1.bf16.msra.mxu0 %v2597_v38  ;;  %1705 = vmatpush1.bf16.msra.mxu1 %v2600_v39 }
  0xac   : > { %1653 = vmatprep.subr.bf16.mxu0 %v2603_v40  ;;  %1706 = vmatprep.subr.bf16.mxu1 %v2766_v5 }
  0xad   : > { %2284 = vmatprep.mubr.msk.bf16.mxu0 %vm1322_vm0, %v2757_v44  ;;  %2286 = vmatprep.mubr.msk.bf16.mxu1 %vm1322_vm0, %v2757_v44 }
  0xaf   : > { %1654 = vmatpush1.bf16.msra.mxu0 %v2601_v41  ;;  %1707 = vmatpush1.bf16.msra.mxu1 %v2604_v42 }
  0xb0   : > { %1655 = vmatprep.subr.bf16.mxu0 %v2607_v43  ;;  %1708 = vmatprep.subr.bf16.mxu1 %v2766_v5 }
  0xb1   : > { %v3078_v8 = vpop.permute.xlu0 %374 }
  0xb3   : > { %1656 = vmatpush1.bf16.msra.mxu0 %v2605_v45  ;;  %1709 = vmatpush1.bf16.msra.mxu1 %v2608_v46 }
  0xb4   : > { %1657 = vmatprep.subr.bf16.mxu0 %v2611_v47  ;;  %1710 = vmatprep.subr.bf16.mxu1 %v2766_v5 }
  0xb5   : > { %v3080_v9 = vpop.permute.xlu0 %379 }
  0xb7   : > { %1658 = vmatpush1.bf16.msra.mxu0 %v2609_v48  ;;  %1711 = vmatpush1.bf16.msra.mxu1 %v2612_v49 }
  0xb8   : > { %1659 = vmatprep.subr.bf16.mxu0 %v2615_v50  ;;  %1712 = vmatprep.subr.bf16.mxu1 %v2766_v5 }
  0xbb   : > { %1660 = vmatpush1.bf16.msra.mxu0 %v2613_v51  ;;  %1713 = vmatpush1.bf16.msra.mxu1 %v2616_v53 }
  0xbc   : > { %1661 = vmatprep.subr.bf16.mxu0 %v2619_v54  ;;  %1714 = vmatprep.subr.bf16.mxu1 %v2766_v5 }
  0xbf   : > { %1662 = vmatpush1.bf16.msra.mxu0 %v2617_v55  ;;  %1715 = vmatpush1.bf16.msra.mxu1 %v2620_v56 }
  0xc0   : > { %1663 = vmatprep.subr.bf16.mxu0 %v2623_v58  ;;  %1716 = vmatprep.subr.bf16.mxu1 %v2766_v5 }
  0xc3   : > { %1664 = vmatpush1.bf16.msra.mxu0 %v2621_v59  ;;  %1717 = vmatpush1.bf16.msra.mxu1 %v2624_v60 }
  0xc4   : > { %1665 = vmatprep.subr.bf16.mxu0 %v2627_v61  ;;  %1718 = vmatprep.subr.bf16.mxu1 %v2766_v5 }
  0xc7   : > { %1666 = vmatpush1.bf16.msra.mxu0 %v2625_v63  ;;  %1719 = vmatpush1.bf16.msra.mxu1 %v2628_v1 }
  0xc8   : > { %1667 = vmatprep.subr.bf16.mxu0 %v2631_v2  ;;  %1720 = vmatprep.subr.bf16.mxu1 %v2766_v5 }
  0xcb   : > { %1668 = vmatpush1.bf16.msra.mxu0 %v2629_v3  ;;  %1721 = vmatpush1.bf16.msra.mxu1 %v2632_v4 }
  0xcc   : > { %1669 = vmatprep.subr.bf16.mxu0 %v2635_v6  ;;  %1722 = vmatprep.subr.bf16.mxu1 %v2766_v5 }
  0xcd   : > { %v3082_v5 = vpop.permute.xlu1 %384 }
  0xcf   : > { %1670 = vmatpush1.bf16.msra.mxu0 %v2633_v0  ;;  %1723 = vmatpush1.bf16.msra.mxu1 %v2636_v7 }
  0xd2   : > { %1680 = vmatmul.mubr.bf16.vlgmr.msra.gmra.mrb[24].mxu0 %v2867_v52  ;;  %1733 = vmatmul.mubr.bf16.vlgmr.msra.gmra.mrb[24].mxu1 %v2867_v52 }
  0xd3   : > { %2285 = vmatprep.mubr.msk.bf16.mxu0 %vm1322_vm0, %v2876_v57  ;;  %2287 = vmatprep.mubr.msk.bf16.mxu1 %vm1322_vm0, %v2876_v57 }
  0xda   : > { %1690 = vmatmul.mubr.bf16.gmra.mrb[28].mxu0 %v2889_v62  ;;  %1741 = vmatmul.mubr.bf16.gmra.mrb[28].mxu1 %v2889_v62 }
  0xfd   : > { %v3092_v23 = vpop.permute.xlu1 %389 }
 0x115   : > { %v1363_v10 = vpop.f32.mrb[0].mxu0  ;;  %v1416_v11 = vpop.f32.mrb[0].mxu1 }
 0x116   : > { %v1364_v52 = vadd.f32 %v1363_v10, %v3078_v8  ;;  %v1417_v12 = vadd.f32 %v1416_v11, %v3078_v8  ;;  %v1365_v13 = vpop.f32.mrb[1].mxu0  ;;  %v1418_v14 = vpop.f32.mrb[1].mxu1 }
 0x117   : > { %v1366_v57 = vadd.f32 %v1365_v13, %v3078_v8  ;;  %v1419_v15 = vadd.f32 %v1418_v14, %v3078_v8  ;;  %v1367_v16 = vpop.f32.mrb[2].mxu0  ;;  %v1420_v62 = vpop.f32.mrb[2].mxu1 }
 0x118   : > { %2637 = vtanh.f32 %v1364_v52  ;;  %v1368_v17 = vadd.f32 %v1367_v16, %v3080_v9  ;;  %v1369_v18 = vpop.f32.mrb[3].mxu0  ;;  %v1422_v19 = vpop.f32.mrb[3].mxu1  ;;  %v1421_v20 = vadd.f32 %v1420_v62, %v3080_v9 }
 0x119   : > { %2639 = vtanh.f32 %v1417_v12  ;;  %v1370_v21 = vadd.f32 %v1369_v18, %v3080_v9  ;;  %v1423_v22 = vadd.f32 %v1422_v19, %v3080_v9 }
 0x11a   : > { %2641 = vtanh.f32 %v1366_v57 }
 0x11b   : > { %2643 = vtanh.f32 %v1419_v15 }
 0x11c   : > { %2645 = vtanh.f32 %v1368_v17 }
 0x11d   : > { %2647 = vtanh.f32 %v1421_v20  ;;  %v1373_v24 = vpop.f32.mrb[4].mxu0  ;;  %v1426_v25 = vpop.f32.mrb[4].mxu1 }
 0x11e   : > { %2649 = vtanh.f32 %v1370_v21  ;;  %v1374_v26 = vadd.f32 %v1373_v24, %v3082_v5  ;;  %v1375_v27 = vpop.f32.mrb[5].mxu0  ;;  %v1427_v28 = vadd.f32 %v1426_v25, %v3082_v5  ;;  %v1428_v29 = vpop.f32.mrb[5].mxu1 }
 0x11f   : > { %2651 = vtanh.f32 %v1423_v22  ;;  %v1376_v30 = vadd.f32 %v1375_v27, %v3082_v5  ;;  %v1377_v31 = vpop.f32.mrb[6].mxu0  ;;  %v1429_v32 = vadd.f32 %v1428_v29, %v3082_v5  ;;  %v1430_v33 = vpop.f32.mrb[6].mxu1 }
 0x120   : > { %2653 = vtanh.f32 %v1374_v26  ;;  %v1378_v34 = vadd.f32 %v1377_v31, %v3092_v23  ;;  %v1379_v35 = vpop.f32.mrb[7].mxu0  ;;  %v1432_v36 = vpop.f32.mrb[7].mxu1  ;;  %v1431_v39 = vadd.f32 %v1430_v33, %v3092_v23 }
 0x121   : > { %2655 = vtanh.f32 %v1376_v30  ;;  %v1380_v37 = vadd.f32 %v1379_v35, %v3092_v23  ;;  %v1433_v41 = vadd.f32 %v1432_v36, %v3092_v23 }
 0x122   : > { %v2638_v38 = vpop.eup %2637  ;;  %2657 = vtanh.f32 %v1427_v28 }
 0x123   : > { %v2640_v40 = vpop.eup %2639  ;;  %2659 = vtanh.f32 %v1429_v32 }
 0x124   : > { %v2642_v42 = vpop.eup %2641  ;;  %2661 = vtanh.f32 %v1378_v34 }
 0x125   : > { %v2644_v43 = vpop.eup %2643  ;;  %v2322_v44 = vpack.c.bf16 %v2642_v42, %v2638_v38  ;;  %2663 = vtanh.f32 %v1380_v37 }
 0x126   : > { %v2646_v45 = vpop.eup %2645  ;;  %v2323_v46 = vpack.c.bf16 %v2644_v43, %v2640_v40  ;;  %2665 = vtanh.f32 %v1431_v39 }
 0x127   : > { %v2648_v47 = vpop.eup %2647  ;;  %1993 = vst [vmem:[%s3106_s13] sm:$0xff] %v2322_v44  ;;  %2667 = vtanh.f32 %v1433_v41 }
 0x128   : > { %v2650_v48 = vpop.eup %2649  ;;  %1994 = vst [vmem:[%s3106_s13 + $0x8] sm:$0xff] %v2323_v46 }
 0x129   : > { %v2652_v49 = vpop.eup %2651  ;;  %v2330_v50 = vpack.c.bf16 %v2650_v48, %v2646_v45 }
 0x12a   : > { %v2654_v51 = vpop.eup %2653  ;;  %v2331_v53 = vpack.c.bf16 %v2652_v49, %v2648_v47 }
 0x12b   : > { %v2656_v54 = vpop.eup %2655  ;;  %2002 = vst [vmem:[%s3106_s13 + $0x3c] sm:$0xff] %v2330_v50 }
 0x12c   : > { %v2658_v55 = vpop.eup %2657  ;;  %2003 = vst [vmem:[%s3106_s13 + $0x44] sm:$0xff] %v2331_v53  ;;  %v2338_v56 = vpack.c.bf16 %v2656_v54, %v2654_v51 }
 0x12d   : > { %v2660_v58 = vpop.eup %2659 }
 0x12e   : > { %v2662_v59 = vpop.eup %2661  ;;  %2010 = vst [vmem:[%s3106_s13 + $0x78] sm:$0xff] %v2338_v56  ;;  %v2339_v60 = vpack.c.bf16 %v2660_v58, %v2658_v55 }
 0x12f   : > { %v2664_v61 = vpop.eup %2663 }
 0x130   : > { %v2666_v63 = vpop.eup %2665  ;;  %2011 = vst [vmem:[%s3106_s13 + $0x80] sm:$0xff] %v2339_v60  ;;  %v2346_v1 = vpack.c.bf16 %v2664_v61, %v2662_v59 }
 0x131   : > { %v2668_v2 = vpop.eup %2667 }
 0x132   : > { %2018 = vst [vmem:[%s3106_s13 + $0xb4] sm:$0xff] %v2346_v1  ;;  %v2347_v3 = vpack.c.bf16 %v2668_v2, %v2666_v63 }
 0x134   : > { %2019 = vst [vmem:[%s3106_s13 + $0xbc] sm:$0xff] %v2347_v3 }
 0x145   : > { %v1469_v4 = vpop.f32.mrb[8].mxu0  ;;  %v1522_v6 = vpop.f32.mrb[8].mxu1 }
 0x146   : > { %v1470_v0 = vadd.f32 %v1469_v4, %v3078_v8  ;;  %v1523_v7 = vadd.f32 %v1522_v6, %v3078_v8  ;;  %v1471_v10 = vpop.f32.mrb[9].mxu0  ;;  %v1524_v11 = vpop.f32.mrb[9].mxu1 }
 0x147   : > { %v1472_v52 = vadd.f32 %v1471_v10, %v3078_v8  ;;  %v1525_v12 = vadd.f32 %v1524_v11, %v3078_v8  ;;  %v1473_v13 = vpop.f32.mrb[10].mxu0  ;;  %v1526_v14 = vpop.f32.mrb[10].mxu1 }
 0x148   : > { %2669 = vtanh.f32 %v1470_v0  ;;  %v1474_v57 = vadd.f32 %v1473_v13, %v3080_v9  ;;  %v1475_v15 = vpop.f32.mrb[11].mxu0  ;;  %v1528_v16 = vpop.f32.mrb[11].mxu1  ;;  %v1527_v62 = vadd.f32 %v1526_v14, %v3080_v9 }
 0x149   : > { %2671 = vtanh.f32 %v1523_v7  ;;  %v1476_v17 = vadd.f32 %v1475_v15, %v3080_v9  ;;  %v1529_v18 = vadd.f32 %v1528_v16, %v3080_v9 }
 0x14a   : > { %2673 = vtanh.f32 %v1472_v52 }
 0x14b   : > { %2675 = vtanh.f32 %v1525_v12 }
 0x14c   : > { %2677 = vtanh.f32 %v1474_v57 }
 0x14d   : > { %2679 = vtanh.f32 %v1527_v62  ;;  %v1479_v19 = vpop.f32.mrb[12].mxu0  ;;  %v1532_v20 = vpop.f32.mrb[12].mxu1 }
 0x14e   : > { %2681 = vtanh.f32 %v1476_v17  ;;  %v1480_v21 = vadd.f32 %v1479_v19, %v3082_v5  ;;  %v1481_v22 = vpop.f32.mrb[13].mxu0  ;;  %v1533_v24 = vadd.f32 %v1532_v20, %v3082_v5  ;;  %v1534_v25 = vpop.f32.mrb[13].mxu1 }
 0x14f   : > { %2683 = vtanh.f32 %v1529_v18  ;;  %v1482_v26 = vadd.f32 %v1481_v22, %v3082_v5  ;;  %v1483_v27 = vpop.f32.mrb[14].mxu0  ;;  %v1536_v28 = vpop.f32.mrb[14].mxu1  ;;  %v1535_v30 = vadd.f32 %v1534_v25, %v3082_v5 }
 0x150   : > { %2685 = vtanh.f32 %v1480_v21  ;;  %v1484_v29 = vadd.f32 %v1483_v27, %v3092_v23  ;;  %v1485_v31 = vpop.f32.mrb[15].mxu0  ;;  %v1538_v32 = vpop.f32.mrb[15].mxu1  ;;  %v1537_v35 = vadd.f32 %v1536_v28, %v3092_v23 }
 0x151   : > { %2687 = vtanh.f32 %v1482_v26  ;;  %v1486_v33 = vadd.f32 %v1485_v31, %v3092_v23  ;;  %v1539_v37 = vadd.f32 %v1538_v32, %v3092_v23 }
 0x152   : > { %v2670_v34 = vpop.eup %2669  ;;  %2689 = vtanh.f32 %v1533_v24 }
 0x153   : > { %v2672_v36 = vpop.eup %2671  ;;  %2691 = vtanh.f32 %v1484_v29 }
 0x154   : > { %v2674_v38 = vpop.eup %2673  ;;  %2693 = vtanh.f32 %v1535_v30 }
 0x155   : > { %v2676_v39 = vpop.eup %2675  ;;  %v2324_v40 = vpack.c.bf16 %v2674_v38, %v2670_v34  ;;  %2695 = vtanh.f32 %v1486_v33 }
 0x156   : > { %v2678_v41 = vpop.eup %2677  ;;  %v2325_v42 = vpack.c.bf16 %v2676_v39, %v2672_v36  ;;  %2697 = vtanh.f32 %v1537_v35 }
 0x157   : > { %v2680_v43 = vpop.eup %2679  ;;  %1995 = vst [vmem:[%s3106_s13 + $0x10] sm:$0xff] %v2324_v40  ;;  %2699 = vtanh.f32 %v1539_v37 }
 0x158   : > { %v2682_v44 = vpop.eup %2681  ;;  %1996 = vst [vmem:[%s3106_s13 + $0x18] sm:$0xff] %v2325_v42 }
 0x159   : > { %v2684_v45 = vpop.eup %2683  ;;  %v2332_v46 = vpack.c.bf16 %v2682_v44, %v2678_v41 }
 0x15a   : > { %v2686_v47 = vpop.eup %2685  ;;  %v2333_v48 = vpack.c.bf16 %v2684_v45, %v2680_v43 }
 0x15b   : > { %v2688_v49 = vpop.eup %2687  ;;  %2004 = vst [vmem:[%s3106_s13 + $0x4c] sm:$0xff] %v2332_v46 }
 0x15c   : > { %v2690_v50 = vpop.eup %2689  ;;  %2005 = vst [vmem:[%s3106_s13 + $0x54] sm:$0xff] %v2333_v48  ;;  %v2340_v51 = vpack.c.bf16 %v2688_v49, %v2686_v47 }
 0x15d   : > { %v2692_v53 = vpop.eup %2691 }
 0x15e   : > { %v2694_v54 = vpop.eup %2693  ;;  %2012 = vst [vmem:[%s3106_s13 + $0x88] sm:$0xff] %v2340_v51 }
 0x15f   : > { %v2696_v55 = vpop.eup %2695  ;;  %v2341_v56 = vpack.c.bf16 %v2694_v54, %v2690_v50 }
 0x160   : > { %v2698_v58 = vpop.eup %2697  ;;  %v2348_v59 = vpack.c.bf16 %v2696_v55, %v2692_v53 }
 0x161   : > { %v2700_v60 = vpop.eup %2699  ;;  %2013 = vst [vmem:[%s3106_s13 + $0x90] sm:$0xff] %v2341_v56 }
 0x162   : > { %2020 = vst [vmem:[%s3106_s13 + $0xc4] sm:$0xff] %v2348_v59  ;;  %v2349_v61 = vpack.c.bf16 %v2700_v60, %v2698_v58 }
 0x164   : > { %2021 = vst [vmem:[%s3106_s13 + $0xcc] sm:$0xff] %v2349_v61 }
 0x175   : > { %v1575_v63 = vpop.f32.mrb[16].mxu0  ;;  %v1628_v1 = vpop.f32.mrb[16].mxu1 }
 0x176   : > { %v1576_v2 = vadd.f32 %v1575_v63, %v3078_v8  ;;  %v1629_v3 = vadd.f32 %v1628_v1, %v3078_v8  ;;  %v1577_v4 = vpop.f32.mrb[17].mxu0  ;;  %v1630_v6 = vpop.f32.mrb[17].mxu1 }
 0x177   : > { %v1578_v0 = vadd.f32 %v1577_v4, %v3078_v8  ;;  %v1631_v7 = vadd.f32 %v1630_v6, %v3078_v8  ;;  %v1579_v10 = vpop.f32.mrb[18].mxu0  ;;  %v1632_v11 = vpop.f32.mrb[18].mxu1 }
 0x178   : > { %2701 = vtanh.f32 %v1576_v2  ;;  %v1580_v52 = vadd.f32 %v1579_v10, %v3080_v9  ;;  %v1581_v12 = vpop.f32.mrb[19].mxu0  ;;  %v1634_v13 = vpop.f32.mrb[19].mxu1  ;;  %v1633_v14 = vadd.f32 %v1632_v11, %v3080_v9 }
 0x179   : > { %2703 = vtanh.f32 %v1629_v3  ;;  %v1582_v57 = vadd.f32 %v1581_v12, %v3080_v9  ;;  %v1635_v15 = vadd.f32 %v1634_v13, %v3080_v9 }
 0x17a   : > { %2705 = vtanh.f32 %v1578_v0 }
 0x17b   : > { %2707 = vtanh.f32 %v1631_v7 }
 0x17c   : > { %2709 = vtanh.f32 %v1580_v52 }
 0x17d   : > { %2711 = vtanh.f32 %v1633_v14  ;;  %v1585_v16 = vpop.f32.mrb[20].mxu0  ;;  %v1638_v62 = vpop.f32.mrb[20].mxu1 }
 0x17e   : > { %2713 = vtanh.f32 %v1582_v57  ;;  %v1586_v17 = vadd.f32 %v1585_v16, %v3082_v5  ;;  %v1587_v18 = vpop.f32.mrb[21].mxu0  ;;  %v1639_v19 = vadd.f32 %v1638_v62, %v3082_v5  ;;  %v1640_v20 = vpop.f32.mrb[21].mxu1 }
 0x17f   : > { %2715 = vtanh.f32 %v1635_v15  ;;  %v1588_v21 = vadd.f32 %v1587_v18, %v3082_v5  ;;  %v1589_v22 = vpop.f32.mrb[22].mxu0  ;;  %v1642_v24 = vpop.f32.mrb[22].mxu1  ;;  %v1641_v26 = vadd.f32 %v1640_v20, %v3082_v5 }
 0x180   : > { %2717 = vtanh.f32 %v1586_v17  ;;  %v1590_v25 = vadd.f32 %v1589_v22, %v3092_v23  ;;  %v1591_v27 = vpop.f32.mrb[23].mxu0  ;;  %v1644_v28 = vpop.f32.mrb[23].mxu1  ;;  %v1643_v31 = vadd.f32 %v1642_v24, %v3092_v23 }
 0x181   : > { %2719 = vtanh.f32 %v1588_v21  ;;  %v1592_v29 = vadd.f32 %v1591_v27, %v3092_v23  ;;  %v1645_v33 = vadd.f32 %v1644_v28, %v3092_v23 }
 0x182   : > { %v2702_v30 = vpop.eup %2701  ;;  %2721 = vtanh.f32 %v1639_v19 }
 0x183   : > { %v2704_v32 = vpop.eup %2703  ;;  %2723 = vtanh.f32 %v1590_v25 }
 0x184   : > { %v2706_v34 = vpop.eup %2705  ;;  %2725 = vtanh.f32 %v1641_v26 }
 0x185   : > { %v2708_v35 = vpop.eup %2707  ;;  %v2326_v36 = vpack.c.bf16 %v2706_v34, %v2702_v30  ;;  %2727 = vtanh.f32 %v1592_v29 }
 0x186   : > { %v2710_v37 = vpop.eup %2709  ;;  %v2327_v38 = vpack.c.bf16 %v2708_v35, %v2704_v32  ;;  %2729 = vtanh.f32 %v1643_v31 }
 0x187   : > { %v2712_v39 = vpop.eup %2711  ;;  %1997 = vst [vmem:[%s3106_s13 + $0x20] sm:$0xff] %v2326_v36  ;;  %2731 = vtanh.f32 %v1645_v33 }
 0x188   : > { %v2714_v40 = vpop.eup %2713  ;;  %1998 = vst [vmem:[%s3106_s13 + $0x28] sm:$0xff] %v2327_v38 }
 0x189   : > { %v2716_v41 = vpop.eup %2715  ;;  %v2334_v42 = vpack.c.bf16 %v2714_v40, %v2710_v37 }
 0x18a   : > { %v2718_v43 = vpop.eup %2717  ;;  %v2335_v44 = vpack.c.bf16 %v2716_v41, %v2712_v39 }
 0x18b   : > { %v2720_v45 = vpop.eup %2719  ;;  %2006 = vst [vmem:[%s3106_s13 + $0x5c] sm:$0xff] %v2334_v42 }
 0x18c   : > { %v2722_v46 = vpop.eup %2721  ;;  %2007 = vst [vmem:[%s3106_s13 + $0x64] sm:$0xff] %v2335_v44  ;;  %v2342_v47 = vpack.c.bf16 %v2720_v45, %v2718_v43 }
 0x18d   : > { %v2724_v48 = vpop.eup %2723 }
 0x18e   : > { %v2726_v49 = vpop.eup %2725  ;;  %2014 = vst [vmem:[%s3106_s13 + $0x98] sm:$0xff] %v2342_v47 }
 0x18f   : > { %v2728_v50 = vpop.eup %2727  ;;  %v2343_v51 = vpack.c.bf16 %v2726_v49, %v2722_v46 }
 0x190   : > { %v2730_v53 = vpop.eup %2729  ;;  %v2350_v54 = vpack.c.bf16 %v2728_v50, %v2724_v48 }
 0x191   : > { %v2732_v55 = vpop.eup %2731  ;;  %2015 = vst [vmem:[%s3106_s13 + $0xa0] sm:$0xff] %v2343_v51 }
 0x192   : > { %2022 = vst [vmem:[%s3106_s13 + $0xd4] sm:$0xff] %v2350_v54  ;;  %v2351_v56 = vpack.c.bf16 %v2732_v55, %v2730_v53 }
 0x194   : > { %2023 = vst [vmem:[%s3106_s13 + $0xdc] sm:$0xff] %v2351_v56 }
 0x1a5   : > { %v1681_v58 = vpop.f32.mrb[24].mxu0  ;;  %v1734_v59 = vpop.f32.mrb[24].mxu1 }
 0x1a6   : > { %v1682_v60 = vadd.f32 %v1681_v58, %v3078_v8  ;;  %v1735_v61 = vadd.f32 %v1734_v59, %v3078_v8  ;;  %v1683_v63 = vpop.f32.mrb[25].mxu0  ;;  %v1736_v1 = vpop.f32.mrb[25].mxu1 }
 0x1a7   : > { %v1684_v2 = vadd.f32 %v1683_v63, %v3078_v8  ;;  %v1685_v3 = vpop.f32.mrb[26].mxu0  ;;  %v1737_v4 = vpop.f32.mrb[26].mxu1 }
 0x1a8   : > { %2733 = vtanh.f32 %v1682_v60  ;;  %v1686_v6 = vadd.f32 %v1685_v3, %v3080_v9  ;;  %v1738_v0 = vadd.f32 %v1737_v4, %v3080_v9  ;;  %v1687_v7 = vpop.f32.mrb[27].mxu0  ;;  %v1739_v10 = vpop.f32.mrb[27].mxu1 }
 0x1a9   : > { %2735 = vtanh.f32 %v1735_v61  ;;  %v1688_v11 = vadd.f32 %v1687_v7, %v3080_v9 }
 0x1aa   : > { %2737 = vtanh.f32 %v1684_v2 }
 0x1ab   : > { %2739 = vtanh.f32 %v1686_v6 }
 0x1ac   : > { %2741 = vtanh.f32 %v1738_v0 }
 0x1ad   : > { %2743 = vtanh.f32 %v1688_v11  ;;  %v1691_v52 = vpop.f32.mrb[28].mxu0  ;;  %v1742_v12 = vpop.f32.mrb[28].mxu1 }
 0x1ae   : > { %v1692_v8 = vadd.f32 %v1691_v52, %v3082_v5  ;;  %v1743_v13 = vadd.f32 %v1742_v12, %v3082_v5  ;;  %v1693_v14 = vpop.f32.mrb[29].mxu0  ;;  %v1744_v57 = vpop.f32.mrb[29].mxu1 }
 0x1af   : > { %v1694_v15 = vadd.f32 %v1693_v14, %v3082_v5  ;;  %v1695_v16 = vpop.f32.mrb[30].mxu0  ;;  %v1745_v62 = vpop.f32.mrb[30].mxu1 }
 0x1b0   : > { %2745 = vtanh.f32 %v1692_v8  ;;  %v1696_v17 = vadd.f32 %v1695_v16, %v3092_v23  ;;  %v1746_v9 = vadd.f32 %v1745_v62, %v3092_v23  ;;  %v1697_v18 = vpop.f32.mrb[31].mxu0  ;;  %v1747_v19 = vpop.f32.mrb[31].mxu1 }
 0x1b1   : > { %2747 = vtanh.f32 %v1743_v13  ;;  %v1698_v20 = vadd.f32 %v1697_v18, %v3092_v23 }
 0x1b2   : > { %v2734_v21 = vpop.eup %2733  ;;  %2749 = vtanh.f32 %v1694_v15 }
 0x1b3   : > { %v2736_v22 = vpop.eup %2735  ;;  %2751 = vtanh.f32 %v1696_v17 }
 0x1b4   : > { %v2738_v5 = vpop.eup %2737  ;;  %v2329_v24 = vpack.c.bf16 %v2736_v22, %v2736_v22  ;;  %2753 = vtanh.f32 %v1746_v9 }
 0x1b5   : > { %v2740_v25 = vpop.eup %2739  ;;  %v2328_v26 = vpack.c.bf16 %v2738_v5, %v2734_v21  ;;  %2755 = vtanh.f32 %v1698_v20 }
 0x1b6   : > { %v2742_v27 = vpop.eup %2741  ;;  %2001 = vst.msk [vmem:[%s3106_s13 + $0x38] sm:$0xf] %vm2000_vm1, %v2329_v24 }
 0x1b7   : > { %v2744_v28 = vpop.eup %2743  ;;  %1999 = vst [vmem:[%s3106_s13 + $0x30] sm:$0xff] %v2328_v26  ;;  %v2337_v23 = vpack.c.bf16 %v2742_v27, %v2742_v27 }
 0x1b8   : > { %v2336_v29 = vpack.c.bf16 %v2744_v28, %v2740_v25 }
 0x1b9   : > { %2009 = vst.msk [vmem:[%s3106_s13 + $0x74] sm:$0xf] %vm2000_vm1, %v2337_v23 }
 0x1ba   : > { %v2746_v30 = vpop.eup %2745  ;;  %2008 = vst [vmem:[%s3106_s13 + $0x6c] sm:$0xff] %v2336_v29 }
 0x1bb   : > { %v2748_v31 = vpop.eup %2747 }
 0x1bc   : > { %v2750_v32 = vpop.eup %2749  ;;  %v2345_v33 = vpack.c.bf16 %v2748_v31, %v2748_v31 }
 0x1bd   : > { %v2752_v34 = vpop.eup %2751  ;;  %v2344_v35 = vpack.c.bf16 %v2750_v32, %v2746_v30 }
 0x1be   : > { %v2754_v36 = vpop.eup %2753  ;;  %2017 = vst.msk [vmem:[%s3106_s13 + $0xb0] sm:$0xf] %vm2000_vm1, %v2345_v33 }
 0x1bf   : > { %v2756_v37 = vpop.eup %2755  ;;  %2016 = vst [vmem:[%s3106_s13 + $0xa8] sm:$0xff] %v2344_v35  ;;  %v2353_v38 = vpack.c.bf16 %v2754_v36, %v2754_v36 }
 0x1c0   : > { %v2352_v39 = vpack.c.bf16 %v2756_v37, %v2752_v34 }
 0x1c1   : > { %2025 = vst.msk [vmem:[%s3106_s13 + $0xec] sm:$0xf] %vm2000_vm1, %v2353_v38 }
 0x1c2   : > { %2024 = vst [vmem:[%s3106_s13 + $0xe4] sm:$0xff] %v2352_v39 }
 0x1c3 PF: > { %s13_s12 = sadd.s32 1, %s2764_s12  }
 0x1c4   : > { %p10_p4 = scmp.ge.s32.totalorder %s13_s12, 4  }
 0x1c6   :  { %12 = sbr.rel (!%p10_p4) target bundleno = 1 (0x1), region = 62 }

// kernel: dqn_forward.5
= control target key start
LH: loop header
LB: loop body
LE: loop exit
PB: predicated region body
PF: predicated region fallthrough
CT: control target
= control target key end

     0   :  { %s2150_s12 = smov 0   ;;  %s2411_s0 = inlined_call_operand.vmem [shape: bf16[64,512], index: 0, kind: input, shape index: {}]   ;;  %s2412_s1 = inlined_call_operand.vmem [shape: bf16[2,512,432], index: 1, kind: input, shape index: {}]   ;;  %s2413_s2 = inlined_call_operand.vmem [shape: f32[64,1], index: 2, kind: input, shape index: {}]   ;;  %s2414_s3 = inlined_call_operand.vmem [shape: bf16[2,64,432], index: 3, kind: output, shape index: {}]  }
   0x1 LB: > { %s1577_s13 = sadd.s32 4294967295, %s2127_s12   ;;  %p1581_p0 = scmp.ge.s32.totalorder %s2127_s12, 1  ;;  %s2127_s12 = sphi %s2150_s12, %s13_s12  }
   0x2   : > { %p137_p1 = scmp.lt.s32.totalorder %s2127_s12, 3 }
   0x4   : > { %p138_p2 = pnand %p1581_p0, %p137_p1 }
   0x5   : > { %p161_p3 = scmp.lt.s32.totalorder (!%p138_p2), %s1577_s13, 1  ;;  %v1939_v0 = vld [vmem:[%s2411_s0 + $0x4] ss:$16 sps:$4 sm:$0xff] (!%p138_p2)   ;;  %v2129_v35 = vmov (!%p138_p2), 0   ;;  %vm1504_vm0 = vcmask (!%p138_p2), 1043456   ;;  %vm1505_vm1 = vcmask (!%p138_p2), 392196  }
   0x6   : > { %141 = sbr.rel (%p138_p2) target bundleno = 407 (0x197), region = 32  ;;  %1115 = vmatprep.mubr.bf16.mxu0 (!%p138_p2), %v1939_v0  ;;  %1261 = vmatprep.mubr.bf16.mxu1 (!%p138_p2), %v1939_v0  ;;  %vm2372_vm2 = vmor (!%p138_p2), %vm1505_vm1, %vm1504_vm0 }
   0x7   : > { %1839 = vset.pattern.permute.xlu0 (!%p138_p2), %v2129_v35  ;;  %1840 = vset.pattern.permute.xlu1 (!%p138_p2), %v2129_v35 }
   0xd   : > { %s2418_s13 = smov (!%p161_p3, %s1577_s13), 1 }
   0xe   : > { %s1748_s16 = sshll.u32 %s2418_s13, 10 }
   0xf   : > { %s2167_s19 = scalar_lea.vmem %s2412_s1, %s1748_s16  ;;  %s1749_s16 = sshll.u32 %s2418_s13, 7 }
  0x10   : > { %v1841_v1 = vld [vmem:[%s2167_s19 + $0x4] ss:$16 sps:$4 sm:$0xff]   ;;  %v1843_v2 = vld [vmem:[%s2167_s19 + $0xc] ss:$16 sps:$4 sm:$0xff]   ;;  %v1845_v3 = vld [vmem:[%s2167_s19] ss:$16 sps:$4 sm:$0xff]   ;;  %s2370_s20 = scalar_lea.vmem %s2414_s3, %s1749_s16 }
  0x11   : > { %1083 = vmatprep.subr.bf16.mxu0 %v1841_v1  ;;  %v1846_v4 = vld [vmem:[%s2167_s19 + $0x8] ss:$16 sps:$4 sm:$0xff]   ;;  %1229 = vmatprep.subr.bf16.mxu1 %v1843_v2  ;;  %v1847_v5 = vld [vmem:[%s2167_s19 + $0x24] ss:$16 sps:$4 sm:$0xff]   ;;  %v1849_v6 = vld [vmem:[%s2167_s19 + $0x2c] ss:$16 sps:$4 sm:$0xff]  }
  0x12   : > { %1084 = vmatpush1.bf16.msra.mxu0 %v1845_v3  ;;  %1230 = vmatpush1.bf16.msra.mxu1 %v1846_v4  ;;  %v1851_v7 = vld [vmem:[%s2167_s19 + $0x20] ss:$16 sps:$4 sm:$0xff]   ;;  %v1852_v8 = vld [vmem:[%s2167_s19 + $0x28] ss:$16 sps:$4 sm:$0xff]   ;;  %v1853_v9 = vld [vmem:[%s2167_s19 + $0x44] ss:$16 sps:$4 sm:$0xff]  }
  0x13   : > { %1085 = vmatprep.subr.bf16.mxu0 %v1847_v5  ;;  %1231 = vmatprep.subr.bf16.mxu1 %v1849_v6  ;;  %v1855_v10 = vld [vmem:[%s2167_s19 + $0x4c] ss:$16 sps:$4 sm:$0xff]   ;;  %v1857_v11 = vld [vmem:[%s2167_s19 + $0x40] ss:$16 sps:$4 sm:$0xff]   ;;  %v1858_v12 = vld [vmem:[%s2167_s19 + $0x48] ss:$16 sps:$4 sm:$0xff]  }
  0x14   : > { %v1859_v13 = vld [vmem:[%s2167_s19 + $0x64] ss:$16 sps:$4 sm:$0xff]   ;;  %v1861_v14 = vld [vmem:[%s2167_s19 + $0x6c] ss:$16 sps:$4 sm:$0xff]   ;;  %v1863_v15 = vld [vmem:[%s2167_s19 + $0x60] ss:$16 sps:$4 sm:$0xff]  }
  0x15   : > { %v1864_v16 = vld [vmem:[%s2167_s19 + $0x68] ss:$16 sps:$4 sm:$0xff]   ;;  %v1865_v17 = vld [vmem:[%s2167_s19 + $0x84] ss:$16 sps:$4 sm:$0xff]   ;;  %v1867_v18 = vld [vmem:[%s2167_s19 + $0x8c] ss:$16 sps:$4 sm:$0xff]  }
  0x16   : > { %1086 = vmatpush1.bf16.msra.mxu0 %v1851_v7  ;;  %1232 = vmatpush1.bf16.msra.mxu1 %v1852_v8  ;;  %v1869_v19 = vld [vmem:[%s2167_s19 + $0x80] ss:$16 sps:$4 sm:$0xff]   ;;  %v1870_v20 = vld [vmem:[%s2167_s19 + $0x88] ss:$16 sps:$4 sm:$0xff]   ;;  %v1871_v21 = vld [vmem:[%s2167_s19 + $0xa4] ss:$16 sps:$4 sm:$0xff]  }
  0x17   : > { %1087 = vmatprep.subr.bf16.mxu0 %v1853_v9  ;;  %1233 = vmatprep.subr.bf16.mxu1 %v1855_v10  ;;  %v1873_v22 = vld [vmem:[%s2167_s19 + $0xac] ss:$16 sps:$4 sm:$0xff]   ;;  %v1875_v23 = vld [vmem:[%s2167_s19 + $0xa0] ss:$16 sps:$4 sm:$0xff]   ;;  %v1876_v24 = vld [vmem:[%s2167_s19 + $0xa8] ss:$16 sps:$4 sm:$0xff]  }
  0x18   : > { %v1877_v25 = vld [vmem:[%s2167_s19 + $0xc4] ss:$16 sps:$4 sm:$0xff]   ;;  %v1879_v26 = vld [vmem:[%s2167_s19 + $0xcc] ss:$16 sps:$4 sm:$0xff]   ;;  %v1881_v27 = vld [vmem:[%s2167_s19 + $0xc0] ss:$16 sps:$4 sm:$0xff]  }
  0x19   : > { %v1882_v28 = vld [vmem:[%s2167_s19 + $0xc8] ss:$16 sps:$4 sm:$0xff]   ;;  %v1883_v29 = vld [vmem:[%s2167_s19 + $0xe4] ss:$16 sps:$4 sm:$0xff]   ;;  %v1885_v30 = vld [vmem:[%s2167_s19 + $0xec] ss:$16 sps:$4 sm:$0xff]  }
  0x1a   : > { %1088 = vmatpush1.bf16.msra.mxu0 %v1857_v11  ;;  %1234 = vmatpush1.bf16.msra.mxu1 %v1858_v12  ;;  %v1887_v31 = vld [vmem:[%s2167_s19 + $0xe0] ss:$16 sps:$4 sm:$0xff]   ;;  %v1888_v32 = vld [vmem:[%s2167_s19 + $0xe8] ss:$16 sps:$4 sm:$0xff]   ;;  %v1889_v33 = vld [vmem:[%s2167_s19 + $0x104] ss:$16 sps:$4 sm:$0xff]  }
  0x1b   : > { %1089 = vmatprep.subr.bf16.mxu0 %v1859_v13  ;;  %1235 = vmatprep.subr.bf16.mxu1 %v1861_v14  ;;  %v1891_v34 = vld [vmem:[%s2167_s19 + $0x10c] ss:$16 sps:$4 sm:$0xff]   ;;  %v1893_v36 = vld [vmem:[%s2167_s19 + $0x100] ss:$16 sps:$4 sm:$0xff]   ;;  %v1894_v37 = vld [vmem:[%s2167_s19 + $0x108] ss:$16 sps:$4 sm:$0xff]  }
  0x1c   : > { %v1895_v38 = vld [vmem:[%s2167_s19 + $0x124] ss:$16 sps:$4 sm:$0xff]   ;;  %v1897_v39 = vld [vmem:[%s2167_s19 + $0x12c] ss:$16 sps:$4 sm:$0xff]   ;;  %v1899_v40 = vld [vmem:[%s2167_s19 + $0x120] ss:$16 sps:$4 sm:$0xff]  }
  0x1d   : > { %v1900_v41 = vld [vmem:[%s2167_s19 + $0x128] ss:$16 sps:$4 sm:$0xff]   ;;  %v1901_v42 = vld [vmem:[%s2167_s19 + $0x144] ss:$16 sps:$4 sm:$0xff]   ;;  %v1903_v43 = vld [vmem:[%s2167_s19 + $0x14c] ss:$16 sps:$4 sm:$0xff]  }
  0x1e   : > { %1090 = vmatpush1.bf16.msra.mxu0 %v1863_v15  ;;  %1236 = vmatpush1.bf16.msra.mxu1 %v1864_v16  ;;  %v1905_v44 = vld [vmem:[%s2167_s19 + $0x140] ss:$16 sps:$4 sm:$0xff]   ;;  %v1906_v45 = vld [vmem:[%s2167_s19 + $0x148] ss:$16 sps:$4 sm:$0xff]   ;;  %v1907_v46 = vld [vmem:[%s2167_s19 + $0x164] ss:$16 sps:$4 sm:$0xff]  }
  0x1f   : > { %1091 = vmatprep.subr.bf16.mxu0 %v1865_v17  ;;  %1237 = vmatprep.subr.bf16.mxu1 %v1867_v18  ;;  %v1909_v47 = vld [vmem:[%s2167_s19 + $0x16c] ss:$16 sps:$4 sm:$0xff]   ;;  %v1911_v48 = vld [vmem:[%s2167_s19 + $0x160] ss:$16 sps:$4 sm:$0xff]   ;;  %v1912_v49 = vld [vmem:[%s2167_s19 + $0x168] ss:$16 sps:$4 sm:$0xff]  }
  0x20   : > { %v1913_v50 = vld [vmem:[%s2167_s19 + $0x184] ss:$16 sps:$4 sm:$0xff]   ;;  %v1915_v51 = vld [vmem:[%s2167_s19 + $0x18c] ss:$16 sps:$4 sm:$0xff]   ;;  %v1917_v52 = vld [vmem:[%s2167_s19 + $0x180] ss:$16 sps:$4 sm:$0xff]  }
  0x21   : > { %v1918_v53 = vld [vmem:[%s2167_s19 + $0x188] ss:$16 sps:$4 sm:$0xff]   ;;  %v1919_v54 = vld [vmem:[%s2167_s19 + $0x1a4] ss:$16 sps:$4 sm:$0xff]   ;;  %v1921_v55 = vld [vmem:[%s2167_s19 + $0x1ac] ss:$16 sps:$4 sm:$0xff]  }
  0x22   : > { %1092 = vmatpush1.bf16.msra.mxu0 %v1869_v19  ;;  %1238 = vmatpush1.bf16.msra.mxu1 %v1870_v20  ;;  %v1923_v56 = vld [vmem:[%s2167_s19 + $0x1a0] ss:$16 sps:$4 sm:$0xff]   ;;  %v1924_v57 = vld [vmem:[%s2167_s19 + $0x1a8] ss:$16 sps:$4 sm:$0xff]   ;;  %v1925_v58 = vld [vmem:[%s2167_s19 + $0x1c4] ss:$16 sps:$4 sm:$0xff]  }
  0x23   : > { %1093 = vmatprep.subr.bf16.mxu0 %v1871_v21  ;;  %1239 = vmatprep.subr.bf16.mxu1 %v1873_v22  ;;  %v1927_v59 = vld [vmem:[%s2167_s19 + $0x1cc] ss:$16 sps:$4 sm:$0xff]   ;;  %v1929_v60 = vld [vmem:[%s2167_s19 + $0x1c0] ss:$16 sps:$4 sm:$0xff]   ;;  %v1930_v61 = vld [vmem:[%s2167_s19 + $0x1c8] ss:$16 sps:$4 sm:$0xff]  }
  0x24   : > { %v1931_v62 = vld [vmem:[%s2167_s19 + $0x1e4] ss:$16 sps:$4 sm:$0xff]   ;;  %v1933_v63 = vld [vmem:[%s2167_s19 + $0x1ec] ss:$16 sps:$4 sm:$0xff]   ;;  %v1935_v0 = vld [vmem:[%s2167_s19 + $0x1e0] ss:$16 sps:$4 sm:$0xff]  }
  0x25   : > { %v1936_v1 = vld [vmem:[%s2167_s19 + $0x1e8] ss:$16 sps:$4 sm:$0xff]   ;;  %v1942_v2 = vld [vmem:[%s2167_s19 + $0x204] ss:$16 sps:$4 sm:$0xff]   ;;  %v1945_v3 = vld [vmem:[%s2167_s19 + $0x20c] ss:$16 sps:$4 sm:$0xff]  }
  0x26   : > { %1094 = vmatpush1.bf16.msra.mxu0 %v1875_v23  ;;  %1240 = vmatpush1.bf16.msra.mxu1 %v1876_v24  ;;  %v1937_v4 = vld [vmem:[%s2411_s0] ss:$16 sps:$4 sm:$0xff]   ;;  %v1943_v6 = vld [vmem:[%s2167_s19 + $0x208] ss:$16 sps:$4 sm:$0xff]   ;;  %v1948_v7 = vld [vmem:[%s2167_s19 + $0x224] ss:$16 sps:$4 sm:$0xff]  }
  0x27   : > { %1095 = vmatprep.subr.bf16.mxu0 %v1877_v25  ;;  %1241 = vmatprep.subr.bf16.mxu1 %v1879_v26  ;;  %v1940_v5 = vld [vmem:[%s2167_s19 + $0x200] ss:$16 sps:$4 sm:$0xff]   ;;  %v1951_v8 = vld [vmem:[%s2167_s19 + $0x22c] ss:$16 sps:$4 sm:$0xff]   ;;  %v2000_v9 = vld [vmem:[%s2411_s0 + $0x24] ss:$16 sps:$4 sm:$0xff]  }
  0x28   : > { %v1946_v10 = vld [vmem:[%s2167_s19 + $0x220] ss:$16 sps:$4 sm:$0xff]   ;;  %v1949_v11 = vld [vmem:[%s2167_s19 + $0x228] ss:$16 sps:$4 sm:$0xff]   ;;  %v1954_v12 = vld [vmem:[%s2167_s19 + $0x244] ss:$16 sps:$4 sm:$0xff]  }
  0x29   : > { %v1957_v13 = vld [vmem:[%s2167_s19 + $0x24c] ss:$16 sps:$4 sm:$0xff]   ;;  %v2002_v14 = vld [vmem:[%s2411_s0 + $0x20] ss:$16 sps:$4 sm:$0xff]   ;;  %v1955_v16 = vld [vmem:[%s2167_s19 + $0x248] ss:$16 sps:$4 sm:$0xff]  }
  0x2a   : > { %1096 = vmatpush1.bf16.msra.mxu0 %v1881_v27  ;;  %1242 = vmatpush1.bf16.msra.mxu1 %v1882_v28  ;;  %v1952_v15 = vld [vmem:[%s2167_s19 + $0x240] ss:$16 sps:$4 sm:$0xff]   ;;  %v1960_v17 = vld [vmem:[%s2167_s19 + $0x264] ss:$16 sps:$4 sm:$0xff]   ;;  %v1963_v18 = vld [vmem:[%s2167_s19 + $0x26c] ss:$16 sps:$4 sm:$0xff]  }
  0x2b   : > { %1097 = vmatprep.subr.bf16.mxu0 %v1883_v29  ;;  %1243 = vmatprep.subr.bf16.mxu1 %v1885_v30  ;;  %v2015_v19 = vld [vmem:[%s2411_s0 + $0x44] ss:$16 sps:$4 sm:$0xff]   ;;  %v1958_v20 = vld [vmem:[%s2167_s19 + $0x260] ss:$16 sps:$4 sm:$0xff]   ;;  %v1961_v21 = vld [vmem:[%s2167_s19 + $0x268] ss:$16 sps:$4 sm:$0xff]  }
  0x2c   : > { %v1966_v22 = vld [vmem:[%s2167_s19 + $0x284] ss:$16 sps:$4 sm:$0xff]   ;;  %v1969_v23 = vld [vmem:[%s2167_s19 + $0x28c] ss:$16 sps:$4 sm:$0xff]   ;;  %v2017_v24 = vld [vmem:[%s2411_s0 + $0x40] ss:$16 sps:$4 sm:$0xff]  }
  0x2d   : > { %v1964_v25 = vld [vmem:[%s2167_s19 + $0x280] ss:$16 sps:$4 sm:$0xff]   ;;  %v1967_v26 = vld [vmem:[%s2167_s19 + $0x288] ss:$16 sps:$4 sm:$0xff]   ;;  %v1972_v27 = vld [vmem:[%s2167_s19 + $0x2a4] ss:$16 sps:$4 sm:$0xff]  }
  0x2e   : > { %1098 = vmatpush1.bf16.msra.mxu0 %v1887_v31  ;;  %1244 = vmatpush1.bf16.msra.mxu1 %v1888_v32  ;;  %v1975_v28 = vld [vmem:[%s2167_s19 + $0x2ac] ss:$16 sps:$4 sm:$0xff]   ;;  %v2030_v29 = vld [vmem:[%s2411_s0 + $0x64] ss:$16 sps:$4 sm:$0xff]   ;;  %v1970_v30 = vld [vmem:[%s2167_s19 + $0x2a0] ss:$16 sps:$4 sm:$0xff]  }
  0x2f   : > { %1099 = vmatprep.subr.bf16.mxu0 %v1889_v33  ;;  %1245 = vmatprep.subr.bf16.mxu1 %v1891_v34  ;;  %v1973_v31 = vld [vmem:[%s2167_s19 + $0x2a8] ss:$16 sps:$4 sm:$0xff]   ;;  %v1978_v32 = vld [vmem:[%s2167_s19 + $0x2c4] ss:$16 sps:$4 sm:$0xff]   ;;  %v1981_v33 = vld [vmem:[%s2167_s19 + $0x2cc] ss:$16 sps:$4 sm:$0xff]  }
  0x30   : > { %v2032_v34 = vld [vmem:[%s2411_s0 + $0x60] ss:$16 sps:$4 sm:$0xff]  }
  0x31   : > { %v1976_v35 = vld [vmem:[%s2167_s19 + $0x2c0] ss:$16 sps:$4 sm:$0xff]  }
  0x32   : > { %1100 = vmatpush1.bf16.msra.mxu0 %v1893_v36  ;;  %1246 = vmatpush1.bf16.msra.mxu1 %v1894_v37  ;;  %v1979_v36 = vld [vmem:[%s2167_s19 + $0x2c8] ss:$16 sps:$4 sm:$0xff]   ;;  %v1984_v37 = vld [vmem:[%s2167_s19 + $0x2e4] ss:$16 sps:$4 sm:$0xff]  }
  0x33   : > { %1101 = vmatprep.subr.bf16.mxu0 %v1895_v38  ;;  %1247 = vmatprep.subr.bf16.mxu1 %v1897_v39  ;;  %v1987_v38 = vld [vmem:[%s2167_s19 + $0x2ec] ss:$16 sps:$4 sm:$0xff]  }
  0x34   : > { %v2047_v39 = vld [vmem:[%s2411_s0 + $0xc] ss:$16 sps:$4 sm:$0xff]  }
  0x36   : > { %1102 = vmatpush1.bf16.msra.mxu0 %v1899_v40  ;;  %1248 = vmatpush1.bf16.msra.mxu1 %v1900_v41  ;;  %v1982_v40 = vld [vmem:[%s2167_s19 + $0x2e0] ss:$16 sps:$4 sm:$0xff]   ;;  %v1985_v41 = vld [vmem:[%s2167_s19 + $0x2e8] ss:$16 sps:$4 sm:$0xff]  }
  0x37   : > { %1103 = vmatprep.subr.bf16.mxu0 %v1901_v42  ;;  %1249 = vmatprep.subr.bf16.mxu1 %v1903_v43  ;;  %v315_v42 = vld [vmem:[%s2413_s2] sm:$0xff]  ;;  %v317_v43 = vld [vmem:[%s2413_s2 + $0x10] sm:$0xff] }
  0x38   : > { %325 = vperm.xlu0 %1839, %v315_v42   ;;  %335 = vperm.xlu1 %1840, %v317_v43  }
  0x3a   : > { %1104 = vmatpush1.bf16.msra.mxu0 %v1905_v44  ;;  %1250 = vmatpush1.bf16.msra.mxu1 %v1906_v45  ;;  %v1990_v44 = vld [vmem:[%s2167_s19 + $0x304] ss:$16 sps:$4 sm:$0xff]   ;;  %v1993_v45 = vld [vmem:[%s2167_s19 + $0x30c] ss:$16 sps:$4 sm:$0xff]  }
  0x3b   : > { %1105 = vmatprep.subr.bf16.mxu0 %v1907_v46  ;;  %1251 = vmatprep.subr.bf16.mxu1 %v1909_v47  ;;  %v1988_v46 = vld [vmem:[%s2167_s19 + $0x300] ss:$16 sps:$4 sm:$0xff]   ;;  %v1991_v47 = vld [vmem:[%s2167_s19 + $0x308] ss:$16 sps:$4 sm:$0xff]  }
  0x3e   : > { %1106 = vmatpush1.bf16.msra.mxu0 %v1911_v48  ;;  %1252 = vmatpush1.bf16.msra.mxu1 %v1912_v49  ;;  %v316_v48 = vld [vmem:[%s2413_s2 + $0x8] sm:$0xff]  ;;  %v318_v49 = vld [vmem:[%s2413_s2 + $0x18] sm:$0xff] }
  0x3f   : > { %1107 = vmatprep.subr.bf16.mxu0 %v1913_v50  ;;  %1253 = vmatprep.subr.bf16.mxu1 %v1915_v51  ;;  %v1996_v50 = vld [vmem:[%s2167_s19 + $0x324] ss:$16 sps:$4 sm:$0xff]   ;;  %v1999_v51 = vld [vmem:[%s2167_s19 + $0x32c] ss:$16 sps:$4 sm:$0xff]  }
  0x40   : > { %330 = vperm.xlu0 %1839, %v316_v48   ;;  %340 = vperm.xlu1 %1840, %v318_v49  }
  0x42   : > { %1108 = vmatpush1.bf16.msra.mxu0 %v1917_v52  ;;  %1254 = vmatpush1.bf16.msra.mxu1 %v1918_v53  ;;  %v1994_v52 = vld [vmem:[%s2167_s19 + $0x320] ss:$16 sps:$4 sm:$0xff]   ;;  %v1997_v53 = vld [vmem:[%s2167_s19 + $0x328] ss:$16 sps:$4 sm:$0xff]  }
  0x43   : > { %1109 = vmatprep.subr.bf16.mxu0 %v1919_v54  ;;  %1255 = vmatprep.subr.bf16.mxu1 %v1921_v55  ;;  %v320_v54 = vld [vmem:[%s2413_s2 + $0x28] sm:$0xff]  ;;  %v319_v55 = vld [vmem:[%s2413_s2 + $0x20] sm:$0xff] }
  0x44   : > { %350 = vperm.xlu1 %1840, %v320_v54   ;;  %345 = vperm.xlu0 %1839, %v319_v55  }
  0x46   : > { %1110 = vmatpush1.bf16.msra.mxu0 %v1923_v56  ;;  %1256 = vmatpush1.bf16.msra.mxu1 %v1924_v57  ;;  %v2005_v56 = vld [vmem:[%s2167_s19 + $0x344] ss:$16 sps:$4 sm:$0xff]   ;;  %v2008_v57 = vld [vmem:[%s2167_s19 + $0x34c] ss:$16 sps:$4 sm:$0xff]  }
  0x47   : > { %1111 = vmatprep.subr.bf16.mxu0 %v1925_v58  ;;  %1257 = vmatprep.subr.bf16.mxu1 %v1927_v59  ;;  %v2003_v58 = vld [vmem:[%s2167_s19 + $0x340] ss:$16 sps:$4 sm:$0xff]   ;;  %v2006_v59 = vld [vmem:[%s2167_s19 + $0x348] ss:$16 sps:$4 sm:$0xff]  }
  0x4a   : > { %1112 = vmatpush1.bf16.msra.mxu0 %v1929_v60  ;;  %1258 = vmatpush1.bf16.msra.mxu1 %v1930_v61  ;;  %v322_v60 = vld [vmem:[%s2413_s2 + $0x38] sm:$0xff]  ;;  %v321_v61 = vld [vmem:[%s2413_s2 + $0x30] sm:$0xff] }
  0x4b   : > { %1113 = vmatprep.subr.bf16.mxu0 %v1931_v62  ;;  %1259 = vmatprep.subr.bf16.mxu1 %v1933_v63  ;;  %v2011_v62 = vld [vmem:[%s2167_s19 + $0x364] ss:$16 sps:$4 sm:$0xff]   ;;  %v2014_v63 = vld [vmem:[%s2167_s19 + $0x36c] ss:$16 sps:$4 sm:$0xff]  }
  0x4c   : > { %360 = vperm.xlu1 %1840, %v322_v60   ;;  %355 = vperm.xlu0 %1839, %v321_v61  }
  0x4e   : > { %1114 = vmatpush1.bf16.msra.mxu0 %v1935_v0  ;;  %1260 = vmatpush1.bf16.msra.mxu1 %v1936_v1  ;;  %v2009_v0 = vld [vmem:[%s2167_s19 + $0x360] ss:$16 sps:$4 sm:$0xff]   ;;  %v2012_v1 = vld [vmem:[%s2167_s19 + $0x368] ss:$16 sps:$4 sm:$0xff]  }
  0x4f   : > { %1156 = vmatprep.subr.bf16.mxu0 %v1942_v2  ;;  %1302 = vmatprep.subr.bf16.mxu1 %v1945_v3  ;;  %v2020_v2 = vld [vmem:[%s2167_s19 + $0x384] ss:$16 sps:$4 sm:$0xff]   ;;  %v2023_v3 = vld [vmem:[%s2167_s19 + $0x38c] ss:$16 sps:$4 sm:$0xff]  }
  0x51   : > { %1116 = vmatmul.mubr.bf16.vlgmr.msra.gmra.mrb[0].mxu0 %v1937_v4  ;;  %1262 = vmatmul.mubr.bf16.vlgmr.msra.gmra.mrb[0].mxu1 %v1937_v4  ;;  %v2018_v4 = vld [vmem:[%s2167_s19 + $0x380] ss:$16 sps:$4 sm:$0xff]  }
  0x52   : > { %1157 = vmatpush1.bf16.msra.mxu0 %v1940_v5  ;;  %1303 = vmatpush1.bf16.msra.mxu1 %v1943_v6  ;;  %v2021_v5 = vld [vmem:[%s2167_s19 + $0x388] ss:$16 sps:$4 sm:$0xff]   ;;  %v2026_v6 = vld [vmem:[%s2167_s19 + $0x3a4] ss:$16 sps:$4 sm:$0xff]  }
  0x53   : > { %1158 = vmatprep.subr.bf16.mxu0 %v1948_v7  ;;  %1304 = vmatprep.subr.bf16.mxu1 %v1951_v8  ;;  %v2029_v7 = vld [vmem:[%s2167_s19 + $0x3ac] ss:$16 sps:$4 sm:$0xff]   ;;  %v2024_v8 = vld [vmem:[%s2167_s19 + $0x3a0] ss:$16 sps:$4 sm:$0xff]  }
  0x54   : > { %1125 = vmatprep.mubr.bf16.mxu0 %v2000_v9  ;;  %1271 = vmatprep.mubr.bf16.mxu1 %v2000_v9  ;;  %v2027_v9 = vld [vmem:[%s2167_s19 + $0x3a8] ss:$16 sps:$4 sm:$0xff]  }
  0x56   : > { %1159 = vmatpush1.bf16.msra.mxu0 %v1946_v10  ;;  %1305 = vmatpush1.bf16.msra.mxu1 %v1949_v11  ;;  %v2035_v10 = vld [vmem:[%s2167_s19 + $0x3c4] ss:$16 sps:$4 sm:$0xff]   ;;  %v2038_v11 = vld [vmem:[%s2167_s19 + $0x3cc] ss:$16 sps:$4 sm:$0xff]  }
  0x57   : > { %1160 = vmatprep.subr.bf16.mxu0 %v1954_v12  ;;  %1306 = vmatprep.subr.bf16.mxu1 %v1957_v13  ;;  %v2033_v12 = vld [vmem:[%s2167_s19 + $0x3c0] ss:$16 sps:$4 sm:$0xff]   ;;  %v2036_v13 = vld [vmem:[%s2167_s19 + $0x3c8] ss:$16 sps:$4 sm:$0xff]  }
  0x59   : > { %1126 = vmatmul.mubr.bf16.gmra.mrb[4].mxu0 %v2002_v14  ;;  %1272 = vmatmul.mubr.bf16.gmra.mrb[4].mxu1 %v2002_v14  ;;  %v2041_v14 = vld [vmem:[%s2167_s19 + $0x3e4] ss:$16 sps:$4 sm:$0xff]  }
  0x5a   : > { %1161 = vmatpush1.bf16.msra.mxu0 %v1952_v15  ;;  %1307 = vmatpush1.bf16.msra.mxu1 %v1955_v16  ;;  %v2044_v15 = vld [vmem:[%s2167_s19 + $0x3ec] ss:$16 sps:$4 sm:$0xff]   ;;  %v2039_v16 = vld [vmem:[%s2167_s19 + $0x3e0] ss:$16 sps:$4 sm:$0xff]  }
  0x5b   : > { %1162 = vmatprep.subr.bf16.mxu0 %v1960_v17  ;;  %1308 = vmatprep.subr.bf16.mxu1 %v1963_v18  ;;  %v2042_v17 = vld [vmem:[%s2167_s19 + $0x3e8] ss:$16 sps:$4 sm:$0xff]  }
  0x5c   : > { %1135 = vmatprep.mubr.bf16.mxu0 %v2015_v19  ;;  %1281 = vmatprep.mubr.bf16.mxu1 %v2015_v19  ;;  %v2045_v18 = vld [vmem:[%s2411_s0 + $0x8] ss:$16 sps:$4 sm:$0xff]   ;;  %v2048_v19 = vld [vmem:[%s2411_s0 + $0x2c] ss:$16 sps:$4 sm:$0xff]  }
  0x5e   : > { %1163 = vmatpush1.bf16.msra.mxu0 %v1958_v20  ;;  %1309 = vmatpush1.bf16.msra.mxu1 %v1961_v21  ;;  %v2050_v20 = vld [vmem:[%s2411_s0 + $0x28] ss:$16 sps:$4 sm:$0xff]   ;;  %v2051_v21 = vld [vmem:[%s2411_s0 + $0x4c] ss:$16 sps:$4 sm:$0xff]  }
  0x5f   : > { %1164 = vmatprep.subr.bf16.mxu0 %v1966_v22  ;;  %1310 = vmatprep.subr.bf16.mxu1 %v1969_v23  ;;  %v2053_v22 = vld [vmem:[%s2411_s0 + $0x48] ss:$16 sps:$4 sm:$0xff]   ;;  %v2054_v23 = vld [vmem:[%s2411_s0 + $0x6c] ss:$16 sps:$4 sm:$0xff]  }
  0x61   : > { %1136 = vmatmul.mubr.bf16.gmra.mrb[8].mxu0 %v2017_v24  ;;  %1282 = vmatmul.mubr.bf16.gmra.mrb[8].mxu1 %v2017_v24  ;;  %v2056_v24 = vld [vmem:[%s2411_s0 + $0x68] ss:$16 sps:$4 sm:$0xff]  }
  0x62   : > { %1165 = vmatpush1.bf16.msra.mxu0 %v1964_v25  ;;  %1311 = vmatpush1.bf16.msra.mxu1 %v1967_v26 }
  0x63   : > { %1166 = vmatprep.subr.bf16.mxu0 %v1972_v27  ;;  %1312 = vmatprep.subr.bf16.mxu1 %v1975_v28 }
  0x64   : > { %1145 = vmatprep.mubr.bf16.mxu0 %v2030_v29  ;;  %1291 = vmatprep.mubr.bf16.mxu1 %v2030_v29 }
  0x66   : > { %1167 = vmatpush1.bf16.msra.mxu0 %v1970_v30  ;;  %1313 = vmatpush1.bf16.msra.mxu1 %v1973_v31 }
  0x67   : > { %1168 = vmatprep.subr.bf16.mxu0 %v1978_v32  ;;  %1314 = vmatprep.subr.bf16.mxu1 %v1981_v33 }
  0x69   : > { %1146 = vmatmul.mubr.bf16.gmra.mrb[12].mxu0 %v2032_v34  ;;  %1292 = vmatmul.mubr.bf16.gmra.mrb[12].mxu1 %v2032_v34 }
  0x6a   : > { %1169 = vmatpush1.bf16.msra.mxu0 %v1976_v35  ;;  %1315 = vmatpush1.bf16.msra.mxu1 %v1979_v36 }
  0x6b   : > { %1170 = vmatprep.subr.bf16.mxu0 %v1984_v37  ;;  %1316 = vmatprep.subr.bf16.mxu1 %v1987_v38 }
  0x6c   : > { %1188 = vmatprep.mubr.bf16.mxu0 %v2047_v39  ;;  %1334 = vmatprep.mubr.bf16.mxu1 %v2047_v39 }
  0x6e   : > { %1171 = vmatpush1.bf16.msra.mxu0 %v1982_v40  ;;  %1317 = vmatpush1.bf16.msra.mxu1 %v1985_v41 }
  0x6f   : > { %1172 = vmatprep.subr.bf16.mxu0 %v1990_v44  ;;  %1318 = vmatprep.subr.bf16.mxu1 %v1993_v45 }
  0x72   : > { %1173 = vmatpush1.bf16.msra.mxu0 %v1988_v46  ;;  %1319 = vmatpush1.bf16.msra.mxu1 %v1991_v47 }
  0x73   : > { %1174 = vmatprep.subr.bf16.mxu0 %v1996_v50  ;;  %1320 = vmatprep.subr.bf16.mxu1 %v1999_v51 }
  0x76   : > { %1175 = vmatpush1.bf16.msra.mxu0 %v1994_v52  ;;  %1321 = vmatpush1.bf16.msra.mxu1 %v1997_v53 }
  0x77   : > { %1176 = vmatprep.subr.bf16.mxu0 %v2005_v56  ;;  %1322 = vmatprep.subr.bf16.mxu1 %v2008_v57 }
  0x7a   : > { %1177 = vmatpush1.bf16.msra.mxu0 %v2003_v58  ;;  %1323 = vmatpush1.bf16.msra.mxu1 %v2006_v59 }
  0x7b   : > { %1178 = vmatprep.subr.bf16.mxu0 %v2011_v62  ;;  %1324 = vmatprep.subr.bf16.mxu1 %v2014_v63 }
  0x7e   : > { %1179 = vmatpush1.bf16.msra.mxu0 %v2009_v0  ;;  %1325 = vmatpush1.bf16.msra.mxu1 %v2012_v1 }
  0x7f   : > { %1180 = vmatprep.subr.bf16.mxu0 %v2020_v2  ;;  %1326 = vmatprep.subr.bf16.mxu1 %v2023_v3 }
  0x82   : > { %1181 = vmatpush1.bf16.msra.mxu0 %v2018_v4  ;;  %1327 = vmatpush1.bf16.msra.mxu1 %v2021_v5 }
  0x83   : > { %1182 = vmatprep.subr.bf16.mxu0 %v2026_v6  ;;  %1328 = vmatprep.subr.bf16.mxu1 %v2029_v7 }
  0x86   : > { %1183 = vmatpush1.bf16.msra.mxu0 %v2024_v8  ;;  %1329 = vmatpush1.bf16.msra.mxu1 %v2027_v9 }
  0x87   : > { %1184 = vmatprep.subr.bf16.mxu0 %v2035_v10  ;;  %1330 = vmatprep.subr.bf16.mxu1 %v2038_v11 }
  0x8a   : > { %1185 = vmatpush1.bf16.msra.mxu0 %v2033_v12  ;;  %1331 = vmatpush1.bf16.msra.mxu1 %v2036_v13 }
  0x8b   : > { %1186 = vmatprep.subr.bf16.mxu0 %v2041_v14  ;;  %1332 = vmatprep.subr.bf16.mxu1 %v2044_v15 }
  0x8e   : > { %1187 = vmatpush1.bf16.msra.mxu0 %v2039_v16  ;;  %1333 = vmatpush1.bf16.msra.mxu1 %v2042_v17 }
  0x91   : > { %1189 = vmatmul.mubr.bf16.vlgmr.msra.gmra.mrb[0].mxu0 %v2045_v18  ;;  %1335 = vmatmul.mubr.bf16.vlgmr.msra.gmra.mrb[0].mxu1 %v2045_v18 }
  0x92   : > { %1198 = vmatprep.mubr.bf16.mxu0 %v2048_v19  ;;  %1344 = vmatprep.mubr.bf16.mxu1 %v2048_v19 }
  0x99   : > { %1199 = vmatmul.mubr.bf16.gmra.mrb[4].mxu0 %v2050_v20  ;;  %1345 = vmatmul.mubr.bf16.gmra.mrb[4].mxu1 %v2050_v20 }
  0x9a   : > { %1208 = vmatprep.mubr.bf16.mxu0 %v2051_v21  ;;  %1354 = vmatprep.mubr.bf16.mxu1 %v2051_v21 }
  0xa1   : > { %1209 = vmatmul.mubr.bf16.gmra.mrb[8].mxu0 %v2053_v22  ;;  %1355 = vmatmul.mubr.bf16.gmra.mrb[8].mxu1 %v2053_v22 }
  0xa2   : > { %1218 = vmatprep.mubr.bf16.mxu0 %v2054_v23  ;;  %1364 = vmatprep.mubr.bf16.mxu1 %v2054_v23 }
  0xa9   : > { %1219 = vmatmul.mubr.bf16.gmra.mrb[12].mxu0 %v2056_v24  ;;  %1365 = vmatmul.mubr.bf16.gmra.mrb[12].mxu1 %v2056_v24 }
  0xb7   : > { %v326_v25 = vpop.permute.xlu0 %325  ;;  %v336_v27 = vpop.permute.xlu1 %335 }
  0xbf   : > { %v331_v26 = vpop.permute.xlu0 %330  ;;  %v341_v44 = vpop.permute.xlu1 %340 }
  0xc3   : > { %v351_v0 = vpop.permute.xlu1 %350  ;;  %v346_v1 = vpop.permute.xlu0 %345 }
 0x164   : > { %v1190_v28 = vpop.f32.mrb[0].mxu0  ;;  %v1336_v29 = vpop.f32.mrb[0].mxu1 }
 0x165   : > { %v1766_v30 = vadd.f32 %v1190_v28, %v326_v25  ;;  %v1782_v31 = vadd.f32 %v1336_v29, %v326_v25  ;;  %v1192_v32 = vpop.f32.mrb[1].mxu0  ;;  %v1338_v33 = vpop.f32.mrb[1].mxu1 }
 0x166   : > { %v1767_v34 = vadd.f32 %v1192_v32, %v326_v25  ;;  %v1783_v35 = vadd.f32 %v1338_v33, %v326_v25  ;;  %v1194_v36 = vpop.f32.mrb[2].mxu0  ;;  %v1340_v37 = vpop.f32.mrb[2].mxu1 }
 0x167   : > { %2057 = vtanh.f32 %v1766_v30  ;;  %v1768_v38 = vadd.f32 %v1194_v36, %v331_v26  ;;  %v1196_v39 = vpop.f32.mrb[3].mxu0  ;;  %v1342_v40 = vpop.f32.mrb[3].mxu1  ;;  %v1784_v41 = vadd.f32 %v1340_v37, %v331_v26 }
 0x168   : > { %2059 = vtanh.f32 %v1782_v31  ;;  %v1769_v42 = vadd.f32 %v1196_v39, %v331_v26  ;;  %v1785_v43 = vadd.f32 %v1342_v40, %v331_v26  ;;  %v361_v31 = vpop.permute.xlu1 %360  ;;  %v356_v32 = vpop.permute.xlu0 %355 }
 0x169   : > { %2061 = vtanh.f32 %v1767_v34 }
 0x16a   : > { %2063 = vtanh.f32 %v1783_v35 }
 0x16b   : > { %2065 = vtanh.f32 %v1768_v38 }
 0x16c   : > { %2067 = vtanh.f32 %v1784_v41  ;;  %v1200_v45 = vpop.f32.mrb[4].mxu0  ;;  %v1346_v46 = vpop.f32.mrb[4].mxu1 }
 0x16d   : > { %2069 = vtanh.f32 %v1769_v42  ;;  %v1770_v47 = vadd.f32 %v1200_v45, %v336_v27  ;;  %v1786_v48 = vadd.f32 %v1346_v46, %v336_v27  ;;  %v1202_v49 = vpop.f32.mrb[5].mxu0  ;;  %v1348_v50 = vpop.f32.mrb[5].mxu1 }
 0x16e   : > { %2071 = vtanh.f32 %v1785_v43  ;;  %v1771_v51 = vadd.f32 %v1202_v49, %v336_v27  ;;  %v1787_v52 = vadd.f32 %v1348_v50, %v336_v27  ;;  %v1204_v53 = vpop.f32.mrb[6].mxu0  ;;  %v1350_v54 = vpop.f32.mrb[6].mxu1 }
 0x16f   : > { %2073 = vtanh.f32 %v1770_v47  ;;  %v1772_v55 = vadd.f32 %v1204_v53, %v341_v44  ;;  %v1206_v56 = vpop.f32.mrb[7].mxu0  ;;  %v1352_v57 = vpop.f32.mrb[7].mxu1  ;;  %v1788_v58 = vadd.f32 %v1350_v54, %v341_v44 }
 0x170   : > { %2075 = vtanh.f32 %v1786_v48  ;;  %v1773_v60 = vadd.f32 %v1206_v56, %v341_v44  ;;  %v1789_v62 = vadd.f32 %v1352_v57, %v341_v44 }
 0x171   : > { %v2058_v59 = vpop.eup %2057  ;;  %2077 = vtanh.f32 %v1771_v51 }
 0x172   : > { %v2060_v61 = vpop.eup %2059  ;;  %2079 = vtanh.f32 %v1787_v52 }
 0x173   : > { %v2062_v63 = vpop.eup %2061  ;;  %2081 = vtanh.f32 %v1772_v55 }
 0x174   : > { %v2064_v2 = vpop.eup %2063  ;;  %v1750_v3 = vpack.c.bf16 %v2062_v63, %v2058_v59  ;;  %2083 = vtanh.f32 %v1788_v58  ;;  %v1210_v5 = vpop.f32.mrb[8].mxu0 }
 0x175   : > { %v1356_v6 = vpop.f32.mrb[8].mxu1  ;;  %v2066_v7 = vpop.eup %2065  ;;  %v1751_v8 = vpack.c.bf16 %v2064_v2, %v2060_v61  ;;  %2085 = vtanh.f32 %v1773_v60  ;;  %v1774_v9 = vadd.f32 %v1210_v5, %v346_v1 }
 0x176   : > { %v1790_v10 = vadd.f32 %v1356_v6, %v346_v1  ;;  %v1212_v11 = vpop.f32.mrb[9].mxu0  ;;  %v1358_v12 = vpop.f32.mrb[9].mxu1  ;;  %1503 = vst [vmem:[%s2370_s20] sm:$0xff] %v1750_v3  ;;  %2087 = vtanh.f32 %v1789_v62 }
 0x177   : > { %v2068_v13 = vpop.eup %2067  ;;  %v1775_v14 = vadd.f32 %v1212_v11, %v346_v1  ;;  %v1791_v15 = vadd.f32 %v1358_v12, %v346_v1  ;;  %v1214_v16 = vpop.f32.mrb[10].mxu0  ;;  %1507 = vst.msk [vmem:[%s2370_s20 + $0x8] sm:$0xff] %vm2372_vm2, %v1751_v8  ;;  %2089 = vtanh.f32 %v1774_v9 }
 0x178   : > { %v1360_v17 = vpop.f32.mrb[10].mxu1  ;;  %v2070_v18 = vpop.eup %2069  ;;  %v1776_v19 = vadd.f32 %v1214_v16, %v351_v0  ;;  %2091 = vtanh.f32 %v1790_v10 }
 0x179   : > { %v1216_v20 = vpop.f32.mrb[11].mxu0  ;;  %v1362_v21 = vpop.f32.mrb[11].mxu1  ;;  %v1752_v23 = vpack.c.bf16 %v2070_v18, %v2066_v7  ;;  %v1792_v24 = vadd.f32 %v1360_v17, %v351_v0  ;;  %2093 = vtanh.f32 %v1775_v14 }
 0x17a   : > { %v2072_v22 = vpop.eup %2071  ;;  %v1777_v27 = vadd.f32 %v1216_v20, %v351_v0  ;;  %2095 = vtanh.f32 %v1791_v15  ;;  %v1793_v29 = vadd.f32 %v1362_v21, %v351_v0 }
 0x17b   : > { %v2074_v25 = vpop.eup %2073  ;;  %v1753_v26 = vpack.c.bf16 %v2072_v22, %v2068_v13  ;;  %1508 = vst [vmem:[%s2370_s20 + $0x10] sm:$0xff] %v1752_v23  ;;  %2097 = vtanh.f32 %v1776_v19 }
 0x17c   : > { %v2076_v28 = vpop.eup %2075  ;;  %2099 = vtanh.f32 %v1792_v24  ;;  %v1220_v35 = vpop.f32.mrb[12].mxu0 }
 0x17d   : > { %v2078_v30 = vpop.eup %2077  ;;  %1509 = vst.msk [vmem:[%s2370_s20 + $0x18] sm:$0xff] %vm2372_vm2, %v1753_v26  ;;  %v1366_v36 = vpop.f32.mrb[12].mxu1  ;;  %2101 = vtanh.f32 %v1777_v27  ;;  %v1778_v39 = vadd.f32 %v1220_v35, %v356_v32 }
 0x17e   : > { %v2080_v33 = vpop.eup %2079  ;;  %v1754_v34 = vpack.c.bf16 %v2078_v30, %v2074_v25  ;;  %v1794_v40 = vadd.f32 %v1366_v36, %v356_v32  ;;  %v1222_v41 = vpop.f32.mrb[13].mxu0  ;;  %2103 = vtanh.f32 %v1793_v29 }
 0x17f   : > { %v2082_v37 = vpop.eup %2081  ;;  %v1755_v38 = vpack.c.bf16 %v2080_v33, %v2076_v28  ;;  %v1368_v42 = vpop.f32.mrb[13].mxu1  ;;  %v1779_v44 = vadd.f32 %v1222_v41, %v356_v32  ;;  %2105 = vtanh.f32 %v1778_v39 }
 0x180   : > { %v2084_v43 = vpop.eup %2083  ;;  %1510 = vst [vmem:[%s2370_s20 + $0x20] sm:$0xff] %v1754_v34  ;;  %v1795_v45 = vadd.f32 %v1368_v42, %v356_v32  ;;  %v1224_v46 = vpop.f32.mrb[14].mxu0  ;;  %2107 = vtanh.f32 %v1794_v40 }
 0x181   : > { %v1370_v47 = vpop.f32.mrb[14].mxu1  ;;  %v2086_v48 = vpop.eup %2085  ;;  %1511 = vst.msk [vmem:[%s2370_s20 + $0x28] sm:$0xff] %vm2372_vm2, %v1755_v38  ;;  %v1780_v49 = vadd.f32 %v1224_v46, %v361_v31  ;;  %2109 = vtanh.f32 %v1779_v44 }
 0x182   : > { %v1226_v50 = vpop.f32.mrb[15].mxu0  ;;  %v1372_v51 = vpop.f32.mrb[15].mxu1  ;;  %v1756_v53 = vpack.c.bf16 %v2086_v48, %v2082_v37  ;;  %v1796_v54 = vadd.f32 %v1370_v47, %v361_v31  ;;  %2111 = vtanh.f32 %v1795_v45 }
 0x183   : > { %v2088_v52 = vpop.eup %2087  ;;  %v1781_v57 = vadd.f32 %v1226_v50, %v361_v31  ;;  %v1797_v59 = vadd.f32 %v1372_v51, %v361_v31  ;;  %2113 = vtanh.f32 %v1780_v49 }
 0x184   : > { %v2090_v55 = vpop.eup %2089  ;;  %v1757_v56 = vpack.c.bf16 %v2088_v52, %v2084_v43  ;;  %1512 = vst [vmem:[%s2370_s20 + $0x30] sm:$0xff] %v1756_v53  ;;  %2115 = vtanh.f32 %v1796_v54 }
 0x185   : > { %v2092_v58 = vpop.eup %2091  ;;  %2117 = vtanh.f32 %v1781_v57 }
 0x186   : > { %v2094_v60 = vpop.eup %2093  ;;  %1513 = vst.msk [vmem:[%s2370_s20 + $0x38] sm:$0xff] %vm2372_vm2, %v1757_v56  ;;  %2119 = vtanh.f32 %v1797_v59 }
 0x187   : > { %v2096_v61 = vpop.eup %2095  ;;  %v1758_v62 = vpack.c.bf16 %v2094_v60, %v2090_v55 }
 0x188   : > { %v2098_v63 = vpop.eup %2097  ;;  %v1759_v0 = vpack.c.bf16 %v2096_v61, %v2092_v58 }
 0x189   : > { %v2100_v1 = vpop.eup %2099  ;;  %1514 = vst [vmem:[%s2370_s20 + $0x40] sm:$0xff] %v1758_v62 }
 0x18a   : > { %v2102_v2 = vpop.eup %2101  ;;  %1515 = vst.msk [vmem:[%s2370_s20 + $0x48] sm:$0xff] %vm2372_vm2, %v1759_v0 }
 0x18b   : > { %v2104_v3 = vpop.eup %2103  ;;  %v1760_v5 = vpack.c.bf16 %v2102_v2, %v2098_v63 }
 0x18c   : > { %v2106_v6 = vpop.eup %2105  ;;  %v1761_v7 = vpack.c.bf16 %v2104_v3, %v2100_v1 }
 0x18d   : > { %v2108_v8 = vpop.eup %2107  ;;  %1516 = vst [vmem:[%s2370_s20 + $0x50] sm:$0xff] %v1760_v5 }
 0x18e   : > { %v2110_v9 = vpop.eup %2109  ;;  %1517 = vst.msk [vmem:[%s2370_s20 + $0x58] sm:$0xff] %vm2372_vm2, %v1761_v7 }
 0x18f   : > { %v2112_v10 = vpop.eup %2111  ;;  %v1762_v11 = vpack.c.bf16 %v2110_v9, %v2106_v6 }
 0x190   : > { %v2114_v12 = vpop.eup %2113  ;;  %v1763_v13 = vpack.c.bf16 %v2112_v10, %v2108_v8 }
 0x191   : > { %v2116_v14 = vpop.eup %2115  ;;  %1518 = vst [vmem:[%s2370_s20 + $0x60] sm:$0xff] %v1762_v11 }
 0x192   : > { %v2118_v15 = vpop.eup %2117  ;;  %1519 = vst.msk [vmem:[%s2370_s20 + $0x68] sm:$0xff] %vm2372_vm2, %v1763_v13 }
 0x193   : > { %v2120_v16 = vpop.eup %2119  ;;  %v1764_v17 = vpack.c.bf16 %v2118_v15, %v2114_v12 }
 0x194   : > { %v1765_v18 = vpack.c.bf16 %v2120_v16, %v2116_v14 }
 0x195   : > { %1520 = vst [vmem:[%s2370_s20 + $0x70] sm:$0xff] %v1764_v17 }
 0x196   : > { %1521 = vst.msk [vmem:[%s2370_s20 + $0x78] sm:$0xff] %vm2372_vm2, %v1765_v18 }
 0x197 PF: > { %s13_s12 = sadd.s32 1, %s2127_s12  }
 0x198   : > { %p10_p4 = scmp.ge.s32.totalorder %s13_s12, 4  }
 0x19a   :  { %12 = sbr.rel (!%p10_p4) target bundleno = 1 (0x1), region = 62 }

// kernel: dqn_forward.6
= control target key start
LH: loop header
LB: loop body
LE: loop exit
PB: predicated region body
PF: predicated region fallthrough
CT: control target
= control target key end

     0   :  { %s2258_s12 = smov 0   ;;  %s2639_s0 = inlined_call_operand.vmem [shape: bf16[64,576], index: 0, kind: input, shape index: {}]   ;;  %s2640_s1 = inlined_call_operand.vmem [shape: bf16[2,576,352], index: 1, kind: input, shape index: {}]   ;;  %s2641_s2 = inlined_call_operand.vmem [shape: f32[64,1], index: 2, kind: input, shape index: {}]   ;;  %s2642_s3 = inlined_call_operand.vmem [shape: bf16[8,64,352], index: 3, kind: output, shape index: {}]  }
   0x1 LB: > { %s2264_s13 = sadd.s32 4294967295, %s2235_s12   ;;  %p1671_p0 = scmp.ge.s32.totalorder %s2235_s12, 1  ;;  %s2235_s12 = sphi %s2258_s12, %s13_s12  }
   0x2   : > { %p137_p1 = scmp.lt.s32.totalorder %s2235_s12, 3 }
   0x4   : > { %p138_p2 = pnand %p1671_p0, %p137_p1 }
   0x5   : > { %p161_p3 = scmp.lt.s32.totalorder (!%p138_p2), %s2264_s13, 1  ;;  %v2237_v0 = vmov (!%p138_p2), 0   ;;  %v2276_v1 = vld [vmem:[%s2639_s0 + $0x4] ss:$20 sps:$4 sm:$0xff] (!%p138_p2)   ;;  %vm1064_vm0 = vcmask (!%p138_p2), 523264   ;;  %p166_p4 = scmp.lt.s32.totalorder (!%p138_p2), %s2264_s13, 7 }
   0x6   : > { %141 = sbr.rel (%p138_p2) target bundleno = 404 (0x194), region = 32  ;;  %1255 = vmatprep.mubr.bf16.mxu1 (!%p138_p2), %v2237_v0  ;;  %2007 = vset.pattern.permute.xlu0 (!%p138_p2), %v2237_v0  ;;  %v2304_v19 = vld [vmem:[%s2639_s0 + $0x10] ss:$20 sps:$4 sm:$0xff] (!%p138_p2)   ;;  %v2321_v29 = vld [vmem:[%s2639_s0 + $0x38] ss:$20 sps:$4 sm:$0xff] (!%p138_p2)   ;;  %vm1596_vm1 = vcmask (!%p138_p2), 781312  }
   0x7   : > { %2008 = vset.pattern.permute.xlu1 (!%p138_p2), %v2237_v0  ;;  %1109 = vmatprep.mubr.bf16.mxu0 (!%p138_p2), %v2276_v1  ;;  %v2337_v38 = vld [vmem:[%s2639_s0 + $0x60] ss:$20 sps:$4 sm:$0xff] (!%p138_p2)   ;;  %v2353_v47 = vld [vmem:[%s2639_s0 + $0x88] ss:$20 sps:$4 sm:$0xff] (!%p138_p2)  }
   0x8   : > { %v2077_v56 = vld [vmem:[%s2639_s0] ss:$20 sps:$4 sm:$0xff] (!%p138_p2)  }
   0x9   : > { %v2090_v61 = vld [vmem:[%s2639_s0 + $0x2c] ss:$20 sps:$4 sm:$0xff] (!%p138_p2)  }
   0xd   : > { %s162_s14 = scalar_select %p161_p3, %s2264_s13, 1 }
   0xe   : > { %s2644_s13 = smov (!%p166_p4, %s2264_s13), 7 }
   0xf   : > { %s1996_s15 = smul.u32 864, %s162_s14 }
  0x11   : > { %s2281_s20 = scalar_lea.vmem %s2640_s1, %s1996_s15 }
  0x12   : > { %v2009_v2 = vld [vmem:[%s2281_s20 + $0x4] ss:$12 sps:$4 sm:$0xff]   ;;  %v2013_v4 = vld [vmem:[%s2281_s20] ss:$12 sps:$4 sm:$0xff]   ;;  %v2015_v6 = vld [vmem:[%s2281_s20 + $0x1c] ss:$12 sps:$4 sm:$0xff]  }
  0x13   : > { %v2011_v3 = vld [vmem:[%s2281_s20 + $0x304] ss:$12 sps:$4 sm:$0xff]   ;;  %1077 = vmatprep.subr.bf16.mxu0 %v2009_v2  ;;  %v2014_v5 = vld [vmem:[%s2281_s20 + $0x300] ss:$12 sps:$4 sm:$0xff]   ;;  %v2017_v7 = vld [vmem:[%s2281_s20 + $0x31c] ss:$12 sps:$4 sm:$0xff]  }
  0x14   : > { %1223 = vmatprep.subr.bf16.mxu1 %v2011_v3  ;;  %1078 = vmatpush1.bf16.msra.mxu0 %v2013_v4  ;;  %v2019_v8 = vld [vmem:[%s2281_s20 + $0x18] ss:$12 sps:$4 sm:$0xff]   ;;  %v2021_v10 = vld [vmem:[%s2281_s20 + $0x34] ss:$12 sps:$4 sm:$0xff]   ;;  %v2025_v12 = vld [vmem:[%s2281_s20 + $0x30] ss:$12 sps:$4 sm:$0xff]  }
  0x15   : > { %1224 = vmatpush1.bf16.msra.mxu1 %v2014_v5  ;;  %1079 = vmatprep.subr.bf16.mxu0 %v2015_v6  ;;  %v2020_v9 = vld [vmem:[%s2281_s20 + $0x318] ss:$12 sps:$4 sm:$0xff]   ;;  %v2023_v11 = vld [vmem:[%s2281_s20 + $0x334] ss:$12 sps:$4 sm:$0xff]   ;;  %v2026_v13 = vld [vmem:[%s2281_s20 + $0x330] ss:$12 sps:$4 sm:$0xff]  }
  0x16   : > { %1225 = vmatprep.subr.bf16.mxu1 %v2017_v7  ;;  %v2027_v14 = vld [vmem:[%s2281_s20 + $0x4c] ss:$12 sps:$4 sm:$0xff]   ;;  %v2031_v16 = vld [vmem:[%s2281_s20 + $0x48] ss:$12 sps:$4 sm:$0xff]   ;;  %v2033_v18 = vld [vmem:[%s2281_s20 + $0x64] ss:$12 sps:$4 sm:$0xff]  }
  0x17   : > { %v2029_v15 = vld [vmem:[%s2281_s20 + $0x34c] ss:$12 sps:$4 sm:$0xff]   ;;  %v2032_v17 = vld [vmem:[%s2281_s20 + $0x348] ss:$12 sps:$4 sm:$0xff]   ;;  %v2048_v30 = vld [vmem:[%s2281_s20 + $0x90] ss:$12 sps:$4 sm:$0xff]  }
  0x18   : > { %1080 = vmatpush1.bf16.msra.mxu0 %v2019_v8  ;;  %v2036_v20 = vld [vmem:[%s2281_s20 + $0xc8] ss:$12 sps:$4 sm:$0xff]   ;;  %v2037_v21 = vld [vmem:[%s2281_s20 + $0x60] ss:$12 sps:$4 sm:$0xff]   ;;  %v2042_v25 = vld [vmem:[%s2281_s20 + $0x78] ss:$12 sps:$4 sm:$0xff]  }
  0x19   : > { %1226 = vmatpush1.bf16.msra.mxu1 %v2020_v9  ;;  %1081 = vmatprep.subr.bf16.mxu0 %v2021_v10  ;;  %v2038_v22 = vld [vmem:[%s2281_s20 + $0x8] ss:$12 sps:$4 sm:$0xff]   ;;  %v2041_v24 = vld [vmem:[%s2281_s20 + $0xe0] ss:$12 sps:$4 sm:$0xff]   ;;  %v2047_v28 = vld [vmem:[%s2281_s20 + $0xf8] ss:$12 sps:$4 sm:$0xff]  }
  0x1a   : > { %1227 = vmatprep.subr.bf16.mxu1 %v2023_v11  ;;  %v2039_v23 = vld [vmem:[%s2281_s20 + $0x7c] ss:$12 sps:$4 sm:$0xff]   ;;  %v2043_v26 = vld [vmem:[%s2281_s20 + $0x20] ss:$12 sps:$4 sm:$0xff]   ;;  %v2049_v31 = vld [vmem:[%s2281_s20 + $0x38] ss:$12 sps:$4 sm:$0xff]  }
  0x1b   : > { %v2044_v27 = vld [vmem:[%s2281_s20 + $0x94] ss:$12 sps:$4 sm:$0xff]   ;;  %v2050_v32 = vld [vmem:[%s2281_s20 + $0xac] ss:$12 sps:$4 sm:$0xff]   ;;  %v2052_v33 = vld [vmem:[%s2281_s20 + $0x110] ss:$12 sps:$4 sm:$0xff]  }
  0x1c   : > { %1082 = vmatpush1.bf16.msra.mxu0 %v2025_v12  ;;  %v2053_v34 = vld [vmem:[%s2281_s20 + $0xa8] ss:$12 sps:$4 sm:$0xff]   ;;  %v2054_v35 = vld [vmem:[%s2281_s20 + $0x50] ss:$12 sps:$4 sm:$0xff]   ;;  %v2059_v39 = vld [vmem:[%s2281_s20 + $0xc0] ss:$12 sps:$4 sm:$0xff]  }
  0x1d   : > { %1228 = vmatpush1.bf16.msra.mxu1 %v2026_v13  ;;  %1083 = vmatprep.subr.bf16.mxu0 %v2027_v14  ;;  %v2055_v36 = vld [vmem:[%s2281_s20 + $0xc4] ss:$12 sps:$4 sm:$0xff]   ;;  %v2058_v37 = vld [vmem:[%s2281_s20 + $0x128] ss:$12 sps:$4 sm:$0xff]   ;;  %v2063_v42 = vld [vmem:[%s2281_s20 + $0x140] ss:$12 sps:$4 sm:$0xff]  }
  0x1e   : > { %1229 = vmatprep.subr.bf16.mxu1 %v2029_v15  ;;  %v2060_v40 = vld [vmem:[%s2281_s20 + $0x68] ss:$12 sps:$4 sm:$0xff]   ;;  %v2064_v43 = vld [vmem:[%s2281_s20 + $0xd8] ss:$12 sps:$4 sm:$0xff]   ;;  %v2065_v44 = vld [vmem:[%s2281_s20 + $0x80] ss:$12 sps:$4 sm:$0xff]  }
  0x1f   : > { %v2061_v41 = vld [vmem:[%s2281_s20 + $0xdc] ss:$12 sps:$4 sm:$0xff]   ;;  %v2066_v45 = vld [vmem:[%s2281_s20 + $0xf4] ss:$12 sps:$4 sm:$0xff]   ;;  %v2069_v46 = vld [vmem:[%s2281_s20 + $0x158] ss:$12 sps:$4 sm:$0xff]  }
  0x20   : > { %1084 = vmatpush1.bf16.msra.mxu0 %v2031_v16  ;;  %v2070_v48 = vld [vmem:[%s2281_s20 + $0xf0] ss:$12 sps:$4 sm:$0xff]   ;;  %v2071_v49 = vld [vmem:[%s2281_s20 + $0x98] ss:$12 sps:$4 sm:$0xff]   ;;  %v2075_v52 = vld [vmem:[%s2281_s20 + $0x108] ss:$12 sps:$4 sm:$0xff]  }
  0x21   : > { %1230 = vmatpush1.bf16.msra.mxu1 %v2032_v17  ;;  %1085 = vmatprep.subr.bf16.mxu0 %v2033_v18  ;;  %v2072_v50 = vld [vmem:[%s2281_s20 + $0x10c] ss:$12 sps:$4 sm:$0xff]   ;;  %v2074_v51 = vld [vmem:[%s2281_s20 + $0x170] ss:$12 sps:$4 sm:$0xff]   ;;  %v2082_v55 = vld [vmem:[%s2281_s20 + $0x248] ss:$12 sps:$4 sm:$0xff]  }
  0x22   : > { %1844 = vmatprep.subr.bf16.mxu1 %v2036_v20  ;;  %v2076_v53 = vld [vmem:[%s2281_s20 + $0xb0] ss:$12 sps:$4 sm:$0xff]   ;;  %v2083_v57 = vld [vmem:[%s2281_s20 + $0x120] ss:$12 sps:$4 sm:$0xff]   ;;  %v2084_v58 = vld [vmem:[%s2281_s20 + $0x188] ss:$12 sps:$4 sm:$0xff]  }
  0x23   : > { %v2080_v54 = vld [vmem:[%s2281_s20 + $0x124] ss:$12 sps:$4 sm:$0xff]   ;;  %v2085_v59 = vld [vmem:[%s2281_s20 + $0x13c] ss:$12 sps:$4 sm:$0xff]   ;;  %v2087_v60 = vld [vmem:[%s2281_s20 + $0x260] ss:$12 sps:$4 sm:$0xff]  }
  0x24   : > { %1802 = vmatmul.mubr.msk.bf16.vlgmr.msra.gmra.mrb[0].mxu1 %vm1064_vm0, %v2304_v19  ;;  %1086 = vmatpush1.bf16.msra.mxu0 %v2037_v21  ;;  %v2088_v62 = vld [vmem:[%s2281_s20 + $0x138] ss:$12 sps:$4 sm:$0xff]   ;;  %v2089_v63 = vld [vmem:[%s2281_s20 + $0x1a0] ss:$12 sps:$4 sm:$0xff]   ;;  %v2094_v2 = vld [vmem:[%s2639_s0 + $0x28] ss:$20 sps:$4 sm:$0xff]  }
  0x25   : > { %1845 = vmatpush3.bf16.msra.mxu1 %v2038_v22  ;;  %1087 = vmatprep.subr.bf16.mxu0 %v2039_v23  ;;  %v2096_v3 = vld [vmem:[%s2281_s20 + $0x150] ss:$12 sps:$4 sm:$0xff]   ;;  %v2097_v4 = vld [vmem:[%s2281_s20 + $0x1b8] ss:$12 sps:$4 sm:$0xff]   ;;  %v2103_v7 = vld [vmem:[%s2639_s0 + $0x54] ss:$20 sps:$4 sm:$0xff]  }
  0x26   : > { %1846 = vmatprep.subr.bf16.mxu1 %v2041_v24  ;;  %1265 = vmatprep.mubr.bf16.mxu1 %v2237_v0  ;;  %v2098_v5 = vld [vmem:[%s2281_s20 + $0x16c] ss:$12 sps:$4 sm:$0xff]   ;;  %v2100_v6 = vld [vmem:[%s2281_s20 + $0x290] ss:$12 sps:$4 sm:$0xff]   ;;  %v2101_v8 = vld [vmem:[%s2281_s20 + $0x168] ss:$12 sps:$4 sm:$0xff]  }
  0x27   : > { %v2102_v9 = vld [vmem:[%s2281_s20 + $0x1d0] ss:$12 sps:$4 sm:$0xff]   ;;  %v2109_v11 = vld [vmem:[%s2281_s20 + $0x2a8] ss:$12 sps:$4 sm:$0xff]   ;;  %v2105_v12 = vld [vmem:[%s2281_s20 + $0x180] ss:$12 sps:$4 sm:$0xff]  }
  0x28   : > { %1088 = vmatpush1.bf16.msra.mxu0 %v2042_v25  ;;  %v2107_v10 = vld [vmem:[%s2281_s20 + $0x184] ss:$12 sps:$4 sm:$0xff]   ;;  %v2110_v14 = vld [vmem:[%s2281_s20 + $0x1e8] ss:$12 sps:$4 sm:$0xff]   ;;  %v2114_v16 = vld [vmem:[%s2281_s20 + $0x2c0] ss:$12 sps:$4 sm:$0xff]  }
  0x29   : > { %1847 = vmatpush3.bf16.msra.mxu1 %v2043_v26  ;;  %1089 = vmatprep.subr.bf16.mxu0 %v2044_v27  ;;  %v2108_v13 = vld [vmem:[%s2639_s0 + $0x50] ss:$20 sps:$4 sm:$0xff]   ;;  %v2113_v15 = vld [vmem:[%s2281_s20 + $0x19c] ss:$12 sps:$4 sm:$0xff]   ;;  %v2115_v20 = vld [vmem:[%s2281_s20 + $0x200] ss:$12 sps:$4 sm:$0xff]  }
  0x2a   : > { %1848 = vmatprep.subr.bf16.mxu1 %v2047_v28  ;;  %v2116_v17 = vld [vmem:[%s2639_s0 + $0x7c] ss:$20 sps:$4 sm:$0xff]   ;;  %v2111_v18 = vld [vmem:[%s2281_s20 + $0x198] ss:$12 sps:$4 sm:$0xff]   ;;  %v2120_v21 = vld [vmem:[%s2281_s20 + $0x1b4] ss:$12 sps:$4 sm:$0xff]  }
  0x2b   : > { %v2122_v22 = vld [vmem:[%s2281_s20 + $0x2d8] ss:$12 sps:$4 sm:$0xff]   ;;  %v2118_v23 = vld [vmem:[%s2281_s20 + $0x1b0] ss:$12 sps:$4 sm:$0xff]   ;;  %v2131_v28 = vld [vmem:[%s2639_s0 + $0xc] ss:$20 sps:$4 sm:$0xff]  }
  0x2c   : > { %1803 = vmatmul.mubr.msk.bf16.gmra.mrb[4].mxu1 %vm1064_vm0, %v2321_v29  ;;  %1090 = vmatpush1.bf16.msra.mxu0 %v2048_v30  ;;  %v2121_v24 = vld [vmem:[%s2639_s0 + $0x78] ss:$20 sps:$4 sm:$0xff]   ;;  %v2127_v27 = vld [vmem:[%s2281_s20 + $0x2f0] ss:$12 sps:$4 sm:$0xff]   ;;  %v2124_v30 = vld [vmem:[%s2281_s20 + $0x1c8] ss:$12 sps:$4 sm:$0xff]  }
  0x2d   : > { %1849 = vmatpush3.bf16.msra.mxu1 %v2049_v31  ;;  %1091 = vmatprep.subr.bf16.mxu0 %v2050_v32  ;;  %v2123_v25 = vld [vmem:[%s2281_s20 + $0x218] ss:$12 sps:$4 sm:$0xff]   ;;  %v2128_v31 = vld [vmem:[%s2281_s20 + $0x230] ss:$12 sps:$4 sm:$0xff]  }
  0x2e   : > { %1850 = vmatprep.subr.bf16.mxu1 %v2052_v33  ;;  %1275 = vmatprep.mubr.bf16.mxu1 %v2237_v0  ;;  %v2126_v26 = vld [vmem:[%s2281_s20 + $0x1cc] ss:$12 sps:$4 sm:$0xff]   ;;  %v2134_v32 = vld [vmem:[%s2281_s20 + $0x1e4] ss:$12 sps:$4 sm:$0xff]   ;;  %v2153_v33 = vld [vmem:[%s2281_s20 + $0x308] ss:$12 sps:$4 sm:$0xff]  }
  0x30   : > { %1092 = vmatpush1.bf16.msra.mxu0 %v2053_v34  ;;  %v2425_v34 = vld [vmem:[%s2639_s0 + $0x8] ss:$20 sps:$4 sm:$0xff]  }
  0x31   : > { %1851 = vmatpush3.bf16.msra.mxu1 %v2054_v35  ;;  %1093 = vmatprep.subr.bf16.mxu0 %v2055_v36  ;;  %v2132_v35 = vld [vmem:[%s2281_s20 + $0x1e0] ss:$12 sps:$4 sm:$0xff]   ;;  %v2431_v36 = vld [vmem:[%s2639_s0 + $0x34] ss:$20 sps:$4 sm:$0xff]  }
  0x32   : > { %1852 = vmatprep.subr.bf16.mxu1 %v2058_v37  ;;  %v2137_v37 = vld [vmem:[%s2281_s20 + $0x1fc] ss:$12 sps:$4 sm:$0xff]  }
  0x34   : > { %1804 = vmatmul.mubr.msk.bf16.gmra.mrb[8].mxu1 %vm1064_vm0, %v2337_v38  ;;  %1094 = vmatpush1.bf16.msra.mxu0 %v2059_v39  ;;  %v2157_v39 = vld [vmem:[%s2281_s20 + $0x320] ss:$12 sps:$4 sm:$0xff]  }
  0x35   : > { %1853 = vmatpush3.bf16.msra.mxu1 %v2060_v40  ;;  %1095 = vmatprep.subr.bf16.mxu0 %v2061_v41  ;;  %v2135_v40 = vld [vmem:[%s2281_s20 + $0x1f8] ss:$12 sps:$4 sm:$0xff]   ;;  %v2142_v41 = vld [vmem:[%s2281_s20 + $0x214] ss:$12 sps:$4 sm:$0xff]  }
  0x36   : > { %1854 = vmatprep.subr.bf16.mxu1 %v2063_v42  ;;  %1285 = vmatprep.mubr.bf16.mxu1 %v2237_v0  ;;  %v2092_v0 = vld [vmem:[%s2281_s20 + $0x154] ss:$12 sps:$4 sm:$0xff]   ;;  %v2164_v42 = vld [vmem:[%s2281_s20 + $0x338] ss:$12 sps:$4 sm:$0xff]  }
  0x38   : > { %1096 = vmatpush1.bf16.msra.mxu0 %v2064_v43  ;;  %v2140_v43 = vld [vmem:[%s2281_s20 + $0x210] ss:$12 sps:$4 sm:$0xff]  }
  0x39   : > { %1855 = vmatpush3.bf16.msra.mxu1 %v2065_v44  ;;  %1097 = vmatprep.subr.bf16.mxu0 %v2066_v45  ;;  %v2444_v44 = vld [vmem:[%s2639_s0 + $0x30] ss:$20 sps:$4 sm:$0xff]  }
  0x3a   : > { %1856 = vmatprep.subr.bf16.mxu1 %v2069_v46  ;;  %v2449_v45 = vld [vmem:[%s2639_s0 + $0x5c] ss:$20 sps:$4 sm:$0xff]   ;;  %v2146_v46 = vld [vmem:[%s2281_s20 + $0x22c] ss:$12 sps:$4 sm:$0xff]  }
  0x3c   : > { %1805 = vmatmul.mubr.msk.bf16.gmra.mrb[12].mxu1 %vm1064_vm0, %v2353_v47  ;;  %1098 = vmatpush1.bf16.msra.mxu0 %v2070_v48  ;;  %v2168_v48 = vld [vmem:[%s2281_s20 + $0x350] ss:$12 sps:$4 sm:$0xff]  }
  0x3d   : > { %1857 = vmatpush3.bf16.msra.mxu1 %v2071_v49  ;;  %1099 = vmatprep.subr.bf16.mxu0 %v2072_v50  ;;  %v2144_v49 = vld [vmem:[%s2281_s20 + $0x228] ss:$12 sps:$4 sm:$0xff]   ;;  %v340_v50 = vld [vmem:[%s2641_s2] sm:$0xff] }
  0x3e   : > { %1858 = vmatprep.subr.bf16.mxu1 %v2074_v51  ;;  %1328 = vmatprep.mubr.bf16.mxu1 %v2276_v1  ;;  %v2095_v1 = vld [vmem:[%s2281_s20 + $0x278] ss:$12 sps:$4 sm:$0xff]   ;;  %v342_v51 = vld [vmem:[%s2641_s2 + $0x10] sm:$0xff] }
  0x3f   : > { %350 = vperm.xlu0 %2007, %v340_v50   ;;  %360 = vperm.xlu1 %2008, %v342_v51  }
  0x40   : > { %1100 = vmatpush1.bf16.msra.mxu0 %v2075_v52  ;;  %v2151_v52 = vld [vmem:[%s2281_s20 + $0x244] ss:$12 sps:$4 sm:$0xff]  }
  0x41   : > { %1859 = vmatpush3.bf16.msra.mxu1 %v2076_v53  ;;  %1101 = vmatprep.subr.bf16.mxu0 %v2080_v54  ;;  %v2152_v53 = vld [vmem:[%s2639_s0 + $0x58] ss:$20 sps:$4 sm:$0xff]  }
  0x42   : > { %1884 = vmatprep.subr.bf16.mxu1 %v2082_v55  ;;  %v2149_v54 = vld [vmem:[%s2281_s20 + $0x240] ss:$12 sps:$4 sm:$0xff]   ;;  %v2158_v55 = vld [vmem:[%s2639_s0 + $0x84] ss:$20 sps:$4 sm:$0xff]  }
  0x44   : > { %1329 = vmatmul.mubr.bf16.vlgmr.msra.gmra.mrb[16].mxu1 %v2077_v56  ;;  %1102 = vmatpush1.bf16.msra.mxu0 %v2083_v57  ;;  %v2156_v57 = vld [vmem:[%s2281_s20 + $0x25c] ss:$12 sps:$4 sm:$0xff]  }
  0x45   : > { %1885 = vmatpush3.bf16.msra.mxu1 %v2084_v58  ;;  %1103 = vmatprep.subr.bf16.mxu0 %v2085_v59  ;;  %v343_v58 = vld [vmem:[%s2641_s2 + $0x18] sm:$0xff] }
  0x46   : > { %1886 = vmatprep.subr.bf16.mxu1 %v2087_v60  ;;  %1336 = vmatprep.mubr.bf16.mxu1 %v2090_v61  ;;  %v2154_v59 = vld [vmem:[%s2281_s20 + $0x258] ss:$12 sps:$4 sm:$0xff]  }
  0x47   : > { %v344_v60 = vld [vmem:[%s2641_s2 + $0x20] sm:$0xff]  ;;  %365 = vperm.xlu1 %2008, %v343_v58  }
  0x48   : > { %1104 = vmatpush1.bf16.msra.mxu0 %v2088_v62  ;;  %v345_v62 = vld [vmem:[%s2641_s2 + $0x28] sm:$0xff] }
  0x49   : > { %1887 = vmatpush3.bf16.msra.mxu1 %v2089_v63  ;;  %1105 = vmatprep.subr.bf16.mxu0 %v2092_v0  ;;  %v2163_v63 = vld [vmem:[%s2639_s0 + $0x80] ss:$20 sps:$4 sm:$0xff]   ;;  %v2160_v0 = vld [vmem:[%s2281_s20 + $0x270] ss:$12 sps:$4 sm:$0xff]  }
  0x4a   : > { %1888 = vmatprep.subr.bf16.mxu1 %v2095_v1  ;;  %v346_v1 = vld [vmem:[%s2641_s2 + $0x30] sm:$0xff] }
  0x4b   : > { %375 = vperm.xlu1 %2008, %v345_v62  }
  0x4c   : > { %1337 = vmatmul.mubr.bf16.gmra.mrb[20].mxu1 %v2094_v2  ;;  %1106 = vmatpush1.bf16.msra.mxu0 %v2096_v3  ;;  %v347_v3 = vld [vmem:[%s2641_s2 + $0x38] sm:$0xff] }
  0x4d   : > { %1889 = vmatpush3.bf16.msra.mxu1 %v2097_v4  ;;  %1107 = vmatprep.subr.bf16.mxu0 %v2098_v5  ;;  %v2165_v4 = vld [vmem:[%s2281_s20 + $0x288] ss:$12 sps:$4 sm:$0xff]   ;;  %v2171_v5 = vld [vmem:[%s2281_s20 + $0x2a4] ss:$12 sps:$4 sm:$0xff]  }
  0x4e   : > { %1890 = vmatprep.subr.bf16.mxu1 %v2100_v6  ;;  %1344 = vmatprep.mubr.bf16.mxu1 %v2103_v7  ;;  %v2169_v6 = vld [vmem:[%s2281_s20 + $0x2a0] ss:$12 sps:$4 sm:$0xff]  }
  0x4f   : > { %385 = vperm.xlu1 %2008, %v347_v3  }
  0x50   : > { %1108 = vmatpush1.bf16.msra.mxu0 %v2101_v8  ;;  %v2172_v8 = vld [vmem:[%s2281_s20 + $0x2b8] ss:$12 sps:$4 sm:$0xff]  }
  0x51   : > { %1891 = vmatpush3.bf16.msra.mxu1 %v2102_v9  ;;  %1150 = vmatprep.subr.bf16.mxu0 %v2107_v10  ;;  %v2177_v9 = vld [vmem:[%s2281_s20 + $0x2d4] ss:$12 sps:$4 sm:$0xff]   ;;  %v2180_v10 = vld [vmem:[%s2281_s20 + $0x2ec] ss:$12 sps:$4 sm:$0xff]  }
  0x52   : > { %1892 = vmatprep.subr.bf16.mxu1 %v2109_v11  ;;  %v2178_v11 = vld [vmem:[%s2281_s20 + $0x2e8] ss:$12 sps:$4 sm:$0xff]  }
  0x53   : > { %1110 = vmatmul.mubr.bf16.vlgmr.msra.gmra.mrb[0].mxu0 %v2077_v56  ;;  %v341_v56 = vld [vmem:[%s2641_s2 + $0x8] sm:$0xff] }
  0x54   : > { %1345 = vmatmul.mubr.bf16.gmra.mrb[24].mxu1 %v2108_v13  ;;  %1151 = vmatpush1.bf16.msra.mxu0 %v2105_v12 }
  0x55   : > { %1893 = vmatpush3.bf16.msra.mxu1 %v2110_v14  ;;  %1152 = vmatprep.subr.bf16.mxu0 %v2113_v15 }
  0x56   : > { %1894 = vmatprep.subr.bf16.mxu1 %v2114_v16  ;;  %1352 = vmatprep.mubr.bf16.mxu1 %v2116_v17 }
  0x57   : > { %1119 = vmatprep.mubr.bf16.mxu0 %v2090_v61  ;;  %355 = vperm.xlu0 %2007, %v341_v56   ;;  %v2162_v61 = vld [vmem:[%s2281_s20 + $0x274] ss:$12 sps:$4 sm:$0xff]  }
  0x58   : > { %1153 = vmatpush1.bf16.msra.mxu0 %v2111_v18 }
  0x59   : > { %1895 = vmatpush3.bf16.msra.mxu1 %v2115_v20  ;;  %1154 = vmatprep.subr.bf16.mxu0 %v2120_v21 }
  0x5a   : > { %1896 = vmatprep.subr.bf16.mxu1 %v2122_v22 }
  0x5b   : > { %1120 = vmatmul.mubr.bf16.gmra.mrb[4].mxu0 %v2094_v2  ;;  %370 = vperm.xlu0 %2007, %v344_v60   ;;  %v2167_v2 = vld [vmem:[%s2281_s20 + $0x28c] ss:$12 sps:$4 sm:$0xff]  }
  0x5c   : > { %1353 = vmatmul.mubr.bf16.gmra.mrb[28].mxu1 %v2121_v24  ;;  %1155 = vmatpush1.bf16.msra.mxu0 %v2118_v23 }
  0x5d   : > { %1897 = vmatpush3.bf16.msra.mxu1 %v2123_v25  ;;  %1156 = vmatprep.subr.bf16.mxu0 %v2126_v26 }
  0x5e   : > { %1898 = vmatprep.subr.bf16.mxu1 %v2127_v27  ;;  %1393 = vmatprep.mubr.bf16.mxu1 %v2131_v28 }
  0x5f   : > { %1129 = vmatprep.mubr.bf16.mxu0 %v2103_v7  ;;  %380 = vperm.xlu0 %2007, %v346_v1   ;;  %v2174_v7 = vld [vmem:[%s2281_s20 + $0x2bc] ss:$12 sps:$4 sm:$0xff]  }
  0x60   : > { %1157 = vmatpush1.bf16.msra.mxu0 %v2124_v30 }
  0x61   : > { %1899 = vmatpush3.bf16.msra.mxu1 %v2128_v31  ;;  %1158 = vmatprep.subr.bf16.mxu0 %v2134_v32 }
  0x62   : > { %1932 = vmatprep.subr.bf16.mxu1 %v2153_v33 }
  0x63   : > { %1130 = vmatmul.mubr.bf16.gmra.mrb[8].mxu0 %v2108_v13 }
  0x64   : > { %1394 = vmatmul.mubr.bf16.vlgmr.msra.gmra.mrb[32].mxu1 %v2425_v34  ;;  %1159 = vmatpush1.bf16.msra.mxu0 %v2132_v35 }
  0x65   : > { %1401 = vmatprep.mubr.bf16.mxu1 %v2431_v36  ;;  %1160 = vmatprep.subr.bf16.mxu0 %v2137_v37 }
  0x66   : > { %1933 = vmatpush3.bf16.msra.mxu1 %v2153_v33  ;;  %1139 = vmatprep.mubr.bf16.mxu0 %v2116_v17 }
  0x67   : > { %1934 = vmatprep.subr.bf16.mxu1 %v2157_v39 }
  0x68   : > { %1161 = vmatpush1.bf16.msra.mxu0 %v2135_v40 }
  0x69   : > { %1162 = vmatprep.subr.bf16.mxu0 %v2142_v41 }
  0x6a   : > { %1935 = vmatpush3.bf16.msra.mxu1 %v2157_v39 }
  0x6b   : > { %1936 = vmatprep.subr.bf16.mxu1 %v2164_v42  ;;  %1140 = vmatmul.mubr.bf16.gmra.mrb[12].mxu0 %v2121_v24 }
  0x6c   : > { %1402 = vmatmul.mubr.bf16.gmra.mrb[36].mxu1 %v2444_v44  ;;  %1163 = vmatpush1.bf16.msra.mxu0 %v2140_v43 }
  0x6d   : > { %1409 = vmatprep.mubr.bf16.mxu1 %v2449_v45  ;;  %1164 = vmatprep.subr.bf16.mxu0 %v2146_v46 }
  0x6e   : > { %1937 = vmatpush3.bf16.msra.mxu1 %v2164_v42  ;;  %1182 = vmatprep.mubr.bf16.mxu0 %v2131_v28 }
  0x6f   : > { %1938 = vmatprep.subr.bf16.mxu1 %v2168_v48 }
  0x70   : > { %1165 = vmatpush1.bf16.msra.mxu0 %v2144_v49 }
  0x71   : > { %1166 = vmatprep.subr.bf16.mxu0 %v2151_v52 }
  0x72   : > { %1939 = vmatpush3.bf16.msra.mxu1 %v2168_v48 }
  0x74   : > { %1410 = vmatmul.mubr.bf16.gmra.mrb[40].mxu1 %v2152_v53  ;;  %1167 = vmatpush1.bf16.msra.mxu0 %v2149_v54 }
  0x75   : > { %1417 = vmatprep.mubr.bf16.mxu1 %v2158_v55  ;;  %1168 = vmatprep.subr.bf16.mxu0 %v2156_v57 }
  0x78   : > { %1169 = vmatpush1.bf16.msra.mxu0 %v2154_v59 }
  0x79   : > { %1170 = vmatprep.subr.bf16.mxu0 %v2162_v61 }
  0x7c   : > { %1418 = vmatmul.mubr.bf16.gmra.mrb[44].mxu1 %v2163_v63  ;;  %1171 = vmatpush1.bf16.msra.mxu0 %v2160_v0 }
  0x7d   : > { %1940 = vmatprep.mubr.msk.bf16.mxu1 %vm1064_vm0, %v2304_v19  ;;  %1172 = vmatprep.subr.bf16.mxu0 %v2167_v2  ;;  %v2175_v19 = vld [vmem:[%s2281_s20 + $0x2d0] ss:$12 sps:$4 sm:$0xff]   ;;  %s1997_s20 = smul.u32 96, %s2644_s13 }
  0x7f   : > { %s2578_s29 = scalar_lea.vmem %s2642_s3, %s1997_s20 }
  0x80   : > { %1173 = vmatpush1.bf16.msra.mxu0 %v2165_v4 }
  0x81   : > { %1174 = vmatprep.subr.bf16.mxu0 %v2171_v5 }
  0x84   : > { %1941 = vmatmul.mubr.msk.bf16.vlgmr.msra.gmra.mrb[48].mxu1 %vm1064_vm0, %v2321_v29  ;;  %1175 = vmatpush1.bf16.msra.mxu0 %v2169_v6 }
  0x85   : > { %1944 = vmatprep.mubr.msk.bf16.mxu1 %vm1064_vm0, %v2337_v38  ;;  %1176 = vmatprep.subr.bf16.mxu0 %v2174_v7 }
  0x88   : > { %1177 = vmatpush1.bf16.msra.mxu0 %v2172_v8 }
  0x89   : > { %1178 = vmatprep.subr.bf16.mxu0 %v2177_v9 }
  0x8c   : > { %1945 = vmatmul.mubr.msk.bf16.gmra.mrb[52].mxu1 %vm1064_vm0, %v2353_v47  ;;  %1179 = vmatpush1.bf16.msra.mxu0 %v2175_v19 }
  0x8d   : > { %1180 = vmatprep.subr.bf16.mxu0 %v2180_v10 }
  0x90   : > { %1181 = vmatpush1.bf16.msra.mxu0 %v2178_v11 }
  0x93   : > { %1183 = vmatmul.mubr.bf16.vlgmr.msra.gmra.mrb[0].mxu0 %v2425_v34 }
  0x94   : > { %1192 = vmatprep.mubr.bf16.mxu0 %v2431_v36 }
  0x9b   : > { %1193 = vmatmul.mubr.bf16.gmra.mrb[4].mxu0 %v2444_v44 }
  0x9c   : > { %1202 = vmatprep.mubr.bf16.mxu0 %v2449_v45 }
  0xa3   : > { %1203 = vmatmul.mubr.bf16.gmra.mrb[8].mxu0 %v2152_v53 }
  0xa4   : > { %1212 = vmatprep.mubr.bf16.mxu0 %v2158_v55 }
  0xab   : > { %1213 = vmatmul.mubr.bf16.gmra.mrb[12].mxu0 %v2163_v63 }
  0xbe   : > { %v2549_v49 = vpop.permute.xlu0 %350  ;;  %v2554_v58 = vpop.permute.xlu1 %360 }
  0xc6   : > { %v2557_v2 = vpop.permute.xlu1 %365 }
  0xd6   : > { %v2551_v54 = vpop.permute.xlu0 %355 }
  0xda   : > { %v2561_v11 = vpop.permute.xlu0 %370 }
  0xf7   : > { %v2517_v29 = vpop.f32.mrb[0].mxu1 }
  0xf8   : > { %v2519_v38 = vpop.f32.mrb[1].mxu1 }
  0xf9   : > { %v2521_v47 = vpop.f32.mrb[2].mxu1 }
  0xfa   : > { %v2523_v12 = vpop.f32.mrb[3].mxu1 }
  0xff   : > { %v2525_v13 = vpop.f32.mrb[4].mxu1 }
 0x100   : > { %v2527_v14 = vpop.f32.mrb[5].mxu1 }
 0x101   : > { %v2529_v15 = vpop.f32.mrb[6].mxu1 }
 0x102   : > { %v2531_v16 = vpop.f32.mrb[7].mxu1 }
 0x107   : > { %v2533_v17 = vpop.f32.mrb[8].mxu1 }
 0x108   : > { %v2535_v18 = vpop.f32.mrb[9].mxu1 }
 0x109   : > { %v2537_v20 = vpop.f32.mrb[10].mxu1 }
 0x10a   : > { %v2539_v21 = vpop.f32.mrb[11].mxu1 }
 0x10f   : > { %v2541_v22 = vpop.f32.mrb[12].mxu1 }
 0x110   : > { %v2543_v23 = vpop.f32.mrb[13].mxu1 }
 0x111   : > { %v2545_v24 = vpop.f32.mrb[14].mxu1 }
 0x112   : > { %v2547_v25 = vpop.f32.mrb[15].mxu1 }
 0x117   : > { %v1860_v26 = vpop.f32.mrb[16].mxu1 }
 0x118   : > { %v1861_v27 = vpop.f32.mrb[17].mxu1 }
 0x119   : > { %v1862_v28 = vadd.f32 %v1861_v27, %v1860_v26  ;;  %v1863_v30 = vpop.f32.mrb[18].mxu1  ;;  %v2563_v27 = vpop.permute.xlu1 %375 }
 0x11a   : > { %v1864_v31 = vpop.f32.mrb[19].mxu1 }
 0x11b   : > { %v1865_v32 = vadd.f32 %v1864_v31, %v1863_v30  ;;  %v1331_v55 = vadd.f32 %v1862_v28, %v2549_v49 }
 0x11d   : > { %v1334_v61 = vadd.f32 %v1865_v32, %v2551_v54 }
 0x11f   : > { %v1866_v33 = vpop.f32.mrb[20].mxu1 }
 0x120   : > { %v1867_v34 = vpop.f32.mrb[21].mxu1 }
 0x121   : > { %v1868_v35 = vadd.f32 %v1867_v34, %v1866_v33  ;;  %v1869_v36 = vpop.f32.mrb[22].mxu1 }
 0x122   : > { %v1870_v37 = vpop.f32.mrb[23].mxu1 }
 0x123   : > { %v1871_v39 = vadd.f32 %v1870_v37, %v1869_v36  ;;  %v1339_v3 = vadd.f32 %v1868_v35, %v2554_v58 }
 0x125   : > { %v1342_v8 = vadd.f32 %v1871_v39, %v2557_v2  ;;  %v2567_v39 = vpop.permute.xlu0 %380 }
 0x127   : > { %v1872_v40 = vpop.f32.mrb[24].mxu1 }
 0x128   : > { %v1873_v41 = vpop.f32.mrb[25].mxu1 }
 0x129   : > { %v1874_v42 = vadd.f32 %v1873_v41, %v1872_v40  ;;  %v1875_v43 = vpop.f32.mrb[26].mxu1  ;;  %v2569_v41 = vpop.permute.xlu1 %385 }
 0x12a   : > { %v1876_v44 = vpop.f32.mrb[27].mxu1 }
 0x12b   : > { %v1877_v45 = vadd.f32 %v1876_v44, %v1875_v43  ;;  %v1347_v30 = vadd.f32 %v1874_v42, %v2561_v11 }
 0x12d   : > { %v1350_v34 = vadd.f32 %v1877_v45, %v2563_v27 }
 0x12f   : > { %v1878_v46 = vpop.f32.mrb[28].mxu1 }
 0x130   : > { %v1879_v48 = vpop.f32.mrb[29].mxu1 }
 0x131   : > { %v1880_v50 = vadd.f32 %v1879_v48, %v1878_v46  ;;  %v1881_v51 = vpop.f32.mrb[30].mxu1 }
 0x132   : > { %v1882_v52 = vpop.f32.mrb[31].mxu1 }
 0x133   : > { %v1883_v53 = vadd.f32 %v1882_v52, %v1881_v51  ;;  %v1355_v44 = vadd.f32 %v1880_v50, %v2567_v39 }
 0x135   : > { %v1358_v51 = vadd.f32 %v1883_v53, %v2569_v41 }
 0x137   : > { %v1900_v56 = vpop.f32.mrb[32].mxu1 }
 0x138   : > { %v1901_v57 = vpop.f32.mrb[33].mxu1 }
 0x139   : > { %v1902_v59 = vadd.f32 %v1901_v57, %v1900_v56  ;;  %v1903_v60 = vpop.f32.mrb[34].mxu1 }
 0x13a   : > { %v1904_v62 = vpop.f32.mrb[35].mxu1 }
 0x13b   : > { %v1905_v63 = vadd.f32 %v1904_v62, %v1903_v60  ;;  %v1396_v0 = vadd.f32 %v1902_v59, %v1331_v55 }
 0x13d   : > { %v1399_v1 = vadd.f32 %v1905_v63, %v1334_v61 }
 0x13f   : > { %v1906_v4 = vpop.f32.mrb[36].mxu1 }
 0x140   : > { %v1907_v5 = vpop.f32.mrb[37].mxu1 }
 0x141   : > { %v1908_v6 = vadd.f32 %v1907_v5, %v1906_v4  ;;  %v1909_v7 = vpop.f32.mrb[38].mxu1 }
 0x142   : > { %v1910_v9 = vpop.f32.mrb[39].mxu1 }
 0x143   : > { %v1911_v19 = vadd.f32 %v1910_v9, %v1909_v7  ;;  %v1404_v10 = vadd.f32 %v1908_v6, %v1339_v3 }
 0x145   : > { %v1407_v26 = vadd.f32 %v1911_v19, %v1342_v8 }
 0x147   : > { %v1912_v28 = vpop.f32.mrb[40].mxu1 }
 0x148   : > { %v1913_v31 = vpop.f32.mrb[41].mxu1 }
 0x149   : > { %v1914_v32 = vadd.f32 %v1913_v31, %v1912_v28  ;;  %v1915_v33 = vpop.f32.mrb[42].mxu1 }
 0x14a   : > { %v1916_v35 = vpop.f32.mrb[43].mxu1 }
 0x14b   : > { %v1917_v36 = vadd.f32 %v1916_v35, %v1915_v33  ;;  %v1412_v37 = vadd.f32 %v1914_v32, %v1347_v30 }
 0x14d   : > { %v1415_v40 = vadd.f32 %v1917_v36, %v1350_v34 }
 0x14f   : > { %v1918_v43 = vpop.f32.mrb[44].mxu1 }
 0x150   : > { %v1919_v46 = vpop.f32.mrb[45].mxu1 }
 0x151   : > { %v1920_v48 = vadd.f32 %v1919_v46, %v1918_v43  ;;  %v1921_v42 = vpop.f32.mrb[46].mxu1 }
 0x152   : > { %v1922_v52 = vpop.f32.mrb[47].mxu1 }
 0x153   : > { %v1923_v45 = vadd.f32 %v1922_v52, %v1921_v42  ;;  %v1420_v55 = vadd.f32 %v1920_v48, %v1355_v44 }
 0x155   : > { %v1423_v56 = vadd.f32 %v1923_v45, %v1358_v51 }
 0x157   : > { %v1942_v57 = vpop.f32.mrb[48].mxu1 }
 0x158   : > { %v1469_v59 = vadd.f32 %v1942_v57, %v1404_v10  ;;  %v1460_v60 = vpop.f32.mrb[49].mxu1 }
 0x159   : > { %v1461_v61 = vadd.f32 %v1460_v60, %v1396_v0  ;;  %v1943_v62 = vpop.f32.mrb[50].mxu1 }
 0x15a   : > { %2181 = vtanh.f32 %v1469_v59  ;;  %v1472_v63 = vadd.f32 %v1943_v62, %v1407_v26  ;;  %v1463_v3 = vpop.f32.mrb[51].mxu1 }
 0x15b   : > { %2183 = vtanh.f32 %v1461_v61  ;;  %v1464_v50 = vadd.f32 %v1463_v3, %v1399_v1 }
 0x15c   : > { %2185 = vtanh.f32 %v1472_v63 }
 0x15d   : > { %2187 = vtanh.f32 %v1464_v50 }
 0x15f   : > { %v1946_v53 = vpop.f32.mrb[52].mxu1 }
 0x160   : > { %v1485_v4 = vadd.f32 %v1946_v53, %v1420_v55  ;;  %v1476_v5 = vpop.f32.mrb[53].mxu1 }
 0x161   : > { %v1477_v6 = vadd.f32 %v1476_v5, %v1412_v37  ;;  %v1947_v7 = vpop.f32.mrb[54].mxu1 }
 0x162   : > { %2189 = vtanh.f32 %v1485_v4  ;;  %v1488_v8 = vadd.f32 %v1947_v7, %v1423_v56  ;;  %v1479_v9 = vpop.f32.mrb[55].mxu1 }
 0x163   : > { %2191 = vtanh.f32 %v1477_v6  ;;  %v1480_v0 = vadd.f32 %v1479_v9, %v1415_v40 }
 0x164   : > { %v2182_v19 = vpop.eup %2181  ;;  %2193 = vtanh.f32 %v1488_v8 }
 0x165   : > { %v2184_v1 = vpop.eup %2183  ;;  %v1833_v10 = vpack.c.bf16 %v2182_v19, %v2182_v19  ;;  %2195 = vtanh.f32 %v1480_v0 }
 0x166   : > { %v2186_v26 = vpop.eup %2185  ;;  %v1829_v28 = vpack.c.bf16 %v2184_v1, %v2184_v1  ;;  %v1184_v32 = vpop.f32.mrb[0].mxu0 }
 0x167   : > { %v2188_v30 = vpop.eup %2187  ;;  %1601 = vst.msk [vmem:[%s2578_s29 + $0x20] sm:$0xf] %vm1596_vm1, %v1833_v10  ;;  %v1835_v31 = vpack.c.bf16 %v2186_v26, %v2186_v26  ;;  %v1948_v34 = vadd.f32 %v1184_v32, %v2549_v49  ;;  %v1186_v35 = vpop.f32.mrb[1].mxu0 }
 0x168   : > { %1597 = vst.msk [vmem:[%s2578_s29 + $0x8] sm:$0xf] %vm1596_vm1, %v1829_v28  ;;  %v1831_v33 = vpack.c.bf16 %v2188_v30, %v2188_v30  ;;  %v1950_v36 = vadd.f32 %v1186_v35, %v2549_v49  ;;  %v1188_v37 = vpop.f32.mrb[2].mxu0 }
 0x169   : > { %1603 = vst.msk [vmem:[%s2578_s29 + $0x2c] sm:$0xf] %vm1596_vm1, %v1835_v31  ;;  %v1949_v40 = vadd.f32 %v1948_v34, %v2517_v29  ;;  %v1952_v43 = vadd.f32 %v1188_v37, %v2551_v54  ;;  %v1190_v44 = vpop.f32.mrb[3].mxu0 }
 0x16a   : > { %1599 = vst.msk [vmem:[%s2578_s29 + $0x14] sm:$0xf] %vm1596_vm1, %v1831_v33  ;;  %v1951_v46 = vadd.f32 %v1950_v36, %v2519_v38  ;;  %v1954_v48 = vadd.f32 %v1190_v44, %v2551_v54 }
 0x16b   : > { %2197 = vtanh.f32 %v1949_v40  ;;  %v1953_v51 = vadd.f32 %v1952_v43, %v2521_v47 }
 0x16c   : > { %v2190_v42 = vpop.eup %2189  ;;  %2199 = vtanh.f32 %v1951_v46  ;;  %v1955_v45 = vadd.f32 %v1954_v48, %v2523_v12 }
 0x16d   : > { %v2192_v52 = vpop.eup %2191  ;;  %v1841_v49 = vpack.c.bf16 %v2190_v42, %v2190_v42  ;;  %2201 = vtanh.f32 %v1953_v51 }
 0x16e   : > { %v2194_v29 = vpop.eup %2193  ;;  %v1837_v55 = vpack.c.bf16 %v2192_v52, %v2192_v52  ;;  %2203 = vtanh.f32 %v1955_v45  ;;  %v1194_v54 = vpop.f32.mrb[4].mxu0 }
 0x16f   : > { %v2196_v56 = vpop.eup %2195  ;;  %1609 = vst.msk [vmem:[%s2578_s29 + $0x50] sm:$0xf] %vm1596_vm1, %v1841_v49  ;;  %v1843_v38 = vpack.c.bf16 %v2194_v29, %v2194_v29  ;;  %v1956_v47 = vadd.f32 %v1194_v54, %v2554_v58  ;;  %v1196_v59 = vpop.f32.mrb[5].mxu0 }
 0x170   : > { %1605 = vst.msk [vmem:[%s2578_s29 + $0x38] sm:$0xf] %vm1596_vm1, %v1837_v55  ;;  %v1839_v57 = vpack.c.bf16 %v2196_v56, %v2196_v56  ;;  %v1958_v12 = vadd.f32 %v1196_v59, %v2554_v58  ;;  %v1198_v60 = vpop.f32.mrb[6].mxu0 }
 0x171   : > { %1611 = vst.msk [vmem:[%s2578_s29 + $0x5c] sm:$0xf] %vm1596_vm1, %v1843_v38  ;;  %v1957_v61 = vadd.f32 %v1956_v47, %v2525_v13  ;;  %v1960_v62 = vadd.f32 %v1198_v60, %v2557_v2  ;;  %v1200_v63 = vpop.f32.mrb[7].mxu0 }
 0x172   : > { %1607 = vst.msk [vmem:[%s2578_s29 + $0x44] sm:$0xf] %vm1596_vm1, %v1839_v57  ;;  %v1959_v3 = vadd.f32 %v1958_v12, %v2527_v14  ;;  %v1962_v50 = vadd.f32 %v1200_v63, %v2557_v2 }
 0x173   : > { %2205 = vtanh.f32 %v1957_v61  ;;  %v1961_v53 = vadd.f32 %v1960_v62, %v2529_v15 }
 0x174   : > { %2207 = vtanh.f32 %v1959_v3  ;;  %v1963_v4 = vadd.f32 %v1962_v50, %v2531_v16 }
 0x175   : > { %v2198_v58 = vpop.eup %2197  ;;  %2209 = vtanh.f32 %v1961_v53 }
 0x176   : > { %v2200_v5 = vpop.eup %2199  ;;  %2211 = vtanh.f32 %v1963_v4  ;;  %v1204_v13 = vpop.f32.mrb[8].mxu0 }
 0x177   : > { %v2202_v6 = vpop.eup %2201  ;;  %v1828_v7 = vpack.c.bf16 %v2200_v5, %v2198_v58  ;;  %v1964_v8 = vadd.f32 %v1204_v13, %v2561_v11  ;;  %v1206_v14 = vpop.f32.mrb[9].mxu0 }
 0x178   : > { %v2204_v9 = vpop.eup %2203  ;;  %v1966_v2 = vadd.f32 %v1206_v14, %v2561_v11  ;;  %v1208_v0 = vpop.f32.mrb[10].mxu0 }
 0x179   : > { %1595 = vst [vmem:[%s2578_s29] sm:$0xff] %v1828_v7  ;;  %v1830_v15 = vpack.c.bf16 %v2204_v9, %v2202_v6  ;;  %v1965_v19 = vadd.f32 %v1964_v8, %v2533_v17  ;;  %v1968_v16 = vadd.f32 %v1208_v0, %v2563_v27  ;;  %v1210_v1 = vpop.f32.mrb[11].mxu0 }
 0x17a   : > { %v1967_v10 = vadd.f32 %v1966_v2, %v2535_v18  ;;  %v1970_v26 = vadd.f32 %v1210_v1, %v2563_v27 }
 0x17b   : > { %1598 = vst [vmem:[%s2578_s29 + $0xc] sm:$0xff] %v1830_v15  ;;  %2213 = vtanh.f32 %v1965_v19  ;;  %v1969_v28 = vadd.f32 %v1968_v16, %v2537_v20 }
 0x17c   : > { %2215 = vtanh.f32 %v1967_v10  ;;  %v1971_v11 = vadd.f32 %v1970_v26, %v2539_v21 }
 0x17d   : > { %v2206_v30 = vpop.eup %2205  ;;  %2217 = vtanh.f32 %v1969_v28 }
 0x17e   : > { %v2208_v31 = vpop.eup %2207  ;;  %2219 = vtanh.f32 %v1971_v11  ;;  %v1214_v17 = vpop.f32.mrb[12].mxu0 }
 0x17f   : > { %v2210_v32 = vpop.eup %2209  ;;  %v1832_v33 = vpack.c.bf16 %v2208_v31, %v2206_v30  ;;  %v1972_v18 = vadd.f32 %v1214_v17, %v2567_v39  ;;  %v1216_v34 = vpop.f32.mrb[13].mxu0 }
 0x180   : > { %v2212_v27 = vpop.eup %2211  ;;  %v1974_v35 = vadd.f32 %v1216_v34, %v2567_v39  ;;  %v1218_v36 = vpop.f32.mrb[14].mxu0 }
 0x181   : > { %1600 = vst [vmem:[%s2578_s29 + $0x18] sm:$0xff] %v1832_v33  ;;  %v1834_v20 = vpack.c.bf16 %v2212_v27, %v2210_v32  ;;  %v1973_v37 = vadd.f32 %v1972_v18, %v2541_v22  ;;  %v1976_v21 = vadd.f32 %v1218_v36, %v2569_v41  ;;  %v1220_v40 = vpop.f32.mrb[15].mxu0 }
 0x182   : > { %v1975_v43 = vadd.f32 %v1974_v35, %v2543_v23  ;;  %v1978_v44 = vadd.f32 %v1220_v40, %v2569_v41 }
 0x183   : > { %1602 = vst [vmem:[%s2578_s29 + $0x24] sm:$0xff] %v1834_v20  ;;  %2221 = vtanh.f32 %v1973_v37  ;;  %v1977_v46 = vadd.f32 %v1976_v21, %v2545_v24 }
 0x184   : > { %2223 = vtanh.f32 %v1975_v43  ;;  %v1979_v39 = vadd.f32 %v1978_v44, %v2547_v25 }
 0x185   : > { %v2214_v48 = vpop.eup %2213  ;;  %2225 = vtanh.f32 %v1977_v46 }
 0x186   : > { %v2216_v22 = vpop.eup %2215  ;;  %2227 = vtanh.f32 %v1979_v39 }
 0x187   : > { %v2218_v42 = vpop.eup %2217  ;;  %v1836_v51 = vpack.c.bf16 %v2216_v22, %v2214_v48 }
 0x188   : > { %v2220_v52 = vpop.eup %2219 }
 0x189   : > { %1604 = vst [vmem:[%s2578_s29 + $0x30] sm:$0xff] %v1836_v51  ;;  %v1838_v23 = vpack.c.bf16 %v2220_v52, %v2218_v42 }
 0x18b   : > { %1606 = vst [vmem:[%s2578_s29 + $0x3c] sm:$0xff] %v1838_v23 }
 0x18d   : > { %v2222_v41 = vpop.eup %2221 }
 0x18e   : > { %v2224_v49 = vpop.eup %2223 }
 0x18f   : > { %v2226_v45 = vpop.eup %2225  ;;  %v1840_v29 = vpack.c.bf16 %v2224_v49, %v2222_v41 }
 0x190   : > { %v2228_v24 = vpop.eup %2227 }
 0x191   : > { %1608 = vst [vmem:[%s2578_s29 + $0x48] sm:$0xff] %v1840_v29  ;;  %v1842_v55 = vpack.c.bf16 %v2228_v24, %v2226_v45 }
 0x193   : > { %1610 = vst [vmem:[%s2578_s29 + $0x54] sm:$0xff] %v1842_v55 }
 0x194 PF: > { %s13_s12 = sadd.s32 1, %s2235_s12  }
 0x195   : > { %p10_p5 = scmp.ge.s32.totalorder %s13_s12, 4  }
 0x197   :  { %12 = sbr.rel (!%p10_p5) target bundleno = 1 (0x1), region = 62 }

// kernel: dqn_forward.7
= control target key start
LH: loop header
LB: loop body
LE: loop exit
PB: predicated region body
PF: predicated region fallthrough
CT: control target
= control target key end

     0   :  { %s13664_s15 = smov 0   ;;  %s13666_s16 = smov 0   ;;  %s16092_s0 = inlined_call_operand.vmem [shape: bf16[8,22528], index: 0, kind: input, shape index: {}]   ;;  %s16093_s1 = inlined_call_operand.vmem [shape: bf16[22528,512], index: 1, kind: input, shape index: {}]   ;;  %s16094_s2 = inlined_call_operand.vmem [shape: f32[1,512], index: 2, kind: input, shape index: {}]   ;;  %s16095_s3 = inlined_call_operand.vmem [shape: bf16[512,128], index: 3, kind: input, shape index: {}]   ;;  %s16096_s4 = inlined_call_operand.vmem [shape: f32[2,8,128], index: 4, kind: output, shape index: {}]  }
   0x1   :  { %s13668_s17 = smov 0   ;;  %s13670_s18 = smov 0  }
   0x2   :  { %s13672_s19 = smov 0   ;;  %s13674_s20 = smov 0  }
   0x3   :  { %s13676_s21 = smov 0  }
   0x4 LB: > { %s23_s22 = sadd.s32 1, %s13629_s19  ;;  %s26_s23 = sadd.s32 1, %s13633_s20  ;;  %s13637_s21 = sphi %s13676_s21, %s14_s21   ;;  %s13633_s20 = sphi %s13674_s20, %s16102_s20   ;;  %s13629_s19 = sphi %s13672_s19, %s16101_s19   ;;  %s13625_s18 = sphi %s13670_s18, %s16100_s18   ;;  %s13621_s17 = sphi %s13668_s17, %s16099_s17   ;;  %s13617_s16 = sphi %s13666_s16, %s16098_s16   ;;  %s13613_s15 = sphi %s13664_s15, %s16097_s15  }
   0x5   : > { %p24_p0 = scmp.ge.s32.totalorder %s23_s22, 4  ;;  %p68_p1 = scmp.ne.s32.totalorder %s13617_s16, %s13613_s15 }
   0x6   : > { %p69_p2 = scmp.eq.s32.totalorder %s13637_s21, 0  ;;  %s61_s27 = sadd.s32 1, %s13617_s16 }
   0x7   : > { %s16104_s22 = smov (%p24_p0, %s23_s22), 0  ;;  %s16106_s23 = smov (!%p24_p0, %s26_s23), %s13633_s20 }
   0x8   : > { %p70_p3 = por %p69_p2, %p68_p1  ;;  %p28_p4 = scmp.ge.s32.totalorder %s16106_s23, 2 }
   0x9   : > { %s56_s24 = ssub.s32 %s13629_s19, %s16104_s22  ;;  %p11604_p6 = scmp.ge.s32.totalorder %s13637_s21, 8 }
   0xa   : > { %s16108_s23 = smov (%p28_p4, %s16106_s23), 0 }
   0xb   : > { %s57_s25 = ssub.s32 %s13633_s20, %s16108_s23  ;;  %172 = sbr.rel (%p11604_p6) target bundleno = 378 (0x17a), region = 16 }
   0xc   : > { %s58_s26 = sor.u32 %s57_s25, %s56_s24 }
   0xd   : > { %p59_p5 = scmp.eq.s32.totalorder %s58_s26, 0 }
   0xf   : > { %s13715_s28 = scalar_select %p59_p5, %s13617_s16, %s61_s27  }
  0x12   : > { %184 = sbr.rel (!%p70_p3) target bundleno = 378 (0x17a), region = 24  ;;  %s186_s29 = sand.u32 (%p70_p3), 1, %s13617_s16  }
  0x13   : > { %s12405_s30 = smul.u32 (%p70_p3), 5632, %s186_s29  ;;  %s11605_s5 = sshll.u32 (%p70_p3), %s13633_s20, 1 }
  0x14   : > { %s12382_s6 = smul.u32 (%p70_p3), 2816, %s13629_s19 }
  0x15   : > { %s13729_s12 = scalar_lea.vmem (%p70_p3), [#allocation3], %s12405_s30 }
  0x16   : > { %s192_s7 = sadd.s32 (%p70_p3), %s12382_s6, %s11605_s5 }
  0x17   : > { %s11607_s8 = sshll.u32 (%p70_p3), %s192_s7, 2 }
  0x18   : > { %s13724_s11 = scalar_lea.vmem (%p70_p3), %s16093_s1, %s11607_s8 }
  0x19   : > { %v1631_v0 = vld [vmem:[%s13724_s11] sm:$0xff]  ;;  %v1633_v1 = vld [vmem:[%s13724_s11 + $0x10] sm:$0xff] }
  0x1a   : > { %v1635_v2 = vld [vmem:[%s13724_s11 + $0x20] sm:$0xff]  ;;  %1632 = vst [vmem:[%s13729_s12] sm:$0xff] %v1631_v0  ;;  %1634 = vst [vmem:[%s13729_s12 + $0x8] sm:$0xff] %v1633_v1  ;;  %v1637_v3 = vld [vmem:[%s13724_s11 + $0x30] sm:$0xff] }
  0x1b   : > { %1636 = vst [vmem:[%s13729_s12 + $0x10] sm:$0xff] %v1635_v2  ;;  %v1639_v4 = vld [vmem:[%s13724_s11 + $0x40] sm:$0xff]  ;;  %v1641_v5 = vld [vmem:[%s13724_s11 + $0x50] sm:$0xff]  ;;  %1638 = vst [vmem:[%s13729_s12 + $0x18] sm:$0xff] %v1637_v3 }
  0x1c   : > { %1640 = vst [vmem:[%s13729_s12 + $0x20] sm:$0xff] %v1639_v4  ;;  %1642 = vst [vmem:[%s13729_s12 + $0x28] sm:$0xff] %v1641_v5  ;;  %v1643_v6 = vld [vmem:[%s13724_s11 + $0x60] sm:$0xff]  ;;  %v1645_v7 = vld [vmem:[%s13724_s11 + $0x70] sm:$0xff] }
  0x1d   : > { %v1647_v8 = vld [vmem:[%s13724_s11 + $0x80] sm:$0xff]  ;;  %1644 = vst [vmem:[%s13729_s12 + $0x30] sm:$0xff] %v1643_v6  ;;  %1646 = vst [vmem:[%s13729_s12 + $0x38] sm:$0xff] %v1645_v7  ;;  %v1649_v9 = vld [vmem:[%s13724_s11 + $0x90] sm:$0xff] }
  0x1e   : > { %1648 = vst [vmem:[%s13729_s12 + $0x40] sm:$0xff] %v1647_v8  ;;  %v1651_v10 = vld [vmem:[%s13724_s11 + $0xa0] sm:$0xff]  ;;  %v1653_v11 = vld [vmem:[%s13724_s11 + $0xb0] sm:$0xff]  ;;  %1650 = vst [vmem:[%s13729_s12 + $0x48] sm:$0xff] %v1649_v9 }
  0x1f   : > { %1652 = vst [vmem:[%s13729_s12 + $0x50] sm:$0xff] %v1651_v10  ;;  %1654 = vst [vmem:[%s13729_s12 + $0x58] sm:$0xff] %v1653_v11  ;;  %v1655_v12 = vld [vmem:[%s13724_s11 + $0xc0] sm:$0xff]  ;;  %v1657_v13 = vld [vmem:[%s13724_s11 + $0xd0] sm:$0xff] }
  0x20   : > { %v1659_v14 = vld [vmem:[%s13724_s11 + $0xe0] sm:$0xff]  ;;  %1656 = vst [vmem:[%s13729_s12 + $0x60] sm:$0xff] %v1655_v12  ;;  %1658 = vst [vmem:[%s13729_s12 + $0x68] sm:$0xff] %v1657_v13  ;;  %v1661_v15 = vld [vmem:[%s13724_s11 + $0xf0] sm:$0xff] }
  0x21   : > { %1660 = vst [vmem:[%s13729_s12 + $0x70] sm:$0xff] %v1659_v14  ;;  %v1663_v16 = vld [vmem:[%s13724_s11 + $0x100] sm:$0xff]  ;;  %v1665_v17 = vld [vmem:[%s13724_s11 + $0x110] sm:$0xff]  ;;  %1662 = vst [vmem:[%s13729_s12 + $0x78] sm:$0xff] %v1661_v15 }
  0x22   : > { %1664 = vst [vmem:[%s13729_s12 + $0x80] sm:$0xff] %v1663_v16  ;;  %1666 = vst [vmem:[%s13729_s12 + $0x88] sm:$0xff] %v1665_v17  ;;  %v1667_v18 = vld [vmem:[%s13724_s11 + $0x120] sm:$0xff]  ;;  %v1669_v19 = vld [vmem:[%s13724_s11 + $0x130] sm:$0xff] }
  0x23   : > { %v1671_v20 = vld [vmem:[%s13724_s11 + $0x140] sm:$0xff]  ;;  %1668 = vst [vmem:[%s13729_s12 + $0x90] sm:$0xff] %v1667_v18  ;;  %1670 = vst [vmem:[%s13729_s12 + $0x98] sm:$0xff] %v1669_v19  ;;  %v1673_v21 = vld [vmem:[%s13724_s11 + $0x150] sm:$0xff] }
  0x24   : > { %1672 = vst [vmem:[%s13729_s12 + $0xa0] sm:$0xff] %v1671_v20  ;;  %v1675_v22 = vld [vmem:[%s13724_s11 + $0x160] sm:$0xff]  ;;  %v1677_v23 = vld [vmem:[%s13724_s11 + $0x170] sm:$0xff]  ;;  %1674 = vst [vmem:[%s13729_s12 + $0xa8] sm:$0xff] %v1673_v21 }
  0x25   : > { %1676 = vst [vmem:[%s13729_s12 + $0xb0] sm:$0xff] %v1675_v22  ;;  %1678 = vst [vmem:[%s13729_s12 + $0xb8] sm:$0xff] %v1677_v23  ;;  %v1679_v24 = vld [vmem:[%s13724_s11 + $0x180] sm:$0xff]  ;;  %v1681_v25 = vld [vmem:[%s13724_s11 + $0x190] sm:$0xff] }
  0x26   : > { %v1683_v26 = vld [vmem:[%s13724_s11 + $0x1a0] sm:$0xff]  ;;  %1680 = vst [vmem:[%s13729_s12 + $0xc0] sm:$0xff] %v1679_v24  ;;  %1682 = vst [vmem:[%s13729_s12 + $0xc8] sm:$0xff] %v1681_v25  ;;  %v1685_v27 = vld [vmem:[%s13724_s11 + $0x1b0] sm:$0xff] }
  0x27   : > { %1684 = vst [vmem:[%s13729_s12 + $0xd0] sm:$0xff] %v1683_v26  ;;  %v1687_v28 = vld [vmem:[%s13724_s11 + $0x1c0] sm:$0xff]  ;;  %v1689_v29 = vld [vmem:[%s13724_s11 + $0x1d0] sm:$0xff]  ;;  %1686 = vst [vmem:[%s13729_s12 + $0xd8] sm:$0xff] %v1685_v27 }
  0x28   : > { %1688 = vst [vmem:[%s13729_s12 + $0xe0] sm:$0xff] %v1687_v28  ;;  %1690 = vst [vmem:[%s13729_s12 + $0xe8] sm:$0xff] %v1689_v29  ;;  %v1691_v30 = vld [vmem:[%s13724_s11 + $0x1e0] sm:$0xff]  ;;  %v1693_v31 = vld [vmem:[%s13724_s11 + $0x1f0] sm:$0xff] }
  0x29   : > { %v1695_v32 = vld [vmem:[%s13724_s11 + $0x200] sm:$0xff]  ;;  %1692 = vst [vmem:[%s13729_s12 + $0xf0] sm:$0xff] %v1691_v30  ;;  %1694 = vst [vmem:[%s13729_s12 + $0xf8] sm:$0xff] %v1693_v31  ;;  %v1697_v33 = vld [vmem:[%s13724_s11 + $0x210] sm:$0xff] }
  0x2a   : > { %1696 = vst [vmem:[%s13729_s12 + $0x100] sm:$0xff] %v1695_v32  ;;  %v1699_v34 = vld [vmem:[%s13724_s11 + $0x220] sm:$0xff]  ;;  %v1701_v35 = vld [vmem:[%s13724_s11 + $0x230] sm:$0xff]  ;;  %1698 = vst [vmem:[%s13729_s12 + $0x108] sm:$0xff] %v1697_v33 }
  0x2b   : > { %1700 = vst [vmem:[%s13729_s12 + $0x110] sm:$0xff] %v1699_v34  ;;  %1702 = vst [vmem:[%s13729_s12 + $0x118] sm:$0xff] %v1701_v35  ;;  %v1703_v36 = vld [vmem:[%s13724_s11 + $0x240] sm:$0xff]  ;;  %v1705_v37 = vld [vmem:[%s13724_s11 + $0x250] sm:$0xff] }
  0x2c   : > { %v1707_v38 = vld [vmem:[%s13724_s11 + $0x260] sm:$0xff]  ;;  %1704 = vst [vmem:[%s13729_s12 + $0x120] sm:$0xff] %v1703_v36  ;;  %1706 = vst [vmem:[%s13729_s12 + $0x128] sm:$0xff] %v1705_v37  ;;  %v1709_v39 = vld [vmem:[%s13724_s11 + $0x270] sm:$0xff] }
  0x2d   : > { %1708 = vst [vmem:[%s13729_s12 + $0x130] sm:$0xff] %v1707_v38  ;;  %v1711_v40 = vld [vmem:[%s13724_s11 + $0x280] sm:$0xff]  ;;  %v1713_v41 = vld [vmem:[%s13724_s11 + $0x290] sm:$0xff]  ;;  %1710 = vst [vmem:[%s13729_s12 + $0x138] sm:$0xff] %v1709_v39 }
  0x2e   : > { %1712 = vst [vmem:[%s13729_s12 + $0x140] sm:$0xff] %v1711_v40  ;;  %1714 = vst [vmem:[%s13729_s12 + $0x148] sm:$0xff] %v1713_v41  ;;  %v1715_v42 = vld [vmem:[%s13724_s11 + $0x2a0] sm:$0xff]  ;;  %v1717_v43 = vld [vmem:[%s13724_s11 + $0x2b0] sm:$0xff] }
  0x2f   : > { %v1719_v44 = vld [vmem:[%s13724_s11 + $0x2c0] sm:$0xff]  ;;  %1716 = vst [vmem:[%s13729_s12 + $0x150] sm:$0xff] %v1715_v42  ;;  %1718 = vst [vmem:[%s13729_s12 + $0x158] sm:$0xff] %v1717_v43  ;;  %v1721_v45 = vld [vmem:[%s13724_s11 + $0x2d0] sm:$0xff] }
  0x30   : > { %1720 = vst [vmem:[%s13729_s12 + $0x160] sm:$0xff] %v1719_v44  ;;  %v1723_v46 = vld [vmem:[%s13724_s11 + $0x2e0] sm:$0xff]  ;;  %v1725_v47 = vld [vmem:[%s13724_s11 + $0x2f0] sm:$0xff]  ;;  %1722 = vst [vmem:[%s13729_s12 + $0x168] sm:$0xff] %v1721_v45 }
  0x31   : > { %1724 = vst [vmem:[%s13729_s12 + $0x170] sm:$0xff] %v1723_v46  ;;  %1726 = vst [vmem:[%s13729_s12 + $0x178] sm:$0xff] %v1725_v47  ;;  %v1727_v48 = vld [vmem:[%s13724_s11 + $0x300] sm:$0xff]  ;;  %v1729_v49 = vld [vmem:[%s13724_s11 + $0x310] sm:$0xff] }
  0x32   : > { %v1731_v50 = vld [vmem:[%s13724_s11 + $0x320] sm:$0xff]  ;;  %1728 = vst [vmem:[%s13729_s12 + $0x180] sm:$0xff] %v1727_v48  ;;  %1730 = vst [vmem:[%s13729_s12 + $0x188] sm:$0xff] %v1729_v49  ;;  %v1733_v51 = vld [vmem:[%s13724_s11 + $0x330] sm:$0xff] }
  0x33   : > { %1732 = vst [vmem:[%s13729_s12 + $0x190] sm:$0xff] %v1731_v50  ;;  %v1735_v52 = vld [vmem:[%s13724_s11 + $0x340] sm:$0xff]  ;;  %v1737_v53 = vld [vmem:[%s13724_s11 + $0x350] sm:$0xff]  ;;  %1734 = vst [vmem:[%s13729_s12 + $0x198] sm:$0xff] %v1733_v51 }
  0x34   : > { %1736 = vst [vmem:[%s13729_s12 + $0x1a0] sm:$0xff] %v1735_v52  ;;  %1738 = vst [vmem:[%s13729_s12 + $0x1a8] sm:$0xff] %v1737_v53  ;;  %v1739_v54 = vld [vmem:[%s13724_s11 + $0x360] sm:$0xff]  ;;  %v1741_v55 = vld [vmem:[%s13724_s11 + $0x370] sm:$0xff] }
  0x35   : > { %v1743_v56 = vld [vmem:[%s13724_s11 + $0x380] sm:$0xff]  ;;  %1740 = vst [vmem:[%s13729_s12 + $0x1b0] sm:$0xff] %v1739_v54  ;;  %1742 = vst [vmem:[%s13729_s12 + $0x1b8] sm:$0xff] %v1741_v55  ;;  %v1745_v57 = vld [vmem:[%s13724_s11 + $0x390] sm:$0xff] }
  0x36   : > { %1744 = vst [vmem:[%s13729_s12 + $0x1c0] sm:$0xff] %v1743_v56  ;;  %v1747_v58 = vld [vmem:[%s13724_s11 + $0x3a0] sm:$0xff]  ;;  %v1749_v59 = vld [vmem:[%s13724_s11 + $0x3b0] sm:$0xff]  ;;  %1746 = vst [vmem:[%s13729_s12 + $0x1c8] sm:$0xff] %v1745_v57 }
  0x37   : > { %1748 = vst [vmem:[%s13729_s12 + $0x1d0] sm:$0xff] %v1747_v58  ;;  %1750 = vst [vmem:[%s13729_s12 + $0x1d8] sm:$0xff] %v1749_v59  ;;  %v1751_v60 = vld [vmem:[%s13724_s11 + $0x3c0] sm:$0xff]  ;;  %v1753_v61 = vld [vmem:[%s13724_s11 + $0x3d0] sm:$0xff] }
  0x38   : > { %v1755_v62 = vld [vmem:[%s13724_s11 + $0x3e0] sm:$0xff]  ;;  %1752 = vst [vmem:[%s13729_s12 + $0x1e0] sm:$0xff] %v1751_v60  ;;  %1754 = vst [vmem:[%s13729_s12 + $0x1e8] sm:$0xff] %v1753_v61  ;;  %v1757_v63 = vld [vmem:[%s13724_s11 + $0x3f0] sm:$0xff] }
  0x39   : > { %1756 = vst [vmem:[%s13729_s12 + $0x1f0] sm:$0xff] %v1755_v62  ;;  %v1759_v0 = vld [vmem:[%s13724_s11 + $0x400] sm:$0xff]  ;;  %v1761_v1 = vld [vmem:[%s13724_s11 + $0x410] sm:$0xff]  ;;  %1758 = vst [vmem:[%s13729_s12 + $0x1f8] sm:$0xff] %v1757_v63 }
  0x3a   : > { %1760 = vst [vmem:[%s13729_s12 + $0x200] sm:$0xff] %v1759_v0  ;;  %1762 = vst [vmem:[%s13729_s12 + $0x208] sm:$0xff] %v1761_v1  ;;  %v1763_v2 = vld [vmem:[%s13724_s11 + $0x420] sm:$0xff]  ;;  %v1765_v3 = vld [vmem:[%s13724_s11 + $0x430] sm:$0xff] }
  0x3b   : > { %v1767_v4 = vld [vmem:[%s13724_s11 + $0x440] sm:$0xff]  ;;  %1764 = vst [vmem:[%s13729_s12 + $0x210] sm:$0xff] %v1763_v2  ;;  %1766 = vst [vmem:[%s13729_s12 + $0x218] sm:$0xff] %v1765_v3  ;;  %v1769_v5 = vld [vmem:[%s13724_s11 + $0x450] sm:$0xff] }
  0x3c   : > { %1768 = vst [vmem:[%s13729_s12 + $0x220] sm:$0xff] %v1767_v4  ;;  %v1771_v6 = vld [vmem:[%s13724_s11 + $0x460] sm:$0xff]  ;;  %v1773_v7 = vld [vmem:[%s13724_s11 + $0x470] sm:$0xff]  ;;  %1770 = vst [vmem:[%s13729_s12 + $0x228] sm:$0xff] %v1769_v5 }
  0x3d   : > { %1772 = vst [vmem:[%s13729_s12 + $0x230] sm:$0xff] %v1771_v6  ;;  %1774 = vst [vmem:[%s13729_s12 + $0x238] sm:$0xff] %v1773_v7  ;;  %v1775_v8 = vld [vmem:[%s13724_s11 + $0x480] sm:$0xff]  ;;  %v1777_v9 = vld [vmem:[%s13724_s11 + $0x490] sm:$0xff] }
  0x3e   : > { %v1779_v10 = vld [vmem:[%s13724_s11 + $0x4a0] sm:$0xff]  ;;  %1776 = vst [vmem:[%s13729_s12 + $0x240] sm:$0xff] %v1775_v8  ;;  %1778 = vst [vmem:[%s13729_s12 + $0x248] sm:$0xff] %v1777_v9  ;;  %v1781_v11 = vld [vmem:[%s13724_s11 + $0x4b0] sm:$0xff] }
  0x3f   : > { %1780 = vst [vmem:[%s13729_s12 + $0x250] sm:$0xff] %v1779_v10  ;;  %v1783_v12 = vld [vmem:[%s13724_s11 + $0x4c0] sm:$0xff]  ;;  %v1785_v13 = vld [vmem:[%s13724_s11 + $0x4d0] sm:$0xff]  ;;  %1782 = vst [vmem:[%s13729_s12 + $0x258] sm:$0xff] %v1781_v11 }
  0x40   : > { %1784 = vst [vmem:[%s13729_s12 + $0x260] sm:$0xff] %v1783_v12  ;;  %1786 = vst [vmem:[%s13729_s12 + $0x268] sm:$0xff] %v1785_v13  ;;  %v1787_v14 = vld [vmem:[%s13724_s11 + $0x4e0] sm:$0xff]  ;;  %v1789_v15 = vld [vmem:[%s13724_s11 + $0x4f0] sm:$0xff] }
  0x41   : > { %v1791_v16 = vld [vmem:[%s13724_s11 + $0x500] sm:$0xff]  ;;  %1788 = vst [vmem:[%s13729_s12 + $0x270] sm:$0xff] %v1787_v14  ;;  %1790 = vst [vmem:[%s13729_s12 + $0x278] sm:$0xff] %v1789_v15  ;;  %v1793_v17 = vld [vmem:[%s13724_s11 + $0x510] sm:$0xff] }
  0x42   : > { %1792 = vst [vmem:[%s13729_s12 + $0x280] sm:$0xff] %v1791_v16  ;;  %v1795_v18 = vld [vmem:[%s13724_s11 + $0x520] sm:$0xff]  ;;  %v1797_v19 = vld [vmem:[%s13724_s11 + $0x530] sm:$0xff]  ;;  %1794 = vst [vmem:[%s13729_s12 + $0x288] sm:$0xff] %v1793_v17 }
  0x43   : > { %1796 = vst [vmem:[%s13729_s12 + $0x290] sm:$0xff] %v1795_v18  ;;  %1798 = vst [vmem:[%s13729_s12 + $0x298] sm:$0xff] %v1797_v19  ;;  %v1799_v20 = vld [vmem:[%s13724_s11 + $0x540] sm:$0xff]  ;;  %v1801_v21 = vld [vmem:[%s13724_s11 + $0x550] sm:$0xff] }
  0x44   : > { %v1803_v22 = vld [vmem:[%s13724_s11 + $0x560] sm:$0xff]  ;;  %1800 = vst [vmem:[%s13729_s12 + $0x2a0] sm:$0xff] %v1799_v20  ;;  %1802 = vst [vmem:[%s13729_s12 + $0x2a8] sm:$0xff] %v1801_v21  ;;  %v1805_v23 = vld [vmem:[%s13724_s11 + $0x570] sm:$0xff] }
  0x45   : > { %1804 = vst [vmem:[%s13729_s12 + $0x2b0] sm:$0xff] %v1803_v22  ;;  %v1807_v24 = vld [vmem:[%s13724_s11 + $0x580] sm:$0xff]  ;;  %v1809_v25 = vld [vmem:[%s13724_s11 + $0x590] sm:$0xff]  ;;  %1806 = vst [vmem:[%s13729_s12 + $0x2b8] sm:$0xff] %v1805_v23 }
  0x46   : > { %1808 = vst [vmem:[%s13729_s12 + $0x2c0] sm:$0xff] %v1807_v24  ;;  %1810 = vst [vmem:[%s13729_s12 + $0x2c8] sm:$0xff] %v1809_v25  ;;  %v1811_v26 = vld [vmem:[%s13724_s11 + $0x5a0] sm:$0xff]  ;;  %v1813_v27 = vld [vmem:[%s13724_s11 + $0x5b0] sm:$0xff] }
  0x47   : > { %v1815_v28 = vld [vmem:[%s13724_s11 + $0x5c0] sm:$0xff]  ;;  %1812 = vst [vmem:[%s13729_s12 + $0x2d0] sm:$0xff] %v1811_v26  ;;  %1814 = vst [vmem:[%s13729_s12 + $0x2d8] sm:$0xff] %v1813_v27  ;;  %v1817_v29 = vld [vmem:[%s13724_s11 + $0x5d0] sm:$0xff] }
  0x48   : > { %1816 = vst [vmem:[%s13729_s12 + $0x2e0] sm:$0xff] %v1815_v28  ;;  %v1819_v30 = vld [vmem:[%s13724_s11 + $0x5e0] sm:$0xff]  ;;  %v1821_v31 = vld [vmem:[%s13724_s11 + $0x5f0] sm:$0xff]  ;;  %1818 = vst [vmem:[%s13729_s12 + $0x2e8] sm:$0xff] %v1817_v29 }
  0x49   : > { %1820 = vst [vmem:[%s13729_s12 + $0x2f0] sm:$0xff] %v1819_v30  ;;  %1822 = vst [vmem:[%s13729_s12 + $0x2f8] sm:$0xff] %v1821_v31  ;;  %v1823_v32 = vld [vmem:[%s13724_s11 + $0x600] sm:$0xff]  ;;  %v1825_v33 = vld [vmem:[%s13724_s11 + $0x610] sm:$0xff] }
  0x4a   : > { %v1827_v34 = vld [vmem:[%s13724_s11 + $0x620] sm:$0xff]  ;;  %1824 = vst [vmem:[%s13729_s12 + $0x300] sm:$0xff] %v1823_v32  ;;  %1826 = vst [vmem:[%s13729_s12 + $0x308] sm:$0xff] %v1825_v33  ;;  %v1829_v35 = vld [vmem:[%s13724_s11 + $0x630] sm:$0xff] }
  0x4b   : > { %1828 = vst [vmem:[%s13729_s12 + $0x310] sm:$0xff] %v1827_v34  ;;  %v1831_v36 = vld [vmem:[%s13724_s11 + $0x640] sm:$0xff]  ;;  %v1833_v37 = vld [vmem:[%s13724_s11 + $0x650] sm:$0xff]  ;;  %1830 = vst [vmem:[%s13729_s12 + $0x318] sm:$0xff] %v1829_v35 }
  0x4c   : > { %1832 = vst [vmem:[%s13729_s12 + $0x320] sm:$0xff] %v1831_v36  ;;  %1834 = vst [vmem:[%s13729_s12 + $0x328] sm:$0xff] %v1833_v37  ;;  %v1835_v38 = vld [vmem:[%s13724_s11 + $0x660] sm:$0xff]  ;;  %v1837_v39 = vld [vmem:[%s13724_s11 + $0x670] sm:$0xff] }
  0x4d   : > { %v1839_v40 = vld [vmem:[%s13724_s11 + $0x680] sm:$0xff]  ;;  %1836 = vst [vmem:[%s13729_s12 + $0x330] sm:$0xff] %v1835_v38  ;;  %1838 = vst [vmem:[%s13729_s12 + $0x338] sm:$0xff] %v1837_v39  ;;  %v1841_v41 = vld [vmem:[%s13724_s11 + $0x690] sm:$0xff] }
  0x4e   : > { %1840 = vst [vmem:[%s13729_s12 + $0x340] sm:$0xff] %v1839_v40  ;;  %v1843_v42 = vld [vmem:[%s13724_s11 + $0x6a0] sm:$0xff]  ;;  %v1845_v43 = vld [vmem:[%s13724_s11 + $0x6b0] sm:$0xff]  ;;  %1842 = vst [vmem:[%s13729_s12 + $0x348] sm:$0xff] %v1841_v41 }
  0x4f   : > { %1844 = vst [vmem:[%s13729_s12 + $0x350] sm:$0xff] %v1843_v42  ;;  %1846 = vst [vmem:[%s13729_s12 + $0x358] sm:$0xff] %v1845_v43  ;;  %v1847_v44 = vld [vmem:[%s13724_s11 + $0x6c0] sm:$0xff]  ;;  %v1849_v45 = vld [vmem:[%s13724_s11 + $0x6d0] sm:$0xff] }
  0x50   : > { %v1851_v46 = vld [vmem:[%s13724_s11 + $0x6e0] sm:$0xff]  ;;  %1848 = vst [vmem:[%s13729_s12 + $0x360] sm:$0xff] %v1847_v44  ;;  %1850 = vst [vmem:[%s13729_s12 + $0x368] sm:$0xff] %v1849_v45  ;;  %v1853_v47 = vld [vmem:[%s13724_s11 + $0x6f0] sm:$0xff] }
  0x51   : > { %1852 = vst [vmem:[%s13729_s12 + $0x370] sm:$0xff] %v1851_v46  ;;  %v1855_v48 = vld [vmem:[%s13724_s11 + $0x700] sm:$0xff]  ;;  %v1857_v49 = vld [vmem:[%s13724_s11 + $0x710] sm:$0xff]  ;;  %1854 = vst [vmem:[%s13729_s12 + $0x378] sm:$0xff] %v1853_v47 }
  0x52   : > { %1856 = vst [vmem:[%s13729_s12 + $0x380] sm:$0xff] %v1855_v48  ;;  %1858 = vst [vmem:[%s13729_s12 + $0x388] sm:$0xff] %v1857_v49  ;;  %v1859_v50 = vld [vmem:[%s13724_s11 + $0x720] sm:$0xff]  ;;  %v1861_v51 = vld [vmem:[%s13724_s11 + $0x730] sm:$0xff] }
  0x53   : > { %v1863_v52 = vld [vmem:[%s13724_s11 + $0x740] sm:$0xff]  ;;  %1860 = vst [vmem:[%s13729_s12 + $0x390] sm:$0xff] %v1859_v50  ;;  %1862 = vst [vmem:[%s13729_s12 + $0x398] sm:$0xff] %v1861_v51  ;;  %v1865_v53 = vld [vmem:[%s13724_s11 + $0x750] sm:$0xff] }
  0x54   : > { %1864 = vst [vmem:[%s13729_s12 + $0x3a0] sm:$0xff] %v1863_v52  ;;  %v1867_v54 = vld [vmem:[%s13724_s11 + $0x760] sm:$0xff]  ;;  %v1869_v55 = vld [vmem:[%s13724_s11 + $0x770] sm:$0xff]  ;;  %1866 = vst [vmem:[%s13729_s12 + $0x3a8] sm:$0xff] %v1865_v53 }
  0x55   : > { %1868 = vst [vmem:[%s13729_s12 + $0x3b0] sm:$0xff] %v1867_v54  ;;  %1870 = vst [vmem:[%s13729_s12 + $0x3b8] sm:$0xff] %v1869_v55  ;;  %v1871_v56 = vld [vmem:[%s13724_s11 + $0x780] sm:$0xff]  ;;  %v1873_v57 = vld [vmem:[%s13724_s11 + $0x790] sm:$0xff] }
  0x56   : > { %v1875_v58 = vld [vmem:[%s13724_s11 + $0x7a0] sm:$0xff]  ;;  %1872 = vst [vmem:[%s13729_s12 + $0x3c0] sm:$0xff] %v1871_v56  ;;  %1874 = vst [vmem:[%s13729_s12 + $0x3c8] sm:$0xff] %v1873_v57  ;;  %v1877_v59 = vld [vmem:[%s13724_s11 + $0x7b0] sm:$0xff] }
  0x57   : > { %1876 = vst [vmem:[%s13729_s12 + $0x3d0] sm:$0xff] %v1875_v58  ;;  %v1879_v60 = vld [vmem:[%s13724_s11 + $0x7c0] sm:$0xff]  ;;  %v1881_v61 = vld [vmem:[%s13724_s11 + $0x7d0] sm:$0xff]  ;;  %1878 = vst [vmem:[%s13729_s12 + $0x3d8] sm:$0xff] %v1877_v59 }
  0x58   : > { %1880 = vst [vmem:[%s13729_s12 + $0x3e0] sm:$0xff] %v1879_v60  ;;  %1882 = vst [vmem:[%s13729_s12 + $0x3e8] sm:$0xff] %v1881_v61  ;;  %v1883_v62 = vld [vmem:[%s13724_s11 + $0x7e0] sm:$0xff]  ;;  %v1885_v63 = vld [vmem:[%s13724_s11 + $0x7f0] sm:$0xff] }
  0x59   : > { %v1887_v0 = vld [vmem:[%s13724_s11 + $0x800] sm:$0xff]  ;;  %1884 = vst [vmem:[%s13729_s12 + $0x3f0] sm:$0xff] %v1883_v62  ;;  %1886 = vst [vmem:[%s13729_s12 + $0x3f8] sm:$0xff] %v1885_v63  ;;  %v1889_v1 = vld [vmem:[%s13724_s11 + $0x810] sm:$0xff] }
  0x5a   : > { %1888 = vst [vmem:[%s13729_s12 + $0x400] sm:$0xff] %v1887_v0  ;;  %v1891_v2 = vld [vmem:[%s13724_s11 + $0x820] sm:$0xff]  ;;  %v1893_v3 = vld [vmem:[%s13724_s11 + $0x830] sm:$0xff]  ;;  %1890 = vst [vmem:[%s13729_s12 + $0x408] sm:$0xff] %v1889_v1 }
  0x5b   : > { %1892 = vst [vmem:[%s13729_s12 + $0x410] sm:$0xff] %v1891_v2  ;;  %1894 = vst [vmem:[%s13729_s12 + $0x418] sm:$0xff] %v1893_v3  ;;  %v1895_v4 = vld [vmem:[%s13724_s11 + $0x840] sm:$0xff]  ;;  %v1897_v5 = vld [vmem:[%s13724_s11 + $0x850] sm:$0xff] }
  0x5c   : > { %v1899_v6 = vld [vmem:[%s13724_s11 + $0x860] sm:$0xff]  ;;  %1896 = vst [vmem:[%s13729_s12 + $0x420] sm:$0xff] %v1895_v4  ;;  %1898 = vst [vmem:[%s13729_s12 + $0x428] sm:$0xff] %v1897_v5  ;;  %v1901_v7 = vld [vmem:[%s13724_s11 + $0x870] sm:$0xff] }
  0x5d   : > { %1900 = vst [vmem:[%s13729_s12 + $0x430] sm:$0xff] %v1899_v6  ;;  %v1903_v8 = vld [vmem:[%s13724_s11 + $0x880] sm:$0xff]  ;;  %v1905_v9 = vld [vmem:[%s13724_s11 + $0x890] sm:$0xff]  ;;  %1902 = vst [vmem:[%s13729_s12 + $0x438] sm:$0xff] %v1901_v7 }
  0x5e   : > { %1904 = vst [vmem:[%s13729_s12 + $0x440] sm:$0xff] %v1903_v8  ;;  %1906 = vst [vmem:[%s13729_s12 + $0x448] sm:$0xff] %v1905_v9  ;;  %v1907_v10 = vld [vmem:[%s13724_s11 + $0x8a0] sm:$0xff]  ;;  %v1909_v11 = vld [vmem:[%s13724_s11 + $0x8b0] sm:$0xff] }
  0x5f   : > { %v1911_v12 = vld [vmem:[%s13724_s11 + $0x8c0] sm:$0xff]  ;;  %1908 = vst [vmem:[%s13729_s12 + $0x450] sm:$0xff] %v1907_v10  ;;  %1910 = vst [vmem:[%s13729_s12 + $0x458] sm:$0xff] %v1909_v11  ;;  %v1913_v13 = vld [vmem:[%s13724_s11 + $0x8d0] sm:$0xff] }
  0x60   : > { %1912 = vst [vmem:[%s13729_s12 + $0x460] sm:$0xff] %v1911_v12  ;;  %v1915_v14 = vld [vmem:[%s13724_s11 + $0x8e0] sm:$0xff]  ;;  %v1917_v15 = vld [vmem:[%s13724_s11 + $0x8f0] sm:$0xff]  ;;  %1914 = vst [vmem:[%s13729_s12 + $0x468] sm:$0xff] %v1913_v13 }
  0x61   : > { %1916 = vst [vmem:[%s13729_s12 + $0x470] sm:$0xff] %v1915_v14  ;;  %1918 = vst [vmem:[%s13729_s12 + $0x478] sm:$0xff] %v1917_v15  ;;  %v1919_v16 = vld [vmem:[%s13724_s11 + $0x900] sm:$0xff]  ;;  %v1921_v17 = vld [vmem:[%s13724_s11 + $0x910] sm:$0xff] }
  0x62   : > { %v1923_v18 = vld [vmem:[%s13724_s11 + $0x920] sm:$0xff]  ;;  %1920 = vst [vmem:[%s13729_s12 + $0x480] sm:$0xff] %v1919_v16  ;;  %1922 = vst [vmem:[%s13729_s12 + $0x488] sm:$0xff] %v1921_v17  ;;  %v1925_v19 = vld [vmem:[%s13724_s11 + $0x930] sm:$0xff] }
  0x63   : > { %1924 = vst [vmem:[%s13729_s12 + $0x490] sm:$0xff] %v1923_v18  ;;  %v1927_v20 = vld [vmem:[%s13724_s11 + $0x940] sm:$0xff]  ;;  %v1929_v21 = vld [vmem:[%s13724_s11 + $0x950] sm:$0xff]  ;;  %1926 = vst [vmem:[%s13729_s12 + $0x498] sm:$0xff] %v1925_v19 }
  0x64   : > { %1928 = vst [vmem:[%s13729_s12 + $0x4a0] sm:$0xff] %v1927_v20  ;;  %1930 = vst [vmem:[%s13729_s12 + $0x4a8] sm:$0xff] %v1929_v21  ;;  %v1931_v22 = vld [vmem:[%s13724_s11 + $0x960] sm:$0xff]  ;;  %v1933_v23 = vld [vmem:[%s13724_s11 + $0x970] sm:$0xff] }
  0x65   : > { %v1935_v24 = vld [vmem:[%s13724_s11 + $0x980] sm:$0xff]  ;;  %1932 = vst [vmem:[%s13729_s12 + $0x4b0] sm:$0xff] %v1931_v22  ;;  %1934 = vst [vmem:[%s13729_s12 + $0x4b8] sm:$0xff] %v1933_v23  ;;  %v1937_v25 = vld [vmem:[%s13724_s11 + $0x990] sm:$0xff] }
  0x66   : > { %1936 = vst [vmem:[%s13729_s12 + $0x4c0] sm:$0xff] %v1935_v24  ;;  %v1939_v26 = vld [vmem:[%s13724_s11 + $0x9a0] sm:$0xff]  ;;  %v1941_v27 = vld [vmem:[%s13724_s11 + $0x9b0] sm:$0xff]  ;;  %1938 = vst [vmem:[%s13729_s12 + $0x4c8] sm:$0xff] %v1937_v25 }
  0x67   : > { %1940 = vst [vmem:[%s13729_s12 + $0x4d0] sm:$0xff] %v1939_v26  ;;  %1942 = vst [vmem:[%s13729_s12 + $0x4d8] sm:$0xff] %v1941_v27  ;;  %v1943_v28 = vld [vmem:[%s13724_s11 + $0x9c0] sm:$0xff]  ;;  %v1945_v29 = vld [vmem:[%s13724_s11 + $0x9d0] sm:$0xff] }
  0x68   : > { %v1947_v30 = vld [vmem:[%s13724_s11 + $0x9e0] sm:$0xff]  ;;  %1944 = vst [vmem:[%s13729_s12 + $0x4e0] sm:$0xff] %v1943_v28  ;;  %1946 = vst [vmem:[%s13729_s12 + $0x4e8] sm:$0xff] %v1945_v29  ;;  %v1949_v31 = vld [vmem:[%s13724_s11 + $0x9f0] sm:$0xff] }
  0x69   : > { %1948 = vst [vmem:[%s13729_s12 + $0x4f0] sm:$0xff] %v1947_v30  ;;  %v1951_v32 = vld [vmem:[%s13724_s11 + $0xa00] sm:$0xff]  ;;  %v1953_v33 = vld [vmem:[%s13724_s11 + $0xa10] sm:$0xff]  ;;  %1950 = vst [vmem:[%s13729_s12 + $0x4f8] sm:$0xff] %v1949_v31 }
  0x6a   : > { %1952 = vst [vmem:[%s13729_s12 + $0x500] sm:$0xff] %v1951_v32  ;;  %1954 = vst [vmem:[%s13729_s12 + $0x508] sm:$0xff] %v1953_v33  ;;  %v1955_v34 = vld [vmem:[%s13724_s11 + $0xa20] sm:$0xff]  ;;  %v1957_v35 = vld [vmem:[%s13724_s11 + $0xa30] sm:$0xff] }
  0x6b   : > { %v1959_v36 = vld [vmem:[%s13724_s11 + $0xa40] sm:$0xff]  ;;  %1956 = vst [vmem:[%s13729_s12 + $0x510] sm:$0xff] %v1955_v34  ;;  %1958 = vst [vmem:[%s13729_s12 + $0x518] sm:$0xff] %v1957_v35  ;;  %v1961_v37 = vld [vmem:[%s13724_s11 + $0xa50] sm:$0xff] }
  0x6c   : > { %1960 = vst [vmem:[%s13729_s12 + $0x520] sm:$0xff] %v1959_v36  ;;  %v1963_v38 = vld [vmem:[%s13724_s11 + $0xa60] sm:$0xff]  ;;  %v1965_v39 = vld [vmem:[%s13724_s11 + $0xa70] sm:$0xff]  ;;  %1962 = vst [vmem:[%s13729_s12 + $0x528] sm:$0xff] %v1961_v37 }
  0x6d   : > { %1964 = vst [vmem:[%s13729_s12 + $0x530] sm:$0xff] %v1963_v38  ;;  %1966 = vst [vmem:[%s13729_s12 + $0x538] sm:$0xff] %v1965_v39  ;;  %v1967_v40 = vld [vmem:[%s13724_s11 + $0xa80] sm:$0xff]  ;;  %v1969_v41 = vld [vmem:[%s13724_s11 + $0xa90] sm:$0xff] }
  0x6e   : > { %v1971_v42 = vld [vmem:[%s13724_s11 + $0xaa0] sm:$0xff]  ;;  %1968 = vst [vmem:[%s13729_s12 + $0x540] sm:$0xff] %v1967_v40  ;;  %1970 = vst [vmem:[%s13729_s12 + $0x548] sm:$0xff] %v1969_v41  ;;  %v1973_v43 = vld [vmem:[%s13724_s11 + $0xab0] sm:$0xff] }
  0x6f   : > { %1972 = vst [vmem:[%s13729_s12 + $0x550] sm:$0xff] %v1971_v42  ;;  %v1975_v44 = vld [vmem:[%s13724_s11 + $0xac0] sm:$0xff]  ;;  %v1977_v45 = vld [vmem:[%s13724_s11 + $0xad0] sm:$0xff]  ;;  %1974 = vst [vmem:[%s13729_s12 + $0x558] sm:$0xff] %v1973_v43 }
  0x70   : > { %1976 = vst [vmem:[%s13729_s12 + $0x560] sm:$0xff] %v1975_v44  ;;  %1978 = vst [vmem:[%s13729_s12 + $0x568] sm:$0xff] %v1977_v45  ;;  %v1979_v46 = vld [vmem:[%s13724_s11 + $0xae0] sm:$0xff]  ;;  %v1981_v47 = vld [vmem:[%s13724_s11 + $0xaf0] sm:$0xff] }
  0x71   : > { %v1983_v48 = vld [vmem:[%s13724_s11 + $0xb00] sm:$0xff]  ;;  %1980 = vst [vmem:[%s13729_s12 + $0x570] sm:$0xff] %v1979_v46  ;;  %1982 = vst [vmem:[%s13729_s12 + $0x578] sm:$0xff] %v1981_v47  ;;  %v1985_v49 = vld [vmem:[%s13724_s11 + $0xb10] sm:$0xff] }
  0x72   : > { %1984 = vst [vmem:[%s13729_s12 + $0x580] sm:$0xff] %v1983_v48  ;;  %v1987_v50 = vld [vmem:[%s13724_s11 + $0xb20] sm:$0xff]  ;;  %v1989_v51 = vld [vmem:[%s13724_s11 + $0xb30] sm:$0xff]  ;;  %1986 = vst [vmem:[%s13729_s12 + $0x588] sm:$0xff] %v1985_v49 }
  0x73   : > { %1988 = vst [vmem:[%s13729_s12 + $0x590] sm:$0xff] %v1987_v50  ;;  %1990 = vst [vmem:[%s13729_s12 + $0x598] sm:$0xff] %v1989_v51  ;;  %v1991_v52 = vld [vmem:[%s13724_s11 + $0xb40] sm:$0xff]  ;;  %v1993_v53 = vld [vmem:[%s13724_s11 + $0xb50] sm:$0xff] }
  0x74   : > { %v1995_v54 = vld [vmem:[%s13724_s11 + $0xb60] sm:$0xff]  ;;  %1992 = vst [vmem:[%s13729_s12 + $0x5a0] sm:$0xff] %v1991_v52  ;;  %1994 = vst [vmem:[%s13729_s12 + $0x5a8] sm:$0xff] %v1993_v53  ;;  %v1997_v55 = vld [vmem:[%s13724_s11 + $0xb70] sm:$0xff] }
  0x75   : > { %1996 = vst [vmem:[%s13729_s12 + $0x5b0] sm:$0xff] %v1995_v54  ;;  %v1999_v56 = vld [vmem:[%s13724_s11 + $0xb80] sm:$0xff]  ;;  %v2001_v57 = vld [vmem:[%s13724_s11 + $0xb90] sm:$0xff]  ;;  %1998 = vst [vmem:[%s13729_s12 + $0x5b8] sm:$0xff] %v1997_v55 }
  0x76   : > { %2000 = vst [vmem:[%s13729_s12 + $0x5c0] sm:$0xff] %v1999_v56  ;;  %2002 = vst [vmem:[%s13729_s12 + $0x5c8] sm:$0xff] %v2001_v57  ;;  %v2003_v58 = vld [vmem:[%s13724_s11 + $0xba0] sm:$0xff]  ;;  %v2005_v59 = vld [vmem:[%s13724_s11 + $0xbb0] sm:$0xff] }
  0x77   : > { %v2007_v60 = vld [vmem:[%s13724_s11 + $0xbc0] sm:$0xff]  ;;  %2004 = vst [vmem:[%s13729_s12 + $0x5d0] sm:$0xff] %v2003_v58  ;;  %2006 = vst [vmem:[%s13729_s12 + $0x5d8] sm:$0xff] %v2005_v59  ;;  %v2009_v61 = vld [vmem:[%s13724_s11 + $0xbd0] sm:$0xff] }
  0x78   : > { %2008 = vst [vmem:[%s13729_s12 + $0x5e0] sm:$0xff] %v2007_v60  ;;  %v2011_v62 = vld [vmem:[%s13724_s11 + $0xbe0] sm:$0xff]  ;;  %v2013_v63 = vld [vmem:[%s13724_s11 + $0xbf0] sm:$0xff]  ;;  %2010 = vst [vmem:[%s13729_s12 + $0x5e8] sm:$0xff] %v2009_v61 }
  0x79   : > { %2012 = vst [vmem:[%s13729_s12 + $0x5f0] sm:$0xff] %v2011_v62  ;;  %2014 = vst [vmem:[%s13729_s12 + $0x5f8] sm:$0xff] %v2013_v63  ;;  %v2015_v0 = vld [vmem:[%s13724_s11 + $0xc00] sm:$0xff]  ;;  %v2017_v1 = vld [vmem:[%s13724_s11 + $0xc10] sm:$0xff] }
  0x7a   : > { %v2019_v2 = vld [vmem:[%s13724_s11 + $0xc20] sm:$0xff]  ;;  %2016 = vst [vmem:[%s13729_s12 + $0x600] sm:$0xff] %v2015_v0  ;;  %2018 = vst [vmem:[%s13729_s12 + $0x608] sm:$0xff] %v2017_v1  ;;  %v2021_v3 = vld [vmem:[%s13724_s11 + $0xc30] sm:$0xff] }
  0x7b   : > { %2020 = vst [vmem:[%s13729_s12 + $0x610] sm:$0xff] %v2019_v2  ;;  %v2023_v4 = vld [vmem:[%s13724_s11 + $0xc40] sm:$0xff]  ;;  %v2025_v5 = vld [vmem:[%s13724_s11 + $0xc50] sm:$0xff]  ;;  %2022 = vst [vmem:[%s13729_s12 + $0x618] sm:$0xff] %v2021_v3 }
  0x7c   : > { %2024 = vst [vmem:[%s13729_s12 + $0x620] sm:$0xff] %v2023_v4  ;;  %2026 = vst [vmem:[%s13729_s12 + $0x628] sm:$0xff] %v2025_v5  ;;  %v2027_v6 = vld [vmem:[%s13724_s11 + $0xc60] sm:$0xff]  ;;  %v2029_v7 = vld [vmem:[%s13724_s11 + $0xc70] sm:$0xff] }
  0x7d   : > { %v2031_v8 = vld [vmem:[%s13724_s11 + $0xc80] sm:$0xff]  ;;  %2028 = vst [vmem:[%s13729_s12 + $0x630] sm:$0xff] %v2027_v6  ;;  %2030 = vst [vmem:[%s13729_s12 + $0x638] sm:$0xff] %v2029_v7  ;;  %v2033_v9 = vld [vmem:[%s13724_s11 + $0xc90] sm:$0xff] }
  0x7e   : > { %2032 = vst [vmem:[%s13729_s12 + $0x640] sm:$0xff] %v2031_v8  ;;  %v2035_v10 = vld [vmem:[%s13724_s11 + $0xca0] sm:$0xff]  ;;  %v2037_v11 = vld [vmem:[%s13724_s11 + $0xcb0] sm:$0xff]  ;;  %2034 = vst [vmem:[%s13729_s12 + $0x648] sm:$0xff] %v2033_v9 }
  0x7f   : > { %2036 = vst [vmem:[%s13729_s12 + $0x650] sm:$0xff] %v2035_v10  ;;  %2038 = vst [vmem:[%s13729_s12 + $0x658] sm:$0xff] %v2037_v11  ;;  %v2039_v12 = vld [vmem:[%s13724_s11 + $0xcc0] sm:$0xff]  ;;  %v2041_v13 = vld [vmem:[%s13724_s11 + $0xcd0] sm:$0xff] }
  0x80   : > { %v2043_v14 = vld [vmem:[%s13724_s11 + $0xce0] sm:$0xff]  ;;  %2040 = vst [vmem:[%s13729_s12 + $0x660] sm:$0xff] %v2039_v12  ;;  %2042 = vst [vmem:[%s13729_s12 + $0x668] sm:$0xff] %v2041_v13  ;;  %v2045_v15 = vld [vmem:[%s13724_s11 + $0xcf0] sm:$0xff] }
  0x81   : > { %2044 = vst [vmem:[%s13729_s12 + $0x670] sm:$0xff] %v2043_v14  ;;  %v2047_v16 = vld [vmem:[%s13724_s11 + $0xd00] sm:$0xff]  ;;  %v2049_v17 = vld [vmem:[%s13724_s11 + $0xd10] sm:$0xff]  ;;  %2046 = vst [vmem:[%s13729_s12 + $0x678] sm:$0xff] %v2045_v15 }
  0x82   : > { %2048 = vst [vmem:[%s13729_s12 + $0x680] sm:$0xff] %v2047_v16  ;;  %2050 = vst [vmem:[%s13729_s12 + $0x688] sm:$0xff] %v2049_v17  ;;  %v2051_v18 = vld [vmem:[%s13724_s11 + $0xd20] sm:$0xff]  ;;  %v2053_v19 = vld [vmem:[%s13724_s11 + $0xd30] sm:$0xff] }
  0x83   : > { %v2055_v20 = vld [vmem:[%s13724_s11 + $0xd40] sm:$0xff]  ;;  %2052 = vst [vmem:[%s13729_s12 + $0x690] sm:$0xff] %v2051_v18  ;;  %2054 = vst [vmem:[%s13729_s12 + $0x698] sm:$0xff] %v2053_v19  ;;  %v2057_v21 = vld [vmem:[%s13724_s11 + $0xd50] sm:$0xff] }
  0x84   : > { %2056 = vst [vmem:[%s13729_s12 + $0x6a0] sm:$0xff] %v2055_v20  ;;  %v2059_v22 = vld [vmem:[%s13724_s11 + $0xd60] sm:$0xff]  ;;  %v2061_v23 = vld [vmem:[%s13724_s11 + $0xd70] sm:$0xff]  ;;  %2058 = vst [vmem:[%s13729_s12 + $0x6a8] sm:$0xff] %v2057_v21 }
  0x85   : > { %2060 = vst [vmem:[%s13729_s12 + $0x6b0] sm:$0xff] %v2059_v22  ;;  %2062 = vst [vmem:[%s13729_s12 + $0x6b8] sm:$0xff] %v2061_v23  ;;  %v2063_v24 = vld [vmem:[%s13724_s11 + $0xd80] sm:$0xff]  ;;  %v2065_v25 = vld [vmem:[%s13724_s11 + $0xd90] sm:$0xff] }
  0x86   : > { %v2067_v26 = vld [vmem:[%s13724_s11 + $0xda0] sm:$0xff]  ;;  %2064 = vst [vmem:[%s13729_s12 + $0x6c0] sm:$0xff] %v2063_v24  ;;  %2066 = vst [vmem:[%s13729_s12 + $0x6c8] sm:$0xff] %v2065_v25  ;;  %v2069_v27 = vld [vmem:[%s13724_s11 + $0xdb0] sm:$0xff] }
  0x87   : > { %2068 = vst [vmem:[%s13729_s12 + $0x6d0] sm:$0xff] %v2067_v26  ;;  %v2071_v28 = vld [vmem:[%s13724_s11 + $0xdc0] sm:$0xff]  ;;  %v2073_v29 = vld [vmem:[%s13724_s11 + $0xdd0] sm:$0xff]  ;;  %2070 = vst [vmem:[%s13729_s12 + $0x6d8] sm:$0xff] %v2069_v27 }
  0x88   : > { %2072 = vst [vmem:[%s13729_s12 + $0x6e0] sm:$0xff] %v2071_v28  ;;  %2074 = vst [vmem:[%s13729_s12 + $0x6e8] sm:$0xff] %v2073_v29  ;;  %v2075_v30 = vld [vmem:[%s13724_s11 + $0xde0] sm:$0xff]  ;;  %v2077_v31 = vld [vmem:[%s13724_s11 + $0xdf0] sm:$0xff] }
  0x89   : > { %v2079_v32 = vld [vmem:[%s13724_s11 + $0xe00] sm:$0xff]  ;;  %2076 = vst [vmem:[%s13729_s12 + $0x6f0] sm:$0xff] %v2075_v30  ;;  %2078 = vst [vmem:[%s13729_s12 + $0x6f8] sm:$0xff] %v2077_v31  ;;  %v2081_v33 = vld [vmem:[%s13724_s11 + $0xe10] sm:$0xff] }
  0x8a   : > { %2080 = vst [vmem:[%s13729_s12 + $0x700] sm:$0xff] %v2079_v32  ;;  %v2083_v34 = vld [vmem:[%s13724_s11 + $0xe20] sm:$0xff]  ;;  %v2085_v35 = vld [vmem:[%s13724_s11 + $0xe30] sm:$0xff]  ;;  %2082 = vst [vmem:[%s13729_s12 + $0x708] sm:$0xff] %v2081_v33 }
  0x8b   : > { %2084 = vst [vmem:[%s13729_s12 + $0x710] sm:$0xff] %v2083_v34  ;;  %2086 = vst [vmem:[%s13729_s12 + $0x718] sm:$0xff] %v2085_v35  ;;  %v2087_v36 = vld [vmem:[%s13724_s11 + $0xe40] sm:$0xff]  ;;  %v2089_v37 = vld [vmem:[%s13724_s11 + $0xe50] sm:$0xff] }
  0x8c   : > { %v2091_v38 = vld [vmem:[%s13724_s11 + $0xe60] sm:$0xff]  ;;  %2088 = vst [vmem:[%s13729_s12 + $0x720] sm:$0xff] %v2087_v36  ;;  %2090 = vst [vmem:[%s13729_s12 + $0x728] sm:$0xff] %v2089_v37  ;;  %v2093_v39 = vld [vmem:[%s13724_s11 + $0xe70] sm:$0xff] }
  0x8d   : > { %2092 = vst [vmem:[%s13729_s12 + $0x730] sm:$0xff] %v2091_v38  ;;  %v2095_v40 = vld [vmem:[%s13724_s11 + $0xe80] sm:$0xff]  ;;  %v2097_v41 = vld [vmem:[%s13724_s11 + $0xe90] sm:$0xff]  ;;  %2094 = vst [vmem:[%s13729_s12 + $0x738] sm:$0xff] %v2093_v39 }
  0x8e   : > { %2096 = vst [vmem:[%s13729_s12 + $0x740] sm:$0xff] %v2095_v40  ;;  %2098 = vst [vmem:[%s13729_s12 + $0x748] sm:$0xff] %v2097_v41  ;;  %v2099_v42 = vld [vmem:[%s13724_s11 + $0xea0] sm:$0xff]  ;;  %v2101_v43 = vld [vmem:[%s13724_s11 + $0xeb0] sm:$0xff] }
  0x8f   : > { %v2103_v44 = vld [vmem:[%s13724_s11 + $0xec0] sm:$0xff]  ;;  %2100 = vst [vmem:[%s13729_s12 + $0x750] sm:$0xff] %v2099_v42  ;;  %2102 = vst [vmem:[%s13729_s12 + $0x758] sm:$0xff] %v2101_v43  ;;  %v2105_v45 = vld [vmem:[%s13724_s11 + $0xed0] sm:$0xff] }
  0x90   : > { %2104 = vst [vmem:[%s13729_s12 + $0x760] sm:$0xff] %v2103_v44  ;;  %v2107_v46 = vld [vmem:[%s13724_s11 + $0xee0] sm:$0xff]  ;;  %v2109_v47 = vld [vmem:[%s13724_s11 + $0xef0] sm:$0xff]  ;;  %2106 = vst [vmem:[%s13729_s12 + $0x768] sm:$0xff] %v2105_v45 }
  0x91   : > { %2108 = vst [vmem:[%s13729_s12 + $0x770] sm:$0xff] %v2107_v46  ;;  %2110 = vst [vmem:[%s13729_s12 + $0x778] sm:$0xff] %v2109_v47  ;;  %v2111_v48 = vld [vmem:[%s13724_s11 + $0xf00] sm:$0xff]  ;;  %v2113_v49 = vld [vmem:[%s13724_s11 + $0xf10] sm:$0xff] }
  0x92   : > { %v2115_v50 = vld [vmem:[%s13724_s11 + $0xf20] sm:$0xff]  ;;  %2112 = vst [vmem:[%s13729_s12 + $0x780] sm:$0xff] %v2111_v48  ;;  %2114 = vst [vmem:[%s13729_s12 + $0x788] sm:$0xff] %v2113_v49  ;;  %v2117_v51 = vld [vmem:[%s13724_s11 + $0xf30] sm:$0xff] }
  0x93   : > { %2116 = vst [vmem:[%s13729_s12 + $0x790] sm:$0xff] %v2115_v50  ;;  %v2119_v52 = vld [vmem:[%s13724_s11 + $0xf40] sm:$0xff]  ;;  %v2121_v53 = vld [vmem:[%s13724_s11 + $0xf50] sm:$0xff]  ;;  %2118 = vst [vmem:[%s13729_s12 + $0x798] sm:$0xff] %v2117_v51 }
  0x94   : > { %2120 = vst [vmem:[%s13729_s12 + $0x7a0] sm:$0xff] %v2119_v52  ;;  %2122 = vst [vmem:[%s13729_s12 + $0x7a8] sm:$0xff] %v2121_v53  ;;  %v2123_v54 = vld [vmem:[%s13724_s11 + $0xf60] sm:$0xff]  ;;  %v2125_v55 = vld [vmem:[%s13724_s11 + $0xf70] sm:$0xff] }
  0x95   : > { %v2127_v56 = vld [vmem:[%s13724_s11 + $0xf80] sm:$0xff]  ;;  %2124 = vst [vmem:[%s13729_s12 + $0x7b0] sm:$0xff] %v2123_v54  ;;  %2126 = vst [vmem:[%s13729_s12 + $0x7b8] sm:$0xff] %v2125_v55  ;;  %v2129_v57 = vld [vmem:[%s13724_s11 + $0xf90] sm:$0xff] }
  0x96   : > { %2128 = vst [vmem:[%s13729_s12 + $0x7c0] sm:$0xff] %v2127_v56  ;;  %v2131_v58 = vld [vmem:[%s13724_s11 + $0xfa0] sm:$0xff]  ;;  %v2133_v59 = vld [vmem:[%s13724_s11 + $0xfb0] sm:$0xff]  ;;  %2130 = vst [vmem:[%s13729_s12 + $0x7c8] sm:$0xff] %v2129_v57 }
  0x97   : > { %2132 = vst [vmem:[%s13729_s12 + $0x7d0] sm:$0xff] %v2131_v58  ;;  %2134 = vst [vmem:[%s13729_s12 + $0x7d8] sm:$0xff] %v2133_v59  ;;  %v2135_v60 = vld [vmem:[%s13724_s11 + $0xfc0] sm:$0xff]  ;;  %v2137_v61 = vld [vmem:[%s13724_s11 + $0xfd0] sm:$0xff] }
  0x98   : > { %v2139_v62 = vld [vmem:[%s13724_s11 + $0xfe0] sm:$0xff]  ;;  %2136 = vst [vmem:[%s13729_s12 + $0x7e0] sm:$0xff] %v2135_v60  ;;  %2138 = vst [vmem:[%s13729_s12 + $0x7e8] sm:$0xff] %v2137_v61  ;;  %v2141_v63 = vld [vmem:[%s13724_s11 + $0xff0] sm:$0xff] }
  0x99   : > { %2140 = vst [vmem:[%s13729_s12 + $0x7f0] sm:$0xff] %v2139_v62  ;;  %v2143_v0 = vld [vmem:[%s13724_s11 + $0x1000] sm:$0xff]  ;;  %v2145_v1 = vld [vmem:[%s13724_s11 + $0x1010] sm:$0xff]  ;;  %2142 = vst [vmem:[%s13729_s12 + $0x7f8] sm:$0xff] %v2141_v63 }
  0x9a   : > { %2144 = vst [vmem:[%s13729_s12 + $0x800] sm:$0xff] %v2143_v0  ;;  %2146 = vst [vmem:[%s13729_s12 + $0x808] sm:$0xff] %v2145_v1  ;;  %v2147_v2 = vld [vmem:[%s13724_s11 + $0x1020] sm:$0xff]  ;;  %v2149_v3 = vld [vmem:[%s13724_s11 + $0x1030] sm:$0xff] }
  0x9b   : > { %v2151_v4 = vld [vmem:[%s13724_s11 + $0x1040] sm:$0xff]  ;;  %2148 = vst [vmem:[%s13729_s12 + $0x810] sm:$0xff] %v2147_v2  ;;  %2150 = vst [vmem:[%s13729_s12 + $0x818] sm:$0xff] %v2149_v3  ;;  %v2153_v5 = vld [vmem:[%s13724_s11 + $0x1050] sm:$0xff] }
  0x9c   : > { %2152 = vst [vmem:[%s13729_s12 + $0x820] sm:$0xff] %v2151_v4  ;;  %v2155_v6 = vld [vmem:[%s13724_s11 + $0x1060] sm:$0xff]  ;;  %v2157_v7 = vld [vmem:[%s13724_s11 + $0x1070] sm:$0xff]  ;;  %2154 = vst [vmem:[%s13729_s12 + $0x828] sm:$0xff] %v2153_v5 }
  0x9d   : > { %2156 = vst [vmem:[%s13729_s12 + $0x830] sm:$0xff] %v2155_v6  ;;  %2158 = vst [vmem:[%s13729_s12 + $0x838] sm:$0xff] %v2157_v7  ;;  %v2159_v8 = vld [vmem:[%s13724_s11 + $0x1080] sm:$0xff]  ;;  %v2161_v9 = vld [vmem:[%s13724_s11 + $0x1090] sm:$0xff] }
  0x9e   : > { %v2163_v10 = vld [vmem:[%s13724_s11 + $0x10a0] sm:$0xff]  ;;  %2160 = vst [vmem:[%s13729_s12 + $0x840] sm:$0xff] %v2159_v8  ;;  %2162 = vst [vmem:[%s13729_s12 + $0x848] sm:$0xff] %v2161_v9  ;;  %v2165_v11 = vld [vmem:[%s13724_s11 + $0x10b0] sm:$0xff] }
  0x9f   : > { %2164 = vst [vmem:[%s13729_s12 + $0x850] sm:$0xff] %v2163_v10  ;;  %v2167_v12 = vld [vmem:[%s13724_s11 + $0x10c0] sm:$0xff]  ;;  %v2169_v13 = vld [vmem:[%s13724_s11 + $0x10d0] sm:$0xff]  ;;  %2166 = vst [vmem:[%s13729_s12 + $0x858] sm:$0xff] %v2165_v11 }
  0xa0   : > { %2168 = vst [vmem:[%s13729_s12 + $0x860] sm:$0xff] %v2167_v12  ;;  %2170 = vst [vmem:[%s13729_s12 + $0x868] sm:$0xff] %v2169_v13  ;;  %v2171_v14 = vld [vmem:[%s13724_s11 + $0x10e0] sm:$0xff]  ;;  %v2173_v15 = vld [vmem:[%s13724_s11 + $0x10f0] sm:$0xff] }
  0xa1   : > { %v2175_v16 = vld [vmem:[%s13724_s11 + $0x1100] sm:$0xff]  ;;  %2172 = vst [vmem:[%s13729_s12 + $0x870] sm:$0xff] %v2171_v14  ;;  %2174 = vst [vmem:[%s13729_s12 + $0x878] sm:$0xff] %v2173_v15  ;;  %v2177_v17 = vld [vmem:[%s13724_s11 + $0x1110] sm:$0xff] }
  0xa2   : > { %2176 = vst [vmem:[%s13729_s12 + $0x880] sm:$0xff] %v2175_v16  ;;  %v2179_v18 = vld [vmem:[%s13724_s11 + $0x1120] sm:$0xff]  ;;  %v2181_v19 = vld [vmem:[%s13724_s11 + $0x1130] sm:$0xff]  ;;  %2178 = vst [vmem:[%s13729_s12 + $0x888] sm:$0xff] %v2177_v17 }
  0xa3   : > { %2180 = vst [vmem:[%s13729_s12 + $0x890] sm:$0xff] %v2179_v18  ;;  %2182 = vst [vmem:[%s13729_s12 + $0x898] sm:$0xff] %v2181_v19  ;;  %v2183_v20 = vld [vmem:[%s13724_s11 + $0x1140] sm:$0xff]  ;;  %v2185_v21 = vld [vmem:[%s13724_s11 + $0x1150] sm:$0xff] }
  0xa4   : > { %v2187_v22 = vld [vmem:[%s13724_s11 + $0x1160] sm:$0xff]  ;;  %2184 = vst [vmem:[%s13729_s12 + $0x8a0] sm:$0xff] %v2183_v20  ;;  %2186 = vst [vmem:[%s13729_s12 + $0x8a8] sm:$0xff] %v2185_v21  ;;  %v2189_v23 = vld [vmem:[%s13724_s11 + $0x1170] sm:$0xff] }
  0xa5   : > { %2188 = vst [vmem:[%s13729_s12 + $0x8b0] sm:$0xff] %v2187_v22  ;;  %v2191_v24 = vld [vmem:[%s13724_s11 + $0x1180] sm:$0xff]  ;;  %v2193_v25 = vld [vmem:[%s13724_s11 + $0x1190] sm:$0xff]  ;;  %2190 = vst [vmem:[%s13729_s12 + $0x8b8] sm:$0xff] %v2189_v23 }
  0xa6   : > { %2192 = vst [vmem:[%s13729_s12 + $0x8c0] sm:$0xff] %v2191_v24  ;;  %2194 = vst [vmem:[%s13729_s12 + $0x8c8] sm:$0xff] %v2193_v25  ;;  %v2195_v26 = vld [vmem:[%s13724_s11 + $0x11a0] sm:$0xff]  ;;  %v2197_v27 = vld [vmem:[%s13724_s11 + $0x11b0] sm:$0xff] }
  0xa7   : > { %v2199_v28 = vld [vmem:[%s13724_s11 + $0x11c0] sm:$0xff]  ;;  %2196 = vst [vmem:[%s13729_s12 + $0x8d0] sm:$0xff] %v2195_v26  ;;  %2198 = vst [vmem:[%s13729_s12 + $0x8d8] sm:$0xff] %v2197_v27  ;;  %v2201_v29 = vld [vmem:[%s13724_s11 + $0x11d0] sm:$0xff] }
  0xa8   : > { %2200 = vst [vmem:[%s13729_s12 + $0x8e0] sm:$0xff] %v2199_v28  ;;  %v2203_v30 = vld [vmem:[%s13724_s11 + $0x11e0] sm:$0xff]  ;;  %v2205_v31 = vld [vmem:[%s13724_s11 + $0x11f0] sm:$0xff]  ;;  %2202 = vst [vmem:[%s13729_s12 + $0x8e8] sm:$0xff] %v2201_v29 }
  0xa9   : > { %2204 = vst [vmem:[%s13729_s12 + $0x8f0] sm:$0xff] %v2203_v30  ;;  %2206 = vst [vmem:[%s13729_s12 + $0x8f8] sm:$0xff] %v2205_v31  ;;  %v2207_v32 = vld [vmem:[%s13724_s11 + $0x1200] sm:$0xff]  ;;  %v2209_v33 = vld [vmem:[%s13724_s11 + $0x1210] sm:$0xff] }
  0xaa   : > { %v2211_v34 = vld [vmem:[%s13724_s11 + $0x1220] sm:$0xff]  ;;  %2208 = vst [vmem:[%s13729_s12 + $0x900] sm:$0xff] %v2207_v32  ;;  %2210 = vst [vmem:[%s13729_s12 + $0x908] sm:$0xff] %v2209_v33  ;;  %v2213_v35 = vld [vmem:[%s13724_s11 + $0x1230] sm:$0xff] }
  0xab   : > { %2212 = vst [vmem:[%s13729_s12 + $0x910] sm:$0xff] %v2211_v34  ;;  %v2215_v36 = vld [vmem:[%s13724_s11 + $0x1240] sm:$0xff]  ;;  %v2217_v37 = vld [vmem:[%s13724_s11 + $0x1250] sm:$0xff]  ;;  %2214 = vst [vmem:[%s13729_s12 + $0x918] sm:$0xff] %v2213_v35 }
  0xac   : > { %2216 = vst [vmem:[%s13729_s12 + $0x920] sm:$0xff] %v2215_v36  ;;  %2218 = vst [vmem:[%s13729_s12 + $0x928] sm:$0xff] %v2217_v37  ;;  %v2219_v38 = vld [vmem:[%s13724_s11 + $0x1260] sm:$0xff]  ;;  %v2221_v39 = vld [vmem:[%s13724_s11 + $0x1270] sm:$0xff] }
  0xad   : > { %v2223_v40 = vld [vmem:[%s13724_s11 + $0x1280] sm:$0xff]  ;;  %2220 = vst [vmem:[%s13729_s12 + $0x930] sm:$0xff] %v2219_v38  ;;  %2222 = vst [vmem:[%s13729_s12 + $0x938] sm:$0xff] %v2221_v39  ;;  %v2225_v41 = vld [vmem:[%s13724_s11 + $0x1290] sm:$0xff] }
  0xae   : > { %2224 = vst [vmem:[%s13729_s12 + $0x940] sm:$0xff] %v2223_v40  ;;  %v2227_v42 = vld [vmem:[%s13724_s11 + $0x12a0] sm:$0xff]  ;;  %v2229_v43 = vld [vmem:[%s13724_s11 + $0x12b0] sm:$0xff]  ;;  %2226 = vst [vmem:[%s13729_s12 + $0x948] sm:$0xff] %v2225_v41 }
  0xaf   : > { %2228 = vst [vmem:[%s13729_s12 + $0x950] sm:$0xff] %v2227_v42  ;;  %2230 = vst [vmem:[%s13729_s12 + $0x958] sm:$0xff] %v2229_v43  ;;  %v2231_v44 = vld [vmem:[%s13724_s11 + $0x12c0] sm:$0xff]  ;;  %v2233_v45 = vld [vmem:[%s13724_s11 + $0x12d0] sm:$0xff] }
  0xb0   : > { %v2235_v46 = vld [vmem:[%s13724_s11 + $0x12e0] sm:$0xff]  ;;  %2232 = vst [vmem:[%s13729_s12 + $0x960] sm:$0xff] %v2231_v44  ;;  %2234 = vst [vmem:[%s13729_s12 + $0x968] sm:$0xff] %v2233_v45  ;;  %v2237_v47 = vld [vmem:[%s13724_s11 + $0x12f0] sm:$0xff] }
  0xb1   : > { %2236 = vst [vmem:[%s13729_s12 + $0x970] sm:$0xff] %v2235_v46  ;;  %v2239_v48 = vld [vmem:[%s13724_s11 + $0x1300] sm:$0xff]  ;;  %v2241_v49 = vld [vmem:[%s13724_s11 + $0x1310] sm:$0xff]  ;;  %2238 = vst [vmem:[%s13729_s12 + $0x978] sm:$0xff] %v2237_v47 }
  0xb2   : > { %2240 = vst [vmem:[%s13729_s12 + $0x980] sm:$0xff] %v2239_v48  ;;  %2242 = vst [vmem:[%s13729_s12 + $0x988] sm:$0xff] %v2241_v49  ;;  %v2243_v50 = vld [vmem:[%s13724_s11 + $0x1320] sm:$0xff]  ;;  %v2245_v51 = vld [vmem:[%s13724_s11 + $0x1330] sm:$0xff] }
  0xb3   : > { %v2247_v52 = vld [vmem:[%s13724_s11 + $0x1340] sm:$0xff]  ;;  %2244 = vst [vmem:[%s13729_s12 + $0x990] sm:$0xff] %v2243_v50  ;;  %2246 = vst [vmem:[%s13729_s12 + $0x998] sm:$0xff] %v2245_v51  ;;  %v2249_v53 = vld [vmem:[%s13724_s11 + $0x1350] sm:$0xff] }
  0xb4   : > { %2248 = vst [vmem:[%s13729_s12 + $0x9a0] sm:$0xff] %v2247_v52  ;;  %v2251_v54 = vld [vmem:[%s13724_s11 + $0x1360] sm:$0xff]  ;;  %v2253_v55 = vld [vmem:[%s13724_s11 + $0x1370] sm:$0xff]  ;;  %2250 = vst [vmem:[%s13729_s12 + $0x9a8] sm:$0xff] %v2249_v53 }
  0xb5   : > { %2252 = vst [vmem:[%s13729_s12 + $0x9b0] sm:$0xff] %v2251_v54  ;;  %2254 = vst [vmem:[%s13729_s12 + $0x9b8] sm:$0xff] %v2253_v55  ;;  %v2255_v56 = vld [vmem:[%s13724_s11 + $0x1380] sm:$0xff]  ;;  %v2257_v57 = vld [vmem:[%s13724_s11 + $0x1390] sm:$0xff] }
  0xb6   : > { %v2259_v58 = vld [vmem:[%s13724_s11 + $0x13a0] sm:$0xff]  ;;  %2256 = vst [vmem:[%s13729_s12 + $0x9c0] sm:$0xff] %v2255_v56  ;;  %2258 = vst [vmem:[%s13729_s12 + $0x9c8] sm:$0xff] %v2257_v57  ;;  %v2261_v59 = vld [vmem:[%s13724_s11 + $0x13b0] sm:$0xff] }
  0xb7   : > { %2260 = vst [vmem:[%s13729_s12 + $0x9d0] sm:$0xff] %v2259_v58  ;;  %v2263_v60 = vld [vmem:[%s13724_s11 + $0x13c0] sm:$0xff]  ;;  %v2265_v61 = vld [vmem:[%s13724_s11 + $0x13d0] sm:$0xff]  ;;  %2262 = vst [vmem:[%s13729_s12 + $0x9d8] sm:$0xff] %v2261_v59 }
  0xb8   : > { %2264 = vst [vmem:[%s13729_s12 + $0x9e0] sm:$0xff] %v2263_v60  ;;  %2266 = vst [vmem:[%s13729_s12 + $0x9e8] sm:$0xff] %v2265_v61  ;;  %v2267_v62 = vld [vmem:[%s13724_s11 + $0x13e0] sm:$0xff]  ;;  %v2269_v63 = vld [vmem:[%s13724_s11 + $0x13f0] sm:$0xff] }
  0xb9   : > { %v2271_v0 = vld [vmem:[%s13724_s11 + $0x1400] sm:$0xff]  ;;  %2268 = vst [vmem:[%s13729_s12 + $0x9f0] sm:$0xff] %v2267_v62  ;;  %2270 = vst [vmem:[%s13729_s12 + $0x9f8] sm:$0xff] %v2269_v63  ;;  %v2273_v1 = vld [vmem:[%s13724_s11 + $0x1410] sm:$0xff] }
  0xba   : > { %2272 = vst [vmem:[%s13729_s12 + $0xa00] sm:$0xff] %v2271_v0  ;;  %v2275_v2 = vld [vmem:[%s13724_s11 + $0x1420] sm:$0xff]  ;;  %v2277_v3 = vld [vmem:[%s13724_s11 + $0x1430] sm:$0xff]  ;;  %2274 = vst [vmem:[%s13729_s12 + $0xa08] sm:$0xff] %v2273_v1 }
  0xbb   : > { %2276 = vst [vmem:[%s13729_s12 + $0xa10] sm:$0xff] %v2275_v2  ;;  %2278 = vst [vmem:[%s13729_s12 + $0xa18] sm:$0xff] %v2277_v3  ;;  %v2279_v4 = vld [vmem:[%s13724_s11 + $0x1440] sm:$0xff]  ;;  %v2281_v5 = vld [vmem:[%s13724_s11 + $0x1450] sm:$0xff] }
  0xbc   : > { %v2283_v6 = vld [vmem:[%s13724_s11 + $0x1460] sm:$0xff]  ;;  %2280 = vst [vmem:[%s13729_s12 + $0xa20] sm:$0xff] %v2279_v4  ;;  %2282 = vst [vmem:[%s13729_s12 + $0xa28] sm:$0xff] %v2281_v5  ;;  %v2285_v7 = vld [vmem:[%s13724_s11 + $0x1470] sm:$0xff] }
  0xbd   : > { %2284 = vst [vmem:[%s13729_s12 + $0xa30] sm:$0xff] %v2283_v6  ;;  %v2287_v8 = vld [vmem:[%s13724_s11 + $0x1480] sm:$0xff]  ;;  %v2289_v9 = vld [vmem:[%s13724_s11 + $0x1490] sm:$0xff]  ;;  %2286 = vst [vmem:[%s13729_s12 + $0xa38] sm:$0xff] %v2285_v7 }
  0xbe   : > { %2288 = vst [vmem:[%s13729_s12 + $0xa40] sm:$0xff] %v2287_v8  ;;  %2290 = vst [vmem:[%s13729_s12 + $0xa48] sm:$0xff] %v2289_v9  ;;  %v2291_v10 = vld [vmem:[%s13724_s11 + $0x14a0] sm:$0xff]  ;;  %v2293_v11 = vld [vmem:[%s13724_s11 + $0x14b0] sm:$0xff] }
  0xbf   : > { %v2295_v12 = vld [vmem:[%s13724_s11 + $0x14c0] sm:$0xff]  ;;  %2292 = vst [vmem:[%s13729_s12 + $0xa50] sm:$0xff] %v2291_v10  ;;  %2294 = vst [vmem:[%s13729_s12 + $0xa58] sm:$0xff] %v2293_v11  ;;  %v2297_v13 = vld [vmem:[%s13724_s11 + $0x14d0] sm:$0xff] }
  0xc0   : > { %2296 = vst [vmem:[%s13729_s12 + $0xa60] sm:$0xff] %v2295_v12  ;;  %v2299_v14 = vld [vmem:[%s13724_s11 + $0x14e0] sm:$0xff]  ;;  %v2301_v15 = vld [vmem:[%s13724_s11 + $0x14f0] sm:$0xff]  ;;  %2298 = vst [vmem:[%s13729_s12 + $0xa68] sm:$0xff] %v2297_v13 }
  0xc1   : > { %2300 = vst [vmem:[%s13729_s12 + $0xa70] sm:$0xff] %v2299_v14  ;;  %2302 = vst [vmem:[%s13729_s12 + $0xa78] sm:$0xff] %v2301_v15  ;;  %v2303_v16 = vld [vmem:[%s13724_s11 + $0x1500] sm:$0xff]  ;;  %v2305_v17 = vld [vmem:[%s13724_s11 + $0x1510] sm:$0xff] }
  0xc2   : > { %v2307_v18 = vld [vmem:[%s13724_s11 + $0x1520] sm:$0xff]  ;;  %2304 = vst [vmem:[%s13729_s12 + $0xa80] sm:$0xff] %v2303_v16  ;;  %2306 = vst [vmem:[%s13729_s12 + $0xa88] sm:$0xff] %v2305_v17  ;;  %v2309_v19 = vld [vmem:[%s13724_s11 + $0x1530] sm:$0xff] }
  0xc3   : > { %2308 = vst [vmem:[%s13729_s12 + $0xa90] sm:$0xff] %v2307_v18  ;;  %v2311_v20 = vld [vmem:[%s13724_s11 + $0x1540] sm:$0xff]  ;;  %v2313_v21 = vld [vmem:[%s13724_s11 + $0x1550] sm:$0xff]  ;;  %2310 = vst [vmem:[%s13729_s12 + $0xa98] sm:$0xff] %v2309_v19 }
  0xc4   : > { %2312 = vst [vmem:[%s13729_s12 + $0xaa0] sm:$0xff] %v2311_v20  ;;  %2314 = vst [vmem:[%s13729_s12 + $0xaa8] sm:$0xff] %v2313_v21  ;;  %v2315_v22 = vld [vmem:[%s13724_s11 + $0x1560] sm:$0xff]  ;;  %v2317_v23 = vld [vmem:[%s13724_s11 + $0x1570] sm:$0xff] }
  0xc5   : > { %v2319_v24 = vld [vmem:[%s13724_s11 + $0x1580] sm:$0xff]  ;;  %2316 = vst [vmem:[%s13729_s12 + $0xab0] sm:$0xff] %v2315_v22  ;;  %2318 = vst [vmem:[%s13729_s12 + $0xab8] sm:$0xff] %v2317_v23  ;;  %v2321_v25 = vld [vmem:[%s13724_s11 + $0x1590] sm:$0xff] }
  0xc6   : > { %2320 = vst [vmem:[%s13729_s12 + $0xac0] sm:$0xff] %v2319_v24  ;;  %v2323_v26 = vld [vmem:[%s13724_s11 + $0x15a0] sm:$0xff]  ;;  %v2325_v27 = vld [vmem:[%s13724_s11 + $0x15b0] sm:$0xff]  ;;  %2322 = vst [vmem:[%s13729_s12 + $0xac8] sm:$0xff] %v2321_v25 }
  0xc7   : > { %2324 = vst [vmem:[%s13729_s12 + $0xad0] sm:$0xff] %v2323_v26  ;;  %2326 = vst [vmem:[%s13729_s12 + $0xad8] sm:$0xff] %v2325_v27  ;;  %v2327_v28 = vld [vmem:[%s13724_s11 + $0x15c0] sm:$0xff]  ;;  %v2329_v29 = vld [vmem:[%s13724_s11 + $0x15d0] sm:$0xff] }
  0xc8   : > { %v2331_v30 = vld [vmem:[%s13724_s11 + $0x15e0] sm:$0xff]  ;;  %2328 = vst [vmem:[%s13729_s12 + $0xae0] sm:$0xff] %v2327_v28  ;;  %2330 = vst [vmem:[%s13729_s12 + $0xae8] sm:$0xff] %v2329_v29  ;;  %v2333_v31 = vld [vmem:[%s13724_s11 + $0x15f0] sm:$0xff] }
  0xc9   : > { %2332 = vst [vmem:[%s13729_s12 + $0xaf0] sm:$0xff] %v2331_v30  ;;  %v2335_v32 = vld [vmem:[%s13724_s11 + $0x1600] sm:$0xff]  ;;  %v2337_v33 = vld [vmem:[%s13724_s11 + $0x1610] sm:$0xff]  ;;  %2334 = vst [vmem:[%s13729_s12 + $0xaf8] sm:$0xff] %v2333_v31 }
  0xca   : > { %2336 = vst [vmem:[%s13729_s12 + $0xb00] sm:$0xff] %v2335_v32  ;;  %2338 = vst [vmem:[%s13729_s12 + $0xb08] sm:$0xff] %v2337_v33  ;;  %v2339_v34 = vld [vmem:[%s13724_s11 + $0x1620] sm:$0xff]  ;;  %v2341_v35 = vld [vmem:[%s13724_s11 + $0x1630] sm:$0xff] }
  0xcb   : > { %v2343_v36 = vld [vmem:[%s13724_s11 + $0x1640] sm:$0xff]  ;;  %2340 = vst [vmem:[%s13729_s12 + $0xb10] sm:$0xff] %v2339_v34  ;;  %2342 = vst [vmem:[%s13729_s12 + $0xb18] sm:$0xff] %v2341_v35  ;;  %v2345_v37 = vld [vmem:[%s13724_s11 + $0x1650] sm:$0xff] }
  0xcc   : > { %2344 = vst [vmem:[%s13729_s12 + $0xb20] sm:$0xff] %v2343_v36  ;;  %v2347_v38 = vld [vmem:[%s13724_s11 + $0x1660] sm:$0xff]  ;;  %v2349_v39 = vld [vmem:[%s13724_s11 + $0x1670] sm:$0xff]  ;;  %2346 = vst [vmem:[%s13729_s12 + $0xb28] sm:$0xff] %v2345_v37 }
  0xcd   : > { %2348 = vst [vmem:[%s13729_s12 + $0xb30] sm:$0xff] %v2347_v38  ;;  %2350 = vst [vmem:[%s13729_s12 + $0xb38] sm:$0xff] %v2349_v39  ;;  %v2351_v40 = vld [vmem:[%s13724_s11 + $0x1680] sm:$0xff]  ;;  %v2353_v41 = vld [vmem:[%s13724_s11 + $0x1690] sm:$0xff] }
  0xce   : > { %v2355_v42 = vld [vmem:[%s13724_s11 + $0x16a0] sm:$0xff]  ;;  %2352 = vst [vmem:[%s13729_s12 + $0xb40] sm:$0xff] %v2351_v40  ;;  %2354 = vst [vmem:[%s13729_s12 + $0xb48] sm:$0xff] %v2353_v41  ;;  %v2357_v43 = vld [vmem:[%s13724_s11 + $0x16b0] sm:$0xff] }
  0xcf   : > { %2356 = vst [vmem:[%s13729_s12 + $0xb50] sm:$0xff] %v2355_v42  ;;  %v2359_v44 = vld [vmem:[%s13724_s11 + $0x16c0] sm:$0xff]  ;;  %v2361_v45 = vld [vmem:[%s13724_s11 + $0x16d0] sm:$0xff]  ;;  %2358 = vst [vmem:[%s13729_s12 + $0xb58] sm:$0xff] %v2357_v43 }
  0xd0   : > { %2360 = vst [vmem:[%s13729_s12 + $0xb60] sm:$0xff] %v2359_v44  ;;  %2362 = vst [vmem:[%s13729_s12 + $0xb68] sm:$0xff] %v2361_v45  ;;  %v2363_v46 = vld [vmem:[%s13724_s11 + $0x16e0] sm:$0xff]  ;;  %v2365_v47 = vld [vmem:[%s13724_s11 + $0x16f0] sm:$0xff] }
  0xd1   : > { %v2367_v48 = vld [vmem:[%s13724_s11 + $0x1700] sm:$0xff]  ;;  %2364 = vst [vmem:[%s13729_s12 + $0xb70] sm:$0xff] %v2363_v46  ;;  %2366 = vst [vmem:[%s13729_s12 + $0xb78] sm:$0xff] %v2365_v47  ;;  %v2369_v49 = vld [vmem:[%s13724_s11 + $0x1710] sm:$0xff] }
  0xd2   : > { %2368 = vst [vmem:[%s13729_s12 + $0xb80] sm:$0xff] %v2367_v48  ;;  %v2371_v50 = vld [vmem:[%s13724_s11 + $0x1720] sm:$0xff]  ;;  %v2373_v51 = vld [vmem:[%s13724_s11 + $0x1730] sm:$0xff]  ;;  %2370 = vst [vmem:[%s13729_s12 + $0xb88] sm:$0xff] %v2369_v49 }
  0xd3   : > { %2372 = vst [vmem:[%s13729_s12 + $0xb90] sm:$0xff] %v2371_v50  ;;  %2374 = vst [vmem:[%s13729_s12 + $0xb98] sm:$0xff] %v2373_v51  ;;  %v2375_v52 = vld [vmem:[%s13724_s11 + $0x1740] sm:$0xff]  ;;  %v2377_v53 = vld [vmem:[%s13724_s11 + $0x1750] sm:$0xff] }
  0xd4   : > { %v2379_v54 = vld [vmem:[%s13724_s11 + $0x1760] sm:$0xff]  ;;  %2376 = vst [vmem:[%s13729_s12 + $0xba0] sm:$0xff] %v2375_v52  ;;  %2378 = vst [vmem:[%s13729_s12 + $0xba8] sm:$0xff] %v2377_v53  ;;  %v2381_v55 = vld [vmem:[%s13724_s11 + $0x1770] sm:$0xff] }
  0xd5   : > { %2380 = vst [vmem:[%s13729_s12 + $0xbb0] sm:$0xff] %v2379_v54  ;;  %v2383_v56 = vld [vmem:[%s13724_s11 + $0x1780] sm:$0xff]  ;;  %v2385_v57 = vld [vmem:[%s13724_s11 + $0x1790] sm:$0xff]  ;;  %2382 = vst [vmem:[%s13729_s12 + $0xbb8] sm:$0xff] %v2381_v55 }
  0xd6   : > { %2384 = vst [vmem:[%s13729_s12 + $0xbc0] sm:$0xff] %v2383_v56  ;;  %2386 = vst [vmem:[%s13729_s12 + $0xbc8] sm:$0xff] %v2385_v57  ;;  %v2387_v58 = vld [vmem:[%s13724_s11 + $0x17a0] sm:$0xff]  ;;  %v2389_v59 = vld [vmem:[%s13724_s11 + $0x17b0] sm:$0xff] }
  0xd7   : > { %v2391_v60 = vld [vmem:[%s13724_s11 + $0x17c0] sm:$0xff]  ;;  %2388 = vst [vmem:[%s13729_s12 + $0xbd0] sm:$0xff] %v2387_v58  ;;  %2390 = vst [vmem:[%s13729_s12 + $0xbd8] sm:$0xff] %v2389_v59  ;;  %v2393_v61 = vld [vmem:[%s13724_s11 + $0x17d0] sm:$0xff] }
  0xd8   : > { %2392 = vst [vmem:[%s13729_s12 + $0xbe0] sm:$0xff] %v2391_v60  ;;  %v2395_v62 = vld [vmem:[%s13724_s11 + $0x17e0] sm:$0xff]  ;;  %v2397_v63 = vld [vmem:[%s13724_s11 + $0x17f0] sm:$0xff]  ;;  %2394 = vst [vmem:[%s13729_s12 + $0xbe8] sm:$0xff] %v2393_v61 }
  0xd9   : > { %2396 = vst [vmem:[%s13729_s12 + $0xbf0] sm:$0xff] %v2395_v62  ;;  %2398 = vst [vmem:[%s13729_s12 + $0xbf8] sm:$0xff] %v2397_v63  ;;  %v2399_v0 = vld [vmem:[%s13724_s11 + $0x1800] sm:$0xff]  ;;  %v2401_v1 = vld [vmem:[%s13724_s11 + $0x1810] sm:$0xff] }
  0xda   : > { %v2403_v2 = vld [vmem:[%s13724_s11 + $0x1820] sm:$0xff]  ;;  %2400 = vst [vmem:[%s13729_s12 + $0xc00] sm:$0xff] %v2399_v0  ;;  %2402 = vst [vmem:[%s13729_s12 + $0xc08] sm:$0xff] %v2401_v1  ;;  %v2405_v3 = vld [vmem:[%s13724_s11 + $0x1830] sm:$0xff] }
  0xdb   : > { %2404 = vst [vmem:[%s13729_s12 + $0xc10] sm:$0xff] %v2403_v2  ;;  %v2407_v4 = vld [vmem:[%s13724_s11 + $0x1840] sm:$0xff]  ;;  %v2409_v5 = vld [vmem:[%s13724_s11 + $0x1850] sm:$0xff]  ;;  %2406 = vst [vmem:[%s13729_s12 + $0xc18] sm:$0xff] %v2405_v3 }
  0xdc   : > { %2408 = vst [vmem:[%s13729_s12 + $0xc20] sm:$0xff] %v2407_v4  ;;  %2410 = vst [vmem:[%s13729_s12 + $0xc28] sm:$0xff] %v2409_v5  ;;  %v2411_v6 = vld [vmem:[%s13724_s11 + $0x1860] sm:$0xff]  ;;  %v2413_v7 = vld [vmem:[%s13724_s11 + $0x1870] sm:$0xff] }
  0xdd   : > { %v2415_v8 = vld [vmem:[%s13724_s11 + $0x1880] sm:$0xff]  ;;  %2412 = vst [vmem:[%s13729_s12 + $0xc30] sm:$0xff] %v2411_v6  ;;  %2414 = vst [vmem:[%s13729_s12 + $0xc38] sm:$0xff] %v2413_v7  ;;  %v2417_v9 = vld [vmem:[%s13724_s11 + $0x1890] sm:$0xff] }
  0xde   : > { %2416 = vst [vmem:[%s13729_s12 + $0xc40] sm:$0xff] %v2415_v8  ;;  %v2419_v10 = vld [vmem:[%s13724_s11 + $0x18a0] sm:$0xff]  ;;  %v2421_v11 = vld [vmem:[%s13724_s11 + $0x18b0] sm:$0xff]  ;;  %2418 = vst [vmem:[%s13729_s12 + $0xc48] sm:$0xff] %v2417_v9 }
  0xdf   : > { %2420 = vst [vmem:[%s13729_s12 + $0xc50] sm:$0xff] %v2419_v10  ;;  %2422 = vst [vmem:[%s13729_s12 + $0xc58] sm:$0xff] %v2421_v11  ;;  %v2423_v12 = vld [vmem:[%s13724_s11 + $0x18c0] sm:$0xff]  ;;  %v2425_v13 = vld [vmem:[%s13724_s11 + $0x18d0] sm:$0xff] }
  0xe0   : > { %v2427_v14 = vld [vmem:[%s13724_s11 + $0x18e0] sm:$0xff]  ;;  %2424 = vst [vmem:[%s13729_s12 + $0xc60] sm:$0xff] %v2423_v12  ;;  %2426 = vst [vmem:[%s13729_s12 + $0xc68] sm:$0xff] %v2425_v13  ;;  %v2429_v15 = vld [vmem:[%s13724_s11 + $0x18f0] sm:$0xff] }
  0xe1   : > { %2428 = vst [vmem:[%s13729_s12 + $0xc70] sm:$0xff] %v2427_v14  ;;  %v2431_v16 = vld [vmem:[%s13724_s11 + $0x1900] sm:$0xff]  ;;  %v2433_v17 = vld [vmem:[%s13724_s11 + $0x1910] sm:$0xff]  ;;  %2430 = vst [vmem:[%s13729_s12 + $0xc78] sm:$0xff] %v2429_v15 }
  0xe2   : > { %2432 = vst [vmem:[%s13729_s12 + $0xc80] sm:$0xff] %v2431_v16  ;;  %2434 = vst [vmem:[%s13729_s12 + $0xc88] sm:$0xff] %v2433_v17  ;;  %v2435_v18 = vld [vmem:[%s13724_s11 + $0x1920] sm:$0xff]  ;;  %v2437_v19 = vld [vmem:[%s13724_s11 + $0x1930] sm:$0xff] }
  0xe3   : > { %v2439_v20 = vld [vmem:[%s13724_s11 + $0x1940] sm:$0xff]  ;;  %2436 = vst [vmem:[%s13729_s12 + $0xc90] sm:$0xff] %v2435_v18  ;;  %2438 = vst [vmem:[%s13729_s12 + $0xc98] sm:$0xff] %v2437_v19  ;;  %v2441_v21 = vld [vmem:[%s13724_s11 + $0x1950] sm:$0xff] }
  0xe4   : > { %2440 = vst [vmem:[%s13729_s12 + $0xca0] sm:$0xff] %v2439_v20  ;;  %v2443_v22 = vld [vmem:[%s13724_s11 + $0x1960] sm:$0xff]  ;;  %v2445_v23 = vld [vmem:[%s13724_s11 + $0x1970] sm:$0xff]  ;;  %2442 = vst [vmem:[%s13729_s12 + $0xca8] sm:$0xff] %v2441_v21 }
  0xe5   : > { %2444 = vst [vmem:[%s13729_s12 + $0xcb0] sm:$0xff] %v2443_v22  ;;  %2446 = vst [vmem:[%s13729_s12 + $0xcb8] sm:$0xff] %v2445_v23  ;;  %v2447_v24 = vld [vmem:[%s13724_s11 + $0x1980] sm:$0xff]  ;;  %v2449_v25 = vld [vmem:[%s13724_s11 + $0x1990] sm:$0xff] }
  0xe6   : > { %v2451_v26 = vld [vmem:[%s13724_s11 + $0x19a0] sm:$0xff]  ;;  %2448 = vst [vmem:[%s13729_s12 + $0xcc0] sm:$0xff] %v2447_v24  ;;  %2450 = vst [vmem:[%s13729_s12 + $0xcc8] sm:$0xff] %v2449_v25  ;;  %v2453_v27 = vld [vmem:[%s13724_s11 + $0x19b0] sm:$0xff] }
  0xe7   : > { %2452 = vst [vmem:[%s13729_s12 + $0xcd0] sm:$0xff] %v2451_v26  ;;  %v2455_v28 = vld [vmem:[%s13724_s11 + $0x19c0] sm:$0xff]  ;;  %v2457_v29 = vld [vmem:[%s13724_s11 + $0x19d0] sm:$0xff]  ;;  %2454 = vst [vmem:[%s13729_s12 + $0xcd8] sm:$0xff] %v2453_v27 }
  0xe8   : > { %2456 = vst [vmem:[%s13729_s12 + $0xce0] sm:$0xff] %v2455_v28  ;;  %2458 = vst [vmem:[%s13729_s12 + $0xce8] sm:$0xff] %v2457_v29  ;;  %v2459_v30 = vld [vmem:[%s13724_s11 + $0x19e0] sm:$0xff]  ;;  %v2461_v31 = vld [vmem:[%s13724_s11 + $0x19f0] sm:$0xff] }
  0xe9   : > { %v2463_v32 = vld [vmem:[%s13724_s11 + $0x1a00] sm:$0xff]  ;;  %2460 = vst [vmem:[%s13729_s12 + $0xcf0] sm:$0xff] %v2459_v30  ;;  %2462 = vst [vmem:[%s13729_s12 + $0xcf8] sm:$0xff] %v2461_v31  ;;  %v2465_v33 = vld [vmem:[%s13724_s11 + $0x1a10] sm:$0xff] }
  0xea   : > { %2464 = vst [vmem:[%s13729_s12 + $0xd00] sm:$0xff] %v2463_v32  ;;  %v2467_v34 = vld [vmem:[%s13724_s11 + $0x1a20] sm:$0xff]  ;;  %v2469_v35 = vld [vmem:[%s13724_s11 + $0x1a30] sm:$0xff]  ;;  %2466 = vst [vmem:[%s13729_s12 + $0xd08] sm:$0xff] %v2465_v33 }
  0xeb   : > { %2468 = vst [vmem:[%s13729_s12 + $0xd10] sm:$0xff] %v2467_v34  ;;  %2470 = vst [vmem:[%s13729_s12 + $0xd18] sm:$0xff] %v2469_v35  ;;  %v2471_v36 = vld [vmem:[%s13724_s11 + $0x1a40] sm:$0xff]  ;;  %v2473_v37 = vld [vmem:[%s13724_s11 + $0x1a50] sm:$0xff] }
  0xec   : > { %v2475_v38 = vld [vmem:[%s13724_s11 + $0x1a60] sm:$0xff]  ;;  %2472 = vst [vmem:[%s13729_s12 + $0xd20] sm:$0xff] %v2471_v36  ;;  %2474 = vst [vmem:[%s13729_s12 + $0xd28] sm:$0xff] %v2473_v37  ;;  %v2477_v39 = vld [vmem:[%s13724_s11 + $0x1a70] sm:$0xff] }
  0xed   : > { %2476 = vst [vmem:[%s13729_s12 + $0xd30] sm:$0xff] %v2475_v38  ;;  %v2479_v40 = vld [vmem:[%s13724_s11 + $0x1a80] sm:$0xff]  ;;  %v2481_v41 = vld [vmem:[%s13724_s11 + $0x1a90] sm:$0xff]  ;;  %2478 = vst [vmem:[%s13729_s12 + $0xd38] sm:$0xff] %v2477_v39 }
  0xee   : > { %2480 = vst [vmem:[%s13729_s12 + $0xd40] sm:$0xff] %v2479_v40  ;;  %2482 = vst [vmem:[%s13729_s12 + $0xd48] sm:$0xff] %v2481_v41  ;;  %v2483_v42 = vld [vmem:[%s13724_s11 + $0x1aa0] sm:$0xff]  ;;  %v2485_v43 = vld [vmem:[%s13724_s11 + $0x1ab0] sm:$0xff] }
  0xef   : > { %v2487_v44 = vld [vmem:[%s13724_s11 + $0x1ac0] sm:$0xff]  ;;  %2484 = vst [vmem:[%s13729_s12 + $0xd50] sm:$0xff] %v2483_v42  ;;  %2486 = vst [vmem:[%s13729_s12 + $0xd58] sm:$0xff] %v2485_v43  ;;  %v2489_v45 = vld [vmem:[%s13724_s11 + $0x1ad0] sm:$0xff] }
  0xf0   : > { %2488 = vst [vmem:[%s13729_s12 + $0xd60] sm:$0xff] %v2487_v44  ;;  %v2491_v46 = vld [vmem:[%s13724_s11 + $0x1ae0] sm:$0xff]  ;;  %v2493_v47 = vld [vmem:[%s13724_s11 + $0x1af0] sm:$0xff]  ;;  %2490 = vst [vmem:[%s13729_s12 + $0xd68] sm:$0xff] %v2489_v45 }
  0xf1   : > { %2492 = vst [vmem:[%s13729_s12 + $0xd70] sm:$0xff] %v2491_v46  ;;  %2494 = vst [vmem:[%s13729_s12 + $0xd78] sm:$0xff] %v2493_v47  ;;  %v2495_v48 = vld [vmem:[%s13724_s11 + $0x1b00] sm:$0xff]  ;;  %v2497_v49 = vld [vmem:[%s13724_s11 + $0x1b10] sm:$0xff] }
  0xf2   : > { %v2499_v50 = vld [vmem:[%s13724_s11 + $0x1b20] sm:$0xff]  ;;  %2496 = vst [vmem:[%s13729_s12 + $0xd80] sm:$0xff] %v2495_v48  ;;  %2498 = vst [vmem:[%s13729_s12 + $0xd88] sm:$0xff] %v2497_v49  ;;  %v2501_v51 = vld [vmem:[%s13724_s11 + $0x1b30] sm:$0xff] }
  0xf3   : > { %2500 = vst [vmem:[%s13729_s12 + $0xd90] sm:$0xff] %v2499_v50  ;;  %v2503_v52 = vld [vmem:[%s13724_s11 + $0x1b40] sm:$0xff]  ;;  %v2505_v53 = vld [vmem:[%s13724_s11 + $0x1b50] sm:$0xff]  ;;  %2502 = vst [vmem:[%s13729_s12 + $0xd98] sm:$0xff] %v2501_v51 }
  0xf4   : > { %2504 = vst [vmem:[%s13729_s12 + $0xda0] sm:$0xff] %v2503_v52  ;;  %2506 = vst [vmem:[%s13729_s12 + $0xda8] sm:$0xff] %v2505_v53  ;;  %v2507_v54 = vld [vmem:[%s13724_s11 + $0x1b60] sm:$0xff]  ;;  %v2509_v55 = vld [vmem:[%s13724_s11 + $0x1b70] sm:$0xff] }
  0xf5   : > { %v2511_v56 = vld [vmem:[%s13724_s11 + $0x1b80] sm:$0xff]  ;;  %2508 = vst [vmem:[%s13729_s12 + $0xdb0] sm:$0xff] %v2507_v54  ;;  %2510 = vst [vmem:[%s13729_s12 + $0xdb8] sm:$0xff] %v2509_v55  ;;  %v2513_v57 = vld [vmem:[%s13724_s11 + $0x1b90] sm:$0xff] }
  0xf6   : > { %2512 = vst [vmem:[%s13729_s12 + $0xdc0] sm:$0xff] %v2511_v56  ;;  %v2515_v58 = vld [vmem:[%s13724_s11 + $0x1ba0] sm:$0xff]  ;;  %v2517_v59 = vld [vmem:[%s13724_s11 + $0x1bb0] sm:$0xff]  ;;  %2514 = vst [vmem:[%s13729_s12 + $0xdc8] sm:$0xff] %v2513_v57 }
  0xf7   : > { %2516 = vst [vmem:[%s13729_s12 + $0xdd0] sm:$0xff] %v2515_v58  ;;  %2518 = vst [vmem:[%s13729_s12 + $0xdd8] sm:$0xff] %v2517_v59  ;;  %v2519_v60 = vld [vmem:[%s13724_s11 + $0x1bc0] sm:$0xff]  ;;  %v2521_v61 = vld [vmem:[%s13724_s11 + $0x1bd0] sm:$0xff] }
  0xf8   : > { %v2523_v62 = vld [vmem:[%s13724_s11 + $0x1be0] sm:$0xff]  ;;  %2520 = vst [vmem:[%s13729_s12 + $0xde0] sm:$0xff] %v2519_v60  ;;  %2522 = vst [vmem:[%s13729_s12 + $0xde8] sm:$0xff] %v2521_v61  ;;  %v2525_v63 = vld [vmem:[%s13724_s11 + $0x1bf0] sm:$0xff] }
  0xf9   : > { %2524 = vst [vmem:[%s13729_s12 + $0xdf0] sm:$0xff] %v2523_v62  ;;  %v2527_v0 = vld [vmem:[%s13724_s11 + $0x1c00] sm:$0xff]  ;;  %v2529_v1 = vld [vmem:[%s13724_s11 + $0x1c10] sm:$0xff]  ;;  %2526 = vst [vmem:[%s13729_s12 + $0xdf8] sm:$0xff] %v2525_v63 }
  0xfa   : > { %2528 = vst [vmem:[%s13729_s12 + $0xe00] sm:$0xff] %v2527_v0  ;;  %2530 = vst [vmem:[%s13729_s12 + $0xe08] sm:$0xff] %v2529_v1  ;;  %v2531_v2 = vld [vmem:[%s13724_s11 + $0x1c20] sm:$0xff]  ;;  %v2533_v3 = vld [vmem:[%s13724_s11 + $0x1c30] sm:$0xff] }
  0xfb   : > { %v2535_v4 = vld [vmem:[%s13724_s11 + $0x1c40] sm:$0xff]  ;;  %2532 = vst [vmem:[%s13729_s12 + $0xe10] sm:$0xff] %v2531_v2  ;;  %2534 = vst [vmem:[%s13729_s12 + $0xe18] sm:$0xff] %v2533_v3  ;;  %v2537_v5 = vld [vmem:[%s13724_s11 + $0x1c50] sm:$0xff] }
  0xfc   : > { %2536 = vst [vmem:[%s13729_s12 + $0xe20] sm:$0xff] %v2535_v4  ;;  %v2539_v6 = vld [vmem:[%s13724_s11 + $0x1c60] sm:$0xff]  ;;  %v2541_v7 = vld [vmem:[%s13724_s11 + $0x1c70] sm:$0xff]  ;;  %2538 = vst [vmem:[%s13729_s12 + $0xe28] sm:$0xff] %v2537_v5 }
  0xfd   : > { %2540 = vst [vmem:[%s13729_s12 + $0xe30] sm:$0xff] %v2539_v6  ;;  %2542 = vst [vmem:[%s13729_s12 + $0xe38] sm:$0xff] %v2541_v7  ;;  %v2543_v8 = vld [vmem:[%s13724_s11 + $0x1c80] sm:$0xff]  ;;  %v2545_v9 = vld [vmem:[%s13724_s11 + $0x1c90] sm:$0xff] }
  0xfe   : > { %v2547_v10 = vld [vmem:[%s13724_s11 + $0x1ca0] sm:$0xff]  ;;  %2544 = vst [vmem:[%s13729_s12 + $0xe40] sm:$0xff] %v2543_v8  ;;  %2546 = vst [vmem:[%s13729_s12 + $0xe48] sm:$0xff] %v2545_v9  ;;  %v2549_v11 = vld [vmem:[%s13724_s11 + $0x1cb0] sm:$0xff] }
  0xff   : > { %2548 = vst [vmem:[%s13729_s12 + $0xe50] sm:$0xff] %v2547_v10  ;;  %v2551_v12 = vld [vmem:[%s13724_s11 + $0x1cc0] sm:$0xff]  ;;  %v2553_v13 = vld [vmem:[%s13724_s11 + $0x1cd0] sm:$0xff]  ;;  %2550 = vst [vmem:[%s13729_s12 + $0xe58] sm:$0xff] %v2549_v11 }
 0x100   : > { %2552 = vst [vmem:[%s13729_s12 + $0xe60] sm:$0xff] %v2551_v12  ;;  %2554 = vst [vmem:[%s13729_s12 + $0xe68] sm:$0xff] %v2553_v13  ;;  %v2555_v14 = vld [vmem:[%s13724_s11 + $0x1ce0] sm:$0xff]  ;;  %v2557_v15 = vld [vmem:[%s13724_s11 + $0x1cf0] sm:$0xff] }
 0x101   : > { %v2559_v16 = vld [vmem:[%s13724_s11 + $0x1d00] sm:$0xff]  ;;  %2556 = vst [vmem:[%s13729_s12 + $0xe70] sm:$0xff] %v2555_v14  ;;  %2558 = vst [vmem:[%s13729_s12 + $0xe78] sm:$0xff] %v2557_v15  ;;  %v2561_v17 = vld [vmem:[%s13724_s11 + $0x1d10] sm:$0xff] }
 0x102   : > { %2560 = vst [vmem:[%s13729_s12 + $0xe80] sm:$0xff] %v2559_v16  ;;  %v2563_v18 = vld [vmem:[%s13724_s11 + $0x1d20] sm:$0xff]  ;;  %v2565_v19 = vld [vmem:[%s13724_s11 + $0x1d30] sm:$0xff]  ;;  %2562 = vst [vmem:[%s13729_s12 + $0xe88] sm:$0xff] %v2561_v17 }
 0x103   : > { %2564 = vst [vmem:[%s13729_s12 + $0xe90] sm:$0xff] %v2563_v18  ;;  %2566 = vst [vmem:[%s13729_s12 + $0xe98] sm:$0xff] %v2565_v19  ;;  %v2567_v20 = vld [vmem:[%s13724_s11 + $0x1d40] sm:$0xff]  ;;  %v2569_v21 = vld [vmem:[%s13724_s11 + $0x1d50] sm:$0xff] }
 0x104   : > { %v2571_v22 = vld [vmem:[%s13724_s11 + $0x1d60] sm:$0xff]  ;;  %2568 = vst [vmem:[%s13729_s12 + $0xea0] sm:$0xff] %v2567_v20  ;;  %2570 = vst [vmem:[%s13729_s12 + $0xea8] sm:$0xff] %v2569_v21  ;;  %v2573_v23 = vld [vmem:[%s13724_s11 + $0x1d70] sm:$0xff] }
 0x105   : > { %2572 = vst [vmem:[%s13729_s12 + $0xeb0] sm:$0xff] %v2571_v22  ;;  %v2575_v24 = vld [vmem:[%s13724_s11 + $0x1d80] sm:$0xff]  ;;  %v2577_v25 = vld [vmem:[%s13724_s11 + $0x1d90] sm:$0xff]  ;;  %2574 = vst [vmem:[%s13729_s12 + $0xeb8] sm:$0xff] %v2573_v23 }
 0x106   : > { %2576 = vst [vmem:[%s13729_s12 + $0xec0] sm:$0xff] %v2575_v24  ;;  %2578 = vst [vmem:[%s13729_s12 + $0xec8] sm:$0xff] %v2577_v25  ;;  %v2579_v26 = vld [vmem:[%s13724_s11 + $0x1da0] sm:$0xff]  ;;  %v2581_v27 = vld [vmem:[%s13724_s11 + $0x1db0] sm:$0xff] }
 0x107   : > { %v2583_v28 = vld [vmem:[%s13724_s11 + $0x1dc0] sm:$0xff]  ;;  %2580 = vst [vmem:[%s13729_s12 + $0xed0] sm:$0xff] %v2579_v26  ;;  %2582 = vst [vmem:[%s13729_s12 + $0xed8] sm:$0xff] %v2581_v27  ;;  %v2585_v29 = vld [vmem:[%s13724_s11 + $0x1dd0] sm:$0xff] }
 0x108   : > { %2584 = vst [vmem:[%s13729_s12 + $0xee0] sm:$0xff] %v2583_v28  ;;  %v2587_v30 = vld [vmem:[%s13724_s11 + $0x1de0] sm:$0xff]  ;;  %v2589_v31 = vld [vmem:[%s13724_s11 + $0x1df0] sm:$0xff]  ;;  %2586 = vst [vmem:[%s13729_s12 + $0xee8] sm:$0xff] %v2585_v29 }
 0x109   : > { %2588 = vst [vmem:[%s13729_s12 + $0xef0] sm:$0xff] %v2587_v30  ;;  %2590 = vst [vmem:[%s13729_s12 + $0xef8] sm:$0xff] %v2589_v31  ;;  %v2591_v32 = vld [vmem:[%s13724_s11 + $0x1e00] sm:$0xff]  ;;  %v2593_v33 = vld [vmem:[%s13724_s11 + $0x1e10] sm:$0xff] }
 0x10a   : > { %v2595_v34 = vld [vmem:[%s13724_s11 + $0x1e20] sm:$0xff]  ;;  %2592 = vst [vmem:[%s13729_s12 + $0xf00] sm:$0xff] %v2591_v32  ;;  %2594 = vst [vmem:[%s13729_s12 + $0xf08] sm:$0xff] %v2593_v33  ;;  %v2597_v35 = vld [vmem:[%s13724_s11 + $0x1e30] sm:$0xff] }
 0x10b   : > { %2596 = vst [vmem:[%s13729_s12 + $0xf10] sm:$0xff] %v2595_v34  ;;  %v2599_v36 = vld [vmem:[%s13724_s11 + $0x1e40] sm:$0xff]  ;;  %v2601_v37 = vld [vmem:[%s13724_s11 + $0x1e50] sm:$0xff]  ;;  %2598 = vst [vmem:[%s13729_s12 + $0xf18] sm:$0xff] %v2597_v35 }
 0x10c   : > { %2600 = vst [vmem:[%s13729_s12 + $0xf20] sm:$0xff] %v2599_v36  ;;  %2602 = vst [vmem:[%s13729_s12 + $0xf28] sm:$0xff] %v2601_v37  ;;  %v2603_v38 = vld [vmem:[%s13724_s11 + $0x1e60] sm:$0xff]  ;;  %v2605_v39 = vld [vmem:[%s13724_s11 + $0x1e70] sm:$0xff] }
 0x10d   : > { %v2607_v40 = vld [vmem:[%s13724_s11 + $0x1e80] sm:$0xff]  ;;  %2604 = vst [vmem:[%s13729_s12 + $0xf30] sm:$0xff] %v2603_v38  ;;  %2606 = vst [vmem:[%s13729_s12 + $0xf38] sm:$0xff] %v2605_v39  ;;  %v2609_v41 = vld [vmem:[%s13724_s11 + $0x1e90] sm:$0xff] }
 0x10e   : > { %2608 = vst [vmem:[%s13729_s12 + $0xf40] sm:$0xff] %v2607_v40  ;;  %v2611_v42 = vld [vmem:[%s13724_s11 + $0x1ea0] sm:$0xff]  ;;  %v2613_v43 = vld [vmem:[%s13724_s11 + $0x1eb0] sm:$0xff]  ;;  %2610 = vst [vmem:[%s13729_s12 + $0xf48] sm:$0xff] %v2609_v41 }
 0x10f   : > { %2612 = vst [vmem:[%s13729_s12 + $0xf50] sm:$0xff] %v2611_v42  ;;  %2614 = vst [vmem:[%s13729_s12 + $0xf58] sm:$0xff] %v2613_v43  ;;  %v2615_v44 = vld [vmem:[%s13724_s11 + $0x1ec0] sm:$0xff]  ;;  %v2617_v45 = vld [vmem:[%s13724_s11 + $0x1ed0] sm:$0xff] }
 0x110   : > { %v2619_v46 = vld [vmem:[%s13724_s11 + $0x1ee0] sm:$0xff]  ;;  %2616 = vst [vmem:[%s13729_s12 + $0xf60] sm:$0xff] %v2615_v44  ;;  %2618 = vst [vmem:[%s13729_s12 + $0xf68] sm:$0xff] %v2617_v45  ;;  %v2621_v47 = vld [vmem:[%s13724_s11 + $0x1ef0] sm:$0xff] }
 0x111   : > { %2620 = vst [vmem:[%s13729_s12 + $0xf70] sm:$0xff] %v2619_v46  ;;  %v2623_v48 = vld [vmem:[%s13724_s11 + $0x1f00] sm:$0xff]  ;;  %v2625_v49 = vld [vmem:[%s13724_s11 + $0x1f10] sm:$0xff]  ;;  %2622 = vst [vmem:[%s13729_s12 + $0xf78] sm:$0xff] %v2621_v47 }
 0x112   : > { %2624 = vst [vmem:[%s13729_s12 + $0xf80] sm:$0xff] %v2623_v48  ;;  %2626 = vst [vmem:[%s13729_s12 + $0xf88] sm:$0xff] %v2625_v49  ;;  %v2627_v50 = vld [vmem:[%s13724_s11 + $0x1f20] sm:$0xff]  ;;  %v2629_v51 = vld [vmem:[%s13724_s11 + $0x1f30] sm:$0xff] }
 0x113   : > { %v2631_v52 = vld [vmem:[%s13724_s11 + $0x1f40] sm:$0xff]  ;;  %2628 = vst [vmem:[%s13729_s12 + $0xf90] sm:$0xff] %v2627_v50  ;;  %2630 = vst [vmem:[%s13729_s12 + $0xf98] sm:$0xff] %v2629_v51  ;;  %v2633_v53 = vld [vmem:[%s13724_s11 + $0x1f50] sm:$0xff] }
 0x114   : > { %2632 = vst [vmem:[%s13729_s12 + $0xfa0] sm:$0xff] %v2631_v52  ;;  %v2635_v54 = vld [vmem:[%s13724_s11 + $0x1f60] sm:$0xff]  ;;  %v2637_v55 = vld [vmem:[%s13724_s11 + $0x1f70] sm:$0xff]  ;;  %2634 = vst [vmem:[%s13729_s12 + $0xfa8] sm:$0xff] %v2633_v53 }
 0x115   : > { %2636 = vst [vmem:[%s13729_s12 + $0xfb0] sm:$0xff] %v2635_v54  ;;  %2638 = vst [vmem:[%s13729_s12 + $0xfb8] sm:$0xff] %v2637_v55  ;;  %v2639_v56 = vld [vmem:[%s13724_s11 + $0x1f80] sm:$0xff]  ;;  %v2641_v57 = vld [vmem:[%s13724_s11 + $0x1f90] sm:$0xff] }
 0x116   : > { %v2643_v58 = vld [vmem:[%s13724_s11 + $0x1fa0] sm:$0xff]  ;;  %2640 = vst [vmem:[%s13729_s12 + $0xfc0] sm:$0xff] %v2639_v56  ;;  %2642 = vst [vmem:[%s13729_s12 + $0xfc8] sm:$0xff] %v2641_v57  ;;  %v2645_v59 = vld [vmem:[%s13724_s11 + $0x1fb0] sm:$0xff] }
 0x117   : > { %2644 = vst [vmem:[%s13729_s12 + $0xfd0] sm:$0xff] %v2643_v58  ;;  %v2647_v60 = vld [vmem:[%s13724_s11 + $0x1fc0] sm:$0xff]  ;;  %v2649_v61 = vld [vmem:[%s13724_s11 + $0x1fd0] sm:$0xff]  ;;  %2646 = vst [vmem:[%s13729_s12 + $0xfd8] sm:$0xff] %v2645_v59 }
 0x118   : > { %2648 = vst [vmem:[%s13729_s12 + $0xfe0] sm:$0xff] %v2647_v60  ;;  %2650 = vst [vmem:[%s13729_s12 + $0xfe8] sm:$0xff] %v2649_v61  ;;  %v2651_v62 = vld [vmem:[%s13724_s11 + $0x1fe0] sm:$0xff]  ;;  %v2653_v63 = vld [vmem:[%s13724_s11 + $0x1ff0] sm:$0xff] }
 0x119   : > { %v2655_v0 = vld [vmem:[%s13724_s11 + $0x2000] sm:$0xff]  ;;  %2652 = vst [vmem:[%s13729_s12 + $0xff0] sm:$0xff] %v2651_v62  ;;  %2654 = vst [vmem:[%s13729_s12 + $0xff8] sm:$0xff] %v2653_v63  ;;  %v2657_v1 = vld [vmem:[%s13724_s11 + $0x2010] sm:$0xff] }
 0x11a   : > { %2656 = vst [vmem:[%s13729_s12 + $0x1000] sm:$0xff] %v2655_v0  ;;  %v2659_v2 = vld [vmem:[%s13724_s11 + $0x2020] sm:$0xff]  ;;  %v2661_v3 = vld [vmem:[%s13724_s11 + $0x2030] sm:$0xff]  ;;  %2658 = vst [vmem:[%s13729_s12 + $0x1008] sm:$0xff] %v2657_v1 }
 0x11b   : > { %2660 = vst [vmem:[%s13729_s12 + $0x1010] sm:$0xff] %v2659_v2  ;;  %2662 = vst [vmem:[%s13729_s12 + $0x1018] sm:$0xff] %v2661_v3  ;;  %v2663_v4 = vld [vmem:[%s13724_s11 + $0x2040] sm:$0xff]  ;;  %v2665_v5 = vld [vmem:[%s13724_s11 + $0x2050] sm:$0xff] }
 0x11c   : > { %v2667_v6 = vld [vmem:[%s13724_s11 + $0x2060] sm:$0xff]  ;;  %2664 = vst [vmem:[%s13729_s12 + $0x1020] sm:$0xff] %v2663_v4  ;;  %2666 = vst [vmem:[%s13729_s12 + $0x1028] sm:$0xff] %v2665_v5  ;;  %v2669_v7 = vld [vmem:[%s13724_s11 + $0x2070] sm:$0xff] }
 0x11d   : > { %2668 = vst [vmem:[%s13729_s12 + $0x1030] sm:$0xff] %v2667_v6  ;;  %v2671_v8 = vld [vmem:[%s13724_s11 + $0x2080] sm:$0xff]  ;;  %v2673_v9 = vld [vmem:[%s13724_s11 + $0x2090] sm:$0xff]  ;;  %2670 = vst [vmem:[%s13729_s12 + $0x1038] sm:$0xff] %v2669_v7 }
 0x11e   : > { %2672 = vst [vmem:[%s13729_s12 + $0x1040] sm:$0xff] %v2671_v8  ;;  %2674 = vst [vmem:[%s13729_s12 + $0x1048] sm:$0xff] %v2673_v9  ;;  %v2675_v10 = vld [vmem:[%s13724_s11 + $0x20a0] sm:$0xff]  ;;  %v2677_v11 = vld [vmem:[%s13724_s11 + $0x20b0] sm:$0xff] }
 0x11f   : > { %v2679_v12 = vld [vmem:[%s13724_s11 + $0x20c0] sm:$0xff]  ;;  %2676 = vst [vmem:[%s13729_s12 + $0x1050] sm:$0xff] %v2675_v10  ;;  %2678 = vst [vmem:[%s13729_s12 + $0x1058] sm:$0xff] %v2677_v11  ;;  %v2681_v13 = vld [vmem:[%s13724_s11 + $0x20d0] sm:$0xff] }
 0x120   : > { %2680 = vst [vmem:[%s13729_s12 + $0x1060] sm:$0xff] %v2679_v12  ;;  %v2683_v14 = vld [vmem:[%s13724_s11 + $0x20e0] sm:$0xff]  ;;  %v2685_v15 = vld [vmem:[%s13724_s11 + $0x20f0] sm:$0xff]  ;;  %2682 = vst [vmem:[%s13729_s12 + $0x1068] sm:$0xff] %v2681_v13 }
 0x121   : > { %2684 = vst [vmem:[%s13729_s12 + $0x1070] sm:$0xff] %v2683_v14  ;;  %2686 = vst [vmem:[%s13729_s12 + $0x1078] sm:$0xff] %v2685_v15  ;;  %v2687_v16 = vld [vmem:[%s13724_s11 + $0x2100] sm:$0xff]  ;;  %v2689_v17 = vld [vmem:[%s13724_s11 + $0x2110] sm:$0xff] }
 0x122   : > { %v2691_v18 = vld [vmem:[%s13724_s11 + $0x2120] sm:$0xff]  ;;  %2688 = vst [vmem:[%s13729_s12 + $0x1080] sm:$0xff] %v2687_v16  ;;  %2690 = vst [vmem:[%s13729_s12 + $0x1088] sm:$0xff] %v2689_v17  ;;  %v2693_v19 = vld [vmem:[%s13724_s11 + $0x2130] sm:$0xff] }
 0x123   : > { %2692 = vst [vmem:[%s13729_s12 + $0x1090] sm:$0xff] %v2691_v18  ;;  %v2695_v20 = vld [vmem:[%s13724_s11 + $0x2140] sm:$0xff]  ;;  %v2697_v21 = vld [vmem:[%s13724_s11 + $0x2150] sm:$0xff]  ;;  %2694 = vst [vmem:[%s13729_s12 + $0x1098] sm:$0xff] %v2693_v19 }
 0x124   : > { %2696 = vst [vmem:[%s13729_s12 + $0x10a0] sm:$0xff] %v2695_v20  ;;  %2698 = vst [vmem:[%s13729_s12 + $0x10a8] sm:$0xff] %v2697_v21  ;;  %v2699_v22 = vld [vmem:[%s13724_s11 + $0x2160] sm:$0xff]  ;;  %v2701_v23 = vld [vmem:[%s13724_s11 + $0x2170] sm:$0xff] }
 0x125   : > { %v2703_v24 = vld [vmem:[%s13724_s11 + $0x2180] sm:$0xff]  ;;  %2700 = vst [vmem:[%s13729_s12 + $0x10b0] sm:$0xff] %v2699_v22  ;;  %2702 = vst [vmem:[%s13729_s12 + $0x10b8] sm:$0xff] %v2701_v23  ;;  %v2705_v25 = vld [vmem:[%s13724_s11 + $0x2190] sm:$0xff] }
 0x126   : > { %2704 = vst [vmem:[%s13729_s12 + $0x10c0] sm:$0xff] %v2703_v24  ;;  %v2707_v26 = vld [vmem:[%s13724_s11 + $0x21a0] sm:$0xff]  ;;  %v2709_v27 = vld [vmem:[%s13724_s11 + $0x21b0] sm:$0xff]  ;;  %2706 = vst [vmem:[%s13729_s12 + $0x10c8] sm:$0xff] %v2705_v25 }
 0x127   : > { %2708 = vst [vmem:[%s13729_s12 + $0x10d0] sm:$0xff] %v2707_v26  ;;  %2710 = vst [vmem:[%s13729_s12 + $0x10d8] sm:$0xff] %v2709_v27  ;;  %v2711_v28 = vld [vmem:[%s13724_s11 + $0x21c0] sm:$0xff]  ;;  %v2713_v29 = vld [vmem:[%s13724_s11 + $0x21d0] sm:$0xff] }
 0x128   : > { %v2715_v30 = vld [vmem:[%s13724_s11 + $0x21e0] sm:$0xff]  ;;  %2712 = vst [vmem:[%s13729_s12 + $0x10e0] sm:$0xff] %v2711_v28  ;;  %2714 = vst [vmem:[%s13729_s12 + $0x10e8] sm:$0xff] %v2713_v29  ;;  %v2717_v31 = vld [vmem:[%s13724_s11 + $0x21f0] sm:$0xff] }
 0x129   : > { %2716 = vst [vmem:[%s13729_s12 + $0x10f0] sm:$0xff] %v2715_v30  ;;  %v2719_v32 = vld [vmem:[%s13724_s11 + $0x2200] sm:$0xff]  ;;  %v2721_v33 = vld [vmem:[%s13724_s11 + $0x2210] sm:$0xff]  ;;  %2718 = vst [vmem:[%s13729_s12 + $0x10f8] sm:$0xff] %v2717_v31 }
 0x12a   : > { %2720 = vst [vmem:[%s13729_s12 + $0x1100] sm:$0xff] %v2719_v32  ;;  %2722 = vst [vmem:[%s13729_s12 + $0x1108] sm:$0xff] %v2721_v33  ;;  %v2723_v34 = vld [vmem:[%s13724_s11 + $0x2220] sm:$0xff]  ;;  %v2725_v35 = vld [vmem:[%s13724_s11 + $0x2230] sm:$0xff] }
 0x12b   : > { %v2727_v36 = vld [vmem:[%s13724_s11 + $0x2240] sm:$0xff]  ;;  %2724 = vst [vmem:[%s13729_s12 + $0x1110] sm:$0xff] %v2723_v34  ;;  %2726 = vst [vmem:[%s13729_s12 + $0x1118] sm:$0xff] %v2725_v35  ;;  %v2729_v37 = vld [vmem:[%s13724_s11 + $0x2250] sm:$0xff] }
 0x12c   : > { %2728 = vst [vmem:[%s13729_s12 + $0x1120] sm:$0xff] %v2727_v36  ;;  %v2731_v38 = vld [vmem:[%s13724_s11 + $0x2260] sm:$0xff]  ;;  %v2733_v39 = vld [vmem:[%s13724_s11 + $0x2270] sm:$0xff]  ;;  %2730 = vst [vmem:[%s13729_s12 + $0x1128] sm:$0xff] %v2729_v37 }
 0x12d   : > { %2732 = vst [vmem:[%s13729_s12 + $0x1130] sm:$0xff] %v2731_v38  ;;  %2734 = vst [vmem:[%s13729_s12 + $0x1138] sm:$0xff] %v2733_v39  ;;  %v2735_v40 = vld [vmem:[%s13724_s11 + $0x2280] sm:$0xff]  ;;  %v2737_v41 = vld [vmem:[%s13724_s11 + $0x2290] sm:$0xff] }
 0x12e   : > { %v2739_v42 = vld [vmem:[%s13724_s11 + $0x22a0] sm:$0xff]  ;;  %2736 = vst [vmem:[%s13729_s12 + $0x1140] sm:$0xff] %v2735_v40  ;;  %2738 = vst [vmem:[%s13729_s12 + $0x1148] sm:$0xff] %v2737_v41  ;;  %v2741_v43 = vld [vmem:[%s13724_s11 + $0x22b0] sm:$0xff] }
 0x12f   : > { %2740 = vst [vmem:[%s13729_s12 + $0x1150] sm:$0xff] %v2739_v42  ;;  %v2743_v44 = vld [vmem:[%s13724_s11 + $0x22c0] sm:$0xff]  ;;  %v2745_v45 = vld [vmem:[%s13724_s11 + $0x22d0] sm:$0xff]  ;;  %2742 = vst [vmem:[%s13729_s12 + $0x1158] sm:$0xff] %v2741_v43 }
 0x130   : > { %2744 = vst [vmem:[%s13729_s12 + $0x1160] sm:$0xff] %v2743_v44  ;;  %2746 = vst [vmem:[%s13729_s12 + $0x1168] sm:$0xff] %v2745_v45  ;;  %v2747_v46 = vld [vmem:[%s13724_s11 + $0x22e0] sm:$0xff]  ;;  %v2749_v47 = vld [vmem:[%s13724_s11 + $0x22f0] sm:$0xff] }
 0x131   : > { %v2751_v48 = vld [vmem:[%s13724_s11 + $0x2300] sm:$0xff]  ;;  %2748 = vst [vmem:[%s13729_s12 + $0x1170] sm:$0xff] %v2747_v46  ;;  %2750 = vst [vmem:[%s13729_s12 + $0x1178] sm:$0xff] %v2749_v47  ;;  %v2753_v49 = vld [vmem:[%s13724_s11 + $0x2310] sm:$0xff] }
 0x132   : > { %2752 = vst [vmem:[%s13729_s12 + $0x1180] sm:$0xff] %v2751_v48  ;;  %v2755_v50 = vld [vmem:[%s13724_s11 + $0x2320] sm:$0xff]  ;;  %v2757_v51 = vld [vmem:[%s13724_s11 + $0x2330] sm:$0xff]  ;;  %2754 = vst [vmem:[%s13729_s12 + $0x1188] sm:$0xff] %v2753_v49 }
 0x133   : > { %2756 = vst [vmem:[%s13729_s12 + $0x1190] sm:$0xff] %v2755_v50  ;;  %2758 = vst [vmem:[%s13729_s12 + $0x1198] sm:$0xff] %v2757_v51  ;;  %v2759_v52 = vld [vmem:[%s13724_s11 + $0x2340] sm:$0xff]  ;;  %v2761_v53 = vld [vmem:[%s13724_s11 + $0x2350] sm:$0xff] }
 0x134   : > { %v2763_v54 = vld [vmem:[%s13724_s11 + $0x2360] sm:$0xff]  ;;  %2760 = vst [vmem:[%s13729_s12 + $0x11a0] sm:$0xff] %v2759_v52  ;;  %2762 = vst [vmem:[%s13729_s12 + $0x11a8] sm:$0xff] %v2761_v53  ;;  %v2765_v55 = vld [vmem:[%s13724_s11 + $0x2370] sm:$0xff] }
 0x135   : > { %2764 = vst [vmem:[%s13729_s12 + $0x11b0] sm:$0xff] %v2763_v54  ;;  %v2767_v56 = vld [vmem:[%s13724_s11 + $0x2380] sm:$0xff]  ;;  %v2769_v57 = vld [vmem:[%s13724_s11 + $0x2390] sm:$0xff]  ;;  %2766 = vst [vmem:[%s13729_s12 + $0x11b8] sm:$0xff] %v2765_v55 }
 0x136   : > { %2768 = vst [vmem:[%s13729_s12 + $0x11c0] sm:$0xff] %v2767_v56  ;;  %2770 = vst [vmem:[%s13729_s12 + $0x11c8] sm:$0xff] %v2769_v57  ;;  %v2771_v58 = vld [vmem:[%s13724_s11 + $0x23a0] sm:$0xff]  ;;  %v2773_v59 = vld [vmem:[%s13724_s11 + $0x23b0] sm:$0xff] }
 0x137   : > { %v2775_v60 = vld [vmem:[%s13724_s11 + $0x23c0] sm:$0xff]  ;;  %2772 = vst [vmem:[%s13729_s12 + $0x11d0] sm:$0xff] %v2771_v58  ;;  %2774 = vst [vmem:[%s13729_s12 + $0x11d8] sm:$0xff] %v2773_v59  ;;  %v2777_v61 = vld [vmem:[%s13724_s11 + $0x23d0] sm:$0xff] }
 0x138   : > { %2776 = vst [vmem:[%s13729_s12 + $0x11e0] sm:$0xff] %v2775_v60  ;;  %v2779_v62 = vld [vmem:[%s13724_s11 + $0x23e0] sm:$0xff]  ;;  %v2781_v63 = vld [vmem:[%s13724_s11 + $0x23f0] sm:$0xff]  ;;  %2778 = vst [vmem:[%s13729_s12 + $0x11e8] sm:$0xff] %v2777_v61 }
 0x139   : > { %2780 = vst [vmem:[%s13729_s12 + $0x11f0] sm:$0xff] %v2779_v62  ;;  %2782 = vst [vmem:[%s13729_s12 + $0x11f8] sm:$0xff] %v2781_v63  ;;  %v2783_v0 = vld [vmem:[%s13724_s11 + $0x2400] sm:$0xff]  ;;  %v2785_v1 = vld [vmem:[%s13724_s11 + $0x2410] sm:$0xff] }
 0x13a   : > { %v2787_v2 = vld [vmem:[%s13724_s11 + $0x2420] sm:$0xff]  ;;  %2784 = vst [vmem:[%s13729_s12 + $0x1200] sm:$0xff] %v2783_v0  ;;  %2786 = vst [vmem:[%s13729_s12 + $0x1208] sm:$0xff] %v2785_v1  ;;  %v2789_v3 = vld [vmem:[%s13724_s11 + $0x2430] sm:$0xff] }
 0x13b   : > { %2788 = vst [vmem:[%s13729_s12 + $0x1210] sm:$0xff] %v2787_v2  ;;  %v2791_v4 = vld [vmem:[%s13724_s11 + $0x2440] sm:$0xff]  ;;  %v2793_v5 = vld [vmem:[%s13724_s11 + $0x2450] sm:$0xff]  ;;  %2790 = vst [vmem:[%s13729_s12 + $0x1218] sm:$0xff] %v2789_v3 }
 0x13c   : > { %2792 = vst [vmem:[%s13729_s12 + $0x1220] sm:$0xff] %v2791_v4  ;;  %2794 = vst [vmem:[%s13729_s12 + $0x1228] sm:$0xff] %v2793_v5  ;;  %v2795_v6 = vld [vmem:[%s13724_s11 + $0x2460] sm:$0xff]  ;;  %v2797_v7 = vld [vmem:[%s13724_s11 + $0x2470] sm:$0xff] }
 0x13d   : > { %v2799_v8 = vld [vmem:[%s13724_s11 + $0x2480] sm:$0xff]  ;;  %2796 = vst [vmem:[%s13729_s12 + $0x1230] sm:$0xff] %v2795_v6  ;;  %2798 = vst [vmem:[%s13729_s12 + $0x1238] sm:$0xff] %v2797_v7  ;;  %v2801_v9 = vld [vmem:[%s13724_s11 + $0x2490] sm:$0xff] }
 0x13e   : > { %2800 = vst [vmem:[%s13729_s12 + $0x1240] sm:$0xff] %v2799_v8  ;;  %v2803_v10 = vld [vmem:[%s13724_s11 + $0x24a0] sm:$0xff]  ;;  %v2805_v11 = vld [vmem:[%s13724_s11 + $0x24b0] sm:$0xff]  ;;  %2802 = vst [vmem:[%s13729_s12 + $0x1248] sm:$0xff] %v2801_v9 }
 0x13f   : > { %2804 = vst [vmem:[%s13729_s12 + $0x1250] sm:$0xff] %v2803_v10  ;;  %2806 = vst [vmem:[%s13729_s12 + $0x1258] sm:$0xff] %v2805_v11  ;;  %v2807_v12 = vld [vmem:[%s13724_s11 + $0x24c0] sm:$0xff]  ;;  %v2809_v13 = vld [vmem:[%s13724_s11 + $0x24d0] sm:$0xff] }
 0x140   : > { %v2811_v14 = vld [vmem:[%s13724_s11 + $0x24e0] sm:$0xff]  ;;  %2808 = vst [vmem:[%s13729_s12 + $0x1260] sm:$0xff] %v2807_v12  ;;  %2810 = vst [vmem:[%s13729_s12 + $0x1268] sm:$0xff] %v2809_v13  ;;  %v2813_v15 = vld [vmem:[%s13724_s11 + $0x24f0] sm:$0xff] }
 0x141   : > { %2812 = vst [vmem:[%s13729_s12 + $0x1270] sm:$0xff] %v2811_v14  ;;  %v2815_v16 = vld [vmem:[%s13724_s11 + $0x2500] sm:$0xff]  ;;  %v2817_v17 = vld [vmem:[%s13724_s11 + $0x2510] sm:$0xff]  ;;  %2814 = vst [vmem:[%s13729_s12 + $0x1278] sm:$0xff] %v2813_v15 }
 0x142   : > { %2816 = vst [vmem:[%s13729_s12 + $0x1280] sm:$0xff] %v2815_v16  ;;  %2818 = vst [vmem:[%s13729_s12 + $0x1288] sm:$0xff] %v2817_v17  ;;  %v2819_v18 = vld [vmem:[%s13724_s11 + $0x2520] sm:$0xff]  ;;  %v2821_v19 = vld [vmem:[%s13724_s11 + $0x2530] sm:$0xff] }
 0x143   : > { %v2823_v20 = vld [vmem:[%s13724_s11 + $0x2540] sm:$0xff]  ;;  %2820 = vst [vmem:[%s13729_s12 + $0x1290] sm:$0xff] %v2819_v18  ;;  %2822 = vst [vmem:[%s13729_s12 + $0x1298] sm:$0xff] %v2821_v19  ;;  %v2825_v21 = vld [vmem:[%s13724_s11 + $0x2550] sm:$0xff] }
 0x144   : > { %2824 = vst [vmem:[%s13729_s12 + $0x12a0] sm:$0xff] %v2823_v20  ;;  %v2827_v22 = vld [vmem:[%s13724_s11 + $0x2560] sm:$0xff]  ;;  %v2829_v23 = vld [vmem:[%s13724_s11 + $0x2570] sm:$0xff]  ;;  %2826 = vst [vmem:[%s13729_s12 + $0x12a8] sm:$0xff] %v2825_v21 }
 0x145   : > { %2828 = vst [vmem:[%s13729_s12 + $0x12b0] sm:$0xff] %v2827_v22  ;;  %2830 = vst [vmem:[%s13729_s12 + $0x12b8] sm:$0xff] %v2829_v23  ;;  %v2831_v24 = vld [vmem:[%s13724_s11 + $0x2580] sm:$0xff]  ;;  %v2833_v25 = vld [vmem:[%s13724_s11 + $0x2590] sm:$0xff] }
 0x146   : > { %v2835_v26 = vld [vmem:[%s13724_s11 + $0x25a0] sm:$0xff]  ;;  %2832 = vst [vmem:[%s13729_s12 + $0x12c0] sm:$0xff] %v2831_v24  ;;  %2834 = vst [vmem:[%s13729_s12 + $0x12c8] sm:$0xff] %v2833_v25  ;;  %v2837_v27 = vld [vmem:[%s13724_s11 + $0x25b0] sm:$0xff] }
 0x147   : > { %2836 = vst [vmem:[%s13729_s12 + $0x12d0] sm:$0xff] %v2835_v26  ;;  %v2839_v28 = vld [vmem:[%s13724_s11 + $0x25c0] sm:$0xff]  ;;  %v2841_v29 = vld [vmem:[%s13724_s11 + $0x25d0] sm:$0xff]  ;;  %2838 = vst [vmem:[%s13729_s12 + $0x12d8] sm:$0xff] %v2837_v27 }
 0x148   : > { %2840 = vst [vmem:[%s13729_s12 + $0x12e0] sm:$0xff] %v2839_v28  ;;  %2842 = vst [vmem:[%s13729_s12 + $0x12e8] sm:$0xff] %v2841_v29  ;;  %v2843_v30 = vld [vmem:[%s13724_s11 + $0x25e0] sm:$0xff]  ;;  %v2845_v31 = vld [vmem:[%s13724_s11 + $0x25f0] sm:$0xff] }
 0x149   : > { %v2847_v32 = vld [vmem:[%s13724_s11 + $0x2600] sm:$0xff]  ;;  %2844 = vst [vmem:[%s13729_s12 + $0x12f0] sm:$0xff] %v2843_v30  ;;  %2846 = vst [vmem:[%s13729_s12 + $0x12f8] sm:$0xff] %v2845_v31  ;;  %v2849_v33 = vld [vmem:[%s13724_s11 + $0x2610] sm:$0xff] }
 0x14a   : > { %2848 = vst [vmem:[%s13729_s12 + $0x1300] sm:$0xff] %v2847_v32  ;;  %v2851_v34 = vld [vmem:[%s13724_s11 + $0x2620] sm:$0xff]  ;;  %v2853_v35 = vld [vmem:[%s13724_s11 + $0x2630] sm:$0xff]  ;;  %2850 = vst [vmem:[%s13729_s12 + $0x1308] sm:$0xff] %v2849_v33 }
 0x14b   : > { %2852 = vst [vmem:[%s13729_s12 + $0x1310] sm:$0xff] %v2851_v34  ;;  %2854 = vst [vmem:[%s13729_s12 + $0x1318] sm:$0xff] %v2853_v35  ;;  %v2855_v36 = vld [vmem:[%s13724_s11 + $0x2640] sm:$0xff]  ;;  %v2857_v37 = vld [vmem:[%s13724_s11 + $0x2650] sm:$0xff] }
 0x14c   : > { %v2859_v38 = vld [vmem:[%s13724_s11 + $0x2660] sm:$0xff]  ;;  %2856 = vst [vmem:[%s13729_s12 + $0x1320] sm:$0xff] %v2855_v36  ;;  %2858 = vst [vmem:[%s13729_s12 + $0x1328] sm:$0xff] %v2857_v37  ;;  %v2861_v39 = vld [vmem:[%s13724_s11 + $0x2670] sm:$0xff] }
 0x14d   : > { %2860 = vst [vmem:[%s13729_s12 + $0x1330] sm:$0xff] %v2859_v38  ;;  %v2863_v40 = vld [vmem:[%s13724_s11 + $0x2680] sm:$0xff]  ;;  %v2865_v41 = vld [vmem:[%s13724_s11 + $0x2690] sm:$0xff]  ;;  %2862 = vst [vmem:[%s13729_s12 + $0x1338] sm:$0xff] %v2861_v39 }
 0x14e   : > { %2864 = vst [vmem:[%s13729_s12 + $0x1340] sm:$0xff] %v2863_v40  ;;  %2866 = vst [vmem:[%s13729_s12 + $0x1348] sm:$0xff] %v2865_v41  ;;  %v2867_v42 = vld [vmem:[%s13724_s11 + $0x26a0] sm:$0xff]  ;;  %v2869_v43 = vld [vmem:[%s13724_s11 + $0x26b0] sm:$0xff] }
 0x14f   : > { %v2871_v44 = vld [vmem:[%s13724_s11 + $0x26c0] sm:$0xff]  ;;  %2868 = vst [vmem:[%s13729_s12 + $0x1350] sm:$0xff] %v2867_v42  ;;  %2870 = vst [vmem:[%s13729_s12 + $0x1358] sm:$0xff] %v2869_v43  ;;  %v2873_v45 = vld [vmem:[%s13724_s11 + $0x26d0] sm:$0xff] }
 0x150   : > { %2872 = vst [vmem:[%s13729_s12 + $0x1360] sm:$0xff] %v2871_v44  ;;  %v2875_v46 = vld [vmem:[%s13724_s11 + $0x26e0] sm:$0xff]  ;;  %v2877_v47 = vld [vmem:[%s13724_s11 + $0x26f0] sm:$0xff]  ;;  %2874 = vst [vmem:[%s13729_s12 + $0x1368] sm:$0xff] %v2873_v45 }
 0x151   : > { %2876 = vst [vmem:[%s13729_s12 + $0x1370] sm:$0xff] %v2875_v46  ;;  %2878 = vst [vmem:[%s13729_s12 + $0x1378] sm:$0xff] %v2877_v47  ;;  %v2879_v48 = vld [vmem:[%s13724_s11 + $0x2700] sm:$0xff]  ;;  %v2881_v49 = vld [vmem:[%s13724_s11 + $0x2710] sm:$0xff] }
 0x152   : > { %v2883_v50 = vld [vmem:[%s13724_s11 + $0x2720] sm:$0xff]  ;;  %2880 = vst [vmem:[%s13729_s12 + $0x1380] sm:$0xff] %v2879_v48  ;;  %2882 = vst [vmem:[%s13729_s12 + $0x1388] sm:$0xff] %v2881_v49  ;;  %v2885_v51 = vld [vmem:[%s13724_s11 + $0x2730] sm:$0xff] }
 0x153   : > { %2884 = vst [vmem:[%s13729_s12 + $0x1390] sm:$0xff] %v2883_v50  ;;  %v2887_v52 = vld [vmem:[%s13724_s11 + $0x2740] sm:$0xff]  ;;  %v2889_v53 = vld [vmem:[%s13724_s11 + $0x2750] sm:$0xff]  ;;  %2886 = vst [vmem:[%s13729_s12 + $0x1398] sm:$0xff] %v2885_v51 }
 0x154   : > { %2888 = vst [vmem:[%s13729_s12 + $0x13a0] sm:$0xff] %v2887_v52  ;;  %2890 = vst [vmem:[%s13729_s12 + $0x13a8] sm:$0xff] %v2889_v53  ;;  %v2891_v54 = vld [vmem:[%s13724_s11 + $0x2760] sm:$0xff]  ;;  %v2893_v55 = vld [vmem:[%s13724_s11 + $0x2770] sm:$0xff] }
 0x155   : > { %v2895_v56 = vld [vmem:[%s13724_s11 + $0x2780] sm:$0xff]  ;;  %2892 = vst [vmem:[%s13729_s12 + $0x13b0] sm:$0xff] %v2891_v54  ;;  %2894 = vst [vmem:[%s13729_s12 + $0x13b8] sm:$0xff] %v2893_v55  ;;  %v2897_v57 = vld [vmem:[%s13724_s11 + $0x2790] sm:$0xff] }
 0x156   : > { %2896 = vst [vmem:[%s13729_s12 + $0x13c0] sm:$0xff] %v2895_v56  ;;  %v2899_v58 = vld [vmem:[%s13724_s11 + $0x27a0] sm:$0xff]  ;;  %v2901_v59 = vld [vmem:[%s13724_s11 + $0x27b0] sm:$0xff]  ;;  %2898 = vst [vmem:[%s13729_s12 + $0x13c8] sm:$0xff] %v2897_v57 }
 0x157   : > { %2900 = vst [vmem:[%s13729_s12 + $0x13d0] sm:$0xff] %v2899_v58  ;;  %2902 = vst [vmem:[%s13729_s12 + $0x13d8] sm:$0xff] %v2901_v59  ;;  %v2903_v60 = vld [vmem:[%s13724_s11 + $0x27c0] sm:$0xff]  ;;  %v2905_v61 = vld [vmem:[%s13724_s11 + $0x27d0] sm:$0xff] }
 0x158   : > { %v2907_v62 = vld [vmem:[%s13724_s11 + $0x27e0] sm:$0xff]  ;;  %2904 = vst [vmem:[%s13729_s12 + $0x13e0] sm:$0xff] %v2903_v60  ;;  %2906 = vst [vmem:[%s13729_s12 + $0x13e8] sm:$0xff] %v2905_v61  ;;  %v2909_v63 = vld [vmem:[%s13724_s11 + $0x27f0] sm:$0xff] }
 0x159   : > { %2908 = vst [vmem:[%s13729_s12 + $0x13f0] sm:$0xff] %v2907_v62  ;;  %v2911_v0 = vld [vmem:[%s13724_s11 + $0x2800] sm:$0xff]  ;;  %v2913_v1 = vld [vmem:[%s13724_s11 + $0x2810] sm:$0xff]  ;;  %2910 = vst [vmem:[%s13729_s12 + $0x13f8] sm:$0xff] %v2909_v63 }
 0x15a   : > { %2912 = vst [vmem:[%s13729_s12 + $0x1400] sm:$0xff] %v2911_v0  ;;  %2914 = vst [vmem:[%s13729_s12 + $0x1408] sm:$0xff] %v2913_v1  ;;  %v2915_v2 = vld [vmem:[%s13724_s11 + $0x2820] sm:$0xff]  ;;  %v2917_v3 = vld [vmem:[%s13724_s11 + $0x2830] sm:$0xff] }
 0x15b   : > { %v2919_v4 = vld [vmem:[%s13724_s11 + $0x2840] sm:$0xff]  ;;  %2916 = vst [vmem:[%s13729_s12 + $0x1410] sm:$0xff] %v2915_v2  ;;  %2918 = vst [vmem:[%s13729_s12 + $0x1418] sm:$0xff] %v2917_v3  ;;  %v2921_v5 = vld [vmem:[%s13724_s11 + $0x2850] sm:$0xff] }
 0x15c   : > { %2920 = vst [vmem:[%s13729_s12 + $0x1420] sm:$0xff] %v2919_v4  ;;  %v2923_v6 = vld [vmem:[%s13724_s11 + $0x2860] sm:$0xff]  ;;  %v2925_v7 = vld [vmem:[%s13724_s11 + $0x2870] sm:$0xff]  ;;  %2922 = vst [vmem:[%s13729_s12 + $0x1428] sm:$0xff] %v2921_v5 }
 0x15d   : > { %2924 = vst [vmem:[%s13729_s12 + $0x1430] sm:$0xff] %v2923_v6  ;;  %2926 = vst [vmem:[%s13729_s12 + $0x1438] sm:$0xff] %v2925_v7  ;;  %v2927_v8 = vld [vmem:[%s13724_s11 + $0x2880] sm:$0xff]  ;;  %v2929_v9 = vld [vmem:[%s13724_s11 + $0x2890] sm:$0xff] }
 0x15e   : > { %v2931_v10 = vld [vmem:[%s13724_s11 + $0x28a0] sm:$0xff]  ;;  %2928 = vst [vmem:[%s13729_s12 + $0x1440] sm:$0xff] %v2927_v8  ;;  %2930 = vst [vmem:[%s13729_s12 + $0x1448] sm:$0xff] %v2929_v9  ;;  %v2933_v11 = vld [vmem:[%s13724_s11 + $0x28b0] sm:$0xff] }
 0x15f   : > { %2932 = vst [vmem:[%s13729_s12 + $0x1450] sm:$0xff] %v2931_v10  ;;  %v2935_v12 = vld [vmem:[%s13724_s11 + $0x28c0] sm:$0xff]  ;;  %v2937_v13 = vld [vmem:[%s13724_s11 + $0x28d0] sm:$0xff]  ;;  %2934 = vst [vmem:[%s13729_s12 + $0x1458] sm:$0xff] %v2933_v11 }
 0x160   : > { %2936 = vst [vmem:[%s13729_s12 + $0x1460] sm:$0xff] %v2935_v12  ;;  %2938 = vst [vmem:[%s13729_s12 + $0x1468] sm:$0xff] %v2937_v13  ;;  %v2939_v14 = vld [vmem:[%s13724_s11 + $0x28e0] sm:$0xff]  ;;  %v2941_v15 = vld [vmem:[%s13724_s11 + $0x28f0] sm:$0xff] }
 0x161   : > { %v2943_v16 = vld [vmem:[%s13724_s11 + $0x2900] sm:$0xff]  ;;  %2940 = vst [vmem:[%s13729_s12 + $0x1470] sm:$0xff] %v2939_v14  ;;  %2942 = vst [vmem:[%s13729_s12 + $0x1478] sm:$0xff] %v2941_v15  ;;  %v2945_v17 = vld [vmem:[%s13724_s11 + $0x2910] sm:$0xff] }
 0x162   : > { %2944 = vst [vmem:[%s13729_s12 + $0x1480] sm:$0xff] %v2943_v16  ;;  %v2947_v18 = vld [vmem:[%s13724_s11 + $0x2920] sm:$0xff]  ;;  %v2949_v19 = vld [vmem:[%s13724_s11 + $0x2930] sm:$0xff]  ;;  %2946 = vst [vmem:[%s13729_s12 + $0x1488] sm:$0xff] %v2945_v17 }
 0x163   : > { %2948 = vst [vmem:[%s13729_s12 + $0x1490] sm:$0xff] %v2947_v18  ;;  %2950 = vst [vmem:[%s13729_s12 + $0x1498] sm:$0xff] %v2949_v19  ;;  %v2951_v20 = vld [vmem:[%s13724_s11 + $0x2940] sm:$0xff]  ;;  %v2953_v21 = vld [vmem:[%s13724_s11 + $0x2950] sm:$0xff] }
 0x164   : > { %v2955_v22 = vld [vmem:[%s13724_s11 + $0x2960] sm:$0xff]  ;;  %2952 = vst [vmem:[%s13729_s12 + $0x14a0] sm:$0xff] %v2951_v20  ;;  %2954 = vst [vmem:[%s13729_s12 + $0x14a8] sm:$0xff] %v2953_v21  ;;  %v2957_v23 = vld [vmem:[%s13724_s11 + $0x2970] sm:$0xff] }
 0x165   : > { %2956 = vst [vmem:[%s13729_s12 + $0x14b0] sm:$0xff] %v2955_v22  ;;  %v2959_v24 = vld [vmem:[%s13724_s11 + $0x2980] sm:$0xff]  ;;  %v2961_v25 = vld [vmem:[%s13724_s11 + $0x2990] sm:$0xff]  ;;  %2958 = vst [vmem:[%s13729_s12 + $0x14b8] sm:$0xff] %v2957_v23 }
 0x166   : > { %2960 = vst [vmem:[%s13729_s12 + $0x14c0] sm:$0xff] %v2959_v24  ;;  %2962 = vst [vmem:[%s13729_s12 + $0x14c8] sm:$0xff] %v2961_v25  ;;  %v2963_v26 = vld [vmem:[%s13724_s11 + $0x29a0] sm:$0xff]  ;;  %v2965_v27 = vld [vmem:[%s13724_s11 + $0x29b0] sm:$0xff] }
 0x167   : > { %v2967_v28 = vld [vmem:[%s13724_s11 + $0x29c0] sm:$0xff]  ;;  %2964 = vst [vmem:[%s13729_s12 + $0x14d0] sm:$0xff] %v2963_v26  ;;  %2966 = vst [vmem:[%s13729_s12 + $0x14d8] sm:$0xff] %v2965_v27  ;;  %v2969_v29 = vld [vmem:[%s13724_s11 + $0x29d0] sm:$0xff] }
 0x168   : > { %2968 = vst [vmem:[%s13729_s12 + $0x14e0] sm:$0xff] %v2967_v28  ;;  %v2971_v30 = vld [vmem:[%s13724_s11 + $0x29e0] sm:$0xff]  ;;  %v2973_v31 = vld [vmem:[%s13724_s11 + $0x29f0] sm:$0xff]  ;;  %2970 = vst [vmem:[%s13729_s12 + $0x14e8] sm:$0xff] %v2969_v29 }
 0x169   : > { %2972 = vst [vmem:[%s13729_s12 + $0x14f0] sm:$0xff] %v2971_v30  ;;  %2974 = vst [vmem:[%s13729_s12 + $0x14f8] sm:$0xff] %v2973_v31  ;;  %v2975_v32 = vld [vmem:[%s13724_s11 + $0x2a00] sm:$0xff]  ;;  %v2977_v33 = vld [vmem:[%s13724_s11 + $0x2a10] sm:$0xff] }
 0x16a   : > { %v2979_v34 = vld [vmem:[%s13724_s11 + $0x2a20] sm:$0xff]  ;;  %2976 = vst [vmem:[%s13729_s12 + $0x1500] sm:$0xff] %v2975_v32  ;;  %2978 = vst [vmem:[%s13729_s12 + $0x1508] sm:$0xff] %v2977_v33  ;;  %v2981_v35 = vld [vmem:[%s13724_s11 + $0x2a30] sm:$0xff] }
 0x16b   : > { %2980 = vst [vmem:[%s13729_s12 + $0x1510] sm:$0xff] %v2979_v34  ;;  %v2983_v36 = vld [vmem:[%s13724_s11 + $0x2a40] sm:$0xff]  ;;  %v2985_v37 = vld [vmem:[%s13724_s11 + $0x2a50] sm:$0xff]  ;;  %2982 = vst [vmem:[%s13729_s12 + $0x1518] sm:$0xff] %v2981_v35 }
 0x16c   : > { %2984 = vst [vmem:[%s13729_s12 + $0x1520] sm:$0xff] %v2983_v36  ;;  %2986 = vst [vmem:[%s13729_s12 + $0x1528] sm:$0xff] %v2985_v37  ;;  %v2987_v38 = vld [vmem:[%s13724_s11 + $0x2a60] sm:$0xff]  ;;  %v2989_v39 = vld [vmem:[%s13724_s11 + $0x2a70] sm:$0xff] }
 0x16d   : > { %v2991_v40 = vld [vmem:[%s13724_s11 + $0x2a80] sm:$0xff]  ;;  %2988 = vst [vmem:[%s13729_s12 + $0x1530] sm:$0xff] %v2987_v38  ;;  %2990 = vst [vmem:[%s13729_s12 + $0x1538] sm:$0xff] %v2989_v39  ;;  %v2993_v41 = vld [vmem:[%s13724_s11 + $0x2a90] sm:$0xff] }
 0x16e   : > { %2992 = vst [vmem:[%s13729_s12 + $0x1540] sm:$0xff] %v2991_v40  ;;  %v2995_v42 = vld [vmem:[%s13724_s11 + $0x2aa0] sm:$0xff]  ;;  %v2997_v43 = vld [vmem:[%s13724_s11 + $0x2ab0] sm:$0xff]  ;;  %2994 = vst [vmem:[%s13729_s12 + $0x1548] sm:$0xff] %v2993_v41 }
 0x16f   : > { %2996 = vst [vmem:[%s13729_s12 + $0x1550] sm:$0xff] %v2995_v42  ;;  %2998 = vst [vmem:[%s13729_s12 + $0x1558] sm:$0xff] %v2997_v43  ;;  %v2999_v44 = vld [vmem:[%s13724_s11 + $0x2ac0] sm:$0xff]  ;;  %v3001_v45 = vld [vmem:[%s13724_s11 + $0x2ad0] sm:$0xff] }
 0x170   : > { %v3003_v46 = vld [vmem:[%s13724_s11 + $0x2ae0] sm:$0xff]  ;;  %3000 = vst [vmem:[%s13729_s12 + $0x1560] sm:$0xff] %v2999_v44  ;;  %3002 = vst [vmem:[%s13729_s12 + $0x1568] sm:$0xff] %v3001_v45  ;;  %v3005_v47 = vld [vmem:[%s13724_s11 + $0x2af0] sm:$0xff] }
 0x171   : > { %3004 = vst [vmem:[%s13729_s12 + $0x1570] sm:$0xff] %v3003_v46  ;;  %v3007_v48 = vld [vmem:[%s13724_s11 + $0x2b00] sm:$0xff]  ;;  %v3009_v49 = vld [vmem:[%s13724_s11 + $0x2b10] sm:$0xff]  ;;  %3006 = vst [vmem:[%s13729_s12 + $0x1578] sm:$0xff] %v3005_v47 }
 0x172   : > { %3008 = vst [vmem:[%s13729_s12 + $0x1580] sm:$0xff] %v3007_v48  ;;  %3010 = vst [vmem:[%s13729_s12 + $0x1588] sm:$0xff] %v3009_v49  ;;  %v3011_v50 = vld [vmem:[%s13724_s11 + $0x2b20] sm:$0xff]  ;;  %v3013_v51 = vld [vmem:[%s13724_s11 + $0x2b30] sm:$0xff] }
 0x173   : > { %v3015_v52 = vld [vmem:[%s13724_s11 + $0x2b40] sm:$0xff]  ;;  %3012 = vst [vmem:[%s13729_s12 + $0x1590] sm:$0xff] %v3011_v50  ;;  %3014 = vst [vmem:[%s13729_s12 + $0x1598] sm:$0xff] %v3013_v51  ;;  %v3017_v53 = vld [vmem:[%s13724_s11 + $0x2b50] sm:$0xff] }
 0x174   : > { %3016 = vst [vmem:[%s13729_s12 + $0x15a0] sm:$0xff] %v3015_v52  ;;  %v3019_v54 = vld [vmem:[%s13724_s11 + $0x2b60] sm:$0xff]  ;;  %v3021_v55 = vld [vmem:[%s13724_s11 + $0x2b70] sm:$0xff]  ;;  %3018 = vst [vmem:[%s13729_s12 + $0x15a8] sm:$0xff] %v3017_v53 }
 0x175   : > { %3020 = vst [vmem:[%s13729_s12 + $0x15b0] sm:$0xff] %v3019_v54  ;;  %3022 = vst [vmem:[%s13729_s12 + $0x15b8] sm:$0xff] %v3021_v55  ;;  %v3023_v56 = vld [vmem:[%s13724_s11 + $0x2b80] sm:$0xff]  ;;  %v3025_v57 = vld [vmem:[%s13724_s11 + $0x2b90] sm:$0xff] }
 0x176   : > { %v3027_v58 = vld [vmem:[%s13724_s11 + $0x2ba0] sm:$0xff]  ;;  %3024 = vst [vmem:[%s13729_s12 + $0x15c0] sm:$0xff] %v3023_v56  ;;  %3026 = vst [vmem:[%s13729_s12 + $0x15c8] sm:$0xff] %v3025_v57  ;;  %v3029_v59 = vld [vmem:[%s13724_s11 + $0x2bb0] sm:$0xff] }
 0x177   : > { %3028 = vst [vmem:[%s13729_s12 + $0x15d0] sm:$0xff] %v3027_v58  ;;  %v3031_v60 = vld [vmem:[%s13724_s11 + $0x2bc0] sm:$0xff]  ;;  %v3033_v61 = vld [vmem:[%s13724_s11 + $0x2bd0] sm:$0xff]  ;;  %3030 = vst [vmem:[%s13729_s12 + $0x15d8] sm:$0xff] %v3029_v59 }
 0x178   : > { %3032 = vst [vmem:[%s13729_s12 + $0x15e0] sm:$0xff] %v3031_v60  ;;  %3034 = vst [vmem:[%s13729_s12 + $0x15e8] sm:$0xff] %v3033_v61  ;;  %v3035_v62 = vld [vmem:[%s13724_s11 + $0x2be0] sm:$0xff]  ;;  %v3037_v63 = vld [vmem:[%s13724_s11 + $0x2bf0] sm:$0xff] }
 0x179   : > { %3036 = vst [vmem:[%s13729_s12 + $0x15f0] sm:$0xff] %v3035_v62  ;;  %3038 = vst [vmem:[%s13729_s12 + $0x15f8] sm:$0xff] %v3037_v63 }
 0x17a PF: > { %p11608_p7 = scmp.ge.s32.totalorder %s13637_s21, 1  ;;  %p5912_p8 = scmp.lt.s32.totalorder %s13637_s21, 9 }
 0x17c   : > { %p5913_p9 = pnand %p11608_p7, %p5912_p8 }
 0x17d   : > { %s5919_s13 = sand.u32 (!%p5913_p9), 1, %s13613_s15   ;;  %s5957_s14 = smul.u32 (!%p5913_p9), 44, %s13621_s17 }
 0x17e   : > { %5916 = sbr.rel (%p5913_p9) target bundleno = 1564 (0x61c), region = 84  ;;  %s11610_s25 = sshll.u32 (!%p5913_p9), %s13625_s18, 1 }
 0x17f   : > { %s12406_s24 = smul.u32 (!%p5913_p9), 5632, %s5919_s13  ;;  %p5958_p10 = scmp.lt.s32.totalorder (!%p5913_p9), %s5957_s14, 175 }
 0x180   : > { %p5966_p11 = scmp.lt.s32.totalorder (!%p5913_p9), %s11610_s25, 3  ;;  %s11611_s26 = sshll.u32 (!%p5913_p9), %s13625_s18, 5 }
 0x181   : > { %p5971_p12 = scmp.lt.s32.totalorder (!%p5913_p9), %s11611_s26, 63  ;;  %p5976_p13 = scmp.lt.s32.totalorder (!%p5913_p9), %s13625_s18, 1 }
 0x182   : > { %p11614_p0 = scmp.ne.s32.totalorder (!%p5913_p9), %s13621_s17, 0 }
 0x185   : > { %s16110_s14 = smov (!%p5958_p10, %s5957_s14), 175  ;;  %s16112_s25 = smov (!%p5966_p11, %s11610_s25), 3 }
 0x186   : > { %s11609_s27 = sshll.u32 %s16110_s14, 2  ;;  %s5968_s15 = scalar_lea.vmem %s16094_s2, %s16112_s25  ;;  %v5987_v0 = vlaneseq (!%p11614_p0) }
 0x187   : > { %s15145_s5 = scalar_lea.vmem %s16092_s0, %s11609_s27  ;;  %s16114_s26 = smov (!%p5971_p12, %s11611_s26), 63  ;;  %v5985_v2 = vld [vmem:[%s5968_s15] sm:$0x3] (!%p11614_p0) }
 0x188   : > { %s11612_s8 = sshll.u32 %s16114_s26, 2  ;;  %s16116_s18 = smov (!%p5976_p13, %s13625_s18), 1  ;;  %v5988_v1 = vshrl.u32 (!%p11614_p0), %v5987_v0, 7 }
 0x189   : > { %s15154_s11 = scalar_lea.vmem %s16095_s3, %s11612_s8  ;;  %s11613_s12 = sshll.u32 %s16116_s18, 3 }
 0x18a   : > { %s15160_s29 = scalar_lea.vmem %s16096_s4, %s11613_s12  ;;  %s15162_s27 = scalar_lea.vmem [#allocation3], %s12406_s24  ;;  %v5989_v3 = vsub.s32 (!%p11614_p0), 0, %v5988_v1  ;;  %v5993_v4 = vsub.s32 (!%p11614_p0), 1, %v5988_v1 }
 0x18b   : > { %5984 = sbr.rel (%p11614_p0) target bundleno = 402 (0x192), region = 92 }
 0x18c   : > { %v5990_v5 = vrot.slane (!%p11614_p0), %v5985_v2, %v5989_v3  ;;  %v5994_v6 = vrot.slane (!%p11614_p0), %v5985_v2, %v5993_v4 }
 0x18e   : > { %5997 = vst [vmem:[#allocation2] sm:$0xff] (!%p11614_p0), %v5990_v5  ;;  %5998 = vst [vmem:[#allocation2 + $0x8] sm:$0xff] (!%p11614_p0), %v5994_v6 }
 0x192 PF: > { %v12463_v7 = vld [vmem:[%s15162_s27 + $0x4] ss:$8 sps:$4 sm:$0xff]   ;;  %v12467_v9 = vld [vmem:[%s15162_s27] ss:$8 sps:$4 sm:$0xff]   ;;  %v12469_v11 = vld [vmem:[%s15162_s27 + $0x14] ss:$8 sps:$4 sm:$0xff]  }
 0x193   : > { %v12465_v8 = vld [vmem:[%s15162_s27 + $0x104] ss:$8 sps:$4 sm:$0xff]   ;;  %10401 = vmatprep.subr.bf16.mxu0 %v12463_v7  ;;  %v12468_v10 = vld [vmem:[%s15162_s27 + $0x100] ss:$8 sps:$4 sm:$0xff]   ;;  %v12471_v12 = vld [vmem:[%s15162_s27 + $0x114] ss:$8 sps:$4 sm:$0xff]  }
 0x194   : > { %10442 = vmatprep.subr.bf16.mxu1 %v12465_v8  ;;  %10402 = vmatpush1.bf16.msra.mxu0 %v12467_v9  ;;  %v12473_v13 = vld [vmem:[%s15162_s27 + $0x10] ss:$8 sps:$4 sm:$0xff]   ;;  %v12475_v15 = vld [vmem:[%s15162_s27 + $0x24] ss:$8 sps:$4 sm:$0xff]   ;;  %v12479_v17 = vld [vmem:[%s15162_s27 + $0x20] ss:$8 sps:$4 sm:$0xff]  }
 0x195   : > { %10443 = vmatpush1.bf16.msra.mxu1 %v12468_v10  ;;  %10403 = vmatprep.subr.bf16.mxu0 %v12469_v11  ;;  %v12474_v14 = vld [vmem:[%s15162_s27 + $0x110] ss:$8 sps:$4 sm:$0xff]   ;;  %v12477_v16 = vld [vmem:[%s15162_s27 + $0x124] ss:$8 sps:$4 sm:$0xff]   ;;  %v12480_v18 = vld [vmem:[%s15162_s27 + $0x120] ss:$8 sps:$4 sm:$0xff]  }
 0x196   : > { %10444 = vmatprep.subr.bf16.mxu1 %v12471_v12  ;;  %v12481_v19 = vld [vmem:[%s15162_s27 + $0x34] ss:$8 sps:$4 sm:$0xff]   ;;  %v12485_v21 = vld [vmem:[%s15162_s27 + $0x30] ss:$8 sps:$4 sm:$0xff]   ;;  %v12487_v23 = vld [vmem:[%s15162_s27 + $0x44] ss:$8 sps:$4 sm:$0xff]  }
 0x197   : > { %v12483_v20 = vld [vmem:[%s15162_s27 + $0x134] ss:$8 sps:$4 sm:$0xff]   ;;  %v12486_v22 = vld [vmem:[%s15162_s27 + $0x130] ss:$8 sps:$4 sm:$0xff]   ;;  %v12489_v24 = vld [vmem:[%s15162_s27 + $0x144] ss:$8 sps:$4 sm:$0xff]  }
 0x198   : > { %10404 = vmatpush1.bf16.msra.mxu0 %v12473_v13  ;;  %v12491_v25 = vld [vmem:[%s15162_s27 + $0x40] ss:$8 sps:$4 sm:$0xff]   ;;  %v12493_v27 = vld [vmem:[%s15162_s27 + $0x54] ss:$8 sps:$4 sm:$0xff]   ;;  %v12497_v29 = vld [vmem:[%s15162_s27 + $0x50] ss:$8 sps:$4 sm:$0xff]  }
 0x199   : > { %10445 = vmatpush1.bf16.msra.mxu1 %v12474_v14  ;;  %10405 = vmatprep.subr.bf16.mxu0 %v12475_v15  ;;  %v12492_v26 = vld [vmem:[%s15162_s27 + $0x140] ss:$8 sps:$4 sm:$0xff]   ;;  %v12495_v28 = vld [vmem:[%s15162_s27 + $0x154] ss:$8 sps:$4 sm:$0xff]   ;;  %v12498_v30 = vld [vmem:[%s15162_s27 + $0x150] ss:$8 sps:$4 sm:$0xff]  }
 0x19a   : > { %10446 = vmatprep.subr.bf16.mxu1 %v12477_v16  ;;  %v12499_v31 = vld [vmem:[%s15162_s27 + $0x64] ss:$8 sps:$4 sm:$0xff]   ;;  %v12503_v33 = vld [vmem:[%s15162_s27 + $0x60] ss:$8 sps:$4 sm:$0xff]   ;;  %v12505_v35 = vld [vmem:[%s15162_s27 + $0x74] ss:$8 sps:$4 sm:$0xff]  }
 0x19b   : > { %v12501_v32 = vld [vmem:[%s15162_s27 + $0x164] ss:$8 sps:$4 sm:$0xff]   ;;  %v12504_v34 = vld [vmem:[%s15162_s27 + $0x160] ss:$8 sps:$4 sm:$0xff]   ;;  %v12507_v36 = vld [vmem:[%s15162_s27 + $0x174] ss:$8 sps:$4 sm:$0xff]  }
 0x19c   : > { %10406 = vmatpush1.bf16.msra.mxu0 %v12479_v17  ;;  %v12509_v37 = vld [vmem:[%s15162_s27 + $0x70] ss:$8 sps:$4 sm:$0xff]   ;;  %v12511_v39 = vld [vmem:[%s15162_s27 + $0x84] ss:$8 sps:$4 sm:$0xff]   ;;  %v12515_v41 = vld [vmem:[%s15162_s27 + $0x80] ss:$8 sps:$4 sm:$0xff]  }
 0x19d   : > { %10447 = vmatpush1.bf16.msra.mxu1 %v12480_v18  ;;  %10407 = vmatprep.subr.bf16.mxu0 %v12481_v19  ;;  %v12510_v38 = vld [vmem:[%s15162_s27 + $0x170] ss:$8 sps:$4 sm:$0xff]   ;;  %v12513_v40 = vld [vmem:[%s15162_s27 + $0x184] ss:$8 sps:$4 sm:$0xff]   ;;  %v12516_v42 = vld [vmem:[%s15162_s27 + $0x180] ss:$8 sps:$4 sm:$0xff]  }
 0x19e   : > { %10448 = vmatprep.subr.bf16.mxu1 %v12483_v20  ;;  %v12517_v43 = vld [vmem:[%s15162_s27 + $0x94] ss:$8 sps:$4 sm:$0xff]   ;;  %v12521_v45 = vld [vmem:[%s15162_s27 + $0x90] ss:$8 sps:$4 sm:$0xff]   ;;  %v12523_v47 = vld [vmem:[%s15162_s27 + $0xa4] ss:$8 sps:$4 sm:$0xff]  }
 0x19f   : > { %v12519_v44 = vld [vmem:[%s15162_s27 + $0x194] ss:$8 sps:$4 sm:$0xff]   ;;  %v12522_v46 = vld [vmem:[%s15162_s27 + $0x190] ss:$8 sps:$4 sm:$0xff]   ;;  %v12525_v48 = vld [vmem:[%s15162_s27 + $0x1a4] ss:$8 sps:$4 sm:$0xff]  }
 0x1a0   : > { %10408 = vmatpush1.bf16.msra.mxu0 %v12485_v21  ;;  %v12527_v49 = vld [vmem:[%s15162_s27 + $0xa0] ss:$8 sps:$4 sm:$0xff]   ;;  %v12529_v51 = vld [vmem:[%s15162_s27 + $0xb4] ss:$8 sps:$4 sm:$0xff]   ;;  %v12533_v56 = vld [vmem:[%s15162_s27 + $0xb0] ss:$8 sps:$4 sm:$0xff]  }
 0x1a1   : > { %10449 = vmatpush1.bf16.msra.mxu1 %v12486_v22  ;;  %10409 = vmatprep.subr.bf16.mxu0 %v12487_v23  ;;  %v12528_v50 = vld [vmem:[%s15162_s27 + $0x1a0] ss:$8 sps:$4 sm:$0xff]   ;;  %v12531_v52 = vld [vmem:[%s15162_s27 + $0x1b4] ss:$8 sps:$4 sm:$0xff]   ;;  %v12534_v57 = vld [vmem:[%s15162_s27 + $0x1b0] ss:$8 sps:$4 sm:$0xff]  }
 0x1a2   : > { %10450 = vmatprep.subr.bf16.mxu1 %v12489_v24  ;;  %v6001_v53 = vld [vmem:[%s15145_s5] sm:$0xff]  ;;  %v6002_v55 = vld [vmem:[%s15145_s5 + $0x8] sm:$0xff]  ;;  %v12535_v59 = vld [vmem:[%s15162_s27 + $0xc4] ss:$8 sps:$4 sm:$0xff]   ;;  %p12363_p1 = scmp.ne.s32.totalorder %s13621_s17, 3 }
 0x1a3   : > { %v11616_v54 = vcombine.high %v6001_v53, %v6001_v53  ;;  %v11618_v58 = vcombine.high %v6002_v55, %v6002_v55  ;;  %v12537_v60 = vld [vmem:[%s15162_s27 + $0x1c4] ss:$8 sps:$4 sm:$0xff]   ;;  %v12539_v61 = vld [vmem:[%s15162_s27 + $0xc0] ss:$8 sps:$4 sm:$0xff]   ;;  %v12541_v63 = vld [vmem:[%s15162_s27 + $0xd4] ss:$8 sps:$4 sm:$0xff]   ;;  %v11615_v13 = vcombine.low %v6001_v53, %v6001_v53  ;;  %v11617_v14 = vcombine.low %v6002_v55, %v6002_v55 }
 0x1a4   : > { %10410 = vmatpush1.bf16.msra.mxu0 %v12491_v25  ;;  %v12540_v62 = vld [vmem:[%s15162_s27 + $0x1c0] ss:$8 sps:$4 sm:$0xff]   ;;  %v12543_v0 = vld [vmem:[%s15162_s27 + $0x1d4] ss:$8 sps:$4 sm:$0xff]   ;;  %v12545_v1 = vld [vmem:[%s15162_s27 + $0xd0] ss:$8 sps:$4 sm:$0xff]  }
 0x1a5   : > { %10451 = vmatpush1.bf16.msra.mxu1 %v12492_v26  ;;  %10411 = vmatprep.subr.bf16.mxu0 %v12493_v27  ;;  %v12546_v2 = vld [vmem:[%s15162_s27 + $0x1d0] ss:$8 sps:$4 sm:$0xff]   ;;  %v12547_v3 = vld [vmem:[%s15162_s27 + $0xe4] ss:$8 sps:$4 sm:$0xff]   ;;  %v12551_v5 = vld [vmem:[%s15162_s27 + $0xe0] ss:$8 sps:$4 sm:$0xff]  }
 0x1a6   : > { %10452 = vmatprep.subr.bf16.mxu1 %v12495_v28  ;;  %10433 = vmatprep.mubr.bf16.mxu0 %v11616_v54  ;;  %v12549_v4 = vld [vmem:[%s15162_s27 + $0x1e4] ss:$8 sps:$4 sm:$0xff]   ;;  %v12552_v6 = vld [vmem:[%s15162_s27 + $0x1e0] ss:$8 sps:$4 sm:$0xff]   ;;  %v12553_v7 = vld [vmem:[%s15162_s27 + $0xf4] ss:$8 sps:$4 sm:$0xff]  }
 0x1a7   : > { %10474 = vmatprep.mubr.bf16.mxu1 %v11618_v58  ;;  %v12555_v8 = vld [vmem:[%s15162_s27 + $0x1f4] ss:$8 sps:$4 sm:$0xff]   ;;  %v12557_v9 = vld [vmem:[%s15162_s27 + $0xf0] ss:$8 sps:$4 sm:$0xff]   ;;  %v12565_v11 = vld [vmem:[%s15162_s27 + $0x204] ss:$8 sps:$4 sm:$0xff]  }
 0x1a8   : > { %10412 = vmatpush1.bf16.msra.mxu0 %v12497_v29  ;;  %v12558_v10 = vld [vmem:[%s15162_s27 + $0x1f0] ss:$8 sps:$4 sm:$0xff]   ;;  %v12568_v12 = vld [vmem:[%s15162_s27 + $0x304] ss:$8 sps:$4 sm:$0xff]   ;;  %v12563_v15 = vld [vmem:[%s15162_s27 + $0x200] ss:$8 sps:$4 sm:$0xff]  }
 0x1a9   : > { %10453 = vmatpush1.bf16.msra.mxu1 %v12498_v30  ;;  %10413 = vmatprep.subr.bf16.mxu0 %v12499_v31  ;;  %v12566_v16 = vld [vmem:[%s15162_s27 + $0x300] ss:$8 sps:$4 sm:$0xff]   ;;  %v12571_v17 = vld [vmem:[%s15162_s27 + $0x214] ss:$8 sps:$4 sm:$0xff]   ;;  %v12569_v19 = vld [vmem:[%s15162_s27 + $0x210] ss:$8 sps:$4 sm:$0xff]  }
 0x1aa   : > { %10454 = vmatprep.subr.bf16.mxu1 %v12501_v32  ;;  %v12574_v18 = vld [vmem:[%s15162_s27 + $0x314] ss:$8 sps:$4 sm:$0xff]   ;;  %v12572_v20 = vld [vmem:[%s15162_s27 + $0x310] ss:$8 sps:$4 sm:$0xff]   ;;  %v12577_v21 = vld [vmem:[%s15162_s27 + $0x224] ss:$8 sps:$4 sm:$0xff]  }
 0x1ab   : > { %v12580_v22 = vld [vmem:[%s15162_s27 + $0x324] ss:$8 sps:$4 sm:$0xff]   ;;  %v12575_v23 = vld [vmem:[%s15162_s27 + $0x220] ss:$8 sps:$4 sm:$0xff]   ;;  %v12583_v25 = vld [vmem:[%s15162_s27 + $0x234] ss:$8 sps:$4 sm:$0xff]  }
 0x1ac   : > { %10414 = vmatpush1.bf16.msra.mxu0 %v12503_v33  ;;  %v12578_v24 = vld [vmem:[%s15162_s27 + $0x320] ss:$8 sps:$4 sm:$0xff]   ;;  %v12586_v26 = vld [vmem:[%s15162_s27 + $0x334] ss:$8 sps:$4 sm:$0xff]   ;;  %v12581_v27 = vld [vmem:[%s15162_s27 + $0x230] ss:$8 sps:$4 sm:$0xff]  }
 0x1ad   : > { %10455 = vmatpush1.bf16.msra.mxu1 %v12504_v34  ;;  %10415 = vmatprep.subr.bf16.mxu0 %v12505_v35  ;;  %v12584_v28 = vld [vmem:[%s15162_s27 + $0x330] ss:$8 sps:$4 sm:$0xff]   ;;  %v12589_v29 = vld [vmem:[%s15162_s27 + $0x244] ss:$8 sps:$4 sm:$0xff]   ;;  %v12587_v31 = vld [vmem:[%s15162_s27 + $0x240] ss:$8 sps:$4 sm:$0xff]  }
 0x1ae   : > { %10456 = vmatprep.subr.bf16.mxu1 %v12507_v36  ;;  %v12592_v30 = vld [vmem:[%s15162_s27 + $0x344] ss:$8 sps:$4 sm:$0xff]   ;;  %v12590_v32 = vld [vmem:[%s15162_s27 + $0x340] ss:$8 sps:$4 sm:$0xff]   ;;  %v12595_v33 = vld [vmem:[%s15162_s27 + $0x254] ss:$8 sps:$4 sm:$0xff]  }
 0x1af   : > { %v12598_v34 = vld [vmem:[%s15162_s27 + $0x354] ss:$8 sps:$4 sm:$0xff]   ;;  %v12593_v35 = vld [vmem:[%s15162_s27 + $0x250] ss:$8 sps:$4 sm:$0xff]   ;;  %v12628_v58 = vld [vmem:[%s15162_s27 + $0x3a4] ss:$8 sps:$4 sm:$0xff]  }
 0x1b0   : > { %10416 = vmatpush1.bf16.msra.mxu0 %v12509_v37  ;;  %v12596_v36 = vld [vmem:[%s15162_s27 + $0x350] ss:$8 sps:$4 sm:$0xff]   ;;  %v12601_v37 = vld [vmem:[%s15162_s27 + $0x264] ss:$8 sps:$4 sm:$0xff]   ;;  %v12619_v53 = vld [vmem:[%s15162_s27 + $0x294] ss:$8 sps:$4 sm:$0xff]  }
 0x1b1   : > { %10457 = vmatpush1.bf16.msra.mxu1 %v12510_v38  ;;  %10417 = vmatprep.subr.bf16.mxu0 %v12511_v39  ;;  %v12604_v38 = vld [vmem:[%s15162_s27 + $0x364] ss:$8 sps:$4 sm:$0xff]   ;;  %v12622_v54 = vld [vmem:[%s15162_s27 + $0x394] ss:$8 sps:$4 sm:$0xff]   ;;  %v12617_v55 = vld [vmem:[%s15162_s27 + $0x290] ss:$8 sps:$4 sm:$0xff]  }
 0x1b2   : > { %10458 = vmatprep.subr.bf16.mxu1 %v12513_v40  ;;  %v15258_v39 = vld [vmem:[%s15145_s5 + $0x10] sm:$0xff]  ;;  %v15261_v40 = vld [vmem:[%s15145_s5 + $0x18] sm:$0xff] }
 0x1b4   : > { %10418 = vmatpush1.bf16.msra.mxu0 %v12515_v41  ;;  %v12599_v41 = vld [vmem:[%s15162_s27 + $0x260] ss:$8 sps:$4 sm:$0xff]  }
 0x1b5   : > { %10459 = vmatpush1.bf16.msra.mxu1 %v12516_v42  ;;  %10419 = vmatprep.subr.bf16.mxu0 %v12517_v43  ;;  %v12602_v42 = vld [vmem:[%s15162_s27 + $0x360] ss:$8 sps:$4 sm:$0xff]   ;;  %v11620_v43 = vcombine.high %v15258_v39, %v15258_v39 }
 0x1b6   : > { %10460 = vmatprep.subr.bf16.mxu1 %v12519_v44  ;;  %v11622_v44 = vcombine.high %v15261_v40, %v15261_v40 }
 0x1b8   : > { %10420 = vmatpush1.bf16.msra.mxu0 %v12521_v45  ;;  %v12607_v45 = vld [vmem:[%s15162_s27 + $0x274] ss:$8 sps:$4 sm:$0xff]  }
 0x1b9   : > { %10461 = vmatpush1.bf16.msra.mxu1 %v12522_v46  ;;  %10421 = vmatprep.subr.bf16.mxu0 %v12523_v47  ;;  %v12610_v46 = vld [vmem:[%s15162_s27 + $0x374] ss:$8 sps:$4 sm:$0xff]   ;;  %v12605_v47 = vld [vmem:[%s15162_s27 + $0x270] ss:$8 sps:$4 sm:$0xff]  }
 0x1ba   : > { %10462 = vmatprep.subr.bf16.mxu1 %v12525_v48  ;;  %v12608_v48 = vld [vmem:[%s15162_s27 + $0x370] ss:$8 sps:$4 sm:$0xff]  }
 0x1bc   : > { %10422 = vmatpush1.bf16.msra.mxu0 %v12527_v49  ;;  %v12613_v49 = vld [vmem:[%s15162_s27 + $0x284] ss:$8 sps:$4 sm:$0xff]  }
 0x1bd   : > { %10463 = vmatpush1.bf16.msra.mxu1 %v12528_v50  ;;  %10423 = vmatprep.subr.bf16.mxu0 %v12529_v51  ;;  %v12616_v50 = vld [vmem:[%s15162_s27 + $0x384] ss:$8 sps:$4 sm:$0xff]   ;;  %v12611_v51 = vld [vmem:[%s15162_s27 + $0x280] ss:$8 sps:$4 sm:$0xff]  }
 0x1be   : > { %10464 = vmatprep.subr.bf16.mxu1 %v12531_v52  ;;  %v12614_v52 = vld [vmem:[%s15162_s27 + $0x380] ss:$8 sps:$4 sm:$0xff]  }
 0x1c0   : > { %10424 = vmatpush1.bf16.msra.mxu0 %v12533_v56  ;;  %v12620_v56 = vld [vmem:[%s15162_s27 + $0x390] ss:$8 sps:$4 sm:$0xff]  }
 0x1c1   : > { %10465 = vmatpush1.bf16.msra.mxu1 %v12534_v57  ;;  %10425 = vmatprep.subr.bf16.mxu0 %v12535_v59  ;;  %v12625_v57 = vld [vmem:[%s15162_s27 + $0x2a4] ss:$8 sps:$4 sm:$0xff]   ;;  %v12623_v59 = vld [vmem:[%s15162_s27 + $0x2a0] ss:$8 sps:$4 sm:$0xff]  }
 0x1c2   : > { %10466 = vmatprep.subr.bf16.mxu1 %v12537_v60  ;;  %v12626_v60 = vld [vmem:[%s15162_s27 + $0x3a0] ss:$8 sps:$4 sm:$0xff]  }
 0x1c4   : > { %10426 = vmatpush1.bf16.msra.mxu0 %v12539_v61  ;;  %v12631_v61 = vld [vmem:[%s15162_s27 + $0x2b4] ss:$8 sps:$4 sm:$0xff]  }
 0x1c5   : > { %10467 = vmatpush1.bf16.msra.mxu1 %v12540_v62  ;;  %10427 = vmatprep.subr.bf16.mxu0 %v12541_v63  ;;  %v12634_v62 = vld [vmem:[%s15162_s27 + $0x3b4] ss:$8 sps:$4 sm:$0xff]   ;;  %v12629_v63 = vld [vmem:[%s15162_s27 + $0x2b0] ss:$8 sps:$4 sm:$0xff]  }
 0x1c6   : > { %10468 = vmatprep.subr.bf16.mxu1 %v12543_v0  ;;  %v12632_v0 = vld [vmem:[%s15162_s27 + $0x3b0] ss:$8 sps:$4 sm:$0xff]  }
 0x1c8   : > { %10428 = vmatpush1.bf16.msra.mxu0 %v12545_v1  ;;  %v12637_v1 = vld [vmem:[%s15162_s27 + $0x2c4] ss:$8 sps:$4 sm:$0xff]  }
 0x1c9   : > { %10469 = vmatpush1.bf16.msra.mxu1 %v12546_v2  ;;  %10429 = vmatprep.subr.bf16.mxu0 %v12547_v3  ;;  %v12640_v2 = vld [vmem:[%s15162_s27 + $0x3c4] ss:$8 sps:$4 sm:$0xff]   ;;  %v12635_v3 = vld [vmem:[%s15162_s27 + $0x2c0] ss:$8 sps:$4 sm:$0xff]  }
 0x1ca   : > { %10470 = vmatprep.subr.bf16.mxu1 %v12549_v4  ;;  %v12638_v4 = vld [vmem:[%s15162_s27 + $0x3c0] ss:$8 sps:$4 sm:$0xff]  }
 0x1cc   : > { %10430 = vmatpush1.bf16.msra.mxu0 %v12551_v5  ;;  %v12643_v5 = vld [vmem:[%s15162_s27 + $0x2d4] ss:$8 sps:$4 sm:$0xff]  }
 0x1cd   : > { %10471 = vmatpush1.bf16.msra.mxu1 %v12552_v6  ;;  %10431 = vmatprep.subr.bf16.mxu0 %v12553_v7  ;;  %v12646_v6 = vld [vmem:[%s15162_s27 + $0x3d4] ss:$8 sps:$4 sm:$0xff]   ;;  %v12641_v7 = vld [vmem:[%s15162_s27 + $0x2d0] ss:$8 sps:$4 sm:$0xff]  }
 0x1ce   : > { %10472 = vmatprep.subr.bf16.mxu1 %v12555_v8  ;;  %v12644_v8 = vld [vmem:[%s15162_s27 + $0x3d0] ss:$8 sps:$4 sm:$0xff]  }
 0x1d0   : > { %10432 = vmatpush1.bf16.msra.mxu0 %v12557_v9  ;;  %v12649_v9 = vld [vmem:[%s15162_s27 + $0x2e4] ss:$8 sps:$4 sm:$0xff]  }
 0x1d1   : > { %10473 = vmatpush1.bf16.msra.mxu1 %v12558_v10  ;;  %10483 = vmatprep.subr.bf16.mxu0 %v12565_v11  ;;  %v12652_v10 = vld [vmem:[%s15162_s27 + $0x3e4] ss:$8 sps:$4 sm:$0xff]   ;;  %v12647_v11 = vld [vmem:[%s15162_s27 + $0x2e0] ss:$8 sps:$4 sm:$0xff]  }
 0x1d2   : > { %10524 = vmatprep.subr.bf16.mxu1 %v12568_v12  ;;  %v12650_v12 = vld [vmem:[%s15162_s27 + $0x3e0] ss:$8 sps:$4 sm:$0xff]  }
 0x1d3   : > { %10434 = vmatmul.mubr.bf16.vlgmr.msra.gmra.mrb[0].mxu0 %v11615_v13  ;;  %v12655_v13 = vld [vmem:[%s15162_s27 + $0x2f4] ss:$8 sps:$4 sm:$0xff]  }
 0x1d4   : > { %10475 = vmatmul.mubr.bf16.vlgmr.msra.gmra.mrb[0].mxu1 %v11617_v14  ;;  %10484 = vmatpush1.bf16.msra.mxu0 %v12563_v15  ;;  %v12658_v14 = vld [vmem:[%s15162_s27 + $0x3f4] ss:$8 sps:$4 sm:$0xff]   ;;  %v12653_v15 = vld [vmem:[%s15162_s27 + $0x2f0] ss:$8 sps:$4 sm:$0xff]  }
 0x1d5   : > { %10525 = vmatpush1.bf16.msra.mxu1 %v12566_v16  ;;  %10485 = vmatprep.subr.bf16.mxu0 %v12571_v17  ;;  %v12656_v16 = vld [vmem:[%s15162_s27 + $0x3f0] ss:$8 sps:$4 sm:$0xff]   ;;  %v12665_v17 = vld [vmem:[%s15162_s27 + $0x404] ss:$8 sps:$4 sm:$0xff]  }
 0x1d6   : > { %10526 = vmatprep.subr.bf16.mxu1 %v12574_v18  ;;  %10515 = vmatprep.mubr.bf16.mxu0 %v11620_v43  ;;  %v12668_v18 = vld [vmem:[%s15162_s27 + $0x504] ss:$8 sps:$4 sm:$0xff]   ;;  %v12695_v43 = vld [vmem:[%s15162_s27 + $0x454] ss:$8 sps:$4 sm:$0xff]  }
 0x1d7   : > { %10556 = vmatprep.mubr.bf16.mxu1 %v11622_v44  ;;  %v12698_v44 = vld [vmem:[%s15162_s27 + $0x554] ss:$8 sps:$4 sm:$0xff]  }
 0x1d8   : > { %10486 = vmatpush1.bf16.msra.mxu0 %v12569_v19  ;;  %v11619_v19 = vcombine.low %v15258_v39, %v15258_v39  ;;  %v12689_v39 = vld [vmem:[%s15162_s27 + $0x444] ss:$8 sps:$4 sm:$0xff]  }
 0x1d9   : > { %10527 = vmatpush1.bf16.msra.mxu1 %v12572_v20  ;;  %10487 = vmatprep.subr.bf16.mxu0 %v12577_v21  ;;  %v11621_v20 = vcombine.low %v15261_v40, %v15261_v40  ;;  %v12663_v21 = vld [vmem:[%s15162_s27 + $0x400] ss:$8 sps:$4 sm:$0xff]   ;;  %v12692_v40 = vld [vmem:[%s15162_s27 + $0x544] ss:$8 sps:$4 sm:$0xff]  }
 0x1da   : > { %10528 = vmatprep.subr.bf16.mxu1 %v12580_v22  ;;  %v12666_v22 = vld [vmem:[%s15162_s27 + $0x500] ss:$8 sps:$4 sm:$0xff]  }
 0x1dc   : > { %10488 = vmatpush1.bf16.msra.mxu0 %v12575_v23  ;;  %v12671_v23 = vld [vmem:[%s15162_s27 + $0x414] ss:$8 sps:$4 sm:$0xff]  }
 0x1dd   : > { %10529 = vmatpush1.bf16.msra.mxu1 %v12578_v24  ;;  %10489 = vmatprep.subr.bf16.mxu0 %v12583_v25  ;;  %v12674_v24 = vld [vmem:[%s15162_s27 + $0x514] ss:$8 sps:$4 sm:$0xff]  }
 0x1de   : > { %10530 = vmatprep.subr.bf16.mxu1 %v12586_v26  ;;  %v15316_v25 = vld [vmem:[%s15145_s5 + $0x20] sm:$0xff]  ;;  %v15319_v26 = vld [vmem:[%s15145_s5 + $0x28] sm:$0xff] }
 0x1e0   : > { %10490 = vmatpush1.bf16.msra.mxu0 %v12581_v27  ;;  %v11624_v27 = vcombine.high %v15316_v25, %v15316_v25 }
 0x1e1   : > { %10531 = vmatpush1.bf16.msra.mxu1 %v12584_v28  ;;  %10491 = vmatprep.subr.bf16.mxu0 %v12589_v29  ;;  %v11626_v28 = vcombine.high %v15319_v26, %v15319_v26  ;;  %v12669_v29 = vld [vmem:[%s15162_s27 + $0x410] ss:$8 sps:$4 sm:$0xff]  }
 0x1e2   : > { %10532 = vmatprep.subr.bf16.mxu1 %v12592_v30  ;;  %v12672_v30 = vld [vmem:[%s15162_s27 + $0x510] ss:$8 sps:$4 sm:$0xff]  }
 0x1e4   : > { %10492 = vmatpush1.bf16.msra.mxu0 %v12587_v31  ;;  %v12677_v31 = vld [vmem:[%s15162_s27 + $0x424] ss:$8 sps:$4 sm:$0xff]  }
 0x1e5   : > { %10533 = vmatpush1.bf16.msra.mxu1 %v12590_v32  ;;  %10493 = vmatprep.subr.bf16.mxu0 %v12595_v33  ;;  %v12680_v32 = vld [vmem:[%s15162_s27 + $0x524] ss:$8 sps:$4 sm:$0xff]   ;;  %v12675_v33 = vld [vmem:[%s15162_s27 + $0x420] ss:$8 sps:$4 sm:$0xff]  }
 0x1e6   : > { %10534 = vmatprep.subr.bf16.mxu1 %v12598_v34  ;;  %v12678_v34 = vld [vmem:[%s15162_s27 + $0x520] ss:$8 sps:$4 sm:$0xff]  }
 0x1e8   : > { %10494 = vmatpush1.bf16.msra.mxu0 %v12593_v35  ;;  %v12683_v35 = vld [vmem:[%s15162_s27 + $0x434] ss:$8 sps:$4 sm:$0xff]  }
 0x1e9   : > { %10535 = vmatpush1.bf16.msra.mxu1 %v12596_v36  ;;  %10495 = vmatprep.subr.bf16.mxu0 %v12601_v37  ;;  %v12686_v36 = vld [vmem:[%s15162_s27 + $0x534] ss:$8 sps:$4 sm:$0xff]   ;;  %v12681_v37 = vld [vmem:[%s15162_s27 + $0x430] ss:$8 sps:$4 sm:$0xff]  }
 0x1ea   : > { %10536 = vmatprep.subr.bf16.mxu1 %v12604_v38  ;;  %v12684_v38 = vld [vmem:[%s15162_s27 + $0x530] ss:$8 sps:$4 sm:$0xff]  }
 0x1ec   : > { %10496 = vmatpush1.bf16.msra.mxu0 %v12599_v41  ;;  %v12687_v41 = vld [vmem:[%s15162_s27 + $0x440] ss:$8 sps:$4 sm:$0xff]  }
 0x1ed   : > { %10537 = vmatpush1.bf16.msra.mxu1 %v12602_v42  ;;  %10497 = vmatprep.subr.bf16.mxu0 %v12607_v45  ;;  %v12690_v42 = vld [vmem:[%s15162_s27 + $0x540] ss:$8 sps:$4 sm:$0xff]   ;;  %v12693_v45 = vld [vmem:[%s15162_s27 + $0x450] ss:$8 sps:$4 sm:$0xff]  }
 0x1ee   : > { %10538 = vmatprep.subr.bf16.mxu1 %v12610_v46  ;;  %v12696_v46 = vld [vmem:[%s15162_s27 + $0x550] ss:$8 sps:$4 sm:$0xff]  }
 0x1f0   : > { %10498 = vmatpush1.bf16.msra.mxu0 %v12605_v47  ;;  %v12701_v47 = vld [vmem:[%s15162_s27 + $0x464] ss:$8 sps:$4 sm:$0xff]  }
 0x1f1   : > { %10539 = vmatpush1.bf16.msra.mxu1 %v12608_v48  ;;  %10499 = vmatprep.subr.bf16.mxu0 %v12613_v49  ;;  %v12704_v48 = vld [vmem:[%s15162_s27 + $0x564] ss:$8 sps:$4 sm:$0xff]   ;;  %v12699_v49 = vld [vmem:[%s15162_s27 + $0x460] ss:$8 sps:$4 sm:$0xff]  }
 0x1f2   : > { %10540 = vmatprep.subr.bf16.mxu1 %v12616_v50  ;;  %v12702_v50 = vld [vmem:[%s15162_s27 + $0x560] ss:$8 sps:$4 sm:$0xff]  }
 0x1f4   : > { %10500 = vmatpush1.bf16.msra.mxu0 %v12611_v51  ;;  %v12707_v51 = vld [vmem:[%s15162_s27 + $0x474] ss:$8 sps:$4 sm:$0xff]  }
 0x1f5   : > { %10541 = vmatpush1.bf16.msra.mxu1 %v12614_v52  ;;  %10501 = vmatprep.subr.bf16.mxu0 %v12619_v53  ;;  %v12710_v52 = vld [vmem:[%s15162_s27 + $0x574] ss:$8 sps:$4 sm:$0xff]   ;;  %v12705_v53 = vld [vmem:[%s15162_s27 + $0x470] ss:$8 sps:$4 sm:$0xff]  }
 0x1f6   : > { %10542 = vmatprep.subr.bf16.mxu1 %v12622_v54  ;;  %v12708_v54 = vld [vmem:[%s15162_s27 + $0x570] ss:$8 sps:$4 sm:$0xff]  }
 0x1f8   : > { %10502 = vmatpush1.bf16.msra.mxu0 %v12617_v55  ;;  %v12713_v55 = vld [vmem:[%s15162_s27 + $0x484] ss:$8 sps:$4 sm:$0xff]  }
 0x1f9   : > { %10543 = vmatpush1.bf16.msra.mxu1 %v12620_v56  ;;  %10503 = vmatprep.subr.bf16.mxu0 %v12625_v57  ;;  %v12716_v56 = vld [vmem:[%s15162_s27 + $0x584] ss:$8 sps:$4 sm:$0xff]   ;;  %v12711_v57 = vld [vmem:[%s15162_s27 + $0x480] ss:$8 sps:$4 sm:$0xff]  }
 0x1fa   : > { %10544 = vmatprep.subr.bf16.mxu1 %v12628_v58  ;;  %v12714_v58 = vld [vmem:[%s15162_s27 + $0x580] ss:$8 sps:$4 sm:$0xff]  }
 0x1fc   : > { %10504 = vmatpush1.bf16.msra.mxu0 %v12623_v59  ;;  %v12719_v59 = vld [vmem:[%s15162_s27 + $0x494] ss:$8 sps:$4 sm:$0xff]  }
 0x1fd   : > { %10545 = vmatpush1.bf16.msra.mxu1 %v12626_v60  ;;  %10505 = vmatprep.subr.bf16.mxu0 %v12631_v61  ;;  %v12722_v60 = vld [vmem:[%s15162_s27 + $0x594] ss:$8 sps:$4 sm:$0xff]   ;;  %v12717_v61 = vld [vmem:[%s15162_s27 + $0x490] ss:$8 sps:$4 sm:$0xff]  }
 0x1fe   : > { %10546 = vmatprep.subr.bf16.mxu1 %v12634_v62  ;;  %v12720_v62 = vld [vmem:[%s15162_s27 + $0x590] ss:$8 sps:$4 sm:$0xff]  }
 0x200   : > { %10506 = vmatpush1.bf16.msra.mxu0 %v12629_v63  ;;  %v12725_v63 = vld [vmem:[%s15162_s27 + $0x4a4] ss:$8 sps:$4 sm:$0xff]  }
 0x201   : > { %10547 = vmatpush1.bf16.msra.mxu1 %v12632_v0  ;;  %10507 = vmatprep.subr.bf16.mxu0 %v12637_v1  ;;  %v12728_v0 = vld [vmem:[%s15162_s27 + $0x5a4] ss:$8 sps:$4 sm:$0xff]   ;;  %v12723_v1 = vld [vmem:[%s15162_s27 + $0x4a0] ss:$8 sps:$4 sm:$0xff]  }
 0x202   : > { %10548 = vmatprep.subr.bf16.mxu1 %v12640_v2  ;;  %v12726_v2 = vld [vmem:[%s15162_s27 + $0x5a0] ss:$8 sps:$4 sm:$0xff]  }
 0x204   : > { %10508 = vmatpush1.bf16.msra.mxu0 %v12635_v3  ;;  %v12731_v3 = vld [vmem:[%s15162_s27 + $0x4b4] ss:$8 sps:$4 sm:$0xff]  }
 0x205   : > { %10549 = vmatpush1.bf16.msra.mxu1 %v12638_v4  ;;  %10509 = vmatprep.subr.bf16.mxu0 %v12643_v5  ;;  %v12734_v4 = vld [vmem:[%s15162_s27 + $0x5b4] ss:$8 sps:$4 sm:$0xff]   ;;  %v12729_v5 = vld [vmem:[%s15162_s27 + $0x4b0] ss:$8 sps:$4 sm:$0xff]  }
 0x206   : > { %10550 = vmatprep.subr.bf16.mxu1 %v12646_v6  ;;  %v12732_v6 = vld [vmem:[%s15162_s27 + $0x5b0] ss:$8 sps:$4 sm:$0xff]  }
 0x208   : > { %10510 = vmatpush1.bf16.msra.mxu0 %v12641_v7  ;;  %v12737_v7 = vld [vmem:[%s15162_s27 + $0x4c4] ss:$8 sps:$4 sm:$0xff]  }
 0x209   : > { %10551 = vmatpush1.bf16.msra.mxu1 %v12644_v8  ;;  %10511 = vmatprep.subr.bf16.mxu0 %v12649_v9  ;;  %v12740_v8 = vld [vmem:[%s15162_s27 + $0x5c4] ss:$8 sps:$4 sm:$0xff]   ;;  %v12735_v9 = vld [vmem:[%s15162_s27 + $0x4c0] ss:$8 sps:$4 sm:$0xff]  }
 0x20a   : > { %10552 = vmatprep.subr.bf16.mxu1 %v12652_v10  ;;  %v12738_v10 = vld [vmem:[%s15162_s27 + $0x5c0] ss:$8 sps:$4 sm:$0xff]  }
 0x20c   : > { %10512 = vmatpush1.bf16.msra.mxu0 %v12647_v11  ;;  %v12743_v11 = vld [vmem:[%s15162_s27 + $0x4d4] ss:$8 sps:$4 sm:$0xff]  }
 0x20d   : > { %10553 = vmatpush1.bf16.msra.mxu1 %v12650_v12  ;;  %10513 = vmatprep.subr.bf16.mxu0 %v12655_v13  ;;  %v12746_v12 = vld [vmem:[%s15162_s27 + $0x5d4] ss:$8 sps:$4 sm:$0xff]   ;;  %v12741_v13 = vld [vmem:[%s15162_s27 + $0x4d0] ss:$8 sps:$4 sm:$0xff]  }
 0x20e   : > { %10554 = vmatprep.subr.bf16.mxu1 %v12658_v14  ;;  %v12744_v14 = vld [vmem:[%s15162_s27 + $0x5d0] ss:$8 sps:$4 sm:$0xff]  }
 0x210   : > { %10514 = vmatpush1.bf16.msra.mxu0 %v12653_v15  ;;  %v12749_v15 = vld [vmem:[%s15162_s27 + $0x4e4] ss:$8 sps:$4 sm:$0xff]  }
 0x211   : > { %10555 = vmatpush1.bf16.msra.mxu1 %v12656_v16  ;;  %10565 = vmatprep.subr.bf16.mxu0 %v12665_v17  ;;  %v12752_v16 = vld [vmem:[%s15162_s27 + $0x5e4] ss:$8 sps:$4 sm:$0xff]   ;;  %v12747_v17 = vld [vmem:[%s15162_s27 + $0x4e0] ss:$8 sps:$4 sm:$0xff]  }
 0x212   : > { %10606 = vmatprep.subr.bf16.mxu1 %v12668_v18  ;;  %v12750_v18 = vld [vmem:[%s15162_s27 + $0x5e0] ss:$8 sps:$4 sm:$0xff]  }
 0x213   : > { %10516 = vmatmul.mubr.bf16.vlgmr.msra.gmra.mrb[4].mxu0 %v11619_v19  ;;  %v12755_v19 = vld [vmem:[%s15162_s27 + $0x4f4] ss:$8 sps:$4 sm:$0xff]  }
 0x214   : > { %10557 = vmatmul.mubr.bf16.vlgmr.msra.gmra.mrb[4].mxu1 %v11621_v20  ;;  %10566 = vmatpush1.bf16.msra.mxu0 %v12663_v21  ;;  %v12758_v20 = vld [vmem:[%s15162_s27 + $0x5f4] ss:$8 sps:$4 sm:$0xff]   ;;  %v12753_v21 = vld [vmem:[%s15162_s27 + $0x4f0] ss:$8 sps:$4 sm:$0xff]  }
 0x215   : > { %10607 = vmatpush1.bf16.msra.mxu1 %v12666_v22  ;;  %10567 = vmatprep.subr.bf16.mxu0 %v12671_v23  ;;  %v12756_v22 = vld [vmem:[%s15162_s27 + $0x5f0] ss:$8 sps:$4 sm:$0xff]   ;;  %v12765_v23 = vld [vmem:[%s15162_s27 + $0x604] ss:$8 sps:$4 sm:$0xff]  }
 0x216   : > { %10608 = vmatprep.subr.bf16.mxu1 %v12674_v24  ;;  %10597 = vmatprep.mubr.bf16.mxu0 %v11624_v27  ;;  %v12768_v24 = vld [vmem:[%s15162_s27 + $0x704] ss:$8 sps:$4 sm:$0xff]   ;;  %v12763_v27 = vld [vmem:[%s15162_s27 + $0x600] ss:$8 sps:$4 sm:$0xff]  }
 0x217   : > { %10638 = vmatprep.mubr.bf16.mxu1 %v11626_v28  ;;  %v12766_v28 = vld [vmem:[%s15162_s27 + $0x700] ss:$8 sps:$4 sm:$0xff]  }
 0x218   : > { %10568 = vmatpush1.bf16.msra.mxu0 %v12669_v29  ;;  %v11623_v29 = vcombine.low %v15316_v25, %v15316_v25 }
 0x219   : > { %10609 = vmatpush1.bf16.msra.mxu1 %v12672_v30  ;;  %10569 = vmatprep.subr.bf16.mxu0 %v12677_v31  ;;  %v11625_v30 = vcombine.low %v15319_v26, %v15319_v26  ;;  %v15392_v31 = vld [vmem:[%s15145_s5 + $0x30] sm:$0xff] }
 0x21a   : > { %10610 = vmatprep.subr.bf16.mxu1 %v12680_v32  ;;  %v15395_v32 = vld [vmem:[%s15145_s5 + $0x38] sm:$0xff]  ;;  %v11628_v25 = vcombine.high %v15392_v31, %v15392_v31 }
 0x21b   : > { %v11630_v26 = vcombine.high %v15395_v32, %v15395_v32 }
 0x21c   : > { %10570 = vmatpush1.bf16.msra.mxu0 %v12675_v33  ;;  %v12771_v33 = vld [vmem:[%s15162_s27 + $0x614] ss:$8 sps:$4 sm:$0xff]  }
 0x21d   : > { %10611 = vmatpush1.bf16.msra.mxu1 %v12678_v34  ;;  %10571 = vmatprep.subr.bf16.mxu0 %v12683_v35  ;;  %v12774_v34 = vld [vmem:[%s15162_s27 + $0x714] ss:$8 sps:$4 sm:$0xff]   ;;  %v12769_v35 = vld [vmem:[%s15162_s27 + $0x610] ss:$8 sps:$4 sm:$0xff]  }
 0x21e   : > { %10612 = vmatprep.subr.bf16.mxu1 %v12686_v36  ;;  %v12772_v36 = vld [vmem:[%s15162_s27 + $0x710] ss:$8 sps:$4 sm:$0xff]  }
 0x220   : > { %10572 = vmatpush1.bf16.msra.mxu0 %v12681_v37  ;;  %v12777_v37 = vld [vmem:[%s15162_s27 + $0x624] ss:$8 sps:$4 sm:$0xff]  }
 0x221   : > { %10613 = vmatpush1.bf16.msra.mxu1 %v12684_v38  ;;  %10573 = vmatprep.subr.bf16.mxu0 %v12689_v39  ;;  %v12780_v38 = vld [vmem:[%s15162_s27 + $0x724] ss:$8 sps:$4 sm:$0xff]   ;;  %v12775_v39 = vld [vmem:[%s15162_s27 + $0x620] ss:$8 sps:$4 sm:$0xff]  }
 0x222   : > { %10614 = vmatprep.subr.bf16.mxu1 %v12692_v40  ;;  %v12778_v40 = vld [vmem:[%s15162_s27 + $0x720] ss:$8 sps:$4 sm:$0xff]  }
 0x224   : > { %10574 = vmatpush1.bf16.msra.mxu0 %v12687_v41  ;;  %v12783_v41 = vld [vmem:[%s15162_s27 + $0x634] ss:$8 sps:$4 sm:$0xff]  }
 0x225   : > { %10615 = vmatpush1.bf16.msra.mxu1 %v12690_v42  ;;  %10575 = vmatprep.subr.bf16.mxu0 %v12695_v43  ;;  %v12786_v42 = vld [vmem:[%s15162_s27 + $0x734] ss:$8 sps:$4 sm:$0xff]   ;;  %v12781_v43 = vld [vmem:[%s15162_s27 + $0x630] ss:$8 sps:$4 sm:$0xff]  }
 0x226   : > { %10616 = vmatprep.subr.bf16.mxu1 %v12698_v44  ;;  %v12784_v44 = vld [vmem:[%s15162_s27 + $0x730] ss:$8 sps:$4 sm:$0xff]  }
 0x228   : > { %10576 = vmatpush1.bf16.msra.mxu0 %v12693_v45  ;;  %v12789_v45 = vld [vmem:[%s15162_s27 + $0x644] ss:$8 sps:$4 sm:$0xff]  }
 0x229   : > { %10617 = vmatpush1.bf16.msra.mxu1 %v12696_v46  ;;  %10577 = vmatprep.subr.bf16.mxu0 %v12701_v47  ;;  %v12792_v46 = vld [vmem:[%s15162_s27 + $0x744] ss:$8 sps:$4 sm:$0xff]   ;;  %v12787_v47 = vld [vmem:[%s15162_s27 + $0x640] ss:$8 sps:$4 sm:$0xff]  }
 0x22a   : > { %10618 = vmatprep.subr.bf16.mxu1 %v12704_v48  ;;  %v12790_v48 = vld [vmem:[%s15162_s27 + $0x740] ss:$8 sps:$4 sm:$0xff]  }
 0x22c   : > { %10578 = vmatpush1.bf16.msra.mxu0 %v12699_v49  ;;  %v12795_v49 = vld [vmem:[%s15162_s27 + $0x654] ss:$8 sps:$4 sm:$0xff]  }
 0x22d   : > { %10619 = vmatpush1.bf16.msra.mxu1 %v12702_v50  ;;  %10579 = vmatprep.subr.bf16.mxu0 %v12707_v51  ;;  %v12798_v50 = vld [vmem:[%s15162_s27 + $0x754] ss:$8 sps:$4 sm:$0xff]   ;;  %v12793_v51 = vld [vmem:[%s15162_s27 + $0x650] ss:$8 sps:$4 sm:$0xff]  }
 0x22e   : > { %10620 = vmatprep.subr.bf16.mxu1 %v12710_v52  ;;  %v12796_v52 = vld [vmem:[%s15162_s27 + $0x750] ss:$8 sps:$4 sm:$0xff]  }
 0x230   : > { %10580 = vmatpush1.bf16.msra.mxu0 %v12705_v53  ;;  %v12801_v53 = vld [vmem:[%s15162_s27 + $0x664] ss:$8 sps:$4 sm:$0xff]  }
 0x231   : > { %10621 = vmatpush1.bf16.msra.mxu1 %v12708_v54  ;;  %10581 = vmatprep.subr.bf16.mxu0 %v12713_v55  ;;  %v12804_v54 = vld [vmem:[%s15162_s27 + $0x764] ss:$8 sps:$4 sm:$0xff]   ;;  %v12799_v55 = vld [vmem:[%s15162_s27 + $0x660] ss:$8 sps:$4 sm:$0xff]  }
 0x232   : > { %10622 = vmatprep.subr.bf16.mxu1 %v12716_v56  ;;  %v12802_v56 = vld [vmem:[%s15162_s27 + $0x760] ss:$8 sps:$4 sm:$0xff]  }
 0x234   : > { %10582 = vmatpush1.bf16.msra.mxu0 %v12711_v57  ;;  %v12807_v57 = vld [vmem:[%s15162_s27 + $0x674] ss:$8 sps:$4 sm:$0xff]  }
 0x235   : > { %10623 = vmatpush1.bf16.msra.mxu1 %v12714_v58  ;;  %10583 = vmatprep.subr.bf16.mxu0 %v12719_v59  ;;  %v12810_v58 = vld [vmem:[%s15162_s27 + $0x774] ss:$8 sps:$4 sm:$0xff]   ;;  %v12805_v59 = vld [vmem:[%s15162_s27 + $0x670] ss:$8 sps:$4 sm:$0xff]  }
 0x236   : > { %10624 = vmatprep.subr.bf16.mxu1 %v12722_v60  ;;  %v12808_v60 = vld [vmem:[%s15162_s27 + $0x770] ss:$8 sps:$4 sm:$0xff]  }
 0x238   : > { %10584 = vmatpush1.bf16.msra.mxu0 %v12717_v61  ;;  %v12813_v61 = vld [vmem:[%s15162_s27 + $0x684] ss:$8 sps:$4 sm:$0xff]  }
 0x239   : > { %10625 = vmatpush1.bf16.msra.mxu1 %v12720_v62  ;;  %10585 = vmatprep.subr.bf16.mxu0 %v12725_v63  ;;  %v12816_v62 = vld [vmem:[%s15162_s27 + $0x784] ss:$8 sps:$4 sm:$0xff]   ;;  %v12811_v63 = vld [vmem:[%s15162_s27 + $0x680] ss:$8 sps:$4 sm:$0xff]  }
 0x23a   : > { %10626 = vmatprep.subr.bf16.mxu1 %v12728_v0  ;;  %v12814_v0 = vld [vmem:[%s15162_s27 + $0x780] ss:$8 sps:$4 sm:$0xff]  }
 0x23c   : > { %10586 = vmatpush1.bf16.msra.mxu0 %v12723_v1  ;;  %v12819_v1 = vld [vmem:[%s15162_s27 + $0x694] ss:$8 sps:$4 sm:$0xff]  }
 0x23d   : > { %10627 = vmatpush1.bf16.msra.mxu1 %v12726_v2  ;;  %10587 = vmatprep.subr.bf16.mxu0 %v12731_v3  ;;  %v12822_v2 = vld [vmem:[%s15162_s27 + $0x794] ss:$8 sps:$4 sm:$0xff]   ;;  %v12817_v3 = vld [vmem:[%s15162_s27 + $0x690] ss:$8 sps:$4 sm:$0xff]  }
 0x23e   : > { %10628 = vmatprep.subr.bf16.mxu1 %v12734_v4  ;;  %v12820_v4 = vld [vmem:[%s15162_s27 + $0x790] ss:$8 sps:$4 sm:$0xff]  }
 0x240   : > { %10588 = vmatpush1.bf16.msra.mxu0 %v12729_v5  ;;  %v12825_v5 = vld [vmem:[%s15162_s27 + $0x6a4] ss:$8 sps:$4 sm:$0xff]  }
 0x241   : > { %10629 = vmatpush1.bf16.msra.mxu1 %v12732_v6  ;;  %10589 = vmatprep.subr.bf16.mxu0 %v12737_v7  ;;  %v12828_v6 = vld [vmem:[%s15162_s27 + $0x7a4] ss:$8 sps:$4 sm:$0xff]   ;;  %v12823_v7 = vld [vmem:[%s15162_s27 + $0x6a0] ss:$8 sps:$4 sm:$0xff]  }
 0x242   : > { %10630 = vmatprep.subr.bf16.mxu1 %v12740_v8  ;;  %v12826_v8 = vld [vmem:[%s15162_s27 + $0x7a0] ss:$8 sps:$4 sm:$0xff]  }
 0x244   : > { %10590 = vmatpush1.bf16.msra.mxu0 %v12735_v9  ;;  %v12831_v9 = vld [vmem:[%s15162_s27 + $0x6b4] ss:$8 sps:$4 sm:$0xff]  }
 0x245   : > { %10631 = vmatpush1.bf16.msra.mxu1 %v12738_v10  ;;  %10591 = vmatprep.subr.bf16.mxu0 %v12743_v11  ;;  %v12834_v10 = vld [vmem:[%s15162_s27 + $0x7b4] ss:$8 sps:$4 sm:$0xff]   ;;  %v12829_v11 = vld [vmem:[%s15162_s27 + $0x6b0] ss:$8 sps:$4 sm:$0xff]  }
 0x246   : > { %10632 = vmatprep.subr.bf16.mxu1 %v12746_v12  ;;  %v12832_v12 = vld [vmem:[%s15162_s27 + $0x7b0] ss:$8 sps:$4 sm:$0xff]  }
 0x248   : > { %10592 = vmatpush1.bf16.msra.mxu0 %v12741_v13  ;;  %v12837_v13 = vld [vmem:[%s15162_s27 + $0x6c4] ss:$8 sps:$4 sm:$0xff]  }
 0x249   : > { %10633 = vmatpush1.bf16.msra.mxu1 %v12744_v14  ;;  %10593 = vmatprep.subr.bf16.mxu0 %v12749_v15  ;;  %v12840_v14 = vld [vmem:[%s15162_s27 + $0x7c4] ss:$8 sps:$4 sm:$0xff]   ;;  %v12835_v15 = vld [vmem:[%s15162_s27 + $0x6c0] ss:$8 sps:$4 sm:$0xff]  }
 0x24a   : > { %10634 = vmatprep.subr.bf16.mxu1 %v12752_v16  ;;  %v12838_v16 = vld [vmem:[%s15162_s27 + $0x7c0] ss:$8 sps:$4 sm:$0xff]  }
 0x24c   : > { %10594 = vmatpush1.bf16.msra.mxu0 %v12747_v17  ;;  %v12843_v17 = vld [vmem:[%s15162_s27 + $0x6d4] ss:$8 sps:$4 sm:$0xff]  }
 0x24d   : > { %10635 = vmatpush1.bf16.msra.mxu1 %v12750_v18  ;;  %10595 = vmatprep.subr.bf16.mxu0 %v12755_v19  ;;  %v12846_v18 = vld [vmem:[%s15162_s27 + $0x7d4] ss:$8 sps:$4 sm:$0xff]   ;;  %v12841_v19 = vld [vmem:[%s15162_s27 + $0x6d0] ss:$8 sps:$4 sm:$0xff]  }
 0x24e   : > { %10636 = vmatprep.subr.bf16.mxu1 %v12758_v20  ;;  %v12844_v20 = vld [vmem:[%s15162_s27 + $0x7d0] ss:$8 sps:$4 sm:$0xff]  }
 0x250   : > { %10596 = vmatpush1.bf16.msra.mxu0 %v12753_v21  ;;  %v12849_v21 = vld [vmem:[%s15162_s27 + $0x6e4] ss:$8 sps:$4 sm:$0xff]  }
 0x251   : > { %10637 = vmatpush1.bf16.msra.mxu1 %v12756_v22  ;;  %10647 = vmatprep.subr.bf16.mxu0 %v12765_v23  ;;  %v12852_v22 = vld [vmem:[%s15162_s27 + $0x7e4] ss:$8 sps:$4 sm:$0xff]   ;;  %v12847_v23 = vld [vmem:[%s15162_s27 + $0x6e0] ss:$8 sps:$4 sm:$0xff]  }
 0x252   : > { %10688 = vmatprep.subr.bf16.mxu1 %v12768_v24  ;;  %v12850_v24 = vld [vmem:[%s15162_s27 + $0x7e0] ss:$8 sps:$4 sm:$0xff]  }
 0x253   : > { %10598 = vmatmul.mubr.bf16.vlgmr.msra.gmra.mrb[8].mxu0 %v11623_v29  ;;  %v12853_v29 = vld [vmem:[%s15162_s27 + $0x6f0] ss:$8 sps:$4 sm:$0xff]  }
 0x254   : > { %10639 = vmatmul.mubr.bf16.vlgmr.msra.gmra.mrb[8].mxu1 %v11625_v30  ;;  %10648 = vmatpush1.bf16.msra.mxu0 %v12763_v27  ;;  %v12855_v27 = vld [vmem:[%s15162_s27 + $0x6f4] ss:$8 sps:$4 sm:$0xff]   ;;  %v12856_v30 = vld [vmem:[%s15162_s27 + $0x7f0] ss:$8 sps:$4 sm:$0xff]  }
 0x255   : > { %10689 = vmatpush1.bf16.msra.mxu1 %v12766_v28  ;;  %10649 = vmatprep.subr.bf16.mxu0 %v12771_v33  ;;  %v12858_v28 = vld [vmem:[%s15162_s27 + $0x7f4] ss:$8 sps:$4 sm:$0xff]   ;;  %v12865_v33 = vld [vmem:[%s15162_s27 + $0x804] ss:$8 sps:$4 sm:$0xff]  }
 0x256   : > { %10690 = vmatprep.subr.bf16.mxu1 %v12774_v34  ;;  %10679 = vmatprep.mubr.bf16.mxu0 %v11628_v25  ;;  %v12868_v34 = vld [vmem:[%s15162_s27 + $0x904] ss:$8 sps:$4 sm:$0xff]   ;;  %v15464_v25 = vld [vmem:[%s15145_s5 + $0x40] sm:$0xff] }
 0x257   : > { %10720 = vmatprep.mubr.bf16.mxu1 %v11630_v26  ;;  %v11627_v26 = vcombine.low %v15392_v31, %v15392_v31  ;;  %v11632_v31 = vcombine.high %v15464_v25, %v15464_v25 }
 0x258   : > { %10650 = vmatpush1.bf16.msra.mxu0 %v12769_v35  ;;  %v11629_v35 = vcombine.low %v15395_v32, %v15395_v32 }
 0x259   : > { %10691 = vmatpush1.bf16.msra.mxu1 %v12772_v36  ;;  %10651 = vmatprep.subr.bf16.mxu0 %v12777_v37  ;;  %v15471_v36 = vld [vmem:[%s15145_s5 + $0x48] sm:$0xff]  ;;  %v12863_v37 = vld [vmem:[%s15162_s27 + $0x800] ss:$8 sps:$4 sm:$0xff]  }
 0x25a   : > { %10692 = vmatprep.subr.bf16.mxu1 %v12780_v38  ;;  %v12866_v38 = vld [vmem:[%s15162_s27 + $0x900] ss:$8 sps:$4 sm:$0xff]   ;;  %v11634_v32 = vcombine.high %v15471_v36, %v15471_v36 }
 0x25c   : > { %10652 = vmatpush1.bf16.msra.mxu0 %v12775_v39  ;;  %v12871_v39 = vld [vmem:[%s15162_s27 + $0x814] ss:$8 sps:$4 sm:$0xff]  }
 0x25d   : > { %10693 = vmatpush1.bf16.msra.mxu1 %v12778_v40  ;;  %10653 = vmatprep.subr.bf16.mxu0 %v12783_v41  ;;  %v12874_v40 = vld [vmem:[%s15162_s27 + $0x914] ss:$8 sps:$4 sm:$0xff]   ;;  %v12869_v41 = vld [vmem:[%s15162_s27 + $0x810] ss:$8 sps:$4 sm:$0xff]  }
 0x25e   : > { %10694 = vmatprep.subr.bf16.mxu1 %v12786_v42  ;;  %v12872_v42 = vld [vmem:[%s15162_s27 + $0x910] ss:$8 sps:$4 sm:$0xff]  }
 0x260   : > { %10654 = vmatpush1.bf16.msra.mxu0 %v12781_v43  ;;  %v12877_v43 = vld [vmem:[%s15162_s27 + $0x824] ss:$8 sps:$4 sm:$0xff]  }
 0x261   : > { %10695 = vmatpush1.bf16.msra.mxu1 %v12784_v44  ;;  %10655 = vmatprep.subr.bf16.mxu0 %v12789_v45  ;;  %v12880_v44 = vld [vmem:[%s15162_s27 + $0x924] ss:$8 sps:$4 sm:$0xff]   ;;  %v12875_v45 = vld [vmem:[%s15162_s27 + $0x820] ss:$8 sps:$4 sm:$0xff]  }
 0x262   : > { %10696 = vmatprep.subr.bf16.mxu1 %v12792_v46  ;;  %v12878_v46 = vld [vmem:[%s15162_s27 + $0x920] ss:$8 sps:$4 sm:$0xff]  }
 0x264   : > { %10656 = vmatpush1.bf16.msra.mxu0 %v12787_v47  ;;  %v12883_v47 = vld [vmem:[%s15162_s27 + $0x834] ss:$8 sps:$4 sm:$0xff]  }
 0x265   : > { %10697 = vmatpush1.bf16.msra.mxu1 %v12790_v48  ;;  %10657 = vmatprep.subr.bf16.mxu0 %v12795_v49  ;;  %v12886_v48 = vld [vmem:[%s15162_s27 + $0x934] ss:$8 sps:$4 sm:$0xff]   ;;  %v12881_v49 = vld [vmem:[%s15162_s27 + $0x830] ss:$8 sps:$4 sm:$0xff]  }
 0x266   : > { %10698 = vmatprep.subr.bf16.mxu1 %v12798_v50  ;;  %v12884_v50 = vld [vmem:[%s15162_s27 + $0x930] ss:$8 sps:$4 sm:$0xff]  }
 0x268   : > { %10658 = vmatpush1.bf16.msra.mxu0 %v12793_v51  ;;  %v12889_v51 = vld [vmem:[%s15162_s27 + $0x844] ss:$8 sps:$4 sm:$0xff]  }
 0x269   : > { %10699 = vmatpush1.bf16.msra.mxu1 %v12796_v52  ;;  %10659 = vmatprep.subr.bf16.mxu0 %v12801_v53  ;;  %v12892_v52 = vld [vmem:[%s15162_s27 + $0x944] ss:$8 sps:$4 sm:$0xff]   ;;  %v12887_v53 = vld [vmem:[%s15162_s27 + $0x840] ss:$8 sps:$4 sm:$0xff]  }
 0x26a   : > { %10700 = vmatprep.subr.bf16.mxu1 %v12804_v54  ;;  %v12890_v54 = vld [vmem:[%s15162_s27 + $0x940] ss:$8 sps:$4 sm:$0xff]  }
 0x26c   : > { %10660 = vmatpush1.bf16.msra.mxu0 %v12799_v55  ;;  %v12895_v55 = vld [vmem:[%s15162_s27 + $0x854] ss:$8 sps:$4 sm:$0xff]  }
 0x26d   : > { %10701 = vmatpush1.bf16.msra.mxu1 %v12802_v56  ;;  %10661 = vmatprep.subr.bf16.mxu0 %v12807_v57  ;;  %v12898_v56 = vld [vmem:[%s15162_s27 + $0x954] ss:$8 sps:$4 sm:$0xff]   ;;  %v12893_v57 = vld [vmem:[%s15162_s27 + $0x850] ss:$8 sps:$4 sm:$0xff]  }
 0x26e   : > { %10702 = vmatprep.subr.bf16.mxu1 %v12810_v58  ;;  %v12896_v58 = vld [vmem:[%s15162_s27 + $0x950] ss:$8 sps:$4 sm:$0xff]  }
 0x270   : > { %10662 = vmatpush1.bf16.msra.mxu0 %v12805_v59  ;;  %v12901_v59 = vld [vmem:[%s15162_s27 + $0x864] ss:$8 sps:$4 sm:$0xff]  }
 0x271   : > { %10703 = vmatpush1.bf16.msra.mxu1 %v12808_v60  ;;  %10663 = vmatprep.subr.bf16.mxu0 %v12813_v61  ;;  %v12904_v60 = vld [vmem:[%s15162_s27 + $0x964] ss:$8 sps:$4 sm:$0xff]  }
 0x272   : > { %10704 = vmatprep.subr.bf16.mxu1 %v12816_v62 }
 0x274   : > { %10664 = vmatpush1.bf16.msra.mxu0 %v12811_v63  ;;  %v12899_v63 = vld [vmem:[%s15162_s27 + $0x860] ss:$8 sps:$4 sm:$0xff]  }
 0x275   : > { %10705 = vmatpush1.bf16.msra.mxu1 %v12814_v0  ;;  %10665 = vmatprep.subr.bf16.mxu0 %v12819_v1  ;;  %v12902_v0 = vld [vmem:[%s15162_s27 + $0x960] ss:$8 sps:$4 sm:$0xff]  }
 0x276   : > { %10706 = vmatprep.subr.bf16.mxu1 %v12822_v2 }
 0x278   : > { %10666 = vmatpush1.bf16.msra.mxu0 %v12817_v3 }
 0x279   : > { %10707 = vmatpush1.bf16.msra.mxu1 %v12820_v4  ;;  %10667 = vmatprep.subr.bf16.mxu0 %v12825_v5 }
 0x27a   : > { %10708 = vmatprep.subr.bf16.mxu1 %v12828_v6 }
 0x27c   : > { %10668 = vmatpush1.bf16.msra.mxu0 %v12823_v7 }
 0x27d   : > { %10709 = vmatpush1.bf16.msra.mxu1 %v12826_v8  ;;  %10669 = vmatprep.subr.bf16.mxu0 %v12831_v9  ;;  %v12907_v9 = vld [vmem:[%s15162_s27 + $0x874] ss:$8 sps:$4 sm:$0xff]  }
 0x27e   : > { %10710 = vmatprep.subr.bf16.mxu1 %v12834_v10  ;;  %v12910_v10 = vld [vmem:[%s15162_s27 + $0x974] ss:$8 sps:$4 sm:$0xff]  }
 0x280   : > { %10670 = vmatpush1.bf16.msra.mxu0 %v12829_v11  ;;  %v12905_v11 = vld [vmem:[%s15162_s27 + $0x870] ss:$8 sps:$4 sm:$0xff]  }
 0x281   : > { %10711 = vmatpush1.bf16.msra.mxu1 %v12832_v12  ;;  %10671 = vmatprep.subr.bf16.mxu0 %v12837_v13  ;;  %v12908_v12 = vld [vmem:[%s15162_s27 + $0x970] ss:$8 sps:$4 sm:$0xff]   ;;  %v12913_v13 = vld [vmem:[%s15162_s27 + $0x884] ss:$8 sps:$4 sm:$0xff]  }
 0x282   : > { %10712 = vmatprep.subr.bf16.mxu1 %v12840_v14  ;;  %v12916_v14 = vld [vmem:[%s15162_s27 + $0x984] ss:$8 sps:$4 sm:$0xff]  }
 0x284   : > { %10672 = vmatpush1.bf16.msra.mxu0 %v12835_v15  ;;  %v12911_v15 = vld [vmem:[%s15162_s27 + $0x880] ss:$8 sps:$4 sm:$0xff]  }
 0x285   : > { %10713 = vmatpush1.bf16.msra.mxu1 %v12838_v16  ;;  %10673 = vmatprep.subr.bf16.mxu0 %v12843_v17  ;;  %v12914_v16 = vld [vmem:[%s15162_s27 + $0x980] ss:$8 sps:$4 sm:$0xff]   ;;  %v12919_v17 = vld [vmem:[%s15162_s27 + $0x894] ss:$8 sps:$4 sm:$0xff]  }
 0x286   : > { %10714 = vmatprep.subr.bf16.mxu1 %v12846_v18  ;;  %v12922_v18 = vld [vmem:[%s15162_s27 + $0x994] ss:$8 sps:$4 sm:$0xff]  }
 0x288   : > { %10674 = vmatpush1.bf16.msra.mxu0 %v12841_v19  ;;  %v12917_v19 = vld [vmem:[%s15162_s27 + $0x890] ss:$8 sps:$4 sm:$0xff]  }
 0x289   : > { %10715 = vmatpush1.bf16.msra.mxu1 %v12844_v20  ;;  %10675 = vmatprep.subr.bf16.mxu0 %v12849_v21  ;;  %v12920_v20 = vld [vmem:[%s15162_s27 + $0x990] ss:$8 sps:$4 sm:$0xff]   ;;  %v12925_v21 = vld [vmem:[%s15162_s27 + $0x8a4] ss:$8 sps:$4 sm:$0xff]  }
 0x28a   : > { %10716 = vmatprep.subr.bf16.mxu1 %v12852_v22  ;;  %v12928_v22 = vld [vmem:[%s15162_s27 + $0x9a4] ss:$8 sps:$4 sm:$0xff]  }
 0x28c   : > { %10676 = vmatpush1.bf16.msra.mxu0 %v12847_v23  ;;  %v12923_v23 = vld [vmem:[%s15162_s27 + $0x8a0] ss:$8 sps:$4 sm:$0xff]  }
 0x28d   : > { %10717 = vmatpush1.bf16.msra.mxu1 %v12850_v24  ;;  %10677 = vmatprep.subr.bf16.mxu0 %v12855_v27  ;;  %v12926_v24 = vld [vmem:[%s15162_s27 + $0x9a0] ss:$8 sps:$4 sm:$0xff]   ;;  %v12931_v27 = vld [vmem:[%s15162_s27 + $0x8b4] ss:$8 sps:$4 sm:$0xff]  }
 0x28e   : > { %10718 = vmatprep.subr.bf16.mxu1 %v12858_v28  ;;  %v12934_v28 = vld [vmem:[%s15162_s27 + $0x9b4] ss:$8 sps:$4 sm:$0xff]  }
 0x290   : > { %10678 = vmatpush1.bf16.msra.mxu0 %v12853_v29  ;;  %v12929_v29 = vld [vmem:[%s15162_s27 + $0x8b0] ss:$8 sps:$4 sm:$0xff]  }
 0x291   : > { %10719 = vmatpush1.bf16.msra.mxu1 %v12856_v30  ;;  %10729 = vmatprep.subr.bf16.mxu0 %v12865_v33  ;;  %v12932_v30 = vld [vmem:[%s15162_s27 + $0x9b0] ss:$8 sps:$4 sm:$0xff]   ;;  %v12937_v33 = vld [vmem:[%s15162_s27 + $0x8c4] ss:$8 sps:$4 sm:$0xff]  }
 0x292   : > { %10770 = vmatprep.subr.bf16.mxu1 %v12868_v34  ;;  %v12940_v34 = vld [vmem:[%s15162_s27 + $0x9c4] ss:$8 sps:$4 sm:$0xff]  }
 0x293   : > { %10680 = vmatmul.mubr.bf16.vlgmr.msra.gmra.mrb[12].mxu0 %v11627_v26  ;;  %v12935_v26 = vld [vmem:[%s15162_s27 + $0x8c0] ss:$8 sps:$4 sm:$0xff]  }
 0x294   : > { %10721 = vmatmul.mubr.bf16.vlgmr.msra.gmra.mrb[12].mxu1 %v11629_v35  ;;  %10730 = vmatpush1.bf16.msra.mxu0 %v12863_v37  ;;  %v12938_v35 = vld [vmem:[%s15162_s27 + $0x9c0] ss:$8 sps:$4 sm:$0xff]   ;;  %v12943_v37 = vld [vmem:[%s15162_s27 + $0x8d4] ss:$8 sps:$4 sm:$0xff]  }
 0x295   : > { %10771 = vmatpush1.bf16.msra.mxu1 %v12866_v38  ;;  %10731 = vmatprep.subr.bf16.mxu0 %v12871_v39  ;;  %v12946_v38 = vld [vmem:[%s15162_s27 + $0x9d4] ss:$8 sps:$4 sm:$0xff]   ;;  %v12941_v39 = vld [vmem:[%s15162_s27 + $0x8d0] ss:$8 sps:$4 sm:$0xff]  }
 0x296   : > { %10772 = vmatprep.subr.bf16.mxu1 %v12874_v40  ;;  %10761 = vmatprep.mubr.bf16.mxu0 %v11632_v31  ;;  %v12944_v40 = vld [vmem:[%s15162_s27 + $0x9d0] ss:$8 sps:$4 sm:$0xff]   ;;  %v12949_v31 = vld [vmem:[%s15162_s27 + $0x8e4] ss:$8 sps:$4 sm:$0xff]  }
 0x297   : > { %10802 = vmatprep.mubr.bf16.mxu1 %v11634_v32  ;;  %v12952_v32 = vld [vmem:[%s15162_s27 + $0x9e4] ss:$8 sps:$4 sm:$0xff]  }
 0x298   : > { %10732 = vmatpush1.bf16.msra.mxu0 %v12869_v41  ;;  %v12947_v41 = vld [vmem:[%s15162_s27 + $0x8e0] ss:$8 sps:$4 sm:$0xff]  }
 0x299   : > { %10773 = vmatpush1.bf16.msra.mxu1 %v12872_v42  ;;  %10733 = vmatprep.subr.bf16.mxu0 %v12877_v43  ;;  %v12950_v42 = vld [vmem:[%s15162_s27 + $0x9e0] ss:$8 sps:$4 sm:$0xff]   ;;  %v12955_v43 = vld [vmem:[%s15162_s27 + $0x8f4] ss:$8 sps:$4 sm:$0xff]  }
 0x29a   : > { %10774 = vmatprep.subr.bf16.mxu1 %v12880_v44  ;;  %v12958_v44 = vld [vmem:[%s15162_s27 + $0x9f4] ss:$8 sps:$4 sm:$0xff]  }
 0x29c   : > { %10734 = vmatpush1.bf16.msra.mxu0 %v12875_v45  ;;  %v12953_v45 = vld [vmem:[%s15162_s27 + $0x8f0] ss:$8 sps:$4 sm:$0xff]  }
 0x29d   : > { %10775 = vmatpush1.bf16.msra.mxu1 %v12878_v46  ;;  %10735 = vmatprep.subr.bf16.mxu0 %v12883_v47  ;;  %v12956_v46 = vld [vmem:[%s15162_s27 + $0x9f0] ss:$8 sps:$4 sm:$0xff]   ;;  %v12965_v47 = vld [vmem:[%s15162_s27 + $0xa04] ss:$8 sps:$4 sm:$0xff]  }
 0x29e   : > { %10776 = vmatprep.subr.bf16.mxu1 %v12886_v48  ;;  %v12968_v48 = vld [vmem:[%s15162_s27 + $0xb04] ss:$8 sps:$4 sm:$0xff]  }
 0x2a0   : > { %10736 = vmatpush1.bf16.msra.mxu0 %v12881_v49  ;;  %v12963_v49 = vld [vmem:[%s15162_s27 + $0xa00] ss:$8 sps:$4 sm:$0xff]  }
 0x2a1   : > { %10777 = vmatpush1.bf16.msra.mxu1 %v12884_v50  ;;  %10737 = vmatprep.subr.bf16.mxu0 %v12889_v51  ;;  %v12966_v50 = vld [vmem:[%s15162_s27 + $0xb00] ss:$8 sps:$4 sm:$0xff]   ;;  %v11631_v51 = vcombine.low %v15464_v25, %v15464_v25 }
 0x2a2   : > { %10778 = vmatprep.subr.bf16.mxu1 %v12892_v52  ;;  %v11633_v52 = vcombine.low %v15471_v36, %v15471_v36 }
 0x2a4   : > { %10738 = vmatpush1.bf16.msra.mxu0 %v12887_v53  ;;  %v15552_v53 = vld [vmem:[%s15145_s5 + $0x50] sm:$0xff] }
 0x2a5   : > { %10779 = vmatpush1.bf16.msra.mxu1 %v12890_v54  ;;  %10739 = vmatprep.subr.bf16.mxu0 %v12895_v55  ;;  %v15555_v54 = vld [vmem:[%s15145_s5 + $0x58] sm:$0xff]  ;;  %v12971_v55 = vld [vmem:[%s15162_s27 + $0xa14] ss:$8 sps:$4 sm:$0xff]   ;;  %v11636_v25 = vcombine.high %v15552_v53, %v15552_v53 }
 0x2a6   : > { %10780 = vmatprep.subr.bf16.mxu1 %v12898_v56  ;;  %v10435_v61 = vpop.f32.mrb[0].mxu0  ;;  %v12974_v56 = vld [vmem:[%s15162_s27 + $0xb14] ss:$8 sps:$4 sm:$0xff]   ;;  %v11638_v36 = vcombine.high %v15555_v54, %v15555_v54 }
 0x2a7   : > { %v10476_v62 = vpop.f32.mrb[0].mxu1  ;;  %v10437_v2 = vpop.f32.mrb[1].mxu0 }
 0x2a8   : > { %v15503_v1 = vadd.f32 %v10476_v62, %v10435_v61  ;;  %v10478_v3 = vpop.f32.mrb[1].mxu1  ;;  %v10439_v5 = vpop.f32.mrb[2].mxu0  ;;  %10740 = vmatpush1.bf16.msra.mxu0 %v12893_v57  ;;  %v12969_v57 = vld [vmem:[%s15162_s27 + $0xa10] ss:$8 sps:$4 sm:$0xff]   ;;  %v12975_v61 = vld [vmem:[%s15162_s27 + $0xa20] ss:$8 sps:$4 sm:$0xff]  }
 0x2a9   : > { %v15505_v4 = vadd.f32 %v10478_v3, %v10437_v2  ;;  %v10480_v6 = vpop.f32.mrb[2].mxu1  ;;  %10781 = vmatpush1.bf16.msra.mxu1 %v12896_v58  ;;  %v10440_v7 = vpop.f32.mrb[3].mxu0  ;;  %10741 = vmatprep.subr.bf16.mxu0 %v12901_v59  ;;  %v12972_v58 = vld [vmem:[%s15162_s27 + $0xb10] ss:$8 sps:$4 sm:$0xff]   ;;  %v12977_v59 = vld [vmem:[%s15162_s27 + $0xa24] ss:$8 sps:$4 sm:$0xff]  }
 0x2aa   : > { %v10481_v8 = vpop.f32.mrb[3].mxu1  ;;  %10782 = vmatprep.subr.bf16.mxu1 %v12904_v60  ;;  %v12980_v60 = vld [vmem:[%s15162_s27 + $0xb24] ss:$8 sps:$4 sm:$0xff]   ;;  %v12978_v62 = vld [vmem:[%s15162_s27 + $0xb20] ss:$8 sps:$4 sm:$0xff]  }
 0x2ab   : > { %v12981_v2 = vld [vmem:[%s15162_s27 + $0xa30] ss:$8 sps:$4 sm:$0xff]   ;;  %v12989_v5 = vld [vmem:[%s15162_s27 + $0xa44] ss:$8 sps:$4 sm:$0xff]   ;;  %v12987_v7 = vld [vmem:[%s15162_s27 + $0xa40] ss:$8 sps:$4 sm:$0xff]  }
 0x2ac   : > { %10742 = vmatpush1.bf16.msra.mxu0 %v12899_v63  ;;  %v12983_v63 = vld [vmem:[%s15162_s27 + $0xa34] ss:$8 sps:$4 sm:$0xff]   ;;  %v12984_v3 = vld [vmem:[%s15162_s27 + $0xb30] ss:$8 sps:$4 sm:$0xff]   ;;  %v12992_v6 = vld [vmem:[%s15162_s27 + $0xb44] ss:$8 sps:$4 sm:$0xff]  }
 0x2ad   : > { %10783 = vmatpush1.bf16.msra.mxu1 %v12902_v0  ;;  %10743 = vmatprep.subr.bf16.mxu0 %v12907_v9  ;;  %v12986_v0 = vld [vmem:[%s15162_s27 + $0xb34] ss:$8 sps:$4 sm:$0xff]   ;;  %v12990_v8 = vld [vmem:[%s15162_s27 + $0xb40] ss:$8 sps:$4 sm:$0xff]  }
 0x2ae   : > { %10784 = vmatprep.subr.bf16.mxu1 %v12910_v10  ;;  %v12995_v9 = vld [vmem:[%s15162_s27 + $0xa54] ss:$8 sps:$4 sm:$0xff]  }
 0x2af   : > { %v12998_v10 = vld [vmem:[%s15162_s27 + $0xb54] ss:$8 sps:$4 sm:$0xff]  }
 0x2b0   : > { %10744 = vmatpush1.bf16.msra.mxu0 %v12905_v11  ;;  %v12993_v11 = vld [vmem:[%s15162_s27 + $0xa50] ss:$8 sps:$4 sm:$0xff]  }
 0x2b1   : > { %10785 = vmatpush1.bf16.msra.mxu1 %v12908_v12  ;;  %10745 = vmatprep.subr.bf16.mxu0 %v12913_v13  ;;  %v12996_v12 = vld [vmem:[%s15162_s27 + $0xb50] ss:$8 sps:$4 sm:$0xff]   ;;  %v13001_v13 = vld [vmem:[%s15162_s27 + $0xa64] ss:$8 sps:$4 sm:$0xff]  }
 0x2b2   : > { %10786 = vmatprep.subr.bf16.mxu1 %v12916_v14  ;;  %v13004_v14 = vld [vmem:[%s15162_s27 + $0xb64] ss:$8 sps:$4 sm:$0xff]  }
 0x2b4   : > { %10746 = vmatpush1.bf16.msra.mxu0 %v12911_v15 }
 0x2b5   : > { %10787 = vmatpush1.bf16.msra.mxu1 %v12914_v16  ;;  %10747 = vmatprep.subr.bf16.mxu0 %v12919_v17  ;;  %v12999_v17 = vld [vmem:[%s15162_s27 + $0xa60] ss:$8 sps:$4 sm:$0xff]  }
 0x2b6   : > { %10788 = vmatprep.subr.bf16.mxu1 %v12922_v18  ;;  %v13002_v18 = vld [vmem:[%s15162_s27 + $0xb60] ss:$8 sps:$4 sm:$0xff]  }
 0x2b8   : > { %10748 = vmatpush1.bf16.msra.mxu0 %v12917_v19 }
 0x2b9   : > { %10789 = vmatpush1.bf16.msra.mxu1 %v12920_v20  ;;  %10749 = vmatprep.subr.bf16.mxu0 %v12925_v21 }
 0x2ba   : > { %10790 = vmatprep.subr.bf16.mxu1 %v12928_v22 }
 0x2bc   : > { %10750 = vmatpush1.bf16.msra.mxu0 %v12923_v23 }
 0x2bd   : > { %10791 = vmatpush1.bf16.msra.mxu1 %v12926_v24  ;;  %10751 = vmatprep.subr.bf16.mxu0 %v12931_v27 }
 0x2be   : > { %10792 = vmatprep.subr.bf16.mxu1 %v12934_v28 }
 0x2c0   : > { %10752 = vmatpush1.bf16.msra.mxu0 %v12929_v29 }
 0x2c1   : > { %10793 = vmatpush1.bf16.msra.mxu1 %v12932_v30  ;;  %10753 = vmatprep.subr.bf16.mxu0 %v12937_v33  ;;  %v13010_v30 = vld [vmem:[%s15162_s27 + $0xb74] ss:$8 sps:$4 sm:$0xff]  }
 0x2c2   : > { %10794 = vmatprep.subr.bf16.mxu1 %v12940_v34  ;;  %v13008_v34 = vld [vmem:[%s15162_s27 + $0xb70] ss:$8 sps:$4 sm:$0xff]  }
 0x2c4   : > { %10754 = vmatpush1.bf16.msra.mxu0 %v12935_v26  ;;  %v13013_v26 = vld [vmem:[%s15162_s27 + $0xa84] ss:$8 sps:$4 sm:$0xff]  }
 0x2c5   : > { %10795 = vmatpush1.bf16.msra.mxu1 %v12938_v35  ;;  %10755 = vmatprep.subr.bf16.mxu0 %v12943_v37  ;;  %v13016_v35 = vld [vmem:[%s15162_s27 + $0xb84] ss:$8 sps:$4 sm:$0xff]   ;;  %v13011_v37 = vld [vmem:[%s15162_s27 + $0xa80] ss:$8 sps:$4 sm:$0xff]  }
 0x2c6   : > { %10796 = vmatprep.subr.bf16.mxu1 %v12946_v38  ;;  %v13014_v38 = vld [vmem:[%s15162_s27 + $0xb80] ss:$8 sps:$4 sm:$0xff]  }
 0x2c8   : > { %10756 = vmatpush1.bf16.msra.mxu0 %v12941_v39  ;;  %v13019_v39 = vld [vmem:[%s15162_s27 + $0xa94] ss:$8 sps:$4 sm:$0xff]  }
 0x2c9   : > { %10797 = vmatpush1.bf16.msra.mxu1 %v12944_v40  ;;  %10757 = vmatprep.subr.bf16.mxu0 %v12949_v31  ;;  %v13022_v40 = vld [vmem:[%s15162_s27 + $0xb94] ss:$8 sps:$4 sm:$0xff]   ;;  %v13017_v31 = vld [vmem:[%s15162_s27 + $0xa90] ss:$8 sps:$4 sm:$0xff]  }
 0x2ca   : > { %10798 = vmatprep.subr.bf16.mxu1 %v12952_v32  ;;  %v13020_v32 = vld [vmem:[%s15162_s27 + $0xb90] ss:$8 sps:$4 sm:$0xff]  }
 0x2cc   : > { %10758 = vmatpush1.bf16.msra.mxu0 %v12947_v41  ;;  %v13025_v41 = vld [vmem:[%s15162_s27 + $0xaa4] ss:$8 sps:$4 sm:$0xff]  }
 0x2cd   : > { %10799 = vmatpush1.bf16.msra.mxu1 %v12950_v42  ;;  %10759 = vmatprep.subr.bf16.mxu0 %v12955_v43  ;;  %v13028_v42 = vld [vmem:[%s15162_s27 + $0xba4] ss:$8 sps:$4 sm:$0xff]   ;;  %v13023_v43 = vld [vmem:[%s15162_s27 + $0xaa0] ss:$8 sps:$4 sm:$0xff]  }
 0x2ce   : > { %10800 = vmatprep.subr.bf16.mxu1 %v12958_v44  ;;  %v13026_v44 = vld [vmem:[%s15162_s27 + $0xba0] ss:$8 sps:$4 sm:$0xff]  }
 0x2d0   : > { %10760 = vmatpush1.bf16.msra.mxu0 %v12953_v45  ;;  %v13031_v45 = vld [vmem:[%s15162_s27 + $0xab4] ss:$8 sps:$4 sm:$0xff]  }
 0x2d1   : > { %10801 = vmatpush1.bf16.msra.mxu1 %v12956_v46  ;;  %10811 = vmatprep.subr.bf16.mxu0 %v12965_v47  ;;  %v13034_v46 = vld [vmem:[%s15162_s27 + $0xbb4] ss:$8 sps:$4 sm:$0xff]   ;;  %v13029_v47 = vld [vmem:[%s15162_s27 + $0xab0] ss:$8 sps:$4 sm:$0xff]  }
 0x2d2   : > { %10852 = vmatprep.subr.bf16.mxu1 %v12968_v48  ;;  %v13032_v48 = vld [vmem:[%s15162_s27 + $0xbb0] ss:$8 sps:$4 sm:$0xff]  }
 0x2d3   : > { %10762 = vmatmul.mubr.bf16.vlgmr.msra.gmra.mrb[16].mxu0 %v11631_v51  ;;  %v13035_v51 = vld [vmem:[%s15162_s27 + $0xac0] ss:$8 sps:$4 sm:$0xff]  }
 0x2d4   : > { %10803 = vmatmul.mubr.bf16.vlgmr.msra.gmra.mrb[16].mxu1 %v11633_v52  ;;  %10812 = vmatpush1.bf16.msra.mxu0 %v12963_v49  ;;  %v13037_v49 = vld [vmem:[%s15162_s27 + $0xac4] ss:$8 sps:$4 sm:$0xff]   ;;  %v13038_v52 = vld [vmem:[%s15162_s27 + $0xbc0] ss:$8 sps:$4 sm:$0xff]  }
 0x2d5   : > { %10853 = vmatpush1.bf16.msra.mxu1 %v12966_v50  ;;  %10813 = vmatprep.subr.bf16.mxu0 %v12971_v55  ;;  %v13040_v50 = vld [vmem:[%s15162_s27 + $0xbc4] ss:$8 sps:$4 sm:$0xff]   ;;  %v13043_v55 = vld [vmem:[%s15162_s27 + $0xad4] ss:$8 sps:$4 sm:$0xff]  }
 0x2d6   : > { %10854 = vmatprep.subr.bf16.mxu1 %v12974_v56  ;;  %10843 = vmatprep.mubr.bf16.mxu0 %v11636_v25  ;;  %v13046_v56 = vld [vmem:[%s15162_s27 + $0xbd4] ss:$8 sps:$4 sm:$0xff]   ;;  %v13041_v25 = vld [vmem:[%s15162_s27 + $0xad0] ss:$8 sps:$4 sm:$0xff]  }
 0x2d7   : > { %10884 = vmatprep.mubr.bf16.mxu1 %v11638_v36  ;;  %v13044_v36 = vld [vmem:[%s15162_s27 + $0xbd0] ss:$8 sps:$4 sm:$0xff]  }
 0x2d8   : > { %10814 = vmatpush1.bf16.msra.mxu0 %v12969_v57  ;;  %v13049_v57 = vld [vmem:[%s15162_s27 + $0xae4] ss:$8 sps:$4 sm:$0xff]  }
 0x2d9   : > { %10855 = vmatpush1.bf16.msra.mxu1 %v12972_v58  ;;  %10815 = vmatprep.subr.bf16.mxu0 %v12977_v59  ;;  %v13052_v58 = vld [vmem:[%s15162_s27 + $0xbe4] ss:$8 sps:$4 sm:$0xff]   ;;  %v13047_v59 = vld [vmem:[%s15162_s27 + $0xae0] ss:$8 sps:$4 sm:$0xff]  }
 0x2da   : > { %10856 = vmatprep.subr.bf16.mxu1 %v12980_v60  ;;  %v13050_v60 = vld [vmem:[%s15162_s27 + $0xbe0] ss:$8 sps:$4 sm:$0xff]  }
 0x2dc   : > { %10816 = vmatpush1.bf16.msra.mxu0 %v12975_v61  ;;  %v13055_v61 = vld [vmem:[%s15162_s27 + $0xaf4] ss:$8 sps:$4 sm:$0xff]  }
 0x2dd   : > { %10857 = vmatpush1.bf16.msra.mxu1 %v12978_v62  ;;  %10817 = vmatprep.subr.bf16.mxu0 %v12983_v63  ;;  %v13058_v62 = vld [vmem:[%s15162_s27 + $0xbf4] ss:$8 sps:$4 sm:$0xff]   ;;  %v13053_v63 = vld [vmem:[%s15162_s27 + $0xaf0] ss:$8 sps:$4 sm:$0xff]  }
 0x2de   : > { %10858 = vmatprep.subr.bf16.mxu1 %v12986_v0  ;;  %v13056_v0 = vld [vmem:[%s15162_s27 + $0xbf0] ss:$8 sps:$4 sm:$0xff]  }
 0x2e0   : > { %10818 = vmatpush1.bf16.msra.mxu0 %v12981_v2  ;;  %v13065_v2 = vld [vmem:[%s15162_s27 + $0xc04] ss:$8 sps:$4 sm:$0xff]  }
 0x2e1   : > { %10859 = vmatpush1.bf16.msra.mxu1 %v12984_v3  ;;  %10819 = vmatprep.subr.bf16.mxu0 %v12989_v5  ;;  %v13068_v3 = vld [vmem:[%s15162_s27 + $0xd04] ss:$8 sps:$4 sm:$0xff]   ;;  %v13063_v5 = vld [vmem:[%s15162_s27 + $0xc00] ss:$8 sps:$4 sm:$0xff]  }
 0x2e2   : > { %10860 = vmatprep.subr.bf16.mxu1 %v12992_v6  ;;  %v13066_v6 = vld [vmem:[%s15162_s27 + $0xd00] ss:$8 sps:$4 sm:$0xff]  }
 0x2e4   : > { %10820 = vmatpush1.bf16.msra.mxu0 %v12987_v7  ;;  %v11635_v7 = vcombine.low %v15552_v53, %v15552_v53 }
 0x2e5   : > { %10861 = vmatpush1.bf16.msra.mxu1 %v12990_v8  ;;  %10821 = vmatprep.subr.bf16.mxu0 %v12995_v9  ;;  %v11637_v8 = vcombine.low %v15555_v54, %v15555_v54  ;;  %v15636_v9 = vld [vmem:[%s15145_s5 + $0x60] sm:$0xff] }
 0x2e6   : > { %10862 = vmatprep.subr.bf16.mxu1 %v12998_v10  ;;  %v10517_v15 = vpop.f32.mrb[4].mxu0  ;;  %v15639_v10 = vld [vmem:[%s15145_s5 + $0x68] sm:$0xff]  ;;  %v11640_v53 = vcombine.high %v15636_v9, %v15636_v9 }
 0x2e7   : > { %v10558_v16 = vpop.f32.mrb[4].mxu1  ;;  %v10518_v19 = vadd.f32 %v10517_v15, %v15503_v1  ;;  %v10519_v20 = vpop.f32.mrb[5].mxu0  ;;  %v13007_v1 = vld [vmem:[%s15162_s27 + $0xa74] ss:$8 sps:$4 sm:$0xff]   ;;  %v11642_v54 = vcombine.high %v15639_v10, %v15639_v10  ;;  %v13077_v15 = vld [vmem:[%s15162_s27 + $0xc24] ss:$8 sps:$4 sm:$0xff]  }
 0x2e8   : > { %v10560_v21 = vpop.f32.mrb[5].mxu1  ;;  %v10520_v22 = vadd.f32 %v10519_v20, %v15505_v4  ;;  %v10521_v23 = vpop.f32.mrb[6].mxu0  ;;  %10822 = vmatpush1.bf16.msra.mxu0 %v12993_v11  ;;  %v13005_v4 = vld [vmem:[%s15162_s27 + $0xa70] ss:$8 sps:$4 sm:$0xff]   ;;  %v13071_v11 = vld [vmem:[%s15162_s27 + $0xc14] ss:$8 sps:$4 sm:$0xff]  }
 0x2e9   : > { %v10562_v24 = vpop.f32.mrb[6].mxu1  ;;  %10863 = vmatpush1.bf16.msra.mxu1 %v12996_v12  ;;  %v15587_v27 = vadd.f32 %v10558_v16, %v10518_v19  ;;  %v10522_v28 = vpop.f32.mrb[7].mxu0  ;;  %10823 = vmatprep.subr.bf16.mxu0 %v13001_v13  ;;  %v13074_v12 = vld [vmem:[%s15162_s27 + $0xd14] ss:$8 sps:$4 sm:$0xff]   ;;  %v13069_v13 = vld [vmem:[%s15162_s27 + $0xc10] ss:$8 sps:$4 sm:$0xff]  }
 0x2ea   : > { %v10563_v29 = vpop.f32.mrb[7].mxu1  ;;  %10864 = vmatprep.subr.bf16.mxu1 %v13004_v14  ;;  %v15591_v33 = vadd.f32 %v10560_v21, %v10520_v22  ;;  %v13072_v14 = vld [vmem:[%s15162_s27 + $0xd10] ss:$8 sps:$4 sm:$0xff]   ;;  %v13080_v16 = vld [vmem:[%s15162_s27 + $0xd24] ss:$8 sps:$4 sm:$0xff]  }
 0x2eb   : > { %v13083_v19 = vld [vmem:[%s15162_s27 + $0xc34] ss:$8 sps:$4 sm:$0xff]   ;;  %v13081_v21 = vld [vmem:[%s15162_s27 + $0xc30] ss:$8 sps:$4 sm:$0xff]   ;;  %v13089_v23 = vld [vmem:[%s15162_s27 + $0xc44] ss:$8 sps:$4 sm:$0xff]  }
 0x2ec   : > { %10824 = vmatpush1.bf16.msra.mxu0 %v12999_v17  ;;  %v13075_v17 = vld [vmem:[%s15162_s27 + $0xc20] ss:$8 sps:$4 sm:$0xff]   ;;  %v13086_v20 = vld [vmem:[%s15162_s27 + $0xd34] ss:$8 sps:$4 sm:$0xff]   ;;  %v13084_v22 = vld [vmem:[%s15162_s27 + $0xd30] ss:$8 sps:$4 sm:$0xff]  }
 0x2ed   : > { %10865 = vmatpush1.bf16.msra.mxu1 %v13002_v18  ;;  %10825 = vmatprep.subr.bf16.mxu0 %v13007_v1  ;;  %v13078_v18 = vld [vmem:[%s15162_s27 + $0xd20] ss:$8 sps:$4 sm:$0xff]   ;;  %v13092_v24 = vld [vmem:[%s15162_s27 + $0xd44] ss:$8 sps:$4 sm:$0xff]   ;;  %v13095_v1 = vld [vmem:[%s15162_s27 + $0xc54] ss:$8 sps:$4 sm:$0xff]  }
 0x2ee   : > { %10866 = vmatprep.subr.bf16.mxu1 %v13010_v30  ;;  %v13087_v28 = vld [vmem:[%s15162_s27 + $0xc40] ss:$8 sps:$4 sm:$0xff]   ;;  %v13098_v30 = vld [vmem:[%s15162_s27 + $0xd54] ss:$8 sps:$4 sm:$0xff]  }
 0x2ef   : > { %v13090_v29 = vld [vmem:[%s15162_s27 + $0xd40] ss:$8 sps:$4 sm:$0xff]  }
 0x2f0   : > { %10826 = vmatpush1.bf16.msra.mxu0 %v13005_v4  ;;  %v13093_v4 = vld [vmem:[%s15162_s27 + $0xc50] ss:$8 sps:$4 sm:$0xff]  }
 0x2f1   : > { %10867 = vmatpush1.bf16.msra.mxu1 %v13008_v34  ;;  %10827 = vmatprep.subr.bf16.mxu0 %v13013_v26  ;;  %v13096_v34 = vld [vmem:[%s15162_s27 + $0xd50] ss:$8 sps:$4 sm:$0xff]   ;;  %v13101_v26 = vld [vmem:[%s15162_s27 + $0xc64] ss:$8 sps:$4 sm:$0xff]  }
 0x2f2   : > { %10868 = vmatprep.subr.bf16.mxu1 %v13016_v35  ;;  %v13104_v35 = vld [vmem:[%s15162_s27 + $0xd64] ss:$8 sps:$4 sm:$0xff]  }
 0x2f4   : > { %10828 = vmatpush1.bf16.msra.mxu0 %v13011_v37 }
 0x2f5   : > { %10869 = vmatpush1.bf16.msra.mxu1 %v13014_v38  ;;  %10829 = vmatprep.subr.bf16.mxu0 %v13019_v39  ;;  %v13099_v39 = vld [vmem:[%s15162_s27 + $0xc60] ss:$8 sps:$4 sm:$0xff]  }
 0x2f6   : > { %10870 = vmatprep.subr.bf16.mxu1 %v13022_v40  ;;  %v13102_v40 = vld [vmem:[%s15162_s27 + $0xd60] ss:$8 sps:$4 sm:$0xff]  }
 0x2f8   : > { %10830 = vmatpush1.bf16.msra.mxu0 %v13017_v31 }
 0x2f9   : > { %10871 = vmatpush1.bf16.msra.mxu1 %v13020_v32  ;;  %10831 = vmatprep.subr.bf16.mxu0 %v13025_v41 }
 0x2fa   : > { %10872 = vmatprep.subr.bf16.mxu1 %v13028_v42 }
 0x2fc   : > { %10832 = vmatpush1.bf16.msra.mxu0 %v13023_v43 }
 0x2fd   : > { %10873 = vmatpush1.bf16.msra.mxu1 %v13026_v44  ;;  %10833 = vmatprep.subr.bf16.mxu0 %v13031_v45 }
 0x2fe   : > { %10874 = vmatprep.subr.bf16.mxu1 %v13034_v46 }
 0x300   : > { %10834 = vmatpush1.bf16.msra.mxu0 %v13029_v47 }
 0x301   : > { %10875 = vmatpush1.bf16.msra.mxu1 %v13032_v48  ;;  %10835 = vmatprep.subr.bf16.mxu0 %v13037_v49  ;;  %v13110_v48 = vld [vmem:[%s15162_s27 + $0xd74] ss:$8 sps:$4 sm:$0xff]  }
 0x302   : > { %10876 = vmatprep.subr.bf16.mxu1 %v13040_v50  ;;  %v13108_v50 = vld [vmem:[%s15162_s27 + $0xd70] ss:$8 sps:$4 sm:$0xff]  }
 0x304   : > { %10836 = vmatpush1.bf16.msra.mxu0 %v13035_v51  ;;  %v13113_v51 = vld [vmem:[%s15162_s27 + $0xc84] ss:$8 sps:$4 sm:$0xff]  }
 0x305   : > { %10877 = vmatpush1.bf16.msra.mxu1 %v13038_v52  ;;  %10837 = vmatprep.subr.bf16.mxu0 %v13043_v55  ;;  %v13116_v52 = vld [vmem:[%s15162_s27 + $0xd84] ss:$8 sps:$4 sm:$0xff]   ;;  %v13111_v55 = vld [vmem:[%s15162_s27 + $0xc80] ss:$8 sps:$4 sm:$0xff]  }
 0x306   : > { %10878 = vmatprep.subr.bf16.mxu1 %v13046_v56  ;;  %v13114_v56 = vld [vmem:[%s15162_s27 + $0xd80] ss:$8 sps:$4 sm:$0xff]  }
 0x308   : > { %10838 = vmatpush1.bf16.msra.mxu0 %v13041_v25  ;;  %v13119_v25 = vld [vmem:[%s15162_s27 + $0xc94] ss:$8 sps:$4 sm:$0xff]  }
 0x309   : > { %10879 = vmatpush1.bf16.msra.mxu1 %v13044_v36  ;;  %10839 = vmatprep.subr.bf16.mxu0 %v13049_v57  ;;  %v13122_v36 = vld [vmem:[%s15162_s27 + $0xd94] ss:$8 sps:$4 sm:$0xff]   ;;  %v13117_v57 = vld [vmem:[%s15162_s27 + $0xc90] ss:$8 sps:$4 sm:$0xff]  }
 0x30a   : > { %10880 = vmatprep.subr.bf16.mxu1 %v13052_v58  ;;  %v13120_v58 = vld [vmem:[%s15162_s27 + $0xd90] ss:$8 sps:$4 sm:$0xff]  }
 0x30c   : > { %10840 = vmatpush1.bf16.msra.mxu0 %v13047_v59  ;;  %v13125_v59 = vld [vmem:[%s15162_s27 + $0xca4] ss:$8 sps:$4 sm:$0xff]  }
 0x30d   : > { %10881 = vmatpush1.bf16.msra.mxu1 %v13050_v60  ;;  %10841 = vmatprep.subr.bf16.mxu0 %v13055_v61  ;;  %v13128_v60 = vld [vmem:[%s15162_s27 + $0xda4] ss:$8 sps:$4 sm:$0xff]   ;;  %v13123_v61 = vld [vmem:[%s15162_s27 + $0xca0] ss:$8 sps:$4 sm:$0xff]  }
 0x30e   : > { %10882 = vmatprep.subr.bf16.mxu1 %v13058_v62  ;;  %v13126_v62 = vld [vmem:[%s15162_s27 + $0xda0] ss:$8 sps:$4 sm:$0xff]  }
 0x310   : > { %10842 = vmatpush1.bf16.msra.mxu0 %v13053_v63  ;;  %v13131_v63 = vld [vmem:[%s15162_s27 + $0xcb4] ss:$8 sps:$4 sm:$0xff]  }
 0x311   : > { %10883 = vmatpush1.bf16.msra.mxu1 %v13056_v0  ;;  %10893 = vmatprep.subr.bf16.mxu0 %v13065_v2  ;;  %v13134_v0 = vld [vmem:[%s15162_s27 + $0xdb4] ss:$8 sps:$4 sm:$0xff]   ;;  %v13129_v2 = vld [vmem:[%s15162_s27 + $0xcb0] ss:$8 sps:$4 sm:$0xff]  }
 0x312   : > { %10934 = vmatprep.subr.bf16.mxu1 %v13068_v3  ;;  %v13132_v3 = vld [vmem:[%s15162_s27 + $0xdb0] ss:$8 sps:$4 sm:$0xff]  }
 0x313   : > { %10844 = vmatmul.mubr.bf16.vlgmr.msra.gmra.mrb[20].mxu0 %v11635_v7  ;;  %v13135_v7 = vld [vmem:[%s15162_s27 + $0xcc0] ss:$8 sps:$4 sm:$0xff]  }
 0x314   : > { %10885 = vmatmul.mubr.bf16.vlgmr.msra.gmra.mrb[20].mxu1 %v11637_v8  ;;  %10894 = vmatpush1.bf16.msra.mxu0 %v13063_v5  ;;  %v13137_v5 = vld [vmem:[%s15162_s27 + $0xcc4] ss:$8 sps:$4 sm:$0xff]   ;;  %v13138_v8 = vld [vmem:[%s15162_s27 + $0xdc0] ss:$8 sps:$4 sm:$0xff]  }
 0x315   : > { %10935 = vmatpush1.bf16.msra.mxu1 %v13066_v6  ;;  %10895 = vmatprep.subr.bf16.mxu0 %v13071_v11  ;;  %v13140_v6 = vld [vmem:[%s15162_s27 + $0xdc4] ss:$8 sps:$4 sm:$0xff]   ;;  %v13143_v11 = vld [vmem:[%s15162_s27 + $0xcd4] ss:$8 sps:$4 sm:$0xff]  }
 0x316   : > { %10936 = vmatprep.subr.bf16.mxu1 %v13074_v12  ;;  %10925 = vmatprep.mubr.bf16.mxu0 %v11640_v53  ;;  %v13146_v12 = vld [vmem:[%s15162_s27 + $0xdd4] ss:$8 sps:$4 sm:$0xff]   ;;  %v13141_v53 = vld [vmem:[%s15162_s27 + $0xcd0] ss:$8 sps:$4 sm:$0xff]  }
 0x317   : > { %10966 = vmatprep.mubr.bf16.mxu1 %v11642_v54  ;;  %v13144_v54 = vld [vmem:[%s15162_s27 + $0xdd0] ss:$8 sps:$4 sm:$0xff]  }
 0x318   : > { %10896 = vmatpush1.bf16.msra.mxu0 %v13069_v13  ;;  %v13149_v13 = vld [vmem:[%s15162_s27 + $0xce4] ss:$8 sps:$4 sm:$0xff]  }
 0x319   : > { %10937 = vmatpush1.bf16.msra.mxu1 %v13072_v14  ;;  %10897 = vmatprep.subr.bf16.mxu0 %v13077_v15  ;;  %v13152_v14 = vld [vmem:[%s15162_s27 + $0xde4] ss:$8 sps:$4 sm:$0xff]   ;;  %v13147_v15 = vld [vmem:[%s15162_s27 + $0xce0] ss:$8 sps:$4 sm:$0xff]  }
 0x31a   : > { %10938 = vmatprep.subr.bf16.mxu1 %v13080_v16  ;;  %v13150_v16 = vld [vmem:[%s15162_s27 + $0xde0] ss:$8 sps:$4 sm:$0xff]  }
 0x31c   : > { %10898 = vmatpush1.bf16.msra.mxu0 %v13075_v17  ;;  %v13155_v17 = vld [vmem:[%s15162_s27 + $0xcf4] ss:$8 sps:$4 sm:$0xff]  }
 0x31d   : > { %10939 = vmatpush1.bf16.msra.mxu1 %v13078_v18  ;;  %10899 = vmatprep.subr.bf16.mxu0 %v13083_v19  ;;  %v13158_v18 = vld [vmem:[%s15162_s27 + $0xdf4] ss:$8 sps:$4 sm:$0xff]   ;;  %v13153_v19 = vld [vmem:[%s15162_s27 + $0xcf0] ss:$8 sps:$4 sm:$0xff]  }
 0x31e   : > { %10940 = vmatprep.subr.bf16.mxu1 %v13086_v20  ;;  %v13156_v20 = vld [vmem:[%s15162_s27 + $0xdf0] ss:$8 sps:$4 sm:$0xff]  }
 0x320   : > { %10900 = vmatpush1.bf16.msra.mxu0 %v13081_v21  ;;  %v13165_v21 = vld [vmem:[%s15162_s27 + $0xe04] ss:$8 sps:$4 sm:$0xff]  }
 0x321   : > { %10941 = vmatpush1.bf16.msra.mxu1 %v13084_v22  ;;  %10901 = vmatprep.subr.bf16.mxu0 %v13089_v23  ;;  %v13168_v22 = vld [vmem:[%s15162_s27 + $0xf04] ss:$8 sps:$4 sm:$0xff]   ;;  %v11639_v23 = vcombine.low %v15636_v9, %v15636_v9 }
 0x322   : > { %10942 = vmatprep.subr.bf16.mxu1 %v13092_v24  ;;  %v11641_v24 = vcombine.low %v15639_v10, %v15639_v10 }
 0x324   : > { %10902 = vmatpush1.bf16.msra.mxu0 %v13087_v28  ;;  %v15718_v28 = vld [vmem:[%s15145_s5 + $0x70] sm:$0xff] }
 0x325   : > { %10943 = vmatpush1.bf16.msra.mxu1 %v13090_v29  ;;  %10903 = vmatprep.subr.bf16.mxu0 %v13095_v1  ;;  %v15721_v29 = vld [vmem:[%s15145_s5 + $0x78] sm:$0xff]  ;;  %v11644_v9 = vcombine.high %v15718_v28, %v15718_v28 }
 0x326   : > { %10944 = vmatprep.subr.bf16.mxu1 %v13098_v30  ;;  %v10599_v37 = vpop.f32.mrb[8].mxu0  ;;  %v13163_v1 = vld [vmem:[%s15162_s27 + $0xe00] ss:$8 sps:$4 sm:$0xff]   ;;  %v11646_v10 = vcombine.high %v15721_v29, %v15721_v29 }
 0x327   : > { %v10640_v38 = vpop.f32.mrb[8].mxu1  ;;  %v10600_v31 = vadd.f32 %v10599_v37, %v15587_v27  ;;  %v10601_v32 = vpop.f32.mrb[9].mxu0  ;;  %v13107_v27 = vld [vmem:[%s15162_s27 + $0xc74] ss:$8 sps:$4 sm:$0xff]   ;;  %v13166_v30 = vld [vmem:[%s15162_s27 + $0xf00] ss:$8 sps:$4 sm:$0xff]  }
 0x328   : > { %v10642_v41 = vpop.f32.mrb[9].mxu1  ;;  %v10602_v42 = vadd.f32 %v10601_v32, %v15591_v33  ;;  %v10603_v43 = vpop.f32.mrb[10].mxu0  ;;  %10904 = vmatpush1.bf16.msra.mxu0 %v13093_v4  ;;  %v13105_v33 = vld [vmem:[%s15162_s27 + $0xc70] ss:$8 sps:$4 sm:$0xff]   ;;  %v13171_v4 = vld [vmem:[%s15162_s27 + $0xe14] ss:$8 sps:$4 sm:$0xff]  }
 0x329   : > { %v10644_v44 = vpop.f32.mrb[10].mxu1  ;;  %10945 = vmatpush1.bf16.msra.mxu1 %v13096_v34  ;;  %v15671_v45 = vadd.f32 %v10640_v38, %v10600_v31  ;;  %v10604_v46 = vpop.f32.mrb[11].mxu0  ;;  %10905 = vmatprep.subr.bf16.mxu0 %v13101_v26  ;;  %v13174_v34 = vld [vmem:[%s15162_s27 + $0xf14] ss:$8 sps:$4 sm:$0xff]   ;;  %v13169_v26 = vld [vmem:[%s15162_s27 + $0xe10] ss:$8 sps:$4 sm:$0xff]  }
 0x32a   : > { %v10645_v47 = vpop.f32.mrb[11].mxu1  ;;  %10946 = vmatprep.subr.bf16.mxu1 %v13104_v35  ;;  %v15675_v49 = vadd.f32 %v10642_v41, %v10602_v42  ;;  %v13172_v35 = vld [vmem:[%s15162_s27 + $0xf10] ss:$8 sps:$4 sm:$0xff]   ;;  %v13177_v37 = vld [vmem:[%s15162_s27 + $0xe24] ss:$8 sps:$4 sm:$0xff]  }
 0x32b   : > { %v13180_v38 = vld [vmem:[%s15162_s27 + $0xf24] ss:$8 sps:$4 sm:$0xff]   ;;  %v13183_v31 = vld [vmem:[%s15162_s27 + $0xe34] ss:$8 sps:$4 sm:$0xff]   ;;  %v13181_v41 = vld [vmem:[%s15162_s27 + $0xe30] ss:$8 sps:$4 sm:$0xff]  }
 0x32c   : > { %10906 = vmatpush1.bf16.msra.mxu0 %v13099_v39  ;;  %v13175_v39 = vld [vmem:[%s15162_s27 + $0xe20] ss:$8 sps:$4 sm:$0xff]   ;;  %v13186_v32 = vld [vmem:[%s15162_s27 + $0xf34] ss:$8 sps:$4 sm:$0xff]   ;;  %v13184_v42 = vld [vmem:[%s15162_s27 + $0xf30] ss:$8 sps:$4 sm:$0xff]  }
 0x32d   : > { %10947 = vmatpush1.bf16.msra.mxu1 %v13102_v40  ;;  %10907 = vmatprep.subr.bf16.mxu0 %v13107_v27  ;;  %v13178_v40 = vld [vmem:[%s15162_s27 + $0xf20] ss:$8 sps:$4 sm:$0xff]   ;;  %v13189_v43 = vld [vmem:[%s15162_s27 + $0xe44] ss:$8 sps:$4 sm:$0xff]   ;;  %v13195_v27 = vld [vmem:[%s15162_s27 + $0xe54] ss:$8 sps:$4 sm:$0xff]  }
 0x32e   : > { %10948 = vmatprep.subr.bf16.mxu1 %v13110_v48  ;;  %v13192_v44 = vld [vmem:[%s15162_s27 + $0xf44] ss:$8 sps:$4 sm:$0xff]   ;;  %v13187_v46 = vld [vmem:[%s15162_s27 + $0xe40] ss:$8 sps:$4 sm:$0xff]   ;;  %v13198_v48 = vld [vmem:[%s15162_s27 + $0xf54] ss:$8 sps:$4 sm:$0xff]  }
 0x32f   : > { %v13190_v47 = vld [vmem:[%s15162_s27 + $0xf40] ss:$8 sps:$4 sm:$0xff]  }
 0x330   : > { %10908 = vmatpush1.bf16.msra.mxu0 %v13105_v33  ;;  %v13193_v33 = vld [vmem:[%s15162_s27 + $0xe50] ss:$8 sps:$4 sm:$0xff]  }
 0x331   : > { %10949 = vmatpush1.bf16.msra.mxu1 %v13108_v50  ;;  %10909 = vmatprep.subr.bf16.mxu0 %v13113_v51  ;;  %v13196_v50 = vld [vmem:[%s15162_s27 + $0xf50] ss:$8 sps:$4 sm:$0xff]   ;;  %v13201_v51 = vld [vmem:[%s15162_s27 + $0xe64] ss:$8 sps:$4 sm:$0xff]  }
 0x332   : > { %10950 = vmatprep.subr.bf16.mxu1 %v13116_v52  ;;  %v13204_v52 = vld [vmem:[%s15162_s27 + $0xf64] ss:$8 sps:$4 sm:$0xff]  }
 0x334   : > { %10910 = vmatpush1.bf16.msra.mxu0 %v13111_v55 }
 0x335   : > { %10951 = vmatpush1.bf16.msra.mxu1 %v13114_v56  ;;  %10911 = vmatprep.subr.bf16.mxu0 %v13119_v25 }
 0x336   : > { %10952 = vmatprep.subr.bf16.mxu1 %v13122_v36 }
 0x338   : > { %10912 = vmatpush1.bf16.msra.mxu0 %v13117_v57 }
 0x339   : > { %10953 = vmatpush1.bf16.msra.mxu1 %v13120_v58  ;;  %10913 = vmatprep.subr.bf16.mxu0 %v13125_v59 }
 0x33a   : > { %10954 = vmatprep.subr.bf16.mxu1 %v13128_v60 }
 0x33c   : > { %10914 = vmatpush1.bf16.msra.mxu0 %v13123_v61  ;;  %v13199_v61 = vld [vmem:[%s15162_s27 + $0xe60] ss:$8 sps:$4 sm:$0xff]  }
 0x33d   : > { %10955 = vmatpush1.bf16.msra.mxu1 %v13126_v62  ;;  %10915 = vmatprep.subr.bf16.mxu0 %v13131_v63  ;;  %v13202_v62 = vld [vmem:[%s15162_s27 + $0xf60] ss:$8 sps:$4 sm:$0xff]  }
 0x33e   : > { %10956 = vmatprep.subr.bf16.mxu1 %v13134_v0 }
 0x340   : > { %10916 = vmatpush1.bf16.msra.mxu0 %v13129_v2 }
 0x341   : > { %10957 = vmatpush1.bf16.msra.mxu1 %v13132_v3  ;;  %10917 = vmatprep.subr.bf16.mxu0 %v13137_v5  ;;  %v13205_v5 = vld [vmem:[%s15162_s27 + $0xe70] ss:$8 sps:$4 sm:$0xff]  }
 0x342   : > { %10958 = vmatprep.subr.bf16.mxu1 %v13140_v6  ;;  %v13208_v6 = vld [vmem:[%s15162_s27 + $0xf70] ss:$8 sps:$4 sm:$0xff]  }
 0x344   : > { %10918 = vmatpush1.bf16.msra.mxu0 %v13135_v7  ;;  %v13213_v7 = vld [vmem:[%s15162_s27 + $0xe84] ss:$8 sps:$4 sm:$0xff]  }
 0x345   : > { %10959 = vmatpush1.bf16.msra.mxu1 %v13138_v8  ;;  %10919 = vmatprep.subr.bf16.mxu0 %v13143_v11  ;;  %v13216_v8 = vld [vmem:[%s15162_s27 + $0xf84] ss:$8 sps:$4 sm:$0xff]   ;;  %v13211_v11 = vld [vmem:[%s15162_s27 + $0xe80] ss:$8 sps:$4 sm:$0xff]  }
 0x346   : > { %10960 = vmatprep.subr.bf16.mxu1 %v13146_v12  ;;  %v13214_v12 = vld [vmem:[%s15162_s27 + $0xf80] ss:$8 sps:$4 sm:$0xff]  }
 0x348   : > { %10920 = vmatpush1.bf16.msra.mxu0 %v13141_v53  ;;  %v13219_v53 = vld [vmem:[%s15162_s27 + $0xe94] ss:$8 sps:$4 sm:$0xff]  }
 0x349   : > { %10961 = vmatpush1.bf16.msra.mxu1 %v13144_v54  ;;  %10921 = vmatprep.subr.bf16.mxu0 %v13149_v13  ;;  %v13222_v54 = vld [vmem:[%s15162_s27 + $0xf94] ss:$8 sps:$4 sm:$0xff]   ;;  %v13217_v13 = vld [vmem:[%s15162_s27 + $0xe90] ss:$8 sps:$4 sm:$0xff]  }
 0x34a   : > { %10962 = vmatprep.subr.bf16.mxu1 %v13152_v14  ;;  %v13220_v14 = vld [vmem:[%s15162_s27 + $0xf90] ss:$8 sps:$4 sm:$0xff]  }
 0x34c   : > { %10922 = vmatpush1.bf16.msra.mxu0 %v13147_v15  ;;  %v13225_v15 = vld [vmem:[%s15162_s27 + $0xea4] ss:$8 sps:$4 sm:$0xff]  }
 0x34d   : > { %10963 = vmatpush1.bf16.msra.mxu1 %v13150_v16  ;;  %10923 = vmatprep.subr.bf16.mxu0 %v13155_v17  ;;  %v13228_v16 = vld [vmem:[%s15162_s27 + $0xfa4] ss:$8 sps:$4 sm:$0xff]   ;;  %v13223_v17 = vld [vmem:[%s15162_s27 + $0xea0] ss:$8 sps:$4 sm:$0xff]  }
 0x34e   : > { %10964 = vmatprep.subr.bf16.mxu1 %v13158_v18  ;;  %v13226_v18 = vld [vmem:[%s15162_s27 + $0xfa0] ss:$8 sps:$4 sm:$0xff]  }
 0x350   : > { %10924 = vmatpush1.bf16.msra.mxu0 %v13153_v19  ;;  %v13231_v19 = vld [vmem:[%s15162_s27 + $0xeb4] ss:$8 sps:$4 sm:$0xff]  }
 0x351   : > { %10965 = vmatpush1.bf16.msra.mxu1 %v13156_v20  ;;  %10975 = vmatprep.subr.bf16.mxu0 %v13165_v21  ;;  %v13234_v20 = vld [vmem:[%s15162_s27 + $0xfb4] ss:$8 sps:$4 sm:$0xff]   ;;  %v13229_v21 = vld [vmem:[%s15162_s27 + $0xeb0] ss:$8 sps:$4 sm:$0xff]  }
 0x352   : > { %11016 = vmatprep.subr.bf16.mxu1 %v13168_v22  ;;  %v13232_v22 = vld [vmem:[%s15162_s27 + $0xfb0] ss:$8 sps:$4 sm:$0xff]  }
 0x353   : > { %10926 = vmatmul.mubr.bf16.vlgmr.msra.gmra.mrb[24].mxu0 %v11639_v23  ;;  %v13237_v23 = vld [vmem:[%s15162_s27 + $0xec4] ss:$8 sps:$4 sm:$0xff]  }
 0x354   : > { %10967 = vmatmul.mubr.bf16.vlgmr.msra.gmra.mrb[24].mxu1 %v11641_v24  ;;  %10976 = vmatpush1.bf16.msra.mxu0 %v13163_v1  ;;  %v13240_v24 = vld [vmem:[%s15162_s27 + $0xfc4] ss:$8 sps:$4 sm:$0xff]   ;;  %v13235_v1 = vld [vmem:[%s15162_s27 + $0xec0] ss:$8 sps:$4 sm:$0xff]  }
 0x355   : > { %11017 = vmatpush1.bf16.msra.mxu1 %v13166_v30  ;;  %10977 = vmatprep.subr.bf16.mxu0 %v13171_v4  ;;  %v13238_v30 = vld [vmem:[%s15162_s27 + $0xfc0] ss:$8 sps:$4 sm:$0xff]   ;;  %v13243_v4 = vld [vmem:[%s15162_s27 + $0xed4] ss:$8 sps:$4 sm:$0xff]  }
 0x356   : > { %11018 = vmatprep.subr.bf16.mxu1 %v13174_v34  ;;  %11007 = vmatprep.mubr.bf16.mxu0 %v11644_v9  ;;  %v13246_v34 = vld [vmem:[%s15162_s27 + $0xfd4] ss:$8 sps:$4 sm:$0xff]   ;;  %v13241_v9 = vld [vmem:[%s15162_s27 + $0xed0] ss:$8 sps:$4 sm:$0xff]  }
 0x357   : > { %11048 = vmatprep.mubr.bf16.mxu1 %v11646_v10  ;;  %v13244_v10 = vld [vmem:[%s15162_s27 + $0xfd0] ss:$8 sps:$4 sm:$0xff]  }
 0x358   : > { %10978 = vmatpush1.bf16.msra.mxu0 %v13169_v26  ;;  %v13249_v26 = vld [vmem:[%s15162_s27 + $0xee4] ss:$8 sps:$4 sm:$0xff]  }
 0x359   : > { %11019 = vmatpush1.bf16.msra.mxu1 %v13172_v35  ;;  %10979 = vmatprep.subr.bf16.mxu0 %v13177_v37  ;;  %v13252_v35 = vld [vmem:[%s15162_s27 + $0xfe4] ss:$8 sps:$4 sm:$0xff]   ;;  %v13247_v37 = vld [vmem:[%s15162_s27 + $0xee0] ss:$8 sps:$4 sm:$0xff]  }
 0x35a   : > { %11020 = vmatprep.subr.bf16.mxu1 %v13180_v38  ;;  %v13250_v38 = vld [vmem:[%s15162_s27 + $0xfe0] ss:$8 sps:$4 sm:$0xff]  }
 0x35c   : > { %10980 = vmatpush1.bf16.msra.mxu0 %v13175_v39  ;;  %v13255_v39 = vld [vmem:[%s15162_s27 + $0xef4] ss:$8 sps:$4 sm:$0xff]  }
 0x35d   : > { %11021 = vmatpush1.bf16.msra.mxu1 %v13178_v40  ;;  %10981 = vmatprep.subr.bf16.mxu0 %v13183_v31  ;;  %v13258_v40 = vld [vmem:[%s15162_s27 + $0xff4] ss:$8 sps:$4 sm:$0xff]   ;;  %v13253_v31 = vld [vmem:[%s15162_s27 + $0xef0] ss:$8 sps:$4 sm:$0xff]  }
 0x35e   : > { %11022 = vmatprep.subr.bf16.mxu1 %v13186_v32  ;;  %v13256_v32 = vld [vmem:[%s15162_s27 + $0xff0] ss:$8 sps:$4 sm:$0xff]  }
 0x360   : > { %10982 = vmatpush1.bf16.msra.mxu0 %v13181_v41  ;;  %v13265_v41 = vld [vmem:[%s15162_s27 + $0x1004] ss:$8 sps:$4 sm:$0xff]  }
 0x361   : > { %11023 = vmatpush1.bf16.msra.mxu1 %v13184_v42  ;;  %10983 = vmatprep.subr.bf16.mxu0 %v13189_v43  ;;  %v13268_v42 = vld [vmem:[%s15162_s27 + $0x1104] ss:$8 sps:$4 sm:$0xff]   ;;  %v11643_v43 = vcombine.low %v15718_v28, %v15718_v28 }
 0x362   : > { %11024 = vmatprep.subr.bf16.mxu1 %v13192_v44  ;;  %v11645_v44 = vcombine.low %v15721_v29, %v15721_v29 }
 0x364   : > { %10984 = vmatpush1.bf16.msra.mxu0 %v13187_v46  ;;  %v15802_v46 = vld [vmem:[%s15145_s5 + $0x80] sm:$0xff] }
 0x365   : > { %11025 = vmatpush1.bf16.msra.mxu1 %v13190_v47  ;;  %10985 = vmatprep.subr.bf16.mxu0 %v13195_v27  ;;  %v15805_v47 = vld [vmem:[%s15145_s5 + $0x88] sm:$0xff]  ;;  %v13263_v27 = vld [vmem:[%s15162_s27 + $0x1000] ss:$8 sps:$4 sm:$0xff]   ;;  %v11648_v28 = vcombine.high %v15802_v46, %v15802_v46 }
 0x366   : > { %11026 = vmatprep.subr.bf16.mxu1 %v13198_v48  ;;  %v10681_v55 = vpop.f32.mrb[12].mxu0  ;;  %v13266_v48 = vld [vmem:[%s15162_s27 + $0x1100] ss:$8 sps:$4 sm:$0xff]   ;;  %v11650_v29 = vcombine.high %v15805_v47, %v15805_v47 }
 0x367   : > { %v10722_v56 = vpop.f32.mrb[12].mxu1  ;;  %v10682_v25 = vadd.f32 %v10681_v55, %v15671_v45  ;;  %v10683_v36 = vpop.f32.mrb[13].mxu0  ;;  %v13207_v45 = vld [vmem:[%s15162_s27 + $0xe74] ss:$8 sps:$4 sm:$0xff]   ;;  %v13277_v55 = vld [vmem:[%s15162_s27 + $0x1024] ss:$8 sps:$4 sm:$0xff]  }
 0x368   : > { %v10724_v57 = vpop.f32.mrb[13].mxu1  ;;  %v10684_v58 = vadd.f32 %v10683_v36, %v15675_v49  ;;  %v10685_v59 = vpop.f32.mrb[14].mxu0  ;;  %10986 = vmatpush1.bf16.msra.mxu0 %v13193_v33  ;;  %v13210_v49 = vld [vmem:[%s15162_s27 + $0xf74] ss:$8 sps:$4 sm:$0xff]   ;;  %v13278_v36 = vld [vmem:[%s15162_s27 + $0x1120] ss:$8 sps:$4 sm:$0xff]  }
 0x369   : > { %v10726_v60 = vpop.f32.mrb[14].mxu1  ;;  %11027 = vmatpush1.bf16.msra.mxu1 %v13196_v50  ;;  %v15755_v63 = vadd.f32 %v10722_v56, %v10682_v25  ;;  %v10686_v0 = vpop.f32.mrb[15].mxu0  ;;  %10987 = vmatprep.subr.bf16.mxu0 %v13201_v51  ;;  %v13271_v33 = vld [vmem:[%s15162_s27 + $0x1014] ss:$8 sps:$4 sm:$0xff]   ;;  %v13269_v51 = vld [vmem:[%s15162_s27 + $0x1010] ss:$8 sps:$4 sm:$0xff]  }
 0x36a   : > { %v10727_v2 = vpop.f32.mrb[15].mxu1  ;;  %11028 = vmatprep.subr.bf16.mxu1 %v13204_v52  ;;  %v15759_v3 = vadd.f32 %v10724_v57, %v10684_v58  ;;  %v13274_v50 = vld [vmem:[%s15162_s27 + $0x1114] ss:$8 sps:$4 sm:$0xff]   ;;  %v13272_v52 = vld [vmem:[%s15162_s27 + $0x1110] ss:$8 sps:$4 sm:$0xff]  }
 0x36b   : > { %v13280_v56 = vld [vmem:[%s15162_s27 + $0x1124] ss:$8 sps:$4 sm:$0xff]   ;;  %v13275_v25 = vld [vmem:[%s15162_s27 + $0x1020] ss:$8 sps:$4 sm:$0xff]   ;;  %v13283_v57 = vld [vmem:[%s15162_s27 + $0x1034] ss:$8 sps:$4 sm:$0xff]  }
 0x36c   : > { %10988 = vmatpush1.bf16.msra.mxu0 %v13199_v61  ;;  %v13286_v58 = vld [vmem:[%s15162_s27 + $0x1134] ss:$8 sps:$4 sm:$0xff]   ;;  %v13281_v59 = vld [vmem:[%s15162_s27 + $0x1030] ss:$8 sps:$4 sm:$0xff]   ;;  %v13289_v61 = vld [vmem:[%s15162_s27 + $0x1044] ss:$8 sps:$4 sm:$0xff]  }
 0x36d   : > { %11029 = vmatpush1.bf16.msra.mxu1 %v13202_v62  ;;  %10989 = vmatprep.subr.bf16.mxu0 %v13207_v45  ;;  %v13284_v60 = vld [vmem:[%s15162_s27 + $0x1130] ss:$8 sps:$4 sm:$0xff]   ;;  %v13292_v62 = vld [vmem:[%s15162_s27 + $0x1144] ss:$8 sps:$4 sm:$0xff]   ;;  %v13287_v0 = vld [vmem:[%s15162_s27 + $0x1040] ss:$8 sps:$4 sm:$0xff]  }
 0x36e   : > { %11030 = vmatprep.subr.bf16.mxu1 %v13210_v49  ;;  %v13290_v2 = vld [vmem:[%s15162_s27 + $0x1140] ss:$8 sps:$4 sm:$0xff]   ;;  %v13295_v45 = vld [vmem:[%s15162_s27 + $0x1054] ss:$8 sps:$4 sm:$0xff]  }
 0x36f   : > { %v13298_v49 = vld [vmem:[%s15162_s27 + $0x1154] ss:$8 sps:$4 sm:$0xff]  }
 0x370   : > { %10990 = vmatpush1.bf16.msra.mxu0 %v13205_v5  ;;  %v13293_v5 = vld [vmem:[%s15162_s27 + $0x1050] ss:$8 sps:$4 sm:$0xff]  }
 0x371   : > { %11031 = vmatpush1.bf16.msra.mxu1 %v13208_v6  ;;  %10991 = vmatprep.subr.bf16.mxu0 %v13213_v7  ;;  %v13296_v6 = vld [vmem:[%s15162_s27 + $0x1150] ss:$8 sps:$4 sm:$0xff]   ;;  %v13301_v7 = vld [vmem:[%s15162_s27 + $0x1064] ss:$8 sps:$4 sm:$0xff]  }
 0x372   : > { %11032 = vmatprep.subr.bf16.mxu1 %v13216_v8  ;;  %v13304_v8 = vld [vmem:[%s15162_s27 + $0x1164] ss:$8 sps:$4 sm:$0xff]  }
 0x374   : > { %10992 = vmatpush1.bf16.msra.mxu0 %v13211_v11 }
 0x375   : > { %11033 = vmatpush1.bf16.msra.mxu1 %v13214_v12  ;;  %10993 = vmatprep.subr.bf16.mxu0 %v13219_v53 }
 0x376   : > { %11034 = vmatprep.subr.bf16.mxu1 %v13222_v54 }
 0x378   : > { %10994 = vmatpush1.bf16.msra.mxu0 %v13217_v13 }
 0x379   : > { %11035 = vmatpush1.bf16.msra.mxu1 %v13220_v14  ;;  %10995 = vmatprep.subr.bf16.mxu0 %v13225_v15 }
 0x37a   : > { %11036 = vmatprep.subr.bf16.mxu1 %v13228_v16 }
 0x37c   : > { %10996 = vmatpush1.bf16.msra.mxu0 %v13223_v17  ;;  %v13299_v17 = vld [vmem:[%s15162_s27 + $0x1060] ss:$8 sps:$4 sm:$0xff]  }
 0x37d   : > { %11037 = vmatpush1.bf16.msra.mxu1 %v13226_v18  ;;  %10997 = vmatprep.subr.bf16.mxu0 %v13231_v19  ;;  %v13302_v18 = vld [vmem:[%s15162_s27 + $0x1160] ss:$8 sps:$4 sm:$0xff]  }
 0x37e   : > { %11038 = vmatprep.subr.bf16.mxu1 %v13234_v20 }
 0x380   : > { %10998 = vmatpush1.bf16.msra.mxu0 %v13229_v21 }
 0x381   : > { %11039 = vmatpush1.bf16.msra.mxu1 %v13232_v22  ;;  %10999 = vmatprep.subr.bf16.mxu0 %v13237_v23  ;;  %v13305_v23 = vld [vmem:[%s15162_s27 + $0x1070] ss:$8 sps:$4 sm:$0xff]  }
 0x382   : > { %11040 = vmatprep.subr.bf16.mxu1 %v13240_v24  ;;  %v13308_v24 = vld [vmem:[%s15162_s27 + $0x1170] ss:$8 sps:$4 sm:$0xff]  }
 0x384   : > { %11000 = vmatpush1.bf16.msra.mxu0 %v13235_v1  ;;  %v13313_v1 = vld [vmem:[%s15162_s27 + $0x1084] ss:$8 sps:$4 sm:$0xff]  }
 0x385   : > { %11041 = vmatpush1.bf16.msra.mxu1 %v13238_v30  ;;  %11001 = vmatprep.subr.bf16.mxu0 %v13243_v4  ;;  %v13316_v30 = vld [vmem:[%s15162_s27 + $0x1184] ss:$8 sps:$4 sm:$0xff]   ;;  %v13311_v4 = vld [vmem:[%s15162_s27 + $0x1080] ss:$8 sps:$4 sm:$0xff]  }
 0x386   : > { %11042 = vmatprep.subr.bf16.mxu1 %v13246_v34  ;;  %v13314_v34 = vld [vmem:[%s15162_s27 + $0x1180] ss:$8 sps:$4 sm:$0xff]  }
 0x388   : > { %11002 = vmatpush1.bf16.msra.mxu0 %v13241_v9  ;;  %v13319_v9 = vld [vmem:[%s15162_s27 + $0x1094] ss:$8 sps:$4 sm:$0xff]  }
 0x389   : > { %11043 = vmatpush1.bf16.msra.mxu1 %v13244_v10  ;;  %11003 = vmatprep.subr.bf16.mxu0 %v13249_v26  ;;  %v13322_v10 = vld [vmem:[%s15162_s27 + $0x1194] ss:$8 sps:$4 sm:$0xff]   ;;  %v13317_v26 = vld [vmem:[%s15162_s27 + $0x1090] ss:$8 sps:$4 sm:$0xff]  }
 0x38a   : > { %11044 = vmatprep.subr.bf16.mxu1 %v13252_v35  ;;  %v13320_v35 = vld [vmem:[%s15162_s27 + $0x1190] ss:$8 sps:$4 sm:$0xff]  }
 0x38c   : > { %11004 = vmatpush1.bf16.msra.mxu0 %v13247_v37  ;;  %v13325_v37 = vld [vmem:[%s15162_s27 + $0x10a4] ss:$8 sps:$4 sm:$0xff]  }
 0x38d   : > { %11045 = vmatpush1.bf16.msra.mxu1 %v13250_v38  ;;  %11005 = vmatprep.subr.bf16.mxu0 %v13255_v39  ;;  %v13328_v38 = vld [vmem:[%s15162_s27 + $0x11a4] ss:$8 sps:$4 sm:$0xff]   ;;  %v13323_v39 = vld [vmem:[%s15162_s27 + $0x10a0] ss:$8 sps:$4 sm:$0xff]  }
 0x38e   : > { %11046 = vmatprep.subr.bf16.mxu1 %v13258_v40  ;;  %v13326_v40 = vld [vmem:[%s15162_s27 + $0x11a0] ss:$8 sps:$4 sm:$0xff]  }
 0x390   : > { %11006 = vmatpush1.bf16.msra.mxu0 %v13253_v31  ;;  %v13331_v31 = vld [vmem:[%s15162_s27 + $0x10b4] ss:$8 sps:$4 sm:$0xff]  }
 0x391   : > { %11047 = vmatpush1.bf16.msra.mxu1 %v13256_v32  ;;  %11057 = vmatprep.subr.bf16.mxu0 %v13265_v41  ;;  %v13334_v32 = vld [vmem:[%s15162_s27 + $0x11b4] ss:$8 sps:$4 sm:$0xff]   ;;  %v13329_v41 = vld [vmem:[%s15162_s27 + $0x10b0] ss:$8 sps:$4 sm:$0xff]  }
 0x392   : > { %11098 = vmatprep.subr.bf16.mxu1 %v13268_v42  ;;  %v13332_v42 = vld [vmem:[%s15162_s27 + $0x11b0] ss:$8 sps:$4 sm:$0xff]  }
 0x393   : > { %11008 = vmatmul.mubr.bf16.vlgmr.msra.gmra.mrb[28].mxu0 %v11643_v43  ;;  %v13337_v43 = vld [vmem:[%s15162_s27 + $0x10c4] ss:$8 sps:$4 sm:$0xff]  }
 0x394   : > { %11049 = vmatmul.mubr.bf16.vlgmr.msra.gmra.mrb[28].mxu1 %v11645_v44  ;;  %11058 = vmatpush1.bf16.msra.mxu0 %v13263_v27  ;;  %v13340_v44 = vld [vmem:[%s15162_s27 + $0x11c4] ss:$8 sps:$4 sm:$0xff]   ;;  %v13335_v27 = vld [vmem:[%s15162_s27 + $0x10c0] ss:$8 sps:$4 sm:$0xff]  }
 0x395   : > { %11099 = vmatpush1.bf16.msra.mxu1 %v13266_v48  ;;  %11059 = vmatprep.subr.bf16.mxu0 %v13271_v33  ;;  %v13338_v48 = vld [vmem:[%s15162_s27 + $0x11c0] ss:$8 sps:$4 sm:$0xff]   ;;  %v13343_v33 = vld [vmem:[%s15162_s27 + $0x10d4] ss:$8 sps:$4 sm:$0xff]  }
 0x396   : > { %11100 = vmatprep.subr.bf16.mxu1 %v13274_v50  ;;  %11089 = vmatprep.mubr.bf16.mxu0 %v11648_v28  ;;  %v13346_v50 = vld [vmem:[%s15162_s27 + $0x11d4] ss:$8 sps:$4 sm:$0xff]   ;;  %v13341_v28 = vld [vmem:[%s15162_s27 + $0x10d0] ss:$8 sps:$4 sm:$0xff]  }
 0x397   : > { %11130 = vmatprep.mubr.bf16.mxu1 %v11650_v29  ;;  %v13344_v29 = vld [vmem:[%s15162_s27 + $0x11d0] ss:$8 sps:$4 sm:$0xff]  }
 0x398   : > { %11060 = vmatpush1.bf16.msra.mxu0 %v13269_v51  ;;  %v13349_v51 = vld [vmem:[%s15162_s27 + $0x10e4] ss:$8 sps:$4 sm:$0xff]  }
 0x399   : > { %11101 = vmatpush1.bf16.msra.mxu1 %v13272_v52  ;;  %11061 = vmatprep.subr.bf16.mxu0 %v13277_v55  ;;  %v13352_v52 = vld [vmem:[%s15162_s27 + $0x11e4] ss:$8 sps:$4 sm:$0xff]   ;;  %v13347_v55 = vld [vmem:[%s15162_s27 + $0x10e0] ss:$8 sps:$4 sm:$0xff]  }
 0x39a   : > { %11102 = vmatprep.subr.bf16.mxu1 %v13280_v56  ;;  %v13350_v56 = vld [vmem:[%s15162_s27 + $0x11e0] ss:$8 sps:$4 sm:$0xff]  }
 0x39c   : > { %11062 = vmatpush1.bf16.msra.mxu0 %v13275_v25  ;;  %v13355_v25 = vld [vmem:[%s15162_s27 + $0x10f4] ss:$8 sps:$4 sm:$0xff]  }
 0x39d   : > { %11103 = vmatpush1.bf16.msra.mxu1 %v13278_v36  ;;  %11063 = vmatprep.subr.bf16.mxu0 %v13283_v57  ;;  %v13358_v36 = vld [vmem:[%s15162_s27 + $0x11f4] ss:$8 sps:$4 sm:$0xff]   ;;  %v13353_v57 = vld [vmem:[%s15162_s27 + $0x10f0] ss:$8 sps:$4 sm:$0xff]  }
 0x39e   : > { %11104 = vmatprep.subr.bf16.mxu1 %v13286_v58  ;;  %v13356_v58 = vld [vmem:[%s15162_s27 + $0x11f0] ss:$8 sps:$4 sm:$0xff]  }
 0x3a0   : > { %11064 = vmatpush1.bf16.msra.mxu0 %v13281_v59  ;;  %v13365_v59 = vld [vmem:[%s15162_s27 + $0x1204] ss:$8 sps:$4 sm:$0xff]  }
 0x3a1   : > { %11105 = vmatpush1.bf16.msra.mxu1 %v13284_v60  ;;  %11065 = vmatprep.subr.bf16.mxu0 %v13289_v61  ;;  %v13368_v60 = vld [vmem:[%s15162_s27 + $0x1304] ss:$8 sps:$4 sm:$0xff]   ;;  %v11647_v61 = vcombine.low %v15802_v46, %v15802_v46 }
 0x3a2   : > { %11106 = vmatprep.subr.bf16.mxu1 %v13292_v62  ;;  %v11649_v62 = vcombine.low %v15805_v47, %v15805_v47 }
 0x3a4   : > { %11066 = vmatpush1.bf16.msra.mxu0 %v13287_v0  ;;  %v15886_v0 = vld [vmem:[%s15145_s5 + $0x90] sm:$0xff] }
 0x3a5   : > { %11107 = vmatpush1.bf16.msra.mxu1 %v13290_v2  ;;  %11067 = vmatprep.subr.bf16.mxu0 %v13295_v45  ;;  %v15889_v2 = vld [vmem:[%s15145_s5 + $0x98] sm:$0xff]  ;;  %v11652_v46 = vcombine.high %v15886_v0, %v15886_v0 }
 0x3a6   : > { %11108 = vmatprep.subr.bf16.mxu1 %v13298_v49  ;;  %v10763_v11 = vpop.f32.mrb[16].mxu0  ;;  %v13363_v45 = vld [vmem:[%s15162_s27 + $0x1200] ss:$8 sps:$4 sm:$0xff]   ;;  %v11654_v47 = vcombine.high %v15889_v2, %v15889_v2 }
 0x3a7   : > { %v10804_v12 = vpop.f32.mrb[16].mxu1  ;;  %v10764_v53 = vadd.f32 %v10763_v11, %v15755_v63  ;;  %v10765_v54 = vpop.f32.mrb[17].mxu0  ;;  %v13307_v63 = vld [vmem:[%s15162_s27 + $0x1074] ss:$8 sps:$4 sm:$0xff]   ;;  %v13366_v49 = vld [vmem:[%s15162_s27 + $0x1300] ss:$8 sps:$4 sm:$0xff]  }
 0x3a8   : > { %v10806_v13 = vpop.f32.mrb[17].mxu1  ;;  %v10766_v14 = vadd.f32 %v10765_v54, %v15759_v3  ;;  %v10767_v15 = vpop.f32.mrb[18].mxu0  ;;  %11068 = vmatpush1.bf16.msra.mxu0 %v13293_v5  ;;  %v13310_v3 = vld [vmem:[%s15162_s27 + $0x1174] ss:$8 sps:$4 sm:$0xff]   ;;  %v13377_v11 = vld [vmem:[%s15162_s27 + $0x1224] ss:$8 sps:$4 sm:$0xff]  }
 0x3a9   : > { %v10808_v16 = vpop.f32.mrb[18].mxu1  ;;  %11109 = vmatpush1.bf16.msra.mxu1 %v13296_v6  ;;  %v15839_v19 = vadd.f32 %v10804_v12, %v10764_v53  ;;  %v10768_v20 = vpop.f32.mrb[19].mxu0  ;;  %11069 = vmatprep.subr.bf16.mxu0 %v13301_v7  ;;  %v13371_v5 = vld [vmem:[%s15162_s27 + $0x1214] ss:$8 sps:$4 sm:$0xff]   ;;  %v13369_v7 = vld [vmem:[%s15162_s27 + $0x1210] ss:$8 sps:$4 sm:$0xff]  }
 0x3aa   : > { %v10809_v21 = vpop.f32.mrb[19].mxu1  ;;  %11110 = vmatprep.subr.bf16.mxu1 %v13304_v8  ;;  %v15843_v22 = vadd.f32 %v10806_v13, %v10766_v14  ;;  %v13374_v6 = vld [vmem:[%s15162_s27 + $0x1314] ss:$8 sps:$4 sm:$0xff]   ;;  %v13372_v8 = vld [vmem:[%s15162_s27 + $0x1310] ss:$8 sps:$4 sm:$0xff]  }
 0x3ab   : > { %v13380_v12 = vld [vmem:[%s15162_s27 + $0x1324] ss:$8 sps:$4 sm:$0xff]   ;;  %v13375_v53 = vld [vmem:[%s15162_s27 + $0x1220] ss:$8 sps:$4 sm:$0xff]   ;;  %v13383_v13 = vld [vmem:[%s15162_s27 + $0x1234] ss:$8 sps:$4 sm:$0xff]  }
 0x3ac   : > { %11070 = vmatpush1.bf16.msra.mxu0 %v13299_v17  ;;  %v13378_v54 = vld [vmem:[%s15162_s27 + $0x1320] ss:$8 sps:$4 sm:$0xff]   ;;  %v13386_v14 = vld [vmem:[%s15162_s27 + $0x1334] ss:$8 sps:$4 sm:$0xff]   ;;  %v13381_v15 = vld [vmem:[%s15162_s27 + $0x1230] ss:$8 sps:$4 sm:$0xff]  }
 0x3ad   : > { %11111 = vmatpush1.bf16.msra.mxu1 %v13302_v18  ;;  %11071 = vmatprep.subr.bf16.mxu0 %v13307_v63  ;;  %v13384_v16 = vld [vmem:[%s15162_s27 + $0x1330] ss:$8 sps:$4 sm:$0xff]   ;;  %v13389_v17 = vld [vmem:[%s15162_s27 + $0x1244] ss:$8 sps:$4 sm:$0xff]   ;;  %v13387_v20 = vld [vmem:[%s15162_s27 + $0x1240] ss:$8 sps:$4 sm:$0xff]  }
 0x3ae   : > { %11112 = vmatprep.subr.bf16.mxu1 %v13310_v3  ;;  %v13392_v18 = vld [vmem:[%s15162_s27 + $0x1344] ss:$8 sps:$4 sm:$0xff]   ;;  %v13390_v21 = vld [vmem:[%s15162_s27 + $0x1340] ss:$8 sps:$4 sm:$0xff]   ;;  %v13395_v63 = vld [vmem:[%s15162_s27 + $0x1254] ss:$8 sps:$4 sm:$0xff]  }
 0x3af   : > { %v13398_v3 = vld [vmem:[%s15162_s27 + $0x1354] ss:$8 sps:$4 sm:$0xff]  }
 0x3b0   : > { %11072 = vmatpush1.bf16.msra.mxu0 %v13305_v23  ;;  %v13393_v23 = vld [vmem:[%s15162_s27 + $0x1250] ss:$8 sps:$4 sm:$0xff]  }
 0x3b1   : > { %11113 = vmatpush1.bf16.msra.mxu1 %v13308_v24  ;;  %11073 = vmatprep.subr.bf16.mxu0 %v13313_v1  ;;  %v13396_v24 = vld [vmem:[%s15162_s27 + $0x1350] ss:$8 sps:$4 sm:$0xff]   ;;  %v13401_v1 = vld [vmem:[%s15162_s27 + $0x1264] ss:$8 sps:$4 sm:$0xff]  }
 0x3b2   : > { %11114 = vmatprep.subr.bf16.mxu1 %v13316_v30  ;;  %v13404_v30 = vld [vmem:[%s15162_s27 + $0x1364] ss:$8 sps:$4 sm:$0xff]  }
 0x3b4   : > { %11074 = vmatpush1.bf16.msra.mxu0 %v13311_v4 }
 0x3b5   : > { %11115 = vmatpush1.bf16.msra.mxu1 %v13314_v34  ;;  %11075 = vmatprep.subr.bf16.mxu0 %v13319_v9 }
 0x3b6   : > { %11116 = vmatprep.subr.bf16.mxu1 %v13322_v10 }
 0x3b8   : > { %11076 = vmatpush1.bf16.msra.mxu0 %v13317_v26 }
 0x3b9   : > { %11117 = vmatpush1.bf16.msra.mxu1 %v13320_v35  ;;  %11077 = vmatprep.subr.bf16.mxu0 %v13325_v37 }
 0x3ba   : > { %11118 = vmatprep.subr.bf16.mxu1 %v13328_v38 }
 0x3bc   : > { %11078 = vmatpush1.bf16.msra.mxu0 %v13323_v39  ;;  %v13399_v39 = vld [vmem:[%s15162_s27 + $0x1260] ss:$8 sps:$4 sm:$0xff]  }
 0x3bd   : > { %11119 = vmatpush1.bf16.msra.mxu1 %v13326_v40  ;;  %11079 = vmatprep.subr.bf16.mxu0 %v13331_v31  ;;  %v13402_v40 = vld [vmem:[%s15162_s27 + $0x1360] ss:$8 sps:$4 sm:$0xff]  }
 0x3be   : > { %11120 = vmatprep.subr.bf16.mxu1 %v13334_v32 }
 0x3c0   : > { %11080 = vmatpush1.bf16.msra.mxu0 %v13329_v41 }
 0x3c1   : > { %11121 = vmatpush1.bf16.msra.mxu1 %v13332_v42  ;;  %11081 = vmatprep.subr.bf16.mxu0 %v13337_v43  ;;  %v13405_v43 = vld [vmem:[%s15162_s27 + $0x1270] ss:$8 sps:$4 sm:$0xff]  }
 0x3c2   : > { %11122 = vmatprep.subr.bf16.mxu1 %v13340_v44  ;;  %v13408_v44 = vld [vmem:[%s15162_s27 + $0x1370] ss:$8 sps:$4 sm:$0xff]  }
 0x3c4   : > { %11082 = vmatpush1.bf16.msra.mxu0 %v13335_v27  ;;  %v13413_v27 = vld [vmem:[%s15162_s27 + $0x1284] ss:$8 sps:$4 sm:$0xff]  }
 0x3c5   : > { %11123 = vmatpush1.bf16.msra.mxu1 %v13338_v48  ;;  %11083 = vmatprep.subr.bf16.mxu0 %v13343_v33  ;;  %v13416_v48 = vld [vmem:[%s15162_s27 + $0x1384] ss:$8 sps:$4 sm:$0xff]   ;;  %v13411_v33 = vld [vmem:[%s15162_s27 + $0x1280] ss:$8 sps:$4 sm:$0xff]  }
 0x3c6   : > { %11124 = vmatprep.subr.bf16.mxu1 %v13346_v50  ;;  %v13414_v50 = vld [vmem:[%s15162_s27 + $0x1380] ss:$8 sps:$4 sm:$0xff]  }
 0x3c8   : > { %11084 = vmatpush1.bf16.msra.mxu0 %v13341_v28  ;;  %v13419_v28 = vld [vmem:[%s15162_s27 + $0x1294] ss:$8 sps:$4 sm:$0xff]  }
 0x3c9   : > { %11125 = vmatpush1.bf16.msra.mxu1 %v13344_v29  ;;  %11085 = vmatprep.subr.bf16.mxu0 %v13349_v51  ;;  %v13422_v29 = vld [vmem:[%s15162_s27 + $0x1394] ss:$8 sps:$4 sm:$0xff]   ;;  %v13417_v51 = vld [vmem:[%s15162_s27 + $0x1290] ss:$8 sps:$4 sm:$0xff]  }
 0x3ca   : > { %11126 = vmatprep.subr.bf16.mxu1 %v13352_v52  ;;  %v13420_v52 = vld [vmem:[%s15162_s27 + $0x1390] ss:$8 sps:$4 sm:$0xff]  }
 0x3cc   : > { %11086 = vmatpush1.bf16.msra.mxu0 %v13347_v55  ;;  %v13425_v55 = vld [vmem:[%s15162_s27 + $0x12a4] ss:$8 sps:$4 sm:$0xff]  }
 0x3cd   : > { %11127 = vmatpush1.bf16.msra.mxu1 %v13350_v56  ;;  %11087 = vmatprep.subr.bf16.mxu0 %v13355_v25  ;;  %v13428_v56 = vld [vmem:[%s15162_s27 + $0x13a4] ss:$8 sps:$4 sm:$0xff]   ;;  %v13423_v25 = vld [vmem:[%s15162_s27 + $0x12a0] ss:$8 sps:$4 sm:$0xff]  }
 0x3ce   : > { %11128 = vmatprep.subr.bf16.mxu1 %v13358_v36  ;;  %v13426_v36 = vld [vmem:[%s15162_s27 + $0x13a0] ss:$8 sps:$4 sm:$0xff]  }
 0x3d0   : > { %11088 = vmatpush1.bf16.msra.mxu0 %v13353_v57  ;;  %v13431_v57 = vld [vmem:[%s15162_s27 + $0x12b4] ss:$8 sps:$4 sm:$0xff]  }
 0x3d1   : > { %11129 = vmatpush1.bf16.msra.mxu1 %v13356_v58  ;;  %11139 = vmatprep.subr.bf16.mxu0 %v13365_v59  ;;  %v13434_v58 = vld [vmem:[%s15162_s27 + $0x13b4] ss:$8 sps:$4 sm:$0xff]   ;;  %v13429_v59 = vld [vmem:[%s15162_s27 + $0x12b0] ss:$8 sps:$4 sm:$0xff]  }
 0x3d2   : > { %11180 = vmatprep.subr.bf16.mxu1 %v13368_v60  ;;  %v13432_v60 = vld [vmem:[%s15162_s27 + $0x13b0] ss:$8 sps:$4 sm:$0xff]  }
 0x3d3   : > { %11090 = vmatmul.mubr.bf16.vlgmr.msra.gmra.mrb[32].mxu0 %v11647_v61  ;;  %v13437_v61 = vld [vmem:[%s15162_s27 + $0x12c4] ss:$8 sps:$4 sm:$0xff]  }
 0x3d4   : > { %11131 = vmatmul.mubr.bf16.vlgmr.msra.gmra.mrb[32].mxu1 %v11649_v62  ;;  %11140 = vmatpush1.bf16.msra.mxu0 %v13363_v45  ;;  %v13440_v62 = vld [vmem:[%s15162_s27 + $0x13c4] ss:$8 sps:$4 sm:$0xff]   ;;  %v13435_v45 = vld [vmem:[%s15162_s27 + $0x12c0] ss:$8 sps:$4 sm:$0xff]  }
 0x3d5   : > { %11181 = vmatpush1.bf16.msra.mxu1 %v13366_v49  ;;  %11141 = vmatprep.subr.bf16.mxu0 %v13371_v5  ;;  %v13438_v49 = vld [vmem:[%s15162_s27 + $0x13c0] ss:$8 sps:$4 sm:$0xff]   ;;  %v13443_v5 = vld [vmem:[%s15162_s27 + $0x12d4] ss:$8 sps:$4 sm:$0xff]  }
 0x3d6   : > { %11182 = vmatprep.subr.bf16.mxu1 %v13374_v6  ;;  %11171 = vmatprep.mubr.bf16.mxu0 %v11652_v46  ;;  %v13446_v6 = vld [vmem:[%s15162_s27 + $0x13d4] ss:$8 sps:$4 sm:$0xff]   ;;  %v13441_v46 = vld [vmem:[%s15162_s27 + $0x12d0] ss:$8 sps:$4 sm:$0xff]  }
 0x3d7   : > { %11212 = vmatprep.mubr.bf16.mxu1 %v11654_v47  ;;  %v13444_v47 = vld [vmem:[%s15162_s27 + $0x13d0] ss:$8 sps:$4 sm:$0xff]  }
 0x3d8   : > { %11142 = vmatpush1.bf16.msra.mxu0 %v13369_v7  ;;  %v13449_v7 = vld [vmem:[%s15162_s27 + $0x12e4] ss:$8 sps:$4 sm:$0xff]  }
 0x3d9   : > { %11183 = vmatpush1.bf16.msra.mxu1 %v13372_v8  ;;  %11143 = vmatprep.subr.bf16.mxu0 %v13377_v11  ;;  %v13452_v8 = vld [vmem:[%s15162_s27 + $0x13e4] ss:$8 sps:$4 sm:$0xff]   ;;  %v13447_v11 = vld [vmem:[%s15162_s27 + $0x12e0] ss:$8 sps:$4 sm:$0xff]  }
 0x3da   : > { %11184 = vmatprep.subr.bf16.mxu1 %v13380_v12  ;;  %v13450_v12 = vld [vmem:[%s15162_s27 + $0x13e0] ss:$8 sps:$4 sm:$0xff]  }
 0x3dc   : > { %11144 = vmatpush1.bf16.msra.mxu0 %v13375_v53  ;;  %v13455_v53 = vld [vmem:[%s15162_s27 + $0x12f4] ss:$8 sps:$4 sm:$0xff]  }
 0x3dd   : > { %11185 = vmatpush1.bf16.msra.mxu1 %v13378_v54  ;;  %11145 = vmatprep.subr.bf16.mxu0 %v13383_v13  ;;  %v13458_v54 = vld [vmem:[%s15162_s27 + $0x13f4] ss:$8 sps:$4 sm:$0xff]   ;;  %v13453_v13 = vld [vmem:[%s15162_s27 + $0x12f0] ss:$8 sps:$4 sm:$0xff]  }
 0x3de   : > { %11186 = vmatprep.subr.bf16.mxu1 %v13386_v14  ;;  %v13456_v14 = vld [vmem:[%s15162_s27 + $0x13f0] ss:$8 sps:$4 sm:$0xff]  }
 0x3e0   : > { %11146 = vmatpush1.bf16.msra.mxu0 %v13381_v15  ;;  %v13465_v15 = vld [vmem:[%s15162_s27 + $0x1404] ss:$8 sps:$4 sm:$0xff]  }
 0x3e1   : > { %11187 = vmatpush1.bf16.msra.mxu1 %v13384_v16  ;;  %11147 = vmatprep.subr.bf16.mxu0 %v13389_v17  ;;  %v13468_v16 = vld [vmem:[%s15162_s27 + $0x1504] ss:$8 sps:$4 sm:$0xff]   ;;  %v11651_v17 = vcombine.low %v15886_v0, %v15886_v0 }
 0x3e2   : > { %11188 = vmatprep.subr.bf16.mxu1 %v13392_v18  ;;  %v11653_v18 = vcombine.low %v15889_v2, %v15889_v2 }
 0x3e4   : > { %11148 = vmatpush1.bf16.msra.mxu0 %v13387_v20  ;;  %v15970_v20 = vld [vmem:[%s15145_s5 + $0xa0] sm:$0xff] }
 0x3e5   : > { %11189 = vmatpush1.bf16.msra.mxu1 %v13390_v21  ;;  %11149 = vmatprep.subr.bf16.mxu0 %v13395_v63  ;;  %v15973_v21 = vld [vmem:[%s15145_s5 + $0xa8] sm:$0xff]  ;;  %v13463_v63 = vld [vmem:[%s15162_s27 + $0x1400] ss:$8 sps:$4 sm:$0xff]   ;;  %v11656_v0 = vcombine.high %v15970_v20, %v15970_v20 }
 0x3e6   : > { %11190 = vmatprep.subr.bf16.mxu1 %v13398_v3  ;;  %v10845_v4 = vpop.f32.mrb[20].mxu0  ;;  %v13466_v3 = vld [vmem:[%s15162_s27 + $0x1500] ss:$8 sps:$4 sm:$0xff]   ;;  %v11658_v2 = vcombine.high %v15973_v21, %v15973_v21 }
 0x3e7   : > { %v10886_v34 = vpop.f32.mrb[20].mxu1  ;;  %v10846_v9 = vadd.f32 %v10845_v4, %v15839_v19  ;;  %v10847_v10 = vpop.f32.mrb[21].mxu0  ;;  %v13407_v19 = vld [vmem:[%s15162_s27 + $0x1274] ss:$8 sps:$4 sm:$0xff]   ;;  %v13477_v4 = vld [vmem:[%s15162_s27 + $0x1424] ss:$8 sps:$4 sm:$0xff]  }
 0x3e8   : > { %v10888_v26 = vpop.f32.mrb[21].mxu1  ;;  %v10848_v35 = vadd.f32 %v10847_v10, %v15843_v22  ;;  %v10849_v37 = vpop.f32.mrb[22].mxu0  ;;  %11150 = vmatpush1.bf16.msra.mxu0 %v13393_v23  ;;  %v13410_v22 = vld [vmem:[%s15162_s27 + $0x1374] ss:$8 sps:$4 sm:$0xff]   ;;  %v13478_v10 = vld [vmem:[%s15162_s27 + $0x1520] ss:$8 sps:$4 sm:$0xff]  }
 0x3e9   : > { %v10890_v38 = vpop.f32.mrb[22].mxu1  ;;  %11191 = vmatpush1.bf16.msra.mxu1 %v13396_v24  ;;  %v15923_v31 = vadd.f32 %v10886_v34, %v10846_v9  ;;  %v10850_v32 = vpop.f32.mrb[23].mxu0  ;;  %11151 = vmatprep.subr.bf16.mxu0 %v13401_v1  ;;  %v13471_v23 = vld [vmem:[%s15162_s27 + $0x1414] ss:$8 sps:$4 sm:$0xff]   ;;  %v13469_v1 = vld [vmem:[%s15162_s27 + $0x1410] ss:$8 sps:$4 sm:$0xff]  }
 0x3ea   : > { %v10891_v41 = vpop.f32.mrb[23].mxu1  ;;  %11192 = vmatprep.subr.bf16.mxu1 %v13404_v30  ;;  %v15927_v42 = vadd.f32 %v10888_v26, %v10848_v35  ;;  %v13474_v24 = vld [vmem:[%s15162_s27 + $0x1514] ss:$8 sps:$4 sm:$0xff]   ;;  %v13472_v30 = vld [vmem:[%s15162_s27 + $0x1510] ss:$8 sps:$4 sm:$0xff]  }
 0x3eb   : > { %v13480_v34 = vld [vmem:[%s15162_s27 + $0x1524] ss:$8 sps:$4 sm:$0xff]   ;;  %v13475_v9 = vld [vmem:[%s15162_s27 + $0x1420] ss:$8 sps:$4 sm:$0xff]   ;;  %v13483_v26 = vld [vmem:[%s15162_s27 + $0x1434] ss:$8 sps:$4 sm:$0xff]  }
 0x3ec   : > { %11152 = vmatpush1.bf16.msra.mxu0 %v13399_v39  ;;  %v13486_v35 = vld [vmem:[%s15162_s27 + $0x1534] ss:$8 sps:$4 sm:$0xff]   ;;  %v13481_v37 = vld [vmem:[%s15162_s27 + $0x1430] ss:$8 sps:$4 sm:$0xff]   ;;  %v13489_v39 = vld [vmem:[%s15162_s27 + $0x1444] ss:$8 sps:$4 sm:$0xff]  }
 0x3ed   : > { %11193 = vmatpush1.bf16.msra.mxu1 %v13402_v40  ;;  %11153 = vmatprep.subr.bf16.mxu0 %v13407_v19  ;;  %v13484_v38 = vld [vmem:[%s15162_s27 + $0x1530] ss:$8 sps:$4 sm:$0xff]   ;;  %v13492_v40 = vld [vmem:[%s15162_s27 + $0x1544] ss:$8 sps:$4 sm:$0xff]   ;;  %v13487_v32 = vld [vmem:[%s15162_s27 + $0x1440] ss:$8 sps:$4 sm:$0xff]  }
 0x3ee   : > { %11194 = vmatprep.subr.bf16.mxu1 %v13410_v22  ;;  %v13490_v41 = vld [vmem:[%s15162_s27 + $0x1540] ss:$8 sps:$4 sm:$0xff]   ;;  %v13495_v19 = vld [vmem:[%s15162_s27 + $0x1454] ss:$8 sps:$4 sm:$0xff]  }
 0x3ef   : > { %v13498_v22 = vld [vmem:[%s15162_s27 + $0x1554] ss:$8 sps:$4 sm:$0xff]  }
 0x3f0   : > { %11154 = vmatpush1.bf16.msra.mxu0 %v13405_v43  ;;  %v13493_v43 = vld [vmem:[%s15162_s27 + $0x1450] ss:$8 sps:$4 sm:$0xff]  }
 0x3f1   : > { %11195 = vmatpush1.bf16.msra.mxu1 %v13408_v44  ;;  %11155 = vmatprep.subr.bf16.mxu0 %v13413_v27  ;;  %v13496_v44 = vld [vmem:[%s15162_s27 + $0x1550] ss:$8 sps:$4 sm:$0xff]   ;;  %v13501_v27 = vld [vmem:[%s15162_s27 + $0x1464] ss:$8 sps:$4 sm:$0xff]  }
 0x3f2   : > { %11196 = vmatprep.subr.bf16.mxu1 %v13416_v48  ;;  %v13504_v48 = vld [vmem:[%s15162_s27 + $0x1564] ss:$8 sps:$4 sm:$0xff]  }
 0x3f4   : > { %11156 = vmatpush1.bf16.msra.mxu0 %v13411_v33 }
 0x3f5   : > { %11197 = vmatpush1.bf16.msra.mxu1 %v13414_v50  ;;  %11157 = vmatprep.subr.bf16.mxu0 %v13419_v28 }
 0x3f6   : > { %11198 = vmatprep.subr.bf16.mxu1 %v13422_v29 }
 0x3f8   : > { %11158 = vmatpush1.bf16.msra.mxu0 %v13417_v51 }
 0x3f9   : > { %11199 = vmatpush1.bf16.msra.mxu1 %v13420_v52  ;;  %11159 = vmatprep.subr.bf16.mxu0 %v13425_v55 }
 0x3fa   : > { %11200 = vmatprep.subr.bf16.mxu1 %v13428_v56 }
 0x3fc   : > { %11160 = vmatpush1.bf16.msra.mxu0 %v13423_v25  ;;  %v13499_v25 = vld [vmem:[%s15162_s27 + $0x1460] ss:$8 sps:$4 sm:$0xff]  }
 0x3fd   : > { %11201 = vmatpush1.bf16.msra.mxu1 %v13426_v36  ;;  %11161 = vmatprep.subr.bf16.mxu0 %v13431_v57  ;;  %v13502_v36 = vld [vmem:[%s15162_s27 + $0x1560] ss:$8 sps:$4 sm:$0xff]  }
 0x3fe   : > { %11202 = vmatprep.subr.bf16.mxu1 %v13434_v58 }
 0x400   : > { %11162 = vmatpush1.bf16.msra.mxu0 %v13429_v59 }
 0x401   : > { %11203 = vmatpush1.bf16.msra.mxu1 %v13432_v60  ;;  %11163 = vmatprep.subr.bf16.mxu0 %v13437_v61  ;;  %v13505_v61 = vld [vmem:[%s15162_s27 + $0x1470] ss:$8 sps:$4 sm:$0xff]  }
 0x402   : > { %11204 = vmatprep.subr.bf16.mxu1 %v13440_v62  ;;  %v13508_v62 = vld [vmem:[%s15162_s27 + $0x1570] ss:$8 sps:$4 sm:$0xff]  }
 0x404   : > { %11164 = vmatpush1.bf16.msra.mxu0 %v13435_v45  ;;  %v13513_v45 = vld [vmem:[%s15162_s27 + $0x1484] ss:$8 sps:$4 sm:$0xff]  }
 0x405   : > { %11205 = vmatpush1.bf16.msra.mxu1 %v13438_v49  ;;  %11165 = vmatprep.subr.bf16.mxu0 %v13443_v5  ;;  %v13516_v49 = vld [vmem:[%s15162_s27 + $0x1584] ss:$8 sps:$4 sm:$0xff]   ;;  %v13511_v5 = vld [vmem:[%s15162_s27 + $0x1480] ss:$8 sps:$4 sm:$0xff]  }
 0x406   : > { %11206 = vmatprep.subr.bf16.mxu1 %v13446_v6  ;;  %v13514_v6 = vld [vmem:[%s15162_s27 + $0x1580] ss:$8 sps:$4 sm:$0xff]  }
 0x408   : > { %11166 = vmatpush1.bf16.msra.mxu0 %v13441_v46  ;;  %v13519_v46 = vld [vmem:[%s15162_s27 + $0x1494] ss:$8 sps:$4 sm:$0xff]  }
 0x409   : > { %11207 = vmatpush1.bf16.msra.mxu1 %v13444_v47  ;;  %11167 = vmatprep.subr.bf16.mxu0 %v13449_v7  ;;  %v13522_v47 = vld [vmem:[%s15162_s27 + $0x1594] ss:$8 sps:$4 sm:$0xff]   ;;  %v13517_v7 = vld [vmem:[%s15162_s27 + $0x1490] ss:$8 sps:$4 sm:$0xff]  }
 0x40a   : > { %11208 = vmatprep.subr.bf16.mxu1 %v13452_v8  ;;  %v13520_v8 = vld [vmem:[%s15162_s27 + $0x1590] ss:$8 sps:$4 sm:$0xff]  }
 0x40c   : > { %11168 = vmatpush1.bf16.msra.mxu0 %v13447_v11  ;;  %v13525_v11 = vld [vmem:[%s15162_s27 + $0x14a4] ss:$8 sps:$4 sm:$0xff]  }
 0x40d   : > { %11209 = vmatpush1.bf16.msra.mxu1 %v13450_v12  ;;  %11169 = vmatprep.subr.bf16.mxu0 %v13455_v53  ;;  %v13528_v12 = vld [vmem:[%s15162_s27 + $0x15a4] ss:$8 sps:$4 sm:$0xff]   ;;  %v13523_v53 = vld [vmem:[%s15162_s27 + $0x14a0] ss:$8 sps:$4 sm:$0xff]  }
 0x40e   : > { %11210 = vmatprep.subr.bf16.mxu1 %v13458_v54  ;;  %v13526_v54 = vld [vmem:[%s15162_s27 + $0x15a0] ss:$8 sps:$4 sm:$0xff]  }
 0x410   : > { %11170 = vmatpush1.bf16.msra.mxu0 %v13453_v13  ;;  %v13531_v13 = vld [vmem:[%s15162_s27 + $0x14b4] ss:$8 sps:$4 sm:$0xff]  }
 0x411   : > { %11211 = vmatpush1.bf16.msra.mxu1 %v13456_v14  ;;  %11221 = vmatprep.subr.bf16.mxu0 %v13465_v15  ;;  %v13534_v14 = vld [vmem:[%s15162_s27 + $0x15b4] ss:$8 sps:$4 sm:$0xff]   ;;  %v13529_v15 = vld [vmem:[%s15162_s27 + $0x14b0] ss:$8 sps:$4 sm:$0xff]  }
 0x412   : > { %11262 = vmatprep.subr.bf16.mxu1 %v13468_v16  ;;  %v13532_v16 = vld [vmem:[%s15162_s27 + $0x15b0] ss:$8 sps:$4 sm:$0xff]  }
 0x413   : > { %11172 = vmatmul.mubr.bf16.vlgmr.msra.gmra.mrb[36].mxu0 %v11651_v17  ;;  %v13537_v17 = vld [vmem:[%s15162_s27 + $0x14c4] ss:$8 sps:$4 sm:$0xff]  }
 0x414   : > { %11213 = vmatmul.mubr.bf16.vlgmr.msra.gmra.mrb[36].mxu1 %v11653_v18  ;;  %11222 = vmatpush1.bf16.msra.mxu0 %v13463_v63  ;;  %v13540_v18 = vld [vmem:[%s15162_s27 + $0x15c4] ss:$8 sps:$4 sm:$0xff]   ;;  %v13535_v63 = vld [vmem:[%s15162_s27 + $0x14c0] ss:$8 sps:$4 sm:$0xff]  }
 0x415   : > { %11263 = vmatpush1.bf16.msra.mxu1 %v13466_v3  ;;  %11223 = vmatprep.subr.bf16.mxu0 %v13471_v23  ;;  %v13538_v3 = vld [vmem:[%s15162_s27 + $0x15c0] ss:$8 sps:$4 sm:$0xff]   ;;  %v13543_v23 = vld [vmem:[%s15162_s27 + $0x14d4] ss:$8 sps:$4 sm:$0xff]  }
 0x416   : > { %11264 = vmatprep.subr.bf16.mxu1 %v13474_v24  ;;  %11253 = vmatprep.mubr.bf16.mxu0 %v11656_v0  ;;  %v13546_v24 = vld [vmem:[%s15162_s27 + $0x15d4] ss:$8 sps:$4 sm:$0xff]   ;;  %v13541_v0 = vld [vmem:[%s15162_s27 + $0x14d0] ss:$8 sps:$4 sm:$0xff]  }
 0x417   : > { %11294 = vmatprep.mubr.bf16.mxu1 %v11658_v2  ;;  %v13544_v2 = vld [vmem:[%s15162_s27 + $0x15d0] ss:$8 sps:$4 sm:$0xff]  }
 0x418   : > { %11224 = vmatpush1.bf16.msra.mxu0 %v13469_v1  ;;  %v13549_v1 = vld [vmem:[%s15162_s27 + $0x14e4] ss:$8 sps:$4 sm:$0xff]  }
 0x419   : > { %11265 = vmatpush1.bf16.msra.mxu1 %v13472_v30  ;;  %11225 = vmatprep.subr.bf16.mxu0 %v13477_v4  ;;  %v13552_v30 = vld [vmem:[%s15162_s27 + $0x15e4] ss:$8 sps:$4 sm:$0xff]   ;;  %v13547_v4 = vld [vmem:[%s15162_s27 + $0x14e0] ss:$8 sps:$4 sm:$0xff]  }
 0x41a   : > { %11266 = vmatprep.subr.bf16.mxu1 %v13480_v34  ;;  %v13550_v34 = vld [vmem:[%s15162_s27 + $0x15e0] ss:$8 sps:$4 sm:$0xff]  }
 0x41c   : > { %11226 = vmatpush1.bf16.msra.mxu0 %v13475_v9  ;;  %v13555_v9 = vld [vmem:[%s15162_s27 + $0x14f4] ss:$8 sps:$4 sm:$0xff]  }
 0x41d   : > { %11267 = vmatpush1.bf16.msra.mxu1 %v13478_v10  ;;  %11227 = vmatprep.subr.bf16.mxu0 %v13483_v26  ;;  %v13558_v10 = vld [vmem:[%s15162_s27 + $0x15f4] ss:$8 sps:$4 sm:$0xff]   ;;  %v13553_v26 = vld [vmem:[%s15162_s27 + $0x14f0] ss:$8 sps:$4 sm:$0xff]  }
 0x41e   : > { %11268 = vmatprep.subr.bf16.mxu1 %v13486_v35  ;;  %v13556_v35 = vld [vmem:[%s15162_s27 + $0x15f0] ss:$8 sps:$4 sm:$0xff]  }
 0x420   : > { %11228 = vmatpush1.bf16.msra.mxu0 %v13481_v37  ;;  %v11655_v37 = vcombine.low %v15970_v20, %v15970_v20 }
 0x421   : > { %11269 = vmatpush1.bf16.msra.mxu1 %v13484_v38  ;;  %11229 = vmatprep.subr.bf16.mxu0 %v13489_v39  ;;  %v11657_v38 = vcombine.low %v15973_v21, %v15973_v21 }
 0x422   : > { %11270 = vmatprep.subr.bf16.mxu1 %v13492_v40 }
 0x424   : > { %11230 = vmatpush1.bf16.msra.mxu0 %v13487_v32 }
 0x425   : > { %11271 = vmatpush1.bf16.msra.mxu1 %v13490_v41  ;;  %11231 = vmatprep.subr.bf16.mxu0 %v13495_v19 }
 0x426   : > { %11272 = vmatprep.subr.bf16.mxu1 %v13498_v22  ;;  %v10927_v33 = vpop.f32.mrb[24].mxu0 }
 0x427   : > { %v10968_v50 = vpop.f32.mrb[24].mxu1  ;;  %v10928_v28 = vadd.f32 %v10927_v33, %v15923_v31  ;;  %v10929_v29 = vpop.f32.mrb[25].mxu0  ;;  %v13507_v31 = vld [vmem:[%s15162_s27 + $0x1474] ss:$8 sps:$4 sm:$0xff]  }
 0x428   : > { %v10970_v51 = vpop.f32.mrb[25].mxu1  ;;  %v10930_v52 = vadd.f32 %v10929_v29, %v15927_v42  ;;  %v10931_v55 = vpop.f32.mrb[26].mxu0  ;;  %11232 = vmatpush1.bf16.msra.mxu0 %v13493_v43  ;;  %v13510_v42 = vld [vmem:[%s15162_s27 + $0x1574] ss:$8 sps:$4 sm:$0xff]  }
 0x429   : > { %v10972_v56 = vpop.f32.mrb[26].mxu1  ;;  %11273 = vmatpush1.bf16.msra.mxu1 %v13496_v44  ;;  %v16007_v57 = vadd.f32 %v10968_v50, %v10928_v28  ;;  %v10932_v58 = vpop.f32.mrb[27].mxu0  ;;  %11233 = vmatprep.subr.bf16.mxu0 %v13501_v27 }
 0x42a   : > { %v10973_v59 = vpop.f32.mrb[27].mxu1  ;;  %11274 = vmatprep.subr.bf16.mxu1 %v13504_v48  ;;  %v16011_v60 = vadd.f32 %v10970_v51, %v10930_v52 }
 0x42c   : > { %11234 = vmatpush1.bf16.msra.mxu0 %v13499_v25 }
 0x42d   : > { %11275 = vmatpush1.bf16.msra.mxu1 %v13502_v36  ;;  %11235 = vmatprep.subr.bf16.mxu0 %v13507_v31 }
 0x42e   : > { %11276 = vmatprep.subr.bf16.mxu1 %v13510_v42 }
 0x430   : > { %11236 = vmatpush1.bf16.msra.mxu0 %v13505_v61 }
 0x431   : > { %11277 = vmatpush1.bf16.msra.mxu1 %v13508_v62  ;;  %11237 = vmatprep.subr.bf16.mxu0 %v13513_v45 }
 0x432   : > { %11278 = vmatprep.subr.bf16.mxu1 %v13516_v49 }
 0x434   : > { %11238 = vmatpush1.bf16.msra.mxu0 %v13511_v5 }
 0x435   : > { %11279 = vmatpush1.bf16.msra.mxu1 %v13514_v6  ;;  %11239 = vmatprep.subr.bf16.mxu0 %v13519_v46 }
 0x436   : > { %11280 = vmatprep.subr.bf16.mxu1 %v13522_v47 }
 0x438   : > { %11240 = vmatpush1.bf16.msra.mxu0 %v13517_v7 }
 0x439   : > { %11281 = vmatpush1.bf16.msra.mxu1 %v13520_v8  ;;  %11241 = vmatprep.subr.bf16.mxu0 %v13525_v11 }
 0x43a   : > { %11282 = vmatprep.subr.bf16.mxu1 %v13528_v12 }
 0x43c   : > { %11242 = vmatpush1.bf16.msra.mxu0 %v13523_v53 }
 0x43d   : > { %11283 = vmatpush1.bf16.msra.mxu1 %v13526_v54  ;;  %11243 = vmatprep.subr.bf16.mxu0 %v13531_v13  ;;  %v5999_v54 = vld [vmem:[#allocation2] sm:$0xff] }
 0x43e   : > { %11284 = vmatprep.subr.bf16.mxu1 %v13534_v14 }
 0x440   : > { %11244 = vmatpush1.bf16.msra.mxu0 %v13529_v15 }
 0x441   : > { %11285 = vmatpush1.bf16.msra.mxu1 %v13532_v16  ;;  %11245 = vmatprep.subr.bf16.mxu0 %v13537_v17  ;;  %v6000_v17 = vld [vmem:[#allocation2 + $0x8] sm:$0xff] }
 0x442   : > { %11286 = vmatprep.subr.bf16.mxu1 %v13540_v18 }
 0x444   : > { %11246 = vmatpush1.bf16.msra.mxu0 %v13535_v63 }
 0x445   : > { %11287 = vmatpush1.bf16.msra.mxu1 %v13538_v3  ;;  %11247 = vmatprep.subr.bf16.mxu0 %v13543_v23 }
 0x446   : > { %11288 = vmatprep.subr.bf16.mxu1 %v13546_v24 }
 0x448   : > { %11248 = vmatpush1.bf16.msra.mxu0 %v13541_v0  ;;  %v13563_v0 = vld [vmem:[%s15154_s11 + $0x40] sm:$0xff] (!%p12363_p1)  }
 0x449   : > { %11289 = vmatpush1.bf16.msra.mxu1 %v13544_v2  ;;  %11249 = vmatprep.subr.bf16.mxu0 %v13549_v1  ;;  %v13564_v2 = vld [vmem:[%s15154_s11] sm:$0xff] (!%p12363_p1)   ;;  %v13565_v1 = vld [vmem:[%s15154_s11 + $0x48] sm:$0xff] (!%p12363_p1)  }
 0x44a   : > { %11290 = vmatprep.subr.bf16.mxu1 %v13552_v30  ;;  %v13566_v30 = vld [vmem:[%s15154_s11 + $0x8] sm:$0xff] (!%p12363_p1)  }
 0x44c   : > { %11250 = vmatpush1.bf16.msra.mxu0 %v13547_v4  ;;  %v13567_v4 = vld [vmem:[%s15154_s11 + $0x50] sm:$0xff] (!%p12363_p1)  }
 0x44d   : > { %11291 = vmatpush1.bf16.msra.mxu1 %v13550_v34  ;;  %11251 = vmatprep.subr.bf16.mxu0 %v13555_v9  ;;  %v13568_v34 = vld [vmem:[%s15154_s11 + $0x10] sm:$0xff] (!%p12363_p1)   ;;  %v13569_v9 = vld [vmem:[%s15154_s11 + $0x58] sm:$0xff] (!%p12363_p1)  }
 0x44e   : > { %11292 = vmatprep.subr.bf16.mxu1 %v13558_v10  ;;  %v13570_v10 = vld [vmem:[%s15154_s11 + $0x18] sm:$0xff] (!%p12363_p1)  }
 0x450   : > { %11252 = vmatpush1.bf16.msra.mxu0 %v13553_v26  ;;  %v13571_v26 = vld [vmem:[%s15154_s11 + $0x60] sm:$0xff] (!%p12363_p1)  }
 0x451   : > { %11293 = vmatpush1.bf16.msra.mxu1 %v13556_v35  ;;  %12383 = vmatprep.subr.bf16.mxu0 (!%p12363_p1), %v13563_v0  ;;  %v13572_v35 = vld [vmem:[%s15154_s11 + $0x20] sm:$0xff] (!%p12363_p1)  }
 0x453   : > { %11254 = vmatmul.mubr.bf16.vlgmr.msra.gmra.mrb[40].mxu0 %v11655_v37  ;;  %v13573_v37 = vld [vmem:[%s15154_s11 + $0x68] sm:$0xff] (!%p12363_p1)  }
 0x454   : > { %11295 = vmatmul.mubr.bf16.vlgmr.msra.gmra.mrb[40].mxu1 %v11657_v38  ;;  %12384 = vmatpush3.bf16.msra.mxu0 (!%p12363_p1), %v13564_v2 }
 0x455   : > { %12385 = vmatprep.subr.bf16.mxu0 (!%p12363_p1), %v13565_v1 }
 0x458   : > { %12386 = vmatpush3.bf16.msra.mxu0 (!%p12363_p1), %v13566_v30 }
 0x459   : > { %12387 = vmatprep.subr.bf16.mxu0 (!%p12363_p1), %v13567_v4 }
 0x45c   : > { %12388 = vmatpush3.bf16.msra.mxu0 (!%p12363_p1), %v13568_v34 }
 0x45d   : > { %12389 = vmatprep.subr.bf16.mxu0 (!%p12363_p1), %v13569_v9 }
 0x460   : > { %12390 = vmatpush3.bf16.msra.mxu0 (!%p12363_p1), %v13570_v10 }
 0x461   : > { %12391 = vmatprep.subr.bf16.mxu0 (!%p12363_p1), %v13571_v26 }
 0x464   : > { %12392 = vmatpush3.bf16.msra.mxu0 (!%p12363_p1), %v13572_v35 }
 0x465   : > { %12393 = vmatprep.subr.bf16.mxu0 (!%p12363_p1), %v13573_v37 }
 0x466   : > { %v11009_v39 = vpop.f32.mrb[28].mxu0 }
 0x467   : > { %v11050_v40 = vpop.f32.mrb[28].mxu1  ;;  %v11010_v32 = vadd.f32 %v11009_v39, %v16007_v57  ;;  %v11011_v41 = vpop.f32.mrb[29].mxu0 }
 0x468   : > { %v11052_v19 = vpop.f32.mrb[29].mxu1  ;;  %v11012_v22 = vadd.f32 %v11011_v41, %v16011_v60  ;;  %v11013_v43 = vpop.f32.mrb[30].mxu0  ;;  %v13576_v41 = vld [vmem:[%s15154_s11 + $0x30] sm:$0xff] (!%p12363_p1)  }
 0x469   : > { %v11054_v44 = vpop.f32.mrb[30].mxu1  ;;  %v11051_v27 = vadd.f32 %v11050_v40, %v11010_v32  ;;  %v11014_v48 = vpop.f32.mrb[31].mxu0  ;;  %v13574_v40 = vld [vmem:[%s15154_s11 + $0x28] sm:$0xff] (!%p12363_p1)   ;;  %v13575_v32 = vld [vmem:[%s15154_s11 + $0x70] sm:$0xff] (!%p12363_p1)   ;;  %v13578_v43 = vld [vmem:[%s15154_s11 + $0x38] sm:$0xff] (!%p12363_p1)  }
 0x46a   : > { %v11055_v20 = vpop.f32.mrb[31].mxu1  ;;  %v11053_v33 = vadd.f32 %v11052_v19, %v11012_v22  ;;  %12394 = vmatpush3.bf16.msra.mxu0 (!%p12363_p1), %v13574_v40  ;;  %v13577_v19 = vld [vmem:[%s15154_s11 + $0x78] sm:$0xff] (!%p12363_p1)  }
 0x46b   : > { %12395 = vmatprep.subr.bf16.mxu0 (!%p12363_p1), %v13575_v32 }
 0x46e   : > { %12396 = vmatpush3.bf16.msra.mxu0 (!%p12363_p1), %v13576_v41 }
 0x46f   : > { %12397 = vmatprep.subr.bf16.mxu0 (!%p12363_p1), %v13577_v19 }
 0x472   : > { %12398 = vmatpush3.bf16.msra.mxu0 (!%p12363_p1), %v13578_v43 }
 0x4a6   : > { %v11091_v50 = vpop.f32.mrb[32].mxu0 }
 0x4a7   : > { %v11132_v21 = vpop.f32.mrb[32].mxu1  ;;  %v11092_v28 = vadd.f32 %v11091_v50, %v11051_v27  ;;  %v11093_v29 = vpop.f32.mrb[33].mxu0 }
 0x4a8   : > { %v11134_v51 = vpop.f32.mrb[33].mxu1  ;;  %v11094_v52 = vadd.f32 %v11093_v29, %v11053_v33  ;;  %v11095_v55 = vpop.f32.mrb[34].mxu0 }
 0x4a9   : > { %v11136_v56 = vpop.f32.mrb[34].mxu1  ;;  %v11133_v25 = vadd.f32 %v11132_v21, %v11092_v28  ;;  %v11096_v36 = vpop.f32.mrb[35].mxu0 }
 0x4aa   : > { %v11137_v57 = vpop.f32.mrb[35].mxu1  ;;  %v11135_v58 = vadd.f32 %v11134_v51, %v11094_v52 }
 0x4e6   : > { %v11173_v59 = vpop.f32.mrb[36].mxu0 }
 0x4e7   : > { %v11214_v31 = vpop.f32.mrb[36].mxu1  ;;  %v11174_v42 = vadd.f32 %v11173_v59, %v11133_v25  ;;  %v11175_v60 = vpop.f32.mrb[37].mxu0 }
 0x4e8   : > { %v11216_v61 = vpop.f32.mrb[37].mxu1  ;;  %v11176_v62 = vadd.f32 %v11175_v60, %v11135_v58  ;;  %v11177_v45 = vpop.f32.mrb[38].mxu0 }
 0x4e9   : > { %v11218_v49 = vpop.f32.mrb[38].mxu1  ;;  %v11215_v5 = vadd.f32 %v11214_v31, %v11174_v42  ;;  %v11178_v6 = vpop.f32.mrb[39].mxu0 }
 0x4ea   : > { %v11219_v46 = vpop.f32.mrb[39].mxu1  ;;  %v11217_v47 = vadd.f32 %v11216_v61, %v11176_v62 }
 0x526   : > { %v11255_v7 = vpop.f32.mrb[40].mxu0 }
 0x527   : > { %v11296_v8 = vpop.f32.mrb[40].mxu1  ;;  %v11256_v11 = vadd.f32 %v11255_v7, %v11215_v5  ;;  %v11257_v12 = vpop.f32.mrb[41].mxu0 }
 0x528   : > { %v11298_v53 = vpop.f32.mrb[41].mxu1  ;;  %v11258_v13 = vadd.f32 %v11257_v12, %v11217_v47  ;;  %v11259_v14 = vpop.f32.mrb[42].mxu0  ;;  %11310 = sbr.rel (%p12363_p1) target bundleno = 1564 (0x61c), region = 96 }
 0x529   : > { %v11300_v15 = vpop.f32.mrb[42].mxu1  ;;  %v11297_v16 = vadd.f32 %v11296_v8, %v11256_v11  ;;  %v11260_v18 = vpop.f32.mrb[43].mxu0 }
 0x52a   : > { %v11301_v63 = vpop.f32.mrb[43].mxu1  ;;  %v11299_v3 = vadd.f32 %v11298_v53, %v11258_v13 }
 0x52b   : > { %v11303_v23 = vadd.f32 %v11297_v16, %v5999_v54 }
 0x52c   : > { %v11304_v24 = vadd.f32 %v11299_v3, %v6000_v17 }
 0x52d   : > { %11305 = vst [vmem:[#allocation2] sm:$0xff] %v11303_v23 }
 0x52e   : > { %11306 = vst [vmem:[#allocation2 + $0x8] sm:$0xff] %v11304_v24 }
 0x534   : > { %v11311_v39 = vld [vmem:[#allocation2] sm:$0xff] }
 0x535   : > { %v11312_v38 = vld [vmem:[#allocation2 + $0x8] sm:$0xff] }
 0x536   : > { %13579 = vtanh.f32 %v11312_v38 }
 0x537   : > { %13581 = vtanh.f32 %v11311_v39 }
 0x540   : > { %v13580_v22 = vpop.eup %13579 }
 0x541   : > { %v13582_v44 = vpop.eup %13581  ;;  %v11316_v27 = vpack.c.bf16 %v13580_v22, %v13580_v22 }
 0x542   : > { %v11315_v48 = vpack.c.bf16 %v13582_v44, %v13582_v44 }
 0x543   : > { %11477 = vmatprep.mubr.bf16.mxu0 %v11316_v27 }
 0x544   : > { %11478 = vmatmul.mubr.bf16.vlgmr.msra.gmra.mrb[0].mxu0 %v11315_v48 }
 0x617   : > { %v12399_v20 = vpop.f32.mrb[0].mxu0 }
 0x618   : > { %v12400_v33 = vpop.f32.mrb[1].mxu0 }
 0x619   : > { %v12401_v50 = vadd.f32 %v12400_v33, %v12399_v20  ;;  %v12402_v21 = vpop.f32.mrb[2].mxu0 }
 0x61a   : > { %v12403_v28 = vpop.f32.mrb[3].mxu0 }
 0x61b   : > { %11485 = vst [vmem:[%s15160_s29] sm:$0xff] %v12401_v50 }
 0x61c PF: > { %s14_s21 = sadd.s32 1, %s13637_s21   ;;  %s16097_s15 = smov %s13617_s16 }
 0x61d   : > { %p11_p2 = scmp.ge.s32.totalorder %s14_s21, 10   ;;  %s16098_s16 = smov %s13715_s28 }
 0x61e   : > { %s16099_s17 = smov %s13629_s19  ;;  %s16100_s18 = smov %s13633_s20 }
 0x61f   : > { %s16101_s19 = smov %s16104_s22  ;;  %s16102_s20 = smov %s16108_s23 }
 0x620   :  { %13 = sbr.rel (!%p11_p2) target bundleno = 4 (0x4), region = 146 }

</bundles_post_ra>
